<compile_context>
chip_gen: v7x
topology: tpu7x:2x2x1
jax: 0.10.0
libtpu: 0.0.40
codegen_flags: <defaults>
</compile_context>

<pallas_src>
import jax
import jax.numpy as jnp
from jax.experimental import pallas as pl
from jax.experimental.pallas import tpu as pltpu

M, K, N = 1234, 888, 1234          # shapes implied by the PyTorch module

TM = 128                            # M tile: 10 steps -> even megacore split on v7x


def _linear_add_relu_kernel(x_ref, w_ref, bv_ref, out_ref):
    """One (TM, N) output stripe: single full-K matmul + fused bias/other + relu."""
    acc = jnp.dot(x_ref[...], w_ref[...], preferred_element_type=jnp.float32)
    out_ref[...] = jnp.maximum(acc + bv_ref[...], 0.0).astype(out_ref.dtype)


@jax.jit
def linear_add_relu(x2, weight_t, bias, other):
    """relu(x2 @ weight_t + bias + other) via a Pallas matmul kernel (1-D M grid)."""
    m, k = x2.shape
    n = weight_t.shape[1]

    # Fuse the two broadcast vectors once (single length-N op).
    bv = (bias + other).reshape(1, n)

    grid = (pl.cdiv(m, TM),)

    cost = pl.CostEstimate(
        flops=2 * m * k * n,
        transcendentals=0,
        bytes_accessed=4 * (m * k + k * n + m * n + n),
    )

    out = pl.pallas_call(
        _linear_add_relu_kernel,
        out_shape=jax.ShapeDtypeStruct((m, n), jnp.float32),
        grid_spec=pl.GridSpec(
            grid=grid,
            in_specs=[
                pl.BlockSpec((TM, k), lambda i: (i, 0)),   # x stripe (full K)
                pl.BlockSpec((k, n), lambda i: (0, 0)),    # W resident in VMEM
                pl.BlockSpec((1, n), lambda i: (0, 0)),    # fused bias + other
            ],
            out_specs=pl.BlockSpec((TM, n), lambda i: (i, 0)),
        ),
        compiler_params=pltpu.CompilerParams(
            dimension_semantics=("parallel",),
        ),
        cost_estimate=cost,
    )(x2, weight_t, bv)

    return out


def reference(x2, weight_t, bias, other):
    return jnp.maximum(x2 @ weight_t + bias + other, 0.0)


if __name__ == "__main__":
    key = jax.random.PRNGKey(0)
    k_x, k_w, k_b, k_o = jax.random.split(key, 4)

    # Deterministic "parameters" (mimic torch Linear default init: U(-1/sqrt(K), 1/sqrt(K)))
    bound = 1.0 / (K ** 0.5)
    weight = jax.random.uniform(k_w, (N, K), jnp.float32, -bound, bound)  # torch layout (out, in)
    bias = jax.random.uniform(k_b, (N,), jnp.float32, -bound, bound)
    other = jax.random.normal(k_o, (N,), jnp.float32)                     # torch.randn(1234)
    x2 = jax.random.normal(k_x, (M, K), jnp.float32)                      # torch.randn(1234, 888)

    weight_t = weight.T  # (K, N) so kernel computes x2 @ W

    out = linear_add_relu(x2, weight_t, bias, other)
    out = jax.block_until_ready(out)

    ref = reference(x2, weight_t, bias, other)
    assert out.shape == (M, N), out.shape
    assert jnp.allclose(out, ref, atol=2e-3, rtol=2e-3), float(jnp.max(jnp.abs(out - ref)))

    print("KERNEL_OK")
</pallas_src>

<mosaic_0001>
module attributes {stable_mosaic.version = 11 : i64} {
  func.func @_linear_add_relu_kernel(%arg0: i32, %arg1: memref<128x888xf32, #tpu.memory_space<vmem>>, %arg2: memref<888x1234xf32, #tpu.memory_space<vmem>>, %arg3: memref<1x1234xf32, #tpu.memory_space<vmem>>, %arg4: memref<128x1234xf32, #tpu.memory_space<vmem>>) attributes {dimension_semantics = [#tpu.dimension_semantics<parallel>], iteration_bounds = array<i64: 10>, scalar_prefetch = 0 : i64, scratch_operands = 0 : i64, tpu.core_type = #tpu.core_type<tc>, window_params = [{transform_indices = @transform_0, window_bounds = array<i64: 128, 888>}, {pipeline_mode = #tpu.pipeline_mode<synchronous>, transform_indices = @transform_1, window_bounds = array<i64: 888, 1234>}, {pipeline_mode = #tpu.pipeline_mode<synchronous>, transform_indices = @transform_2, window_bounds = array<i64: 1, 1234>}, {transform_indices = @transform_3, window_bounds = array<i64: 128, 1234>}]} {
    %c0 = arith.constant 0 : index
    %c0_0 = arith.constant 0 : index
    %0 = vector.load %arg1[%c0, %c0_0] : memref<128x888xf32, #tpu.memory_space<vmem>>, vector<128x888xf32>
    %c0_1 = arith.constant 0 : index
    %c0_2 = arith.constant 0 : index
    %1 = vector.load %arg2[%c0_1, %c0_2] : memref<888x1234xf32, #tpu.memory_space<vmem>>, vector<888x1234xf32>
    %cst = arith.constant dense<0.000000e+00> : vector<128x1234xf32>
    %2 = tpu.matmul %0, %1, %cst {dimension_numbers = #tpu.dot_dimension_numbers<[1], [0], [0], [1], [0, 0, 1, 1], [], []>} : vector<128x888xf32>, vector<888x1234xf32>, vector<128x1234xf32> -> vector<128x1234xf32>
    %c0_3 = arith.constant 0 : index
    %c0_4 = arith.constant 0 : index
    %3 = vector.load %arg3[%c0_3, %c0_4] : memref<1x1234xf32, #tpu.memory_space<vmem>>, vector<1x1234xf32>
    %4 = vector.broadcast %3 : vector<1x1234xf32> to vector<128x1234xf32>
    %5 = arith.addf %2, %4 : vector<128x1234xf32>
    %cst_5 = arith.constant 0.000000e+00 : f32
    %6 = vector.broadcast %cst_5 : f32 to vector<128x1234xf32>
    %7 = arith.maximumf %5, %6 : vector<128x1234xf32>
    %c0_6 = arith.constant 0 : index
    %c0_7 = arith.constant 0 : index
    %8 = vector.load %arg4[%c0_6, %c0_7] : memref<128x1234xf32, #tpu.memory_space<vmem>>, vector<128x1234xf32>
    tpu.vector_store %arg4[%c0_6, %c0_7], %7 {strides = array<i32>} : memref<128x1234xf32, #tpu.memory_space<vmem>>, vector<128x1234xf32>,
    return
  }
  func.func @transform_0(%arg0: i32) -> (i32, i32) {
    %c0_i32 = arith.constant 0 : i32
    %c0_i32_0 = arith.constant 0 : i32
    return %arg0, %c0_i32 : i32, i32
  }
  func.func @transform_1(%arg0: i32) -> (i32, i32) {
    %c0_i32 = arith.constant 0 : i32
    %c0_i32_0 = arith.constant 0 : i32
    %c0_i32_1 = arith.constant 0 : i32
    return %c0_i32, %c0_i32_0 : i32, i32
  }
  func.func @transform_2(%arg0: i32) -> (i32, i32) {
    %c0_i32 = arith.constant 0 : i32
    %c0_i32_0 = arith.constant 0 : i32
    %c0_i32_1 = arith.constant 0 : i32
    return %c0_i32, %c0_i32_0 : i32, i32
  }
  func.func @transform_3(%arg0: i32) -> (i32, i32) {
    %c0_i32 = arith.constant 0 : i32
    %c0_i32_0 = arith.constant 0 : i32
    return %arg0, %c0_i32 : i32, i32
  }
}

</mosaic_0001>

<bundles_post_ra>
// kernel: linear_add_relu.1
= control target key start
LH: loop header
LB: loop body
LE: loop exit
PB: predicated region body
PF: predicated region fallthrough
CT: control target
= control target key end

     0   :  { %8 = vsyncpa [#allocation3], 0  ;;  %s11698_s0 = inlined_call_operand.vmem [shape: f32[1234,888], index: 0, kind: input, shape index: {}]   ;;  %s11699_s1 = inlined_call_operand.vmem [shape: f32[888,1234], index: 1, kind: input, shape index: {}]   ;;  %s11700_s2 = inlined_call_operand.vmem [shape: f32[1,1234], index: 2, kind: input, shape index: {}]   ;;  %s11701_s3 = inlined_call_operand.hbm [shape: f32[1234,1234], index: 3, kind: output, shape index: {}]  }
   0x1   :  { %10 = vsyncpa [#allocation3 + $0x1], 0  ;;  %s7347_s12 = smov 0   ;;  %s7349_s13 = smov 0  }
   0x2   :  { %s7351_s14 = smov 0   ;;  %s7353_s15 = smov 0  }
   0x3 LB: > { %s7368_s16 = sadd.s32 4294967295, %s7321_s15   ;;  %s5155_s17 = sadd.s32 4294967294, %s7321_s15   ;;  %s7321_s15 = sphi %s7353_s15, %s11707_s15   ;;  %s7317_s14 = sphi %s7351_s14, %s11706_s14   ;;  %s7313_s13 = sphi %s7349_s13, %s11705_s13   ;;  %s7309_s12 = sphi %s7347_s12, %s11704_s12  }
   0x4   : > { %s7372_s18 = sadd.s32 1, %s7321_s15   ;;  %s91_s19 = sadd.s32 1, %s7317_s14 }
   0x5   : > { %s88_s20 = ssub.s32 %s7321_s15, %s7372_s18  ;;  %p101_p0 = scmp.ne.s32.totalorder %s7317_s14, %s7313_s13 }
   0x6   : > { %p89_p1 = scmp.eq.s32.totalorder %s88_s20, 0  ;;  %p102_p2 = scmp.eq.s32.totalorder %s7368_s16, 9 }
   0x7   : > { %p107_p3 = scmp.ne.s32.totalorder %s7313_s13, %s7309_s12  ;;  %p108_p4 = scmp.eq.s32.totalorder %s5155_s17, 9 }
   0x8   : > { %s7383_s21 = scalar_select %p89_p1, %s7317_s14, %s91_s19  }
   0x9   : > { %p7385_p5 = por %p102_p2, %p101_p0  ;;  %p7389_p6 = por %p108_p4, %p107_p3 }
   0xa   : > { %p5158_p7 = scmp.ge.s32.totalorder %s7321_s15, 1  ;;  %p152_p8 = scmp.lt.s32.totalorder %s7321_s15, 11 }
   0xc   : > { %p153_p9 = pnand %p5158_p7, %p152_p8 }
   0xd   : > { %v318_v0 = vld [vmem:[%s11699_s1 + $0x8] sm:$0xff] (!%p153_p9)  ;;  %v328_v1 = vld [vmem:[%s11699_s1 + $0x58] sm:$0xff] (!%p153_p9)  ;;  %v317_v5 = vld [vmem:[%s11699_s1] sm:$0xff] (!%p153_p9)  ;;  %s7576_s9 = sshll.u32 (!%p153_p9), %s7368_s16, 4  ;;  %vm1481_vm0 = vcmask (!%p153_p9), 982016   ;;  %s179_s5 = sand.u32 (!%p153_p9), 1, %s7313_s13  }
   0xe   : > { %156 = sbr.rel (%p153_p9) target bundleno = 964 (0x3c4), region = 32  ;;  %v958_v2 = vld [vmem:[%s11699_s1 + $0x1408] sm:$0xff] (!%p153_p9)  ;;  %v5250_v3 = vpack.c.bf16 (!%p153_p9), %v328_v1, %v318_v0  ;;  %v968_v4 = vld [vmem:[%s11699_s1 + $0x1458] sm:$0xff] (!%p153_p9)  ;;  %v327_v6 = vld [vmem:[%s11699_s1 + $0x50] sm:$0xff] (!%p153_p9)  ;;  %p188_p10 = scmp.lt.s32.totalorder (!%p153_p9), %s7576_s9, 154  ;;  %vm4919_vm1 = vcmask (!%p153_p9), 670720  }
   0xf   : > { %v5378_v7 = vpack.c.bf16 (!%p153_p9), %v968_v4, %v958_v2  ;;  %v5252_v8 = vpack.c.bf16 (!%p153_p9), %v327_v6, %v317_v5  ;;  %v957_v9 = vld [vmem:[%s11699_s1 + $0x1400] sm:$0xff] (!%p153_p9)  ;;  %v967_v10 = vld [vmem:[%s11699_s1 + $0x1450] sm:$0xff] (!%p153_p9)  ;;  %v338_v11 = vld [vmem:[%s11699_s1 + $0xa8] sm:$0xff] (!%p153_p9)  ;;  %s9621_s20 = smul.u32 (!%p153_p9), 1280, %s179_s5 }
  0x10   : > { %5251 = vmatprep.subr.bf16.mxu1 (!%p153_p9), %v5250_v3  ;;  %v5380_v12 = vpack.c.bf16 (!%p153_p9), %v967_v10, %v957_v9  ;;  %v348_v13 = vld [vmem:[%s11699_s1 + $0xf8] sm:$0xff] (!%p153_p9)  ;;  %v978_v14 = vld [vmem:[%s11699_s1 + $0x14a8] sm:$0xff] (!%p153_p9)  ;;  %v337_v18 = vld [vmem:[%s11699_s1 + $0xa0] sm:$0xff] (!%p153_p9) }
  0x11   : > { %v988_v15 = vld [vmem:[%s11699_s1 + $0x14f8] sm:$0xff] (!%p153_p9)  ;;  %5379 = vmatprep.subr.bf16.mxu0 (!%p153_p9), %v5378_v7  ;;  %5253 = vmatpush1.bf16.msra.mxu1 (!%p153_p9), %v5252_v8  ;;  %v5254_v16 = vpack.c.bf16 (!%p153_p9), %v348_v13, %v338_v11  ;;  %v347_v19 = vld [vmem:[%s11699_s1 + $0xf0] sm:$0xff] (!%p153_p9)  ;;  %v977_v20 = vld [vmem:[%s11699_s1 + $0x14a0] sm:$0xff] (!%p153_p9)  ;;  %s9662_s28 = scalar_lea.vmem (!%p153_p9), [#allocation2], %s9621_s20 }
  0x12   : > { %v5382_v17 = vpack.c.bf16 (!%p153_p9), %v988_v15, %v978_v14  ;;  %5381 = vmatpush1.bf16.msra.mxu0 (!%p153_p9), %v5380_v12  ;;  %v5256_v21 = vpack.c.bf16 (!%p153_p9), %v347_v19, %v337_v18  ;;  %v987_v22 = vld [vmem:[%s11699_s1 + $0x14f0] sm:$0xff] (!%p153_p9)  ;;  %v358_v23 = vld [vmem:[%s11699_s1 + $0x148] sm:$0xff] (!%p153_p9)  ;;  %v368_v24 = vld [vmem:[%s11699_s1 + $0x198] sm:$0xff] (!%p153_p9) }
  0x13   : > { %5255 = vmatprep.subr.bf16.mxu1 (!%p153_p9), %v5254_v16  ;;  %v5384_v25 = vpack.c.bf16 (!%p153_p9), %v987_v22, %v977_v20  ;;  %v5258_v26 = vpack.c.bf16 (!%p153_p9), %v368_v24, %v358_v23  ;;  %v998_v27 = vld [vmem:[%s11699_s1 + $0x1548] sm:$0xff] (!%p153_p9)  ;;  %v1008_v28 = vld [vmem:[%s11699_s1 + $0x1598] sm:$0xff] (!%p153_p9)  ;;  %v357_v29 = vld [vmem:[%s11699_s1 + $0x140] sm:$0xff] (!%p153_p9) }
  0x14   : > { %5383 = vmatprep.subr.bf16.mxu0 (!%p153_p9), %v5382_v17  ;;  %v5386_v30 = vpack.c.bf16 (!%p153_p9), %v1008_v28, %v998_v27  ;;  %v367_v31 = vld [vmem:[%s11699_s1 + $0x190] sm:$0xff] (!%p153_p9)  ;;  %v997_v32 = vld [vmem:[%s11699_s1 + $0x1540] sm:$0xff] (!%p153_p9)  ;;  %v378_v35 = vld [vmem:[%s11699_s1 + $0x1e8] sm:$0xff] (!%p153_p9) }
  0x15   : > { %v1007_v33 = vld [vmem:[%s11699_s1 + $0x1590] sm:$0xff]  ;;  %5257 = vmatpush1.bf16.msra.mxu1 %v5256_v21  ;;  %v5260_v34 = vpack.c.bf16 %v367_v31, %v357_v29  ;;  %v388_v36 = vld [vmem:[%s11699_s1 + $0x238] sm:$0xff]  ;;  %v1018_v37 = vld [vmem:[%s11699_s1 + $0x15e8] sm:$0xff]  ;;  %s7630_s7 = scalar_select %p188_p10, %s7576_s9, 154 }
  0x16   : > { %5385 = vmatpush1.bf16.msra.mxu0 %v5384_v25  ;;  %5259 = vmatprep.subr.bf16.mxu1 %v5258_v26  ;;  %v5388_v38 = vpack.c.bf16 %v1007_v33, %v997_v32  ;;  %v5262_v39 = vpack.c.bf16 %v388_v36, %v378_v35  ;;  %v1028_v40 = vld [vmem:[%s11699_s1 + $0x1638] sm:$0xff]  ;;  %v377_v41 = vld [vmem:[%s11699_s1 + $0x1e0] sm:$0xff]  ;;  %v387_v42 = vld [vmem:[%s11699_s1 + $0x230] sm:$0xff]  ;;  %s5080_s11 = ssub.s32 (%p7385_p5), 155, %s7576_s9 }
  0x17   : > { %5387 = vmatprep.subr.bf16.mxu0 %v5386_v30  ;;  %v5390_v43 = vpack.c.bf16 %v1028_v40, %v1018_v37  ;;  %v1017_v44 = vld [vmem:[%s11699_s1 + $0x15e0] sm:$0xff]  ;;  %v1027_v45 = vld [vmem:[%s11699_s1 + $0x1630] sm:$0xff]  ;;  %v398_v46 = vld [vmem:[%s11699_s1 + $0x288] sm:$0xff]  ;;  %v5264_v50 = vpack.c.bf16 %v387_v42, %v377_v41  ;;  %s6991_s8 = smul.u32 56, %s7630_s7  ;;  %p5081_p11 = scmp.lt.s32.totalorder (%p7385_p5), %s5080_s11, 16 }
  0x18   : > { %v408_v47 = vld [vmem:[%s11699_s1 + $0x2d8] sm:$0xff]  ;;  %v1038_v48 = vld [vmem:[%s11699_s1 + $0x1688] sm:$0xff]  ;;  %v5392_v51 = vpack.c.bf16 %v1027_v45, %v1017_v44  ;;  %v397_v53 = vld [vmem:[%s11699_s1 + $0x280] sm:$0xff] }
  0x19   : > { %v1048_v49 = vld [vmem:[%s11699_s1 + $0x16d8] sm:$0xff]  ;;  %5261 = vmatpush1.bf16.msra.mxu1 %v5260_v34  ;;  %v5266_v52 = vpack.c.bf16 %v408_v47, %v398_v46  ;;  %v407_v54 = vld [vmem:[%s11699_s1 + $0x2d0] sm:$0xff]  ;;  %v1037_v55 = vld [vmem:[%s11699_s1 + $0x1680] sm:$0xff]  ;;  %s7684_s17 = scalar_lea.vmem %s11698_s0, %s6991_s8 }
  0x1a   : > { %5389 = vmatpush1.bf16.msra.mxu0 %v5388_v38  ;;  %5263 = vmatprep.subr.bf16.mxu1 %v5262_v39  ;;  %v5394_v56 = vpack.c.bf16 %v1048_v49, %v1038_v48  ;;  %v1047_v57 = vld [vmem:[%s11699_s1 + $0x16d0] sm:$0xff]  ;;  %v418_v58 = vld [vmem:[%s11699_s1 + $0x328] sm:$0xff]  ;;  %v428_v59 = vld [vmem:[%s11699_s1 + $0x378] sm:$0xff]  ;;  %v5268_v62 = vpack.c.bf16 %v407_v54, %v397_v53 }
  0x1b   : > { %5391 = vmatprep.subr.bf16.mxu0 %v5390_v43  ;;  %v1058_v60 = vld [vmem:[%s11699_s1 + $0x1728] sm:$0xff]  ;;  %v1068_v61 = vld [vmem:[%s11699_s1 + $0x1778] sm:$0xff]  ;;  %v5396_v63 = vpack.c.bf16 %v1047_v57, %v1037_v55  ;;  %v5270_v0 = vpack.c.bf16 %v428_v59, %v418_v58  ;;  %v417_v1 = vld [vmem:[%s11699_s1 + $0x320] sm:$0xff] }
  0x1c   : > { %v427_v2 = vld [vmem:[%s11699_s1 + $0x370] sm:$0xff]  ;;  %v1057_v3 = vld [vmem:[%s11699_s1 + $0x1720] sm:$0xff]  ;;  %v5398_v4 = vpack.c.bf16 %v1068_v61, %v1058_v60  ;;  %v438_v6 = vld [vmem:[%s11699_s1 + $0x3c8] sm:$0xff] }
  0x1d   : > { %5265 = vmatpush1.bf16.msra.mxu1 %v5264_v50  ;;  %v1067_v5 = vld [vmem:[%s11699_s1 + $0x1770] sm:$0xff]  ;;  %v448_v7 = vld [vmem:[%s11699_s1 + $0x418] sm:$0xff]  ;;  %v1078_v8 = vld [vmem:[%s11699_s1 + $0x17c8] sm:$0xff]  ;;  %v5272_v10 = vpack.c.bf16 %v427_v2, %v417_v1 }
  0x1e   : > { %5393 = vmatpush1.bf16.msra.mxu0 %v5392_v51  ;;  %5267 = vmatprep.subr.bf16.mxu1 %v5266_v52  ;;  %v1088_v9 = vld [vmem:[%s11699_s1 + $0x1818] sm:$0xff]  ;;  %v5400_v11 = vpack.c.bf16 %v1067_v5, %v1057_v3  ;;  %v5274_v12 = vpack.c.bf16 %v448_v7, %v438_v6  ;;  %v437_v13 = vld [vmem:[%s11699_s1 + $0x3c0] sm:$0xff]  ;;  %v447_v14 = vld [vmem:[%s11699_s1 + $0x410] sm:$0xff] }
  0x1f   : > { %5395 = vmatprep.subr.bf16.mxu0 %v5394_v56  ;;  %v1077_v15 = vld [vmem:[%s11699_s1 + $0x17c0] sm:$0xff]  ;;  %v5402_v16 = vpack.c.bf16 %v1088_v9, %v1078_v8  ;;  %v1087_v17 = vld [vmem:[%s11699_s1 + $0x1810] sm:$0xff]  ;;  %v458_v18 = vld [vmem:[%s11699_s1 + $0x468] sm:$0xff]  ;;  %v5276_v22 = vpack.c.bf16 %v447_v14, %v437_v13 }
  0x20   : > { %v468_v19 = vld [vmem:[%s11699_s1 + $0x4b8] sm:$0xff]  ;;  %v1098_v20 = vld [vmem:[%s11699_s1 + $0x1868] sm:$0xff]  ;;  %v5404_v23 = vpack.c.bf16 %v1087_v17, %v1077_v15  ;;  %v457_v25 = vld [vmem:[%s11699_s1 + $0x460] sm:$0xff] }
  0x21   : > { %5269 = vmatpush1.bf16.msra.mxu1 %v5268_v62  ;;  %v1108_v21 = vld [vmem:[%s11699_s1 + $0x18b8] sm:$0xff]  ;;  %v5278_v24 = vpack.c.bf16 %v468_v19, %v458_v18  ;;  %v467_v26 = vld [vmem:[%s11699_s1 + $0x4b0] sm:$0xff]  ;;  %v1097_v27 = vld [vmem:[%s11699_s1 + $0x1860] sm:$0xff] }
  0x22   : > { %5397 = vmatpush1.bf16.msra.mxu0 %v5396_v63  ;;  %5271 = vmatprep.subr.bf16.mxu1 %v5270_v0  ;;  %v5406_v28 = vpack.c.bf16 %v1108_v21, %v1098_v20  ;;  %v1107_v29 = vld [vmem:[%s11699_s1 + $0x18b0] sm:$0xff]  ;;  %v478_v30 = vld [vmem:[%s11699_s1 + $0x508] sm:$0xff]  ;;  %v488_v31 = vld [vmem:[%s11699_s1 + $0x558] sm:$0xff]  ;;  %v5280_v34 = vpack.c.bf16 %v467_v26, %v457_v25 }
  0x23   : > { %5399 = vmatprep.subr.bf16.mxu0 %v5398_v4  ;;  %v1118_v32 = vld [vmem:[%s11699_s1 + $0x1908] sm:$0xff]  ;;  %v1128_v33 = vld [vmem:[%s11699_s1 + $0x1958] sm:$0xff]  ;;  %v5408_v35 = vpack.c.bf16 %v1107_v29, %v1097_v27  ;;  %v5282_v36 = vpack.c.bf16 %v488_v31, %v478_v30  ;;  %v477_v37 = vld [vmem:[%s11699_s1 + $0x500] sm:$0xff] }
  0x24   : > { %v487_v38 = vld [vmem:[%s11699_s1 + $0x550] sm:$0xff]  ;;  %v1117_v39 = vld [vmem:[%s11699_s1 + $0x1900] sm:$0xff]  ;;  %v5410_v40 = vpack.c.bf16 %v1128_v33, %v1118_v32  ;;  %v498_v42 = vld [vmem:[%s11699_s1 + $0x5a8] sm:$0xff] }
  0x25   : > { %5273 = vmatpush1.bf16.msra.mxu1 %v5272_v10  ;;  %v1127_v41 = vld [vmem:[%s11699_s1 + $0x1950] sm:$0xff]  ;;  %v508_v43 = vld [vmem:[%s11699_s1 + $0x5f8] sm:$0xff]  ;;  %v1138_v44 = vld [vmem:[%s11699_s1 + $0x19a8] sm:$0xff]  ;;  %v5284_v46 = vpack.c.bf16 %v487_v38, %v477_v37 }
  0x26   : > { %5401 = vmatpush1.bf16.msra.mxu0 %v5400_v11  ;;  %5275 = vmatprep.subr.bf16.mxu1 %v5274_v12  ;;  %v1148_v45 = vld [vmem:[%s11699_s1 + $0x19f8] sm:$0xff]  ;;  %v5412_v47 = vpack.c.bf16 %v1127_v41, %v1117_v39  ;;  %v5286_v48 = vpack.c.bf16 %v508_v43, %v498_v42  ;;  %v497_v49 = vld [vmem:[%s11699_s1 + $0x5a0] sm:$0xff]  ;;  %v507_v50 = vld [vmem:[%s11699_s1 + $0x5f0] sm:$0xff] }
  0x27   : > { %5403 = vmatprep.subr.bf16.mxu0 %v5402_v16  ;;  %v1137_v51 = vld [vmem:[%s11699_s1 + $0x19a0] sm:$0xff]  ;;  %v5414_v52 = vpack.c.bf16 %v1148_v45, %v1138_v44  ;;  %v1147_v53 = vld [vmem:[%s11699_s1 + $0x19f0] sm:$0xff]  ;;  %v518_v54 = vld [vmem:[%s11699_s1 + $0x648] sm:$0xff]  ;;  %v5288_v58 = vpack.c.bf16 %v507_v50, %v497_v49 }
  0x28   : > { %v528_v55 = vld [vmem:[%s11699_s1 + $0x698] sm:$0xff]  ;;  %v1158_v56 = vld [vmem:[%s11699_s1 + $0x1a48] sm:$0xff]  ;;  %v5416_v59 = vpack.c.bf16 %v1147_v53, %v1137_v51  ;;  %v517_v61 = vld [vmem:[%s11699_s1 + $0x640] sm:$0xff] }
  0x29   : > { %5277 = vmatpush1.bf16.msra.mxu1 %v5276_v22  ;;  %v1168_v57 = vld [vmem:[%s11699_s1 + $0x1a98] sm:$0xff]  ;;  %v5290_v60 = vpack.c.bf16 %v528_v55, %v518_v54  ;;  %v527_v62 = vld [vmem:[%s11699_s1 + $0x690] sm:$0xff]  ;;  %v1157_v63 = vld [vmem:[%s11699_s1 + $0x1a40] sm:$0xff] }
  0x2a   : > { %5405 = vmatpush1.bf16.msra.mxu0 %v5404_v23  ;;  %5279 = vmatprep.subr.bf16.mxu1 %v5278_v24  ;;  %v5418_v0 = vpack.c.bf16 %v1168_v57, %v1158_v56  ;;  %v1167_v1 = vld [vmem:[%s11699_s1 + $0x1a90] sm:$0xff]  ;;  %v538_v2 = vld [vmem:[%s11699_s1 + $0x6e8] sm:$0xff]  ;;  %v548_v3 = vld [vmem:[%s11699_s1 + $0x738] sm:$0xff]  ;;  %v5292_v6 = vpack.c.bf16 %v527_v62, %v517_v61 }
  0x2b   : > { %5407 = vmatprep.subr.bf16.mxu0 %v5406_v28  ;;  %v1178_v4 = vld [vmem:[%s11699_s1 + $0x1ae8] sm:$0xff]  ;;  %v1188_v5 = vld [vmem:[%s11699_s1 + $0x1b38] sm:$0xff]  ;;  %v537_v7 = vld [vmem:[%s11699_s1 + $0x6e0] sm:$0xff]  ;;  %v5420_v8 = vpack.c.bf16 %v1167_v1, %v1157_v63  ;;  %v5294_v9 = vpack.c.bf16 %v548_v3, %v538_v2 }
  0x2c   : > { %v547_v10 = vld [vmem:[%s11699_s1 + $0x730] sm:$0xff]  ;;  %v1177_v11 = vld [vmem:[%s11699_s1 + $0x1ae0] sm:$0xff]  ;;  %v5422_v13 = vpack.c.bf16 %v1188_v5, %v1178_v4  ;;  %v558_v14 = vld [vmem:[%s11699_s1 + $0x788] sm:$0xff] }
  0x2d   : > { %5281 = vmatpush1.bf16.msra.mxu1 %v5280_v34  ;;  %v1187_v12 = vld [vmem:[%s11699_s1 + $0x1b30] sm:$0xff]  ;;  %v568_v15 = vld [vmem:[%s11699_s1 + $0x7d8] sm:$0xff]  ;;  %v206_v16 = vld [vmem:[%s7684_s17 + $0x8] sm:$0xff]  ;;  %v5296_v20 = vpack.c.bf16 %v547_v10, %v537_v7 }
  0x2e   : > { %5409 = vmatpush1.bf16.msra.mxu0 %v5408_v35  ;;  %5283 = vmatprep.subr.bf16.mxu1 %v5282_v36  ;;  %v1198_v17 = vld [vmem:[%s11699_s1 + $0x1b88] sm:$0xff]  ;;  %v1208_v18 = vld [vmem:[%s11699_s1 + $0x1bd8] sm:$0xff]  ;;  %v5424_v21 = vpack.c.bf16 %v1187_v12, %v1177_v11  ;;  %v5298_v22 = vpack.c.bf16 %v568_v15, %v558_v14  ;;  %v557_v23 = vld [vmem:[%s11699_s1 + $0x780] sm:$0xff] }
  0x2f   : > { %5411 = vmatprep.subr.bf16.mxu0 %v5410_v40  ;;  %1594 = vmatprep.mubr.f32.mxu1 %v206_v16  ;;  %v210_v19 = vld [vmem:[%s7684_s17 + $0x28] sm:$0xff]  ;;  %v567_v24 = vld [vmem:[%s11699_s1 + $0x7d0] sm:$0xff]  ;;  %v1197_v25 = vld [vmem:[%s11699_s1 + $0x1b80] sm:$0xff]  ;;  %v5426_v26 = vpack.c.bf16 %v1208_v18, %v1198_v17 }
  0x30   : > { %1916 = vmatprep.mubr.f32.mxu0 %v210_v19  ;;  %v1207_v27 = vld [vmem:[%s11699_s1 + $0x1bd0] sm:$0xff]  ;;  %v578_v28 = vld [vmem:[%s11699_s1 + $0x828] sm:$0xff]  ;;  %v588_v29 = vld [vmem:[%s11699_s1 + $0x878] sm:$0xff]  ;;  %v5300_v32 = vpack.c.bf16 %v567_v24, %v557_v23 }
  0x31   : > { %5285 = vmatpush1.bf16.msra.mxu1 %v5284_v46  ;;  %v1218_v30 = vld [vmem:[%s11699_s1 + $0x1c28] sm:$0xff]  ;;  %v1228_v31 = vld [vmem:[%s11699_s1 + $0x1c78] sm:$0xff]  ;;  %v5428_v33 = vpack.c.bf16 %v1207_v27, %v1197_v25  ;;  %v5302_v34 = vpack.c.bf16 %v588_v29, %v578_v28  ;;  %v577_v35 = vld [vmem:[%s11699_s1 + $0x820] sm:$0xff] }
  0x32   : > { %5413 = vmatpush1.bf16.msra.mxu0 %v5412_v47  ;;  %5287 = vmatprep.subr.bf16.mxu1 %v5286_v48  ;;  %v587_v36 = vld [vmem:[%s11699_s1 + $0x870] sm:$0xff]  ;;  %v1217_v37 = vld [vmem:[%s11699_s1 + $0x1c20] sm:$0xff]  ;;  %v5430_v38 = vpack.c.bf16 %v1228_v31, %v1218_v30  ;;  %v598_v40 = vld [vmem:[%s11699_s1 + $0x8c8] sm:$0xff] }
  0x33   : > { %5415 = vmatprep.subr.bf16.mxu0 %v5414_v52  ;;  %v1227_v39 = vld [vmem:[%s11699_s1 + $0x1c70] sm:$0xff]  ;;  %v608_v41 = vld [vmem:[%s11699_s1 + $0x918] sm:$0xff]  ;;  %v1238_v42 = vld [vmem:[%s11699_s1 + $0x1cc8] sm:$0xff]  ;;  %v5304_v44 = vpack.c.bf16 %v587_v36, %v577_v35 }
  0x34   : > { %v1248_v43 = vld [vmem:[%s11699_s1 + $0x1d18] sm:$0xff]  ;;  %v5432_v45 = vpack.c.bf16 %v1227_v39, %v1217_v37  ;;  %v5306_v46 = vpack.c.bf16 %v608_v41, %v598_v40  ;;  %v597_v47 = vld [vmem:[%s11699_s1 + $0x8c0] sm:$0xff]  ;;  %v607_v48 = vld [vmem:[%s11699_s1 + $0x910] sm:$0xff] }
  0x35   : > { %5289 = vmatpush1.bf16.msra.mxu1 %v5288_v58  ;;  %v1237_v49 = vld [vmem:[%s11699_s1 + $0x1cc0] sm:$0xff]  ;;  %v5434_v50 = vpack.c.bf16 %v1248_v43, %v1238_v42  ;;  %v1247_v51 = vld [vmem:[%s11699_s1 + $0x1d10] sm:$0xff]  ;;  %v618_v52 = vld [vmem:[%s11699_s1 + $0x968] sm:$0xff]  ;;  %v5308_v56 = vpack.c.bf16 %v607_v48, %v597_v47 }
  0x36   : > { %5417 = vmatpush1.bf16.msra.mxu0 %v5416_v59  ;;  %5291 = vmatprep.subr.bf16.mxu1 %v5290_v60  ;;  %v628_v53 = vld [vmem:[%s11699_s1 + $0x9b8] sm:$0xff]  ;;  %v1258_v54 = vld [vmem:[%s11699_s1 + $0x1d68] sm:$0xff]  ;;  %v5436_v57 = vpack.c.bf16 %v1247_v51, %v1237_v49  ;;  %v617_v59 = vld [vmem:[%s11699_s1 + $0x960] sm:$0xff] }
  0x37   : > { %5419 = vmatprep.subr.bf16.mxu0 %v5418_v0  ;;  %v1268_v55 = vld [vmem:[%s11699_s1 + $0x1db8] sm:$0xff]  ;;  %v5310_v58 = vpack.c.bf16 %v628_v53, %v618_v52  ;;  %v627_v60 = vld [vmem:[%s11699_s1 + $0x9b0] sm:$0xff]  ;;  %v1257_v61 = vld [vmem:[%s11699_s1 + $0x1d60] sm:$0xff] }
  0x38   : > { %v5438_v62 = vpack.c.bf16 %v1268_v55, %v1258_v54  ;;  %v1267_v63 = vld [vmem:[%s11699_s1 + $0x1db0] sm:$0xff]  ;;  %v638_v0 = vld [vmem:[%s11699_s1 + $0xa08] sm:$0xff]  ;;  %v648_v1 = vld [vmem:[%s11699_s1 + $0xa58] sm:$0xff]  ;;  %v5312_v4 = vpack.c.bf16 %v627_v60, %v617_v59 }
  0x39   : > { %5293 = vmatpush1.bf16.msra.mxu1 %v5292_v6  ;;  %v1278_v2 = vld [vmem:[%s11699_s1 + $0x1e08] sm:$0xff]  ;;  %v1288_v3 = vld [vmem:[%s11699_s1 + $0x1e58] sm:$0xff]  ;;  %v5440_v5 = vpack.c.bf16 %v1267_v63, %v1257_v61  ;;  %v5314_v6 = vpack.c.bf16 %v648_v1, %v638_v0  ;;  %v637_v7 = vld [vmem:[%s11699_s1 + $0xa00] sm:$0xff] }
  0x3a   : > { %5421 = vmatpush1.bf16.msra.mxu0 %v5420_v8  ;;  %5295 = vmatprep.subr.bf16.mxu1 %v5294_v9  ;;  %v647_v8 = vld [vmem:[%s11699_s1 + $0xa50] sm:$0xff]  ;;  %v5442_v9 = vpack.c.bf16 %v1288_v3, %v1278_v2  ;;  %v1277_v10 = vld [vmem:[%s11699_s1 + $0x1e00] sm:$0xff]  ;;  %v658_v12 = vld [vmem:[%s11699_s1 + $0xaa8] sm:$0xff] }
  0x3b   : > { %5423 = vmatprep.subr.bf16.mxu0 %v5422_v13  ;;  %v1287_v11 = vld [vmem:[%s11699_s1 + $0x1e50] sm:$0xff]  ;;  %v668_v13 = vld [vmem:[%s11699_s1 + $0xaf8] sm:$0xff]  ;;  %v205_v14 = vld [vmem:[%s7684_s17] sm:$0xff]  ;;  %v5316_v15 = vpack.c.bf16 %v647_v8, %v637_v7 }
  0x3c   : > { %v1298_v16 = vld [vmem:[%s11699_s1 + $0x1ea8] sm:$0xff]  ;;  %v1308_v17 = vld [vmem:[%s11699_s1 + $0x1ef8] sm:$0xff]  ;;  %v209_v18 = vld [vmem:[%s7684_s17 + $0x20] sm:$0xff]  ;;  %v5444_v19 = vpack.c.bf16 %v1287_v11, %v1277_v10  ;;  %v5318_v24 = vpack.c.bf16 %v668_v13, %v658_v12 }
  0x3d   : > { %5297 = vmatpush1.bf16.msra.mxu1 %v5296_v20  ;;  %v657_v20 = vld [vmem:[%s11699_s1 + $0xaa0] sm:$0xff]  ;;  %v678_v25 = vld [vmem:[%s11699_s1 + $0xb48] sm:$0xff]  ;;  %v5446_v27 = vpack.c.bf16 %v1308_v17, %v1298_v16  ;;  %v1307_v29 = vld [vmem:[%s11699_s1 + $0x1ef0] sm:$0xff] }
  0x3e   : > { %5425 = vmatpush1.bf16.msra.mxu0 %v5424_v21  ;;  %5299 = vmatprep.subr.bf16.mxu1 %v5298_v22  ;;  %v667_v21 = vld [vmem:[%s11699_s1 + $0xaf0] sm:$0xff]  ;;  %v213_v22 = vld [vmem:[%s7684_s17 + $0x40] sm:$0xff]  ;;  %v212_v30 = vld [vmem:[%s7684_s17 + $0x38] sm:$0xff] }
  0x3f   : > { %5427 = vmatprep.subr.bf16.mxu0 %v5426_v26  ;;  %v217_v23 = vld [vmem:[%s7684_s17 + $0x60] sm:$0xff]  ;;  %v688_v26 = vld [vmem:[%s11699_s1 + $0xb98] sm:$0xff]  ;;  %v5320_v31 = vpack.c.bf16 %v667_v21, %v657_v20  ;;  %v687_v36 = vld [vmem:[%s11699_s1 + $0xb90] sm:$0xff] }
  0x40   : > { %v1297_v28 = vld [vmem:[%s11699_s1 + $0x1ea0] sm:$0xff]  ;;  %v220_v37 = vld [vmem:[%s7684_s17 + $0x78] sm:$0xff]  ;;  %v5322_v39 = vpack.c.bf16 %v688_v26, %v678_v25  ;;  %v698_v41 = vld [vmem:[%s11699_s1 + $0xbe8] sm:$0xff] }
  0x41   : > { %5301 = vmatpush1.bf16.msra.mxu1 %v5300_v32  ;;  %v1318_v32 = vld [vmem:[%s11699_s1 + $0x1f48] sm:$0xff]  ;;  %v677_v35 = vld [vmem:[%s11699_s1 + $0xb40] sm:$0xff]  ;;  %v5448_v40 = vpack.c.bf16 %v1307_v29, %v1297_v28  ;;  %v708_v42 = vld [vmem:[%s11699_s1 + $0xc38] sm:$0xff] }
  0x42   : > { %5429 = vmatpush1.bf16.msra.mxu0 %v5428_v33  ;;  %5303 = vmatprep.subr.bf16.mxu1 %v5302_v34  ;;  %v1328_v33 = vld [vmem:[%s11699_s1 + $0x1f98] sm:$0xff]  ;;  %v5324_v47 = vpack.c.bf16 %v687_v36, %v677_v35  ;;  %v1338_v48 = vld [vmem:[%s11699_s1 + $0x1fe8] sm:$0xff]  ;;  %v697_v51 = vld [vmem:[%s11699_s1 + $0xbe0] sm:$0xff]  ;;  %v5326_v55 = vpack.c.bf16 %v708_v42, %v698_v41 }
  0x43   : > { %5431 = vmatprep.subr.bf16.mxu0 %v5430_v38  ;;  %v216_v34 = vld [vmem:[%s7684_s17 + $0x58] sm:$0xff]  ;;  %v5450_v43 = vpack.c.bf16 %v1328_v33, %v1318_v32  ;;  %v707_v52 = vld [vmem:[%s11699_s1 + $0xc30] sm:$0xff]  ;;  %v1337_v60 = vld [vmem:[%s11699_s1 + $0x1fe0] sm:$0xff] }
  0x44   : > { %v224_v38 = vld [vmem:[%s7684_s17 + $0x98] sm:$0xff]  ;;  %v227_v53 = vld [vmem:[%s7684_s17 + $0xb0] sm:$0xff]  ;;  %v5328_v63 = vpack.c.bf16 %v707_v52, %v697_v51  ;;  %v1358_v0 = vld [vmem:[%s11699_s1 + $0x2088] sm:$0xff] }
  0x45   : > { %5305 = vmatpush1.bf16.msra.mxu1 %v5304_v44  ;;  %v1317_v44 = vld [vmem:[%s11699_s1 + $0x1f40] sm:$0xff]  ;;  %v1348_v49 = vld [vmem:[%s11699_s1 + $0x2038] sm:$0xff]  ;;  %v231_v54 = vld [vmem:[%s7684_s17 + $0xd0] sm:$0xff] }
  0x46   : > { %5433 = vmatpush1.bf16.msra.mxu0 %v5432_v45  ;;  %5307 = vmatprep.subr.bf16.mxu1 %v5306_v46  ;;  %v1327_v45 = vld [vmem:[%s11699_s1 + $0x1f90] sm:$0xff]  ;;  %v5454_v59 = vpack.c.bf16 %v1348_v49, %v1338_v48  ;;  %v1368_v1 = vld [vmem:[%s11699_s1 + $0x20d8] sm:$0xff]  ;;  %v230_v2 = vld [vmem:[%s7684_s17 + $0xc8] sm:$0xff] }
  0x47   : > { %5435 = vmatprep.subr.bf16.mxu0 %v5434_v50  ;;  %v219_v46 = vld [vmem:[%s7684_s17 + $0x70] sm:$0xff]  ;;  %v717_v3 = vld [vmem:[%s11699_s1 + $0xc80] sm:$0xff]  ;;  %v738_v8 = vld [vmem:[%s11699_s1 + $0xd28] sm:$0xff]  ;;  %v5458_v11 = vpack.c.bf16 %v1368_v1, %v1358_v0 }
  0x48   : > { %v223_v50 = vld [vmem:[%s7684_s17 + $0x90] sm:$0xff]  ;;  %v748_v10 = vld [vmem:[%s11699_s1 + $0xd78] sm:$0xff]  ;;  %v1357_v12 = vld [vmem:[%s11699_s1 + $0x2080] sm:$0xff] }
  0x49   : > { %5309 = vmatpush1.bf16.msra.mxu1 %v5308_v56  ;;  %v718_v56 = vld [vmem:[%s11699_s1 + $0xc88] sm:$0xff]  ;;  %v1347_v61 = vld [vmem:[%s11699_s1 + $0x2030] sm:$0xff]  ;;  %v1388_v17 = vld [vmem:[%s11699_s1 + $0x2178] sm:$0xff] }
  0x4a   : > { %5437 = vmatpush1.bf16.msra.mxu0 %v5436_v57  ;;  %5311 = vmatprep.subr.bf16.mxu1 %v5310_v58  ;;  %v5452_v57 = vpack.c.bf16 %v1327_v45, %v1317_v44  ;;  %v728_v58 = vld [vmem:[%s11699_s1 + $0xcd8] sm:$0xff]  ;;  %v1367_v13 = vld [vmem:[%s11699_s1 + $0x20d0] sm:$0xff]  ;;  %v1378_v16 = vld [vmem:[%s11699_s1 + $0x2128] sm:$0xff] }
  0x4b   : > { %5439 = vmatprep.subr.bf16.mxu0 %v5438_v62  ;;  %v226_v62 = vld [vmem:[%s7684_s17 + $0xa8] sm:$0xff]  ;;  %v5330_v7 = vpack.c.bf16 %v728_v58, %v718_v56  ;;  %v747_v20 = vld [vmem:[%s11699_s1 + $0xd70] sm:$0xff]  ;;  %v241_v21 = vld [vmem:[%s7684_s17 + $0x120] sm:$0xff]  ;;  %v5460_v25 = vpack.c.bf16 %v1367_v13, %v1357_v12 }
  0x4c   : > { %v768_v26 = vld [vmem:[%s11699_s1 + $0xe18] sm:$0xff]  ;;  %v1377_v28 = vld [vmem:[%s11699_s1 + $0x2120] sm:$0xff]  ;;  %v1387_v29 = vld [vmem:[%s11699_s1 + $0x2170] sm:$0xff] }
  0x4d   : > { %5313 = vmatpush1.bf16.msra.mxu1 %v5312_v4  ;;  %v727_v4 = vld [vmem:[%s11699_s1 + $0xcd0] sm:$0xff]  ;;  %v1398_v33 = vld [vmem:[%s11699_s1 + $0x21c8] sm:$0xff]  ;;  %v1408_v36 = vld [vmem:[%s11699_s1 + $0x2218] sm:$0xff]  ;;  %v5464_v41 = vpack.c.bf16 %v1387_v29, %v1377_v28 }
  0x4e   : > { %5441 = vmatpush1.bf16.msra.mxu0 %v5440_v5  ;;  %5315 = vmatprep.subr.bf16.mxu1 %v5314_v6  ;;  %v234_v5 = vld [vmem:[%s7684_s17 + $0xe8] sm:$0xff]  ;;  %v767_v35 = vld [vmem:[%s11699_s1 + $0xe10] sm:$0xff]  ;;  %v788_v42 = vld [vmem:[%s11699_s1 + $0xeb8] sm:$0xff] }
  0x4f   : > { %5443 = vmatprep.subr.bf16.mxu0 %v5442_v9  ;;  %v238_v6 = vld [vmem:[%s7684_s17 + $0x108] sm:$0xff]  ;;  %v5456_v9 = vpack.c.bf16 %v1347_v61, %v1337_v60  ;;  %v1397_v44 = vld [vmem:[%s11699_s1 + $0x21c0] sm:$0xff]  ;;  %v1407_v45 = vld [vmem:[%s11699_s1 + $0x2210] sm:$0xff] }
  0x50   : > { %1595 = vmatmul.mubr.f32.vlgmr.msra.gmra.mrb[0].mxu1 %v205_v14  ;;  %v233_v14 = vld [vmem:[%s7684_s17 + $0xe0] sm:$0xff]  ;;  %v251_v48 = vld [vmem:[%s7684_s17 + $0x170] sm:$0xff]  ;;  %v808_v56 = vld [vmem:[%s11699_s1 + $0xf58] sm:$0xff] }
  0x51   : > { %1917 = vmatmul.mubr.f32.vlgmr.msra.gmra.mrb[0].mxu0 %v209_v18  ;;  %5317 = vmatpush1.bf16.msra.mxu1 %v5316_v15  ;;  %v5332_v15 = vpack.c.bf16 %v727_v4, %v717_v3  ;;  %v237_v18 = vld [vmem:[%s7684_s17 + $0x100] sm:$0xff]  ;;  %v255_v51 = vld [vmem:[%s7684_s17 + $0x190] sm:$0xff]  ;;  %v258_v60 = vld [vmem:[%s7684_s17 + $0x1a8] sm:$0xff] }
  0x52   : > { %5445 = vmatpush1.bf16.msra.mxu0 %v5444_v19  ;;  %1600 = vmatprep.mubr.f32.mxu1 %v213_v22  ;;  %v737_v19 = vld [vmem:[%s11699_s1 + $0xd20] sm:$0xff]  ;;  %v259_v52 = vld [vmem:[%s7684_s17 + $0x1b0] sm:$0xff]  ;;  %v266_v0 = vld [vmem:[%s7684_s17 + $0x1e8] sm:$0xff] }
  0x53   : > { %1922 = vmatprep.mubr.f32.mxu0 %v217_v23  ;;  %5319 = vmatprep.subr.bf16.mxu1 %v5318_v24  ;;  %v245_v22 = vld [vmem:[%s7684_s17 + $0x140] sm:$0xff]  ;;  %v5334_v23 = vpack.c.bf16 %v748_v10, %v738_v8  ;;  %v758_v24 = vld [vmem:[%s11699_s1 + $0xdc8] sm:$0xff]  ;;  %v5336_v32 = vpack.c.bf16 %v747_v20, %v737_v19  ;;  %v828_v3 = vld [vmem:[%s11699_s1 + $0xff8] sm:$0xff] }
  0x54   : > { %1601 = vmatmul.mubr.f32.gmra.mrb[2].mxu1 %v212_v30  ;;  %5447 = vmatprep.subr.bf16.mxu0 %v5446_v27  ;;  %v5462_v27 = vpack.c.bf16 %v1388_v17, %v1378_v16  ;;  %v240_v30 = vld [vmem:[%s7684_s17 + $0x118] sm:$0xff]  ;;  %v777_v49 = vld [vmem:[%s11699_s1 + $0xe60] sm:$0xff]  ;;  %v322_v10 = vld [vmem:[%s11699_s1 + $0x28] sm:$0xff] }
  0x55   : > { %1923 = vmatmul.mubr.f32.gmra.mrb[2].mxu0 %v216_v34  ;;  %5321 = vmatpush1.bf16.msra.mxu1 %v5320_v31  ;;  %v244_v31 = vld [vmem:[%s7684_s17 + $0x138] sm:$0xff]  ;;  %v757_v34 = vld [vmem:[%s11699_s1 + $0xdc0] sm:$0xff]  ;;  %v838_v16 = vld [vmem:[%s11699_s1 + $0x1048] sm:$0xff] }
  0x56   : > { %1606 = vmatprep.mubr.f32.mxu1 %v220_v37  ;;  %1928 = vmatprep.mubr.f32.mxu0 %v224_v38  ;;  %v248_v37 = vld [vmem:[%s7684_s17 + $0x158] sm:$0xff]  ;;  %v797_v61 = vld [vmem:[%s11699_s1 + $0xf00] sm:$0xff]  ;;  %v275_v28 = vld [vmem:[%s7684_s17 + $0x230] sm:$0xff] }
  0x57   : > { %5323 = vmatprep.subr.bf16.mxu1 %v5322_v39  ;;  %5449 = vmatpush1.bf16.msra.mxu0 %v5448_v40  ;;  %v252_v38 = vld [vmem:[%s7684_s17 + $0x178] sm:$0xff]  ;;  %v5338_v39 = vpack.c.bf16 %v768_v26, %v758_v24  ;;  %v778_v40 = vld [vmem:[%s11699_s1 + $0xe68] sm:$0xff]  ;;  %v1417_v4 = vld [vmem:[%s11699_s1 + $0x2260] sm:$0xff] }
  0x58   : > { %1607 = vmatmul.mubr.f32.gmra.mrb[4].mxu1 %v219_v46  ;;  %5451 = vmatprep.subr.bf16.mxu0 %v5450_v43  ;;  %v5466_v43 = vpack.c.bf16 %v1408_v36, %v1398_v33  ;;  %v247_v46 = vld [vmem:[%s7684_s17 + $0x150] sm:$0xff]  ;;  %v817_v8 = vld [vmem:[%s11699_s1 + $0xfa0] sm:$0xff]  ;;  %v848_v17 = vld [vmem:[%s11699_s1 + $0x1098] sm:$0xff] }
  0x59   : > { %1929 = vmatmul.mubr.f32.gmra.mrb[4].mxu0 %v223_v50  ;;  %5325 = vmatpush1.bf16.msra.mxu1 %v5324_v47  ;;  %v5340_v47 = vpack.c.bf16 %v767_v35, %v757_v34  ;;  %v787_v50 = vld [vmem:[%s11699_s1 + $0xeb0] sm:$0xff]  ;;  %v269_v12 = vld [vmem:[%s7684_s17 + $0x200] sm:$0xff]  ;;  %v272_v20 = vld [vmem:[%s7684_s17 + $0x218] sm:$0xff] }
  0x5a   : > { %1612 = vmatprep.mubr.f32.mxu1 %v227_v53  ;;  %1934 = vmatprep.mubr.f32.mxu0 %v231_v54  ;;  %v5342_v53 = vpack.c.bf16 %v788_v42, %v778_v40  ;;  %v5468_v54 = vpack.c.bf16 %v1407_v45, %v1397_v44  ;;  %v5344_v58 = vpack.c.bf16 %v787_v50, %v777_v49  ;;  %v273_v13 = vld [vmem:[%s7684_s17 + $0x220] sm:$0xff]  ;;  %v280_v24 = vld [vmem:[%s7684_s17 + $0x258] sm:$0xff]  ;;  %v858_v26 = vld [vmem:[%s11699_s1 + $0x10e8] sm:$0xff] }
  0x5b   : > { %5327 = vmatprep.subr.bf16.mxu1 %v5326_v55  ;;  %5453 = vmatpush1.bf16.msra.mxu0 %v5452_v57  ;;  %v798_v55 = vld [vmem:[%s11699_s1 + $0xf08] sm:$0xff]  ;;  %v283_v33 = vld [vmem:[%s7684_s17 + $0x270] sm:$0xff]  ;;  %v293_v50 = vld [vmem:[%s7684_s17 + $0x2c0] sm:$0xff] }
  0x5c   : > { %1613 = vmatmul.mubr.f32.gmra.mrb[6].mxu1 %v226_v62  ;;  %5455 = vmatprep.subr.bf16.mxu0 %v5454_v59  ;;  %v254_v57 = vld [vmem:[%s7684_s17 + $0x188] sm:$0xff]  ;;  %v807_v62 = vld [vmem:[%s11699_s1 + $0xf50] sm:$0xff]  ;;  %v5346_v1 = vpack.c.bf16 %v808_v56, %v798_v55 }
  0x5d   : > { %1935 = vmatmul.mubr.f32.gmra.mrb[6].mxu0 %v230_v2  ;;  %5329 = vmatpush1.bf16.msra.mxu1 %v5328_v63  ;;  %v1418_v59 = vld [vmem:[%s11699_s1 + $0x2268] sm:$0xff]  ;;  %v287_v34 = vld [vmem:[%s7684_s17 + $0x290] sm:$0xff] }
  0x5e   : > { %1618 = vmatprep.mubr.f32.mxu1 %v234_v5  ;;  %1940 = vmatprep.mubr.f32.mxu0 %v238_v6  ;;  %v262_v63 = vld [vmem:[%s7684_s17 + $0x1c8] sm:$0xff]  ;;  %v261_v5 = vld [vmem:[%s7684_s17 + $0x1c0] sm:$0xff]  ;;  %v887_v42 = vld [vmem:[%s11699_s1 + $0x11d0] sm:$0xff] }
  0x5f   : > { %5331 = vmatprep.subr.bf16.mxu1 %v5330_v7  ;;  %5457 = vmatpush1.bf16.msra.mxu0 %v5456_v9  ;;  %v818_v2 = vld [vmem:[%s11699_s1 + $0xfa8] sm:$0xff]  ;;  %v265_v6 = vld [vmem:[%s7684_s17 + $0x1e0] sm:$0xff]  ;;  %v5348_v7 = vpack.c.bf16 %v807_v62, %v797_v61  ;;  %v827_v9 = vld [vmem:[%s11699_s1 + $0xff0] sm:$0xff] }
  0x60   : > { %1619 = vmatmul.mubr.f32.gmra.mrb[8].mxu1 %v233_v14  ;;  %5459 = vmatprep.subr.bf16.mxu0 %v5458_v11  ;;  %v332_v11 = vld [vmem:[%s11699_s1 + $0x78] sm:$0xff]  ;;  %v5350_v14 = vpack.c.bf16 %v828_v3, %v818_v2  ;;  %v5352_v19 = vpack.c.bf16 %v827_v9, %v817_v8  ;;  %v878_v36 = vld [vmem:[%s11699_s1 + $0x1188] sm:$0xff]  ;;  %v917_v61 = vld [vmem:[%s11699_s1 + $0x12c0] sm:$0xff] }
  0x61   : > { %1941 = vmatmul.mubr.f32.gmra.mrb[8].mxu0 %v237_v18  ;;  %5333 = vmatpush1.bf16.msra.mxu1 %v5332_v15  ;;  %v5690_v15 = vpack.c.bf16 %v332_v11, %v322_v10  ;;  %v268_v18 = vld [vmem:[%s7684_s17 + $0x1f8] sm:$0xff]  ;;  %v286_v40 = vld [vmem:[%s7684_s17 + $0x288] sm:$0xff]  ;;  %v927_v62 = vld [vmem:[%s11699_s1 + $0x1310] sm:$0xff] }
  0x62   : > { %1624 = vmatprep.mubr.f32.mxu1 %v241_v21  ;;  %1946 = vmatprep.mubr.f32.mxu0 %v245_v22  ;;  %v837_v21 = vld [vmem:[%s11699_s1 + $0x1040] sm:$0xff]  ;;  %v847_v22 = vld [vmem:[%s11699_s1 + $0x1090] sm:$0xff]  ;;  %v294_v44 = vld [vmem:[%s7684_s17 + $0x2c8] sm:$0xff] }
  0x63   : > { %5335 = vmatprep.subr.bf16.mxu1 %v5334_v23  ;;  %5461 = vmatpush1.bf16.msra.mxu0 %v5460_v25  ;;  %v276_v23 = vld [vmem:[%s7684_s17 + $0x238] sm:$0xff]  ;;  %v5354_v25 = vpack.c.bf16 %v848_v17, %v838_v16  ;;  %v5356_v29 = vpack.c.bf16 %v847_v22, %v837_v21  ;;  %v918_v56 = vld [vmem:[%s11699_s1 + $0x12c8] sm:$0xff]  ;;  %v947_v8 = vld [vmem:[%s11699_s1 + $0x13b0] sm:$0xff] }
  0x64   : > { %1625 = vmatmul.mubr.f32.gmra.mrb[10].mxu1 %v240_v30  ;;  %5463 = vmatprep.subr.bf16.mxu0 %v5462_v27  ;;  %v868_v27 = vld [vmem:[%s11699_s1 + $0x1138] sm:$0xff]  ;;  %v279_v30 = vld [vmem:[%s7684_s17 + $0x250] sm:$0xff]  ;;  %v938_v2 = vld [vmem:[%s11699_s1 + $0x1368] sm:$0xff] }
  0x65   : > { %1947 = vmatmul.mubr.f32.gmra.mrb[10].mxu0 %v244_v31  ;;  %5337 = vmatpush1.bf16.msra.mxu1 %v5336_v32  ;;  %v857_v31 = vld [vmem:[%s11699_s1 + $0x10e0] sm:$0xff]  ;;  %v867_v32 = vld [vmem:[%s11699_s1 + $0x1130] sm:$0xff]  ;;  %v5358_v35 = vpack.c.bf16 %v868_v27, %v858_v26  ;;  %v948_v3 = vld [vmem:[%s11699_s1 + $0x13b8] sm:$0xff] }
  0x66   : > { %1630 = vmatprep.mubr.f32.mxu1 %v248_v37  ;;  %1952 = vmatprep.mubr.f32.mxu0 %v252_v38  ;;  %v888_v37 = vld [vmem:[%s11699_s1 + $0x11d8] sm:$0xff]  ;;  %v282_v38 = vld [vmem:[%s7684_s17 + $0x268] sm:$0xff]  ;;  %v311_v9 = vld [vmem:[%s7684_s17 + $0x350] sm:$0xff]  ;;  %v5374_v11 = vpack.c.bf16 %v948_v3, %v938_v2 }
  0x67   : > { %5339 = vmatprep.subr.bf16.mxu1 %v5338_v39  ;;  %5465 = vmatpush1.bf16.msra.mxu0 %v5464_v41  ;;  %v5360_v39 = vpack.c.bf16 %v867_v32, %v857_v31  ;;  %v877_v41 = vld [vmem:[%s11699_s1 + $0x1180] sm:$0xff]  ;;  %v5362_v45 = vpack.c.bf16 %v888_v37, %v878_v36  ;;  %v315_v10 = vld [vmem:[%s7684_s17 + $0x370] sm:$0xff]  ;;  %v314_v16 = vld [vmem:[%s7684_s17 + $0x368] sm:$0xff] }
  0x68   : > { %1631 = vmatmul.mubr.f32.gmra.mrb[12].mxu1 %v247_v46  ;;  %5467 = vmatprep.subr.bf16.mxu0 %v5466_v43  ;;  %v290_v43 = vld [vmem:[%s7684_s17 + $0x2a8] sm:$0xff]  ;;  %v5364_v49 = vpack.c.bf16 %v887_v42, %v877_v41  ;;  %v319_v17 = vld [vmem:[%s11699_s1 + $0x10] sm:$0xff]  ;;  %v321_v21 = vld [vmem:[%s11699_s1 + $0x20] sm:$0xff] }
  0x69   : > { %1953 = vmatmul.mubr.f32.gmra.mrb[12].mxu0 %v251_v48  ;;  %5341 = vmatpush1.bf16.msra.mxu1 %v5340_v47  ;;  %v898_v46 = vld [vmem:[%s11699_s1 + $0x1228] sm:$0xff]  ;;  %v908_v47 = vld [vmem:[%s11699_s1 + $0x1278] sm:$0xff]  ;;  %v289_v48 = vld [vmem:[%s7684_s17 + $0x2a0] sm:$0xff] }
  0x6a   : > { %1636 = vmatprep.mubr.f32.mxu1 %v255_v51  ;;  %1958 = vmatprep.mubr.f32.mxu0 %v259_v52  ;;  %v897_v51 = vld [vmem:[%s11699_s1 + $0x1220] sm:$0xff]  ;;  %v907_v52 = vld [vmem:[%s11699_s1 + $0x1270] sm:$0xff]  ;;  %v5366_v55 = vpack.c.bf16 %v908_v47, %v898_v46  ;;  %v342_v27 = vld [vmem:[%s11699_s1 + $0xc8] sm:$0xff] }
  0x6b   : > { %5343 = vmatprep.subr.bf16.mxu1 %v5342_v53  ;;  %5469 = vmatpush1.bf16.msra.mxu0 %v5468_v54  ;;  %v297_v53 = vld [vmem:[%s7684_s17 + $0x2e0] sm:$0xff]  ;;  %v331_v22 = vld [vmem:[%s11699_s1 + $0x70] sm:$0xff]  ;;  %v214_v41 = vld [vmem:[%s7684_s17 + $0x48] sm:$0xff] }
  0x6c   : > { %1637 = vmatmul.mubr.f32.gmra.mrb[14].mxu1 %v254_v57  ;;  %2041 = vmatprep.subr.mxu0 %v1418_v59  ;;  %v301_v54 = vld [vmem:[%s7684_s17 + $0x300] sm:$0xff]  ;;  %v928_v57 = vld [vmem:[%s11699_s1 + $0x1318] sm:$0xff]  ;;  %v5368_v59 = vpack.c.bf16 %v907_v52, %v897_v51  ;;  %v5692_v31 = vpack.c.bf16 %v331_v22, %v321_v21  ;;  %v339_v32 = vld [vmem:[%s11699_s1 + $0xb0] sm:$0xff] }
  0x6d   : > { %1959 = vmatmul.mubr.f32.gmra.mrb[14].mxu0 %v258_v60  ;;  %5345 = vmatpush1.bf16.msra.mxu1 %v5344_v58  ;;  %v296_v58 = vld [vmem:[%s7684_s17 + $0x2d8] sm:$0xff]  ;;  %v341_v36 = vld [vmem:[%s11699_s1 + $0xc0] sm:$0xff]  ;;  %v351_v37 = vld [vmem:[%s11699_s1 + $0x110] sm:$0xff] }
  0x6e   : > { %1642 = vmatprep.mubr.f32.mxu1 %v262_v63  ;;  %1964 = vmatprep.mubr.f32.mxu0 %v266_v0  ;;  %v300_v60 = vld [vmem:[%s7684_s17 + $0x2f8] sm:$0xff]  ;;  %v5696_v46 = vpack.c.bf16 %v351_v37, %v341_v36  ;;  %v359_v47 = vld [vmem:[%s11699_s1 + $0x150] sm:$0xff]  ;;  %v361_v51 = vld [vmem:[%s11699_s1 + $0x160] sm:$0xff] }
  0x6f   : > { %5347 = vmatprep.subr.bf16.mxu1 %v5346_v1  ;;  %2042 = vmatpush1.msra.mxu0 %v1417_v4  ;;  %v304_v63 = vld [vmem:[%s7684_s17 + $0x318] sm:$0xff]  ;;  %v5370_v1 = vpack.c.bf16 %v928_v57, %v918_v56  ;;  %v303_v4 = vld [vmem:[%s7684_s17 + $0x310] sm:$0xff]  ;;  %v221_v56 = vld [vmem:[%s7684_s17 + $0x80] sm:$0xff] }
  0x70   : > { %1643 = vmatmul.mubr.f32.gmra.mrb[16].mxu1 %v261_v5  ;;  %5691 = vmatprep.subr.bf16.mxu0 %v5690_v15  ;;  %v308_v0 = vld [vmem:[%s7684_s17 + $0x338] sm:$0xff]  ;;  %v5372_v5 = vpack.c.bf16 %v927_v62, %v917_v61  ;;  %v371_v52 = vld [vmem:[%s11699_s1 + $0x1b0] sm:$0xff]  ;;  %v381_v2 = vld [vmem:[%s11699_s1 + $0x200] sm:$0xff] }
  0x71   : > { %1965 = vmatmul.mubr.f32.gmra.mrb[16].mxu0 %v265_v6  ;;  %5349 = vmatpush1.bf16.msra.mxu1 %v5348_v7  ;;  %v307_v6 = vld [vmem:[%s7684_s17 + $0x330] sm:$0xff]  ;;  %v937_v7 = vld [vmem:[%s11699_s1 + $0x1360] sm:$0xff]  ;;  %v5700_v61 = vpack.c.bf16 %v371_v52, %v361_v51  ;;  %v430_v21 = vld [vmem:[%s11699_s1 + $0x388] sm:$0xff] }
  0x72   : > { %1648 = vmatprep.mubr.f32.mxu1 %v269_v12  ;;  %1970 = vmatprep.mubr.f32.mxu0 %v273_v13  ;;  %v320_v12 = vld [vmem:[%s11699_s1 + $0x18] sm:$0xff]  ;;  %v330_v13 = vld [vmem:[%s11699_s1 + $0x68] sm:$0xff]  ;;  %v5376_v15 = vpack.c.bf16 %v947_v8, %v937_v7  ;;  %v379_v62 = vld [vmem:[%s11699_s1 + $0x1f0] sm:$0xff] }
  0x73   : > { %5351 = vmatprep.subr.bf16.mxu1 %v5350_v14  ;;  %v310_v14 = vld [vmem:[%s7684_s17 + $0x348] sm:$0xff]  ;;  %v391_v3 = vld [vmem:[%s11699_s1 + $0x250] sm:$0xff]  ;;  %v228_v7 = vld [vmem:[%s7684_s17 + $0xb8] sm:$0xff] }
  0x74   : > { %1649 = vmatmul.mubr.f32.gmra.mrb[18].mxu1 %v268_v18  ;;  %v329_v18 = vld [vmem:[%s11699_s1 + $0x60] sm:$0xff]  ;;  %v235_v22 = vld [vmem:[%s7684_s17 + $0xf0] sm:$0xff]  ;;  %v440_v36 = vld [vmem:[%s11699_s1 + $0x3d8] sm:$0xff] }
  0x75   : > { %1971 = vmatmul.mubr.f32.gmra.mrb[18].mxu0 %v272_v20  ;;  %5353 = vmatpush1.bf16.msra.mxu1 %v5352_v19  ;;  %v208_v19 = vld [vmem:[%s7684_s17 + $0x18] sm:$0xff]  ;;  %v5470_v20 = vpack.c.bf16 %v330_v13, %v320_v12  ;;  %v5472_v26 = vpack.c.bf16 %v329_v18, %v319_v17  ;;  %v5704_v12 = vpack.c.bf16 %v391_v3, %v381_v2  ;;  %v399_v13 = vld [vmem:[%s11699_s1 + $0x290] sm:$0xff]  ;;  %v401_v17 = vld [vmem:[%s11699_s1 + $0x2a0] sm:$0xff] }
  0x76   : > { %1654 = vmatprep.mubr.f32.mxu1 %v276_v23  ;;  %1976 = vmatprep.mubr.f32.mxu0 %v280_v24  ;;  %v340_v23 = vld [vmem:[%s11699_s1 + $0xb8] sm:$0xff]  ;;  %v350_v24 = vld [vmem:[%s11699_s1 + $0x108] sm:$0xff]  ;;  %v411_v18 = vld [vmem:[%s11699_s1 + $0x2f0] sm:$0xff] }
  0x77   : > { %5355 = vmatprep.subr.bf16.mxu1 %v5354_v25  ;;  %v207_v25 = vld [vmem:[%s7684_s17 + $0x10] sm:$0xff]  ;;  %v450_v37 = vld [vmem:[%s11699_s1 + $0x428] sm:$0xff]  ;;  %v460_v51 = vld [vmem:[%s11699_s1 + $0x478] sm:$0xff] }
  0x78   : > { %1655 = vmatmul.mubr.f32.gmra.mrb[20].mxu1 %v275_v28  ;;  %v352_v28 = vld [vmem:[%s11699_s1 + $0x118] sm:$0xff]  ;;  %v470_v52 = vld [vmem:[%s11699_s1 + $0x4c8] sm:$0xff] }
  0x79   : > { %1977 = vmatmul.mubr.f32.gmra.mrb[20].mxu0 %v279_v30  ;;  %5357 = vmatpush1.bf16.msra.mxu1 %v5356_v29  ;;  %v7323_v29 = vmov 0.0   ;;  %v211_v30 = vld [vmem:[%s7684_s17 + $0x30] sm:$0xff]  ;;  %v480_v2 = vld [vmem:[%s11699_s1 + $0x518] sm:$0xff]  ;;  %v490_v3 = vld [vmem:[%s11699_s1 + $0x568] sm:$0xff] }
  0x7a   : > { %1660 = vmatprep.mubr.f32.mxu1 %v283_v33  ;;  %1982 = vmatprep.mubr.f32.mxu0 %v287_v34  ;;  %v349_v33 = vld [vmem:[%s11699_s1 + $0x100] sm:$0xff]  ;;  %v215_v34 = vld [vmem:[%s7684_s17 + $0x50] sm:$0xff] }
  0x7b   : > { %5359 = vmatprep.subr.bf16.mxu1 %v5358_v35  ;;  %v5474_v35 = vpack.c.bf16 %v350_v24, %v340_v23  ;;  %v5476_v42 = vpack.c.bf16 %v349_v33, %v339_v32  ;;  %v422_v24 = vld [vmem:[%s11699_s1 + $0x348] sm:$0xff]  ;;  %v421_v33 = vld [vmem:[%s11699_s1 + $0x340] sm:$0xff] }
  0x7c   : > { %1661 = vmatmul.mubr.f32.gmra.mrb[22].mxu1 %v282_v38  ;;  %v5694_v38 = vpack.c.bf16 %v352_v28, %v342_v27  ;;  %v5708_v27 = vpack.c.bf16 %v411_v18, %v401_v17  ;;  %v419_v28 = vld [vmem:[%s11699_s1 + $0x330] sm:$0xff]  ;;  %v500_v17 = vld [vmem:[%s11699_s1 + $0x5b8] sm:$0xff]  ;;  %v510_v18 = vld [vmem:[%s11699_s1 + $0x608] sm:$0xff] }
  0x7d   : > { %1983 = vmatmul.mubr.f32.gmra.mrb[22].mxu0 %v286_v40  ;;  %5361 = vmatpush1.bf16.msra.mxu1 %v5360_v39  ;;  %v360_v39 = vld [vmem:[%s11699_s1 + $0x158] sm:$0xff]  ;;  %v370_v40 = vld [vmem:[%s11699_s1 + $0x1a8] sm:$0xff] }
  0x7e   : > { %1666 = vmatprep.mubr.f32.mxu1 %v290_v43  ;;  %1988 = vmatprep.mubr.f32.mxu0 %v294_v44  ;;  %v362_v43 = vld [vmem:[%s11699_s1 + $0x168] sm:$0xff]  ;;  %v372_v44 = vld [vmem:[%s11699_s1 + $0x1b8] sm:$0xff] }
  0x7f   : > { %5363 = vmatprep.subr.bf16.mxu1 %v5362_v45  ;;  %v218_v45 = vld [vmem:[%s7684_s17 + $0x68] sm:$0xff] }
  0x80   : > { %1667 = vmatmul.mubr.f32.gmra.mrb[24].mxu1 %v289_v48  ;;  %v369_v48 = vld [vmem:[%s11699_s1 + $0x1a0] sm:$0xff] }
  0x81   : > { %1989 = vmatmul.mubr.f32.gmra.mrb[24].mxu0 %v293_v50  ;;  %5365 = vmatpush1.bf16.msra.mxu1 %v5364_v49  ;;  %v222_v49 = vld [vmem:[%s7684_s17 + $0x88] sm:$0xff]  ;;  %v5478_v50 = vpack.c.bf16 %v370_v40, %v360_v39  ;;  %v5480_v57 = vpack.c.bf16 %v369_v48, %v359_v47  ;;  %v5494_v47 = vpack.c.bf16 %v450_v37, %v440_v36  ;;  %v441_v48 = vld [vmem:[%s11699_s1 + $0x3e0] sm:$0xff] }
  0x82   : > { %1672 = vmatprep.mubr.f32.mxu1 %v297_v53  ;;  %1994 = vmatprep.mubr.f32.mxu0 %v301_v54  ;;  %v5698_v53 = vpack.c.bf16 %v372_v44, %v362_v43  ;;  %v380_v54 = vld [vmem:[%s11699_s1 + $0x1f8] sm:$0xff]  ;;  %v442_v40 = vld [vmem:[%s11699_s1 + $0x3e8] sm:$0xff]  ;;  %v439_v44 = vld [vmem:[%s11699_s1 + $0x3d0] sm:$0xff] }
  0x83   : > { %5367 = vmatprep.subr.bf16.mxu1 %v5366_v55  ;;  %v390_v55 = vld [vmem:[%s11699_s1 + $0x248] sm:$0xff] }
  0x84   : > { %1673 = vmatmul.mubr.f32.gmra.mrb[26].mxu1 %v296_v58  ;;  %v382_v58 = vld [vmem:[%s11699_s1 + $0x208] sm:$0xff] }
  0x85   : > { %1995 = vmatmul.mubr.f32.gmra.mrb[26].mxu0 %v300_v60  ;;  %5369 = vmatpush1.bf16.msra.mxu1 %v5368_v59  ;;  %v392_v59 = vld [vmem:[%s11699_s1 + $0x258] sm:$0xff]  ;;  %v225_v60 = vld [vmem:[%s7684_s17 + $0xa0] sm:$0xff]  ;;  %v522_v37 = vld [vmem:[%s11699_s1 + $0x668] sm:$0xff] }
  0x86   : > { %1678 = vmatprep.mubr.f32.mxu1 %v304_v63  ;;  %2000 = vmatprep.mubr.f32.mxu0 %v308_v0  ;;  %v389_v63 = vld [vmem:[%s11699_s1 + $0x240] sm:$0xff] }
  0x87   : > { %5371 = vmatprep.subr.bf16.mxu1 %v5370_v1  ;;  %v229_v0 = vld [vmem:[%s7684_s17 + $0xc0] sm:$0xff]  ;;  %v5482_v1 = vpack.c.bf16 %v390_v55, %v380_v54  ;;  %v5484_v8 = vpack.c.bf16 %v389_v63, %v379_v62  ;;  %v462_v55 = vld [vmem:[%s11699_s1 + $0x488] sm:$0xff]  ;;  %v5498_v62 = vpack.c.bf16 %v470_v52, %v460_v51 }
  0x88   : > { %1679 = vmatmul.mubr.f32.gmra.mrb[28].mxu1 %v303_v4  ;;  %v5702_v4 = vpack.c.bf16 %v392_v59, %v382_v58  ;;  %v459_v59 = vld [vmem:[%s11699_s1 + $0x470] sm:$0xff]  ;;  %v461_v63 = vld [vmem:[%s11699_s1 + $0x480] sm:$0xff]  ;;  %v542_v52 = vld [vmem:[%s11699_s1 + $0x708] sm:$0xff] }
  0x89   : > { %2001 = vmatmul.mubr.f32.gmra.mrb[28].mxu0 %v307_v6  ;;  %5373 = vmatpush1.bf16.msra.mxu1 %v5372_v5  ;;  %v400_v5 = vld [vmem:[%s11699_s1 + $0x298] sm:$0xff]  ;;  %v410_v6 = vld [vmem:[%s11699_s1 + $0x2e8] sm:$0xff] }
  0x8a   : > { %1684 = vmatprep.mubr.f32.mxu1 %v311_v9  ;;  %2006 = vmatprep.mubr.f32.mxu0 %v315_v10  ;;  %v402_v9 = vld [vmem:[%s11699_s1 + $0x2a8] sm:$0xff]  ;;  %v412_v10 = vld [vmem:[%s11699_s1 + $0x2f8] sm:$0xff] }
  0x8b   : > { %5375 = vmatprep.subr.bf16.mxu1 %v5374_v11  ;;  %v232_v11 = vld [vmem:[%s7684_s17 + $0xd8] sm:$0xff] }
  0x8c   : > { %1685 = vmatmul.mubr.f32.gmra.mrb[30].mxu1 %v310_v14  ;;  %v409_v14 = vld [vmem:[%s11699_s1 + $0x2e0] sm:$0xff] }
  0x8d   : > { %2007 = vmatmul.mubr.f32.gmra.mrb[30].mxu0 %v314_v16  ;;  %5377 = vmatpush1.bf16.msra.mxu1 %v5376_v15  ;;  %v236_v15 = vld [vmem:[%s7684_s17 + $0xf8] sm:$0xff]  ;;  %v5486_v16 = vpack.c.bf16 %v410_v6, %v400_v5  ;;  %v5488_v23 = vpack.c.bf16 %v409_v14, %v399_v13  ;;  %v482_v6 = vld [vmem:[%s11699_s1 + $0x528] sm:$0xff]  ;;  %v5502_v13 = vpack.c.bf16 %v490_v3, %v480_v2  ;;  %v481_v14 = vld [vmem:[%s11699_s1 + $0x520] sm:$0xff] }
  0x8e   : > { %1755 = vmatprep.mubr.f32.mxu1 %v208_v19  ;;  %2077 = vmatprep.mubr.f32.mxu0 %v7323_v29  ;;  %v5706_v19 = vpack.c.bf16 %v412_v10, %v402_v9  ;;  %v479_v10 = vld [vmem:[%s11699_s1 + $0x510] sm:$0xff]  ;;  %v562_v3 = vld [vmem:[%s11699_s1 + $0x7a8] sm:$0xff] }
  0x8f   : > { %5471 = vmatprep.subr.bf16.mxu1 %v5470_v20  ;;  %v420_v20 = vld [vmem:[%s11699_s1 + $0x338] sm:$0xff] }
  0x90   : > { %1756 = vmatmul.mubr.f32.vlgmr.msra.gmra.mrb[0].mxu1 %v207_v25  ;;  %v432_v25 = vld [vmem:[%s11699_s1 + $0x398] sm:$0xff]  ;;  %v5490_v32 = vpack.c.bf16 %v430_v21, %v420_v20  ;;  %v502_v21 = vld [vmem:[%s11699_s1 + $0x5c8] sm:$0xff] }
  0x91   : > { %5161 = vmatmul.mubr.msk.f32.vlgmr.msra.gmra.mrb[0].mxu0 %vm1481_vm0, %v211_v30  ;;  %5473 = vmatpush1.bf16.msra.mxu1 %v5472_v26  ;;  %v239_v26 = vld [vmem:[%s7684_s17 + $0x110] sm:$0xff]  ;;  %v429_v30 = vld [vmem:[%s11699_s1 + $0x380] sm:$0xff] }
  0x92   : > { %5693 = vmatpush1.bf16.msra.mxu0 %v5692_v31  ;;  %1761 = vmatprep.mubr.f32.mxu1 %v215_v34  ;;  %v243_v31 = vld [vmem:[%s7684_s17 + $0x130] sm:$0xff]  ;;  %v5492_v39 = vpack.c.bf16 %v429_v30, %v419_v28  ;;  %v5506_v28 = vpack.c.bf16 %v510_v18, %v500_v17  ;;  %v501_v30 = vld [vmem:[%s11699_s1 + $0x5c0] sm:$0xff]  ;;  %v582_v18 = vld [vmem:[%s11699_s1 + $0x848] sm:$0xff] }
  0x93   : > { %2083 = vmatprep.mubr.f32.mxu0 %v7323_v29  ;;  %5475 = vmatprep.subr.bf16.mxu1 %v5474_v35  ;;  %v431_v34 = vld [vmem:[%s11699_s1 + $0x390] sm:$0xff]  ;;  %v5710_v35 = vpack.c.bf16 %v432_v25, %v422_v24 }
  0x94   : > { %1762 = vmatmul.mubr.f32.gmra.mrb[2].mxu1 %v214_v41  ;;  %5695 = vmatprep.subr.bf16.mxu0 %v5694_v38  ;;  %v242_v38 = vld [vmem:[%s7684_s17 + $0x128] sm:$0xff]  ;;  %v452_v41 = vld [vmem:[%s11699_s1 + $0x438] sm:$0xff]  ;;  %v5712_v43 = vpack.c.bf16 %v431_v34, %v421_v33  ;;  %v499_v25 = vld [vmem:[%s11699_s1 + $0x5b0] sm:$0xff] }
  0x95   : > { %5162 = vmatmul.mubr.msk.f32.gmra.mrb[2].mxu0 %vm1481_vm0, %v218_v45  ;;  %5477 = vmatpush1.bf16.msra.mxu1 %v5476_v42  ;;  %v246_v42 = vld [vmem:[%s7684_s17 + $0x148] sm:$0xff]  ;;  %v449_v45 = vld [vmem:[%s11699_s1 + $0x420] sm:$0xff]  ;;  %v520_v33 = vld [vmem:[%s11699_s1 + $0x658] sm:$0xff] }
  0x96   : > { %5697 = vmatpush1.bf16.msra.mxu0 %v5696_v46  ;;  %1767 = vmatprep.mubr.f32.mxu1 %v222_v49  ;;  %v250_v46 = vld [vmem:[%s7684_s17 + $0x168] sm:$0xff]  ;;  %v451_v49 = vld [vmem:[%s11699_s1 + $0x430] sm:$0xff]  ;;  %v5496_v54 = vpack.c.bf16 %v449_v45, %v439_v44  ;;  %v521_v45 = vld [vmem:[%s11699_s1 + $0x660] sm:$0xff] }
  0x97   : > { %2089 = vmatprep.mubr.f32.mxu0 %v7323_v29  ;;  %5479 = vmatprep.subr.bf16.mxu1 %v5478_v50  ;;  %v5714_v50 = vpack.c.bf16 %v452_v41, %v442_v40  ;;  %v5716_v58 = vpack.c.bf16 %v451_v49, %v441_v48  ;;  %v530_v34 = vld [vmem:[%s11699_s1 + $0x6a8] sm:$0xff]  ;;  %v519_v41 = vld [vmem:[%s11699_s1 + $0x650] sm:$0xff]  ;;  %v540_v48 = vld [vmem:[%s11699_s1 + $0x6f8] sm:$0xff] }
  0x98   : > { %1768 = vmatmul.mubr.f32.gmra.mrb[4].mxu1 %v221_v56  ;;  %5699 = vmatprep.subr.bf16.mxu0 %v5698_v53  ;;  %v249_v53 = vld [vmem:[%s7684_s17 + $0x160] sm:$0xff]  ;;  %v472_v56 = vld [vmem:[%s11699_s1 + $0x4d8] sm:$0xff]  ;;  %v5510_v44 = vpack.c.bf16 %v530_v34, %v520_v33  ;;  %v550_v49 = vld [vmem:[%s11699_s1 + $0x748] sm:$0xff] }
  0x99   : > { %5163 = vmatmul.mubr.msk.f32.gmra.mrb[4].mxu0 %vm1481_vm0, %v225_v60  ;;  %5481 = vmatpush1.bf16.msra.mxu1 %v5480_v57  ;;  %v253_v57 = vld [vmem:[%s7684_s17 + $0x180] sm:$0xff]  ;;  %v602_v34 = vld [vmem:[%s11699_s1 + $0x8e8] sm:$0xff] }
  0x9a   : > { %5701 = vmatpush1.bf16.msra.mxu0 %v5700_v61  ;;  %1773 = vmatprep.mubr.f32.mxu1 %v229_v0  ;;  %v469_v60 = vld [vmem:[%s11699_s1 + $0x4c0] sm:$0xff]  ;;  %v471_v0 = vld [vmem:[%s11699_s1 + $0x4d0] sm:$0xff] }
  0x9b   : > { %2095 = vmatprep.mubr.f32.mxu0 %v7323_v29  ;;  %5483 = vmatprep.subr.bf16.mxu1 %v5482_v1  ;;  %v257_v61 = vld [vmem:[%s7684_s17 + $0x1a0] sm:$0xff]  ;;  %v5718_v1 = vpack.c.bf16 %v472_v56, %v462_v55  ;;  %v5500_v5 = vpack.c.bf16 %v469_v60, %v459_v59  ;;  %v5720_v9 = vpack.c.bf16 %v471_v0, %v461_v63  ;;  %v539_v56 = vld [vmem:[%s11699_s1 + $0x6f0] sm:$0xff]  ;;  %v560_v63 = vld [vmem:[%s11699_s1 + $0x798] sm:$0xff] }
  0x9c   : > { %1774 = vmatmul.mubr.f32.gmra.mrb[6].mxu1 %v228_v7  ;;  %5703 = vmatprep.subr.bf16.mxu0 %v5702_v4  ;;  %v256_v4 = vld [vmem:[%s7684_s17 + $0x198] sm:$0xff]  ;;  %v5514_v59 = vpack.c.bf16 %v550_v49, %v540_v48  ;;  %v541_v60 = vld [vmem:[%s11699_s1 + $0x700] sm:$0xff]  ;;  %v570_v0 = vld [vmem:[%s11699_s1 + $0x7e8] sm:$0xff] }
  0x9d   : > { %5164 = vmatmul.mubr.msk.f32.gmra.mrb[6].mxu0 %vm1481_vm0, %v232_v11  ;;  %5485 = vmatpush1.bf16.msra.mxu1 %v5484_v8  ;;  %v492_v7 = vld [vmem:[%s11699_s1 + $0x578] sm:$0xff]  ;;  %v489_v11 = vld [vmem:[%s11699_s1 + $0x560] sm:$0xff]  ;;  %v622_v49 = vld [vmem:[%s11699_s1 + $0x988] sm:$0xff] }
  0x9e   : > { %5705 = vmatpush1.bf16.msra.mxu0 %v5704_v12  ;;  %1779 = vmatprep.mubr.f32.mxu1 %v236_v15  ;;  %v260_v8 = vld [vmem:[%s7684_s17 + $0x1b8] sm:$0xff]  ;;  %v491_v15 = vld [vmem:[%s11699_s1 + $0x570] sm:$0xff]  ;;  %v5504_v20 = vpack.c.bf16 %v489_v11, %v479_v10  ;;  %v5518_v10 = vpack.c.bf16 %v570_v0, %v560_v63  ;;  %v561_v11 = vld [vmem:[%s11699_s1 + $0x7a0] sm:$0xff] }
  0x9f   : > { %2101 = vmatprep.mubr.f32.mxu0 %v7323_v29  ;;  %5487 = vmatprep.subr.bf16.mxu1 %v5486_v16  ;;  %v264_v12 = vld [vmem:[%s7684_s17 + $0x1d8] sm:$0xff]  ;;  %v5722_v16 = vpack.c.bf16 %v492_v7, %v482_v6  ;;  %v5724_v24 = vpack.c.bf16 %v491_v15, %v481_v14  ;;  %v559_v7 = vld [vmem:[%s11699_s1 + $0x790] sm:$0xff]  ;;  %v590_v15 = vld [vmem:[%s11699_s1 + $0x888] sm:$0xff] }
  0xa0   : > { %1780 = vmatmul.mubr.f32.gmra.mrb[8].mxu1 %v235_v22  ;;  %5707 = vmatprep.subr.bf16.mxu0 %v5706_v19  ;;  %v263_v19 = vld [vmem:[%s7684_s17 + $0x1d0] sm:$0xff]  ;;  %v512_v22 = vld [vmem:[%s11699_s1 + $0x618] sm:$0xff]  ;;  %v642_v0 = vld [vmem:[%s11699_s1 + $0xa28] sm:$0xff] }
  0xa1   : > { %5165 = vmatmul.mubr.msk.f32.gmra.mrb[8].mxu0 %vm1481_vm0, %v239_v26  ;;  %5489 = vmatpush1.bf16.msra.mxu1 %v5488_v23  ;;  %v267_v23 = vld [vmem:[%s7684_s17 + $0x1f0] sm:$0xff]  ;;  %v509_v26 = vld [vmem:[%s11699_s1 + $0x600] sm:$0xff]  ;;  %v580_v14 = vld [vmem:[%s11699_s1 + $0x838] sm:$0xff] }
  0xa2   : > { %5709 = vmatpush1.bf16.msra.mxu0 %v5708_v27  ;;  %1785 = vmatprep.mubr.f32.mxu1 %v243_v31  ;;  %v271_v27 = vld [vmem:[%s7684_s17 + $0x210] sm:$0xff]  ;;  %v5508_v36 = vpack.c.bf16 %v509_v26, %v499_v25  ;;  %v5522_v25 = vpack.c.bf16 %v590_v15, %v580_v14  ;;  %v581_v26 = vld [vmem:[%s11699_s1 + $0x840] sm:$0xff]  ;;  %v672_v14 = vld [vmem:[%s11699_s1 + $0xb18] sm:$0xff] }
  0xa3   : > { %2107 = vmatprep.mubr.f32.mxu0 %v7323_v29  ;;  %5491 = vmatprep.subr.bf16.mxu1 %v5490_v32  ;;  %v511_v31 = vld [vmem:[%s11699_s1 + $0x610] sm:$0xff]  ;;  %v5726_v32 = vpack.c.bf16 %v512_v22, %v502_v21  ;;  %v7034_v15 = vld [vmem:[%s7684_s17 + $0x8] sm:$0xff] }
  0xa4   : > { %1786 = vmatmul.mubr.f32.gmra.mrb[10].mxu1 %v242_v38  ;;  %5711 = vmatprep.subr.bf16.mxu0 %v5710_v35  ;;  %v270_v35 = vld [vmem:[%s7684_s17 + $0x208] sm:$0xff]  ;;  %v532_v38 = vld [vmem:[%s11699_s1 + $0x6b8] sm:$0xff]  ;;  %v5728_v40 = vpack.c.bf16 %v511_v31, %v501_v30  ;;  %v579_v22 = vld [vmem:[%s11699_s1 + $0x830] sm:$0xff] }
  0xa5   : > { %5166 = vmatmul.mubr.msk.f32.gmra.mrb[10].mxu0 %vm1481_vm0, %v246_v42  ;;  %5493 = vmatpush1.bf16.msra.mxu1 %v5492_v39  ;;  %v274_v39 = vld [vmem:[%s7684_s17 + $0x228] sm:$0xff]  ;;  %v529_v42 = vld [vmem:[%s11699_s1 + $0x6a0] sm:$0xff]  ;;  %v600_v30 = vld [vmem:[%s11699_s1 + $0x8d8] sm:$0xff] }
  0xa6   : > { %5713 = vmatpush1.bf16.msra.mxu0 %v5712_v43  ;;  %1791 = vmatprep.mubr.f32.mxu1 %v250_v46  ;;  %v278_v43 = vld [vmem:[%s7684_s17 + $0x248] sm:$0xff]  ;;  %v531_v46 = vld [vmem:[%s11699_s1 + $0x6b0] sm:$0xff]  ;;  %v5512_v51 = vpack.c.bf16 %v529_v42, %v519_v41  ;;  %v601_v42 = vld [vmem:[%s11699_s1 + $0x8e0] sm:$0xff] }
  0xa7   : > { %2113 = vmatprep.mubr.f32.mxu0 %v7323_v29  ;;  %5495 = vmatprep.subr.bf16.mxu1 %v5494_v47  ;;  %v5730_v47 = vpack.c.bf16 %v532_v38, %v522_v37  ;;  %v5732_v55 = vpack.c.bf16 %v531_v46, %v521_v45  ;;  %v610_v31 = vld [vmem:[%s11699_s1 + $0x928] sm:$0xff]  ;;  %v599_v38 = vld [vmem:[%s11699_s1 + $0x8d0] sm:$0xff]  ;;  %v620_v45 = vld [vmem:[%s11699_s1 + $0x978] sm:$0xff] }
  0xa8   : > { %1792 = vmatmul.mubr.f32.gmra.mrb[12].mxu1 %v249_v53  ;;  %5715 = vmatprep.subr.bf16.mxu0 %v5714_v50  ;;  %v277_v50 = vld [vmem:[%s7684_s17 + $0x240] sm:$0xff]  ;;  %v552_v53 = vld [vmem:[%s11699_s1 + $0x758] sm:$0xff]  ;;  %v5526_v41 = vpack.c.bf16 %v610_v31, %v600_v30  ;;  %v630_v46 = vld [vmem:[%s11699_s1 + $0x9c8] sm:$0xff] }
  0xa9   : > { %5167 = vmatmul.mubr.msk.f32.gmra.mrb[12].mxu0 %vm1481_vm0, %v253_v57  ;;  %5497 = vmatpush1.bf16.msra.mxu1 %v5496_v54  ;;  %v281_v54 = vld [vmem:[%s7684_s17 + $0x260] sm:$0xff] }
  0xaa   : > { %5717 = vmatpush1.bf16.msra.mxu0 %v5716_v58  ;;  %1797 = vmatprep.mubr.f32.mxu1 %v257_v61  ;;  %v549_v57 = vld [vmem:[%s11699_s1 + $0x740] sm:$0xff]  ;;  %v551_v61 = vld [vmem:[%s11699_s1 + $0x750] sm:$0xff] }
  0xab   : > { %2119 = vmatprep.mubr.f32.mxu0 %v7323_v29  ;;  %5499 = vmatprep.subr.bf16.mxu1 %v5498_v62  ;;  %v285_v58 = vld [vmem:[%s7684_s17 + $0x280] sm:$0xff]  ;;  %v5734_v62 = vpack.c.bf16 %v552_v53, %v542_v52  ;;  %v5516_v2 = vpack.c.bf16 %v549_v57, %v539_v56  ;;  %v5736_v6 = vpack.c.bf16 %v551_v61, %v541_v60  ;;  %v619_v53 = vld [vmem:[%s11699_s1 + $0x970] sm:$0xff]  ;;  %v640_v60 = vld [vmem:[%s11699_s1 + $0xa18] sm:$0xff] }
  0xac   : > { %1798 = vmatmul.mubr.f32.gmra.mrb[14].mxu1 %v256_v4  ;;  %5719 = vmatprep.subr.bf16.mxu0 %v5718_v1  ;;  %v284_v1 = vld [vmem:[%s7684_s17 + $0x278] sm:$0xff]  ;;  %v5530_v56 = vpack.c.bf16 %v630_v46, %v620_v45  ;;  %v621_v57 = vld [vmem:[%s11699_s1 + $0x980] sm:$0xff]  ;;  %v650_v61 = vld [vmem:[%s11699_s1 + $0xa68] sm:$0xff] }
  0xad   : > { %5168 = vmatmul.mubr.msk.f32.gmra.mrb[14].mxu0 %vm1481_vm0, %v260_v8  ;;  %5501 = vmatpush1.bf16.msra.mxu1 %v5500_v5  ;;  %v572_v4 = vld [vmem:[%s11699_s1 + $0x7f8] sm:$0xff]  ;;  %v569_v8 = vld [vmem:[%s11699_s1 + $0x7e0] sm:$0xff]  ;;  %v699_v46 = vld [vmem:[%s11699_s1 + $0xbf0] sm:$0xff] }
  0xae   : > { %5721 = vmatpush1.bf16.msra.mxu0 %v5720_v9  ;;  %1803 = vmatprep.mubr.f32.mxu1 %v264_v12  ;;  %v288_v5 = vld [vmem:[%s7684_s17 + $0x298] sm:$0xff]  ;;  %v571_v12 = vld [vmem:[%s11699_s1 + $0x7f0] sm:$0xff]  ;;  %v5520_v17 = vpack.c.bf16 %v569_v8, %v559_v7  ;;  %v641_v7 = vld [vmem:[%s11699_s1 + $0xa20] sm:$0xff] }
  0xaf   : > { %2125 = vmatprep.mubr.f32.mxu0 %v7323_v29  ;;  %5503 = vmatprep.subr.bf16.mxu1 %v5502_v13  ;;  %v292_v9 = vld [vmem:[%s7684_s17 + $0x2b8] sm:$0xff]  ;;  %v5738_v13 = vpack.c.bf16 %v572_v4, %v562_v3  ;;  %v5740_v21 = vpack.c.bf16 %v571_v12, %v561_v11  ;;  %v639_v4 = vld [vmem:[%s11699_s1 + $0xa10] sm:$0xff]  ;;  %v670_v11 = vld [vmem:[%s11699_s1 + $0xb08] sm:$0xff] }
  0xb0   : > { %1804 = vmatmul.mubr.f32.gmra.mrb[16].mxu1 %v263_v19  ;;  %5723 = vmatprep.subr.bf16.mxu0 %v5722_v16  ;;  %v291_v16 = vld [vmem:[%s7684_s17 + $0x2b0] sm:$0xff]  ;;  %v592_v19 = vld [vmem:[%s11699_s1 + $0x898] sm:$0xff]  ;;  %v7036_v30 = vld [vmem:[%s7684_s17 + $0x40] sm:$0xff] }
  0xb1   : > { %5169 = vmatmul.mubr.msk.f32.gmra.mrb[16].mxu0 %vm1481_vm0, %v267_v23  ;;  %5505 = vmatpush1.bf16.msra.mxu1 %v5504_v20  ;;  %v295_v20 = vld [vmem:[%s7684_s17 + $0x2d0] sm:$0xff]  ;;  %v589_v23 = vld [vmem:[%s11699_s1 + $0x880] sm:$0xff] }
  0xb2   : > { %5725 = vmatpush1.bf16.msra.mxu0 %v5724_v24  ;;  %1809 = vmatprep.mubr.f32.mxu1 %v271_v27  ;;  %v299_v24 = vld [vmem:[%s7684_s17 + $0x2f0] sm:$0xff]  ;;  %v5524_v33 = vpack.c.bf16 %v589_v23, %v579_v22  ;;  %v7035_v22 = vld [vmem:[%s7684_s17] sm:$0xff] }
  0xb3   : > { %2131 = vmatprep.mubr.f32.mxu0 %v7323_v29  ;;  %5507 = vmatprep.subr.bf16.mxu1 %v5506_v28  ;;  %v591_v27 = vld [vmem:[%s11699_s1 + $0x890] sm:$0xff]  ;;  %v5742_v28 = vpack.c.bf16 %v592_v19, %v582_v18  ;;  %v669_v18 = vld [vmem:[%s11699_s1 + $0xb00] sm:$0xff] }
  0xb4   : > { %1810 = vmatmul.mubr.f32.gmra.mrb[18].mxu1 %v270_v35  ;;  %5727 = vmatprep.subr.bf16.mxu0 %v5726_v32  ;;  %v298_v32 = vld [vmem:[%s7684_s17 + $0x2e8] sm:$0xff]  ;;  %v612_v35 = vld [vmem:[%s11699_s1 + $0x938] sm:$0xff]  ;;  %v5744_v37 = vpack.c.bf16 %v591_v27, %v581_v26  ;;  %v651_v8 = vld [vmem:[%s11699_s1 + $0xa70] sm:$0xff] }
  0xb5   : > { %5170 = vmatmul.mubr.msk.f32.gmra.mrb[18].mxu0 %vm1481_vm0, %v274_v39  ;;  %5509 = vmatpush1.bf16.msra.mxu1 %v5508_v36  ;;  %v302_v36 = vld [vmem:[%s7684_s17 + $0x308] sm:$0xff]  ;;  %v609_v39 = vld [vmem:[%s11699_s1 + $0x920] sm:$0xff] }
  0xb6   : > { %5729 = vmatpush1.bf16.msra.mxu0 %v5728_v40  ;;  %1815 = vmatprep.mubr.f32.mxu1 %v278_v43  ;;  %v306_v40 = vld [vmem:[%s7684_s17 + $0x328] sm:$0xff]  ;;  %v611_v43 = vld [vmem:[%s11699_s1 + $0x930] sm:$0xff]  ;;  %v5528_v48 = vpack.c.bf16 %v609_v39, %v599_v38  ;;  %v700_v39 = vld [vmem:[%s11699_s1 + $0xbf8] sm:$0xff] }
  0xb7   : > { %2137 = vmatprep.mubr.f32.mxu0 %v7323_v29  ;;  %5511 = vmatprep.subr.bf16.mxu1 %v5510_v44  ;;  %v5746_v44 = vpack.c.bf16 %v612_v35, %v602_v34  ;;  %v5748_v52 = vpack.c.bf16 %v611_v43, %v601_v42  ;;  %v682_v27 = vld [vmem:[%s11699_s1 + $0xb68] sm:$0xff]  ;;  %v681_v35 = vld [vmem:[%s11699_s1 + $0xb60] sm:$0xff]  ;;  %v712_v43 = vld [vmem:[%s11699_s1 + $0xc58] sm:$0xff] }
  0xb8   : > { %1816 = vmatmul.mubr.f32.gmra.mrb[20].mxu1 %v277_v50  ;;  %5731 = vmatprep.subr.bf16.mxu0 %v5730_v47  ;;  %v305_v47 = vld [vmem:[%s7684_s17 + $0x320] sm:$0xff]  ;;  %v632_v50 = vld [vmem:[%s11699_s1 + $0x9d8] sm:$0xff]  ;;  %v702_v42 = vld [vmem:[%s11699_s1 + $0xc08] sm:$0xff] }
  0xb9   : > { %5171 = vmatmul.mubr.msk.f32.gmra.mrb[20].mxu0 %vm1481_vm0, %v281_v54  ;;  %5513 = vmatpush1.bf16.msra.mxu1 %v5512_v51  ;;  %v309_v51 = vld [vmem:[%s7684_s17 + $0x340] sm:$0xff] }
  0xba   : > { %5733 = vmatpush1.bf16.msra.mxu0 %v5732_v55  ;;  %1821 = vmatprep.mubr.f32.mxu1 %v285_v58  ;;  %v629_v54 = vld [vmem:[%s11699_s1 + $0x9c0] sm:$0xff]  ;;  %v631_v58 = vld [vmem:[%s11699_s1 + $0x9d0] sm:$0xff] }
  0xbb   : > { %2143 = vmatprep.mubr.f32.mxu0 %v7323_v29  ;;  %5515 = vmatprep.subr.bf16.mxu1 %v5514_v59  ;;  %v313_v55 = vld [vmem:[%s7684_s17 + $0x360] sm:$0xff]  ;;  %v5750_v59 = vpack.c.bf16 %v632_v50, %v622_v49  ;;  %v5532_v63 = vpack.c.bf16 %v629_v54, %v619_v53  ;;  %v5752_v3 = vpack.c.bf16 %v631_v58, %v621_v57  ;;  %v711_v50 = vld [vmem:[%s11699_s1 + $0xc50] sm:$0xff]  ;;  %v720_v53 = vld [vmem:[%s11699_s1 + $0xc98] sm:$0xff] }
  0xbc   : > { %1822 = vmatmul.mubr.f32.gmra.mrb[22].mxu1 %v284_v1  ;;  %5735 = vmatprep.subr.bf16.mxu0 %v5734_v62  ;;  %v312_v62 = vld [vmem:[%s7684_s17 + $0x358] sm:$0xff]  ;;  %v701_v49 = vld [vmem:[%s11699_s1 + $0xc00] sm:$0xff]  ;;  %v730_v54 = vld [vmem:[%s11699_s1 + $0xce8] sm:$0xff] }
  0xbd   : > { %5172 = vmatmul.mubr.msk.f32.gmra.mrb[22].mxu0 %vm1481_vm0, %v288_v5  ;;  %5517 = vmatpush1.bf16.msra.mxu1 %v5516_v2  ;;  %v652_v1 = vld [vmem:[%s11699_s1 + $0xa78] sm:$0xff]  ;;  %v649_v5 = vld [vmem:[%s11699_s1 + $0xa60] sm:$0xff]  ;;  %v7040_v58 = vld [vmem:[%s7684_s17 + $0xb0] sm:$0xff] }
  0xbe   : > { %5737 = vmatpush1.bf16.msra.mxu0 %v5736_v6  ;;  %1827 = vmatprep.mubr.f32.mxu1 %v292_v9  ;;  %v316_v2 = vld [vmem:[%s7684_s17 + $0x378] sm:$0xff]  ;;  %v5534_v6 = vpack.c.bf16 %v650_v61, %v640_v60  ;;  %v5754_v9 = vpack.c.bf16 %v652_v1, %v642_v0  ;;  %v5536_v12 = vpack.c.bf16 %v649_v5, %v639_v4  ;;  %v719_v60 = vld [vmem:[%s11699_s1 + $0xc90] sm:$0xff]  ;;  %v729_v61 = vld [vmem:[%s11699_s1 + $0xce0] sm:$0xff] }
  0xbf   : > { %2149 = vmatprep.mubr.f32.mxu0 %v7323_v29  ;;  %5519 = vmatprep.subr.bf16.mxu1 %v5518_v10  ;;  %v660_v10 = vld [vmem:[%s11699_s1 + $0xab8] sm:$0xff]  ;;  %v731_v0 = vld [vmem:[%s11699_s1 + $0xcf0] sm:$0xff]  ;;  %v7041_v1 = vld [vmem:[%s7684_s17 + $0xa8] sm:$0xff]  ;;  %v5552_v5 = vpack.c.bf16 %v729_v61, %v719_v60 }
  0xc0   : > { %1828 = vmatmul.mubr.f32.gmra.mrb[24].mxu1 %v291_v16  ;;  %5739 = vmatprep.subr.bf16.mxu0 %v5738_v13  ;;  %v662_v13 = vld [vmem:[%s11699_s1 + $0xac8] sm:$0xff]  ;;  %v5756_v16 = vpack.c.bf16 %v651_v8, %v641_v7  ;;  %v5538_v19 = vpack.c.bf16 %v670_v11, %v660_v10  ;;  %v732_v57 = vld [vmem:[%s11699_s1 + $0xcf8] sm:$0xff]  ;;  %v739_v10 = vld [vmem:[%s11699_s1 + $0xd30] sm:$0xff] }
  0xc1   : > { %5173 = vmatmul.mubr.msk.f32.gmra.mrb[24].mxu0 %vm1481_vm0, %v295_v20  ;;  %5521 = vmatpush1.bf16.msra.mxu1 %v5520_v17  ;;  %v659_v17 = vld [vmem:[%s11699_s1 + $0xab0] sm:$0xff]  ;;  %v661_v20 = vld [vmem:[%s11699_s1 + $0xac0] sm:$0xff]  ;;  %v5758_v23 = vpack.c.bf16 %v672_v14, %v662_v13  ;;  %v750_v4 = vld [vmem:[%s11699_s1 + $0xd88] sm:$0xff] }
  0xc2   : > { %5741 = vmatpush1.bf16.msra.mxu0 %v5740_v21  ;;  %1833 = vmatprep.mubr.f32.mxu1 %v299_v24  ;;  %v671_v21 = vld [vmem:[%s11699_s1 + $0xb10] sm:$0xff]  ;;  %v680_v24 = vld [vmem:[%s11699_s1 + $0xb58] sm:$0xff]  ;;  %v5540_v26 = vpack.c.bf16 %v669_v18, %v659_v17  ;;  %v7042_v8 = vld [vmem:[%s7684_s17 + $0xe8] sm:$0xff] }
  0xc3   : > { %2155 = vmatprep.mubr.f32.mxu0 %v7323_v29  ;;  %5523 = vmatprep.subr.bf16.mxu1 %v5522_v25  ;;  %v690_v25 = vld [vmem:[%s11699_s1 + $0xba8] sm:$0xff]  ;;  %v5760_v31 = vpack.c.bf16 %v671_v21, %v661_v20  ;;  %v752_v7 = vld [vmem:[%s11699_s1 + $0xd98] sm:$0xff]  ;;  %v749_v11 = vld [vmem:[%s11699_s1 + $0xd80] sm:$0xff] }
  0xc4   : > { %1834 = vmatmul.mubr.f32.gmra.mrb[26].mxu1 %v298_v32  ;;  %5743 = vmatprep.subr.bf16.mxu0 %v5742_v28  ;;  %v692_v28 = vld [vmem:[%s11699_s1 + $0xbb8] sm:$0xff]  ;;  %v679_v32 = vld [vmem:[%s11699_s1 + $0xb50] sm:$0xff]  ;;  %v5542_v34 = vpack.c.bf16 %v690_v25, %v680_v24  ;;  %v741_v13 = vld [vmem:[%s11699_s1 + $0xd40] sm:$0xff] }
  0xc5   : > { %5174 = vmatmul.mubr.msk.f32.gmra.mrb[26].mxu0 %vm1481_vm0, %v302_v36  ;;  %5525 = vmatpush1.bf16.msra.mxu1 %v5524_v33  ;;  %v689_v33 = vld [vmem:[%s11699_s1 + $0xba0] sm:$0xff]  ;;  %v691_v36 = vld [vmem:[%s11699_s1 + $0xbb0] sm:$0xff]  ;;  %v5762_v38 = vpack.c.bf16 %v692_v28, %v682_v27  ;;  %v760_v17 = vld [vmem:[%s11699_s1 + $0xdd8] sm:$0xff] }
  0xc6   : > { %5745 = vmatpush1.bf16.msra.mxu0 %v5744_v37  ;;  %1839 = vmatprep.mubr.f32.mxu1 %v306_v40  ;;  %v7037_v37 = vld [vmem:[%s7684_s17 + $0x38] sm:$0xff]  ;;  %v710_v40 = vld [vmem:[%s11699_s1 + $0xc48] sm:$0xff]  ;;  %v5764_v45 = vpack.c.bf16 %v691_v36, %v681_v35  ;;  %v751_v14 = vld [vmem:[%s11699_s1 + $0xd90] sm:$0xff] }
  0xc7   : > { %2161 = vmatprep.mubr.f32.mxu0 %v7323_v29  ;;  %5527 = vmatprep.subr.bf16.mxu1 %v5526_v41  ;;  %v5544_v41 = vpack.c.bf16 %v689_v33, %v679_v32  ;;  %v770_v18 = vld [vmem:[%s11699_s1 + $0xe28] sm:$0xff]  ;;  %v772_v21 = vld [vmem:[%s11699_s1 + $0xe38] sm:$0xff]  ;;  %v759_v24 = vld [vmem:[%s11699_s1 + $0xdd0] sm:$0xff] }
  0xc8   : > { %1840 = vmatmul.mubr.f32.gmra.mrb[28].mxu1 %v305_v47  ;;  %5747 = vmatprep.subr.bf16.mxu0 %v5746_v44  ;;  %v7038_v44 = vld [vmem:[%s7684_s17 + $0x78] sm:$0xff]  ;;  %v709_v47 = vld [vmem:[%s11699_s1 + $0xc40] sm:$0xff]  ;;  %v762_v20 = vld [vmem:[%s11699_s1 + $0xde8] sm:$0xff] }
  0xc9   : > { %5175 = vmatmul.mubr.msk.f32.gmra.mrb[28].mxu0 %vm1481_vm0, %v309_v51  ;;  %5529 = vmatpush1.bf16.msra.mxu1 %v5528_v48  ;;  %v5546_v48 = vpack.c.bf16 %v710_v40, %v700_v39  ;;  %v7039_v51 = vld [vmem:[%s7684_s17 + $0x70] sm:$0xff]  ;;  %v769_v25 = vld [vmem:[%s11699_s1 + $0xe20] sm:$0xff]  ;;  %v780_v32 = vld [vmem:[%s11699_s1 + $0xe78] sm:$0xff] }
  0xca   : > { %5749 = vmatpush1.bf16.msra.mxu0 %v5748_v52  ;;  %1845 = vmatprep.mubr.f32.mxu1 %v313_v55  ;;  %v5766_v52 = vpack.c.bf16 %v712_v43, %v702_v42  ;;  %v5548_v55 = vpack.c.bf16 %v709_v47, %v699_v46  ;;  %v761_v27 = vld [vmem:[%s11699_s1 + $0xde0] sm:$0xff]  ;;  %v771_v28 = vld [vmem:[%s11699_s1 + $0xe30] sm:$0xff]  ;;  %v790_v33 = vld [vmem:[%s11699_s1 + $0xec8] sm:$0xff] }
  0xcb   : > { %2167 = vmatprep.mubr.f32.mxu0 %v7323_v29  ;;  %5531 = vmatprep.subr.bf16.mxu1 %v5530_v56  ;;  %v722_v56 = vld [vmem:[%s11699_s1 + $0xca8] sm:$0xff]  ;;  %v792_v36 = vld [vmem:[%s11699_s1 + $0xed8] sm:$0xff]  ;;  %v779_v39 = vld [vmem:[%s11699_s1 + $0xe70] sm:$0xff] }
  0xcc   : > { %1846 = vmatmul.mubr.f32.gmra.mrb[30].mxu1 %v312_v62  ;;  %5751 = vmatprep.subr.bf16.mxu0 %v5750_v59  ;;  %v5768_v59 = vpack.c.bf16 %v711_v50, %v701_v49  ;;  %v5550_v62 = vpack.c.bf16 %v730_v54, %v720_v53  ;;  %v782_v35 = vld [vmem:[%s11699_s1 + $0xe88] sm:$0xff]  ;;  %v789_v40 = vld [vmem:[%s11699_s1 + $0xec0] sm:$0xff]  ;;  %v791_v43 = vld [vmem:[%s11699_s1 + $0xed0] sm:$0xff] }
  0xcd   : > { %5176 = vmatmul.mubr.msk.f32.gmra.mrb[30].mxu0 %vm1481_vm0, %v316_v2  ;;  %5533 = vmatpush1.bf16.msra.mxu1 %v5532_v63  ;;  %v721_v63 = vld [vmem:[%s11699_s1 + $0xca0] sm:$0xff]  ;;  %v5770_v2 = vpack.c.bf16 %v732_v57, %v722_v56  ;;  %v800_v46 = vld [vmem:[%s11699_s1 + $0xf18] sm:$0xff]  ;;  %v810_v47 = vld [vmem:[%s11699_s1 + $0xf68] sm:$0xff] }
  0xce   : > { %5753 = vmatpush1.bf16.msra.mxu0 %v5752_v3  ;;  %2238 = vmatprep.mubr.f32.mxu1 %v7034_v15  ;;  %v740_v3 = vld [vmem:[%s11699_s1 + $0xd38] sm:$0xff]  ;;  %v781_v42 = vld [vmem:[%s11699_s1 + $0xe80] sm:$0xff]  ;;  %v802_v49 = vld [vmem:[%s11699_s1 + $0xf28] sm:$0xff] }
  0xcf   : > { %2882 = vmatprep.mubr.f32.mxu0 %v7034_v15  ;;  %5535 = vmatprep.subr.bf16.mxu1 %v5534_v6  ;;  %v742_v6 = vld [vmem:[%s11699_s1 + $0xd48] sm:$0xff]  ;;  %v7043_v15 = vld [vmem:[%s7684_s17 + $0xe0] sm:$0xff]  ;;  %v812_v50 = vld [vmem:[%s11699_s1 + $0xf78] sm:$0xff] }
  0xd0   : > { %2239 = vmatmul.mubr.f32.vlgmr.msra.gmra.mrb[32].mxu1 %v7035_v22  ;;  %5755 = vmatprep.subr.bf16.mxu0 %v5754_v9  ;;  %v5772_v9 = vpack.c.bf16 %v731_v0, %v721_v63  ;;  %v799_v53 = vld [vmem:[%s11699_s1 + $0xf10] sm:$0xff]  ;;  %v809_v54 = vld [vmem:[%s11699_s1 + $0xf60] sm:$0xff]  ;;  %v820_v60 = vld [vmem:[%s11699_s1 + $0xfb8] sm:$0xff] }
  0xd1   : > { %2883 = vmatmul.mubr.f32.vlgmr.msra.gmra.mrb[32].mxu0 %v7035_v22  ;;  %5537 = vmatpush1.bf16.msra.mxu1 %v5536_v12  ;;  %v5554_v12 = vpack.c.bf16 %v750_v4, %v740_v3  ;;  %v7044_v22 = vld [vmem:[%s7684_s17 + $0x120] sm:$0xff]  ;;  %v811_v57 = vld [vmem:[%s11699_s1 + $0xf70] sm:$0xff]  ;;  %v830_v61 = vld [vmem:[%s11699_s1 + $0x1008] sm:$0xff] }
  0xd2   : > { %5757 = vmatpush1.bf16.msra.mxu0 %v5756_v16  ;;  %2244 = vmatprep.mubr.f32.mxu1 %v7036_v30  ;;  %v5774_v16 = vpack.c.bf16 %v752_v7, %v742_v6  ;;  %v801_v56 = vld [vmem:[%s11699_s1 + $0xf20] sm:$0xff]  ;;  %v822_v63 = vld [vmem:[%s11699_s1 + $0xfc8] sm:$0xff]  ;;  %v832_v0 = vld [vmem:[%s11699_s1 + $0x1018] sm:$0xff] }
  0xd3   : > { %2888 = vmatprep.mubr.f32.mxu0 %v7036_v30  ;;  %5539 = vmatprep.subr.bf16.mxu1 %v5538_v19  ;;  %v5556_v19 = vpack.c.bf16 %v749_v11, %v739_v10  ;;  %v7045_v30 = vld [vmem:[%s7684_s17 + $0x118] sm:$0xff]  ;;  %v819_v3 = vld [vmem:[%s11699_s1 + $0xfb0] sm:$0xff]  ;;  %v829_v4 = vld [vmem:[%s11699_s1 + $0x1000] sm:$0xff] }
  0xd4   : > { %2245 = vmatmul.mubr.f32.gmra.mrb[34].mxu1 %v7037_v37  ;;  %5759 = vmatprep.subr.bf16.mxu0 %v5758_v23  ;;  %v5776_v23 = vpack.c.bf16 %v751_v14, %v741_v13  ;;  %v821_v6 = vld [vmem:[%s11699_s1 + $0xfc0] sm:$0xff]  ;;  %v831_v7 = vld [vmem:[%s11699_s1 + $0x1010] sm:$0xff]  ;;  %v840_v10 = vld [vmem:[%s11699_s1 + $0x1058] sm:$0xff] }
  0xd5   : > { %2889 = vmatmul.mubr.f32.gmra.mrb[34].mxu0 %v7037_v37  ;;  %5541 = vmatpush1.bf16.msra.mxu1 %v5540_v26  ;;  %v5558_v26 = vpack.c.bf16 %v770_v18, %v760_v17  ;;  %v7046_v37 = vld [vmem:[%s7684_s17 + $0x158] sm:$0xff]  ;;  %v850_v11 = vld [vmem:[%s11699_s1 + $0x10a8] sm:$0xff]  ;;  %v839_v17 = vld [vmem:[%s11699_s1 + $0x1050] sm:$0xff] }
  0xd6   : > { %5761 = vmatpush1.bf16.msra.mxu0 %v5760_v31  ;;  %2250 = vmatprep.mubr.f32.mxu1 %v7038_v44  ;;  %v5778_v31 = vpack.c.bf16 %v772_v21, %v762_v20  ;;  %v842_v13 = vld [vmem:[%s11699_s1 + $0x1068] sm:$0xff]  ;;  %v852_v14 = vld [vmem:[%s11699_s1 + $0x10b8] sm:$0xff]  ;;  %v849_v18 = vld [vmem:[%s11699_s1 + $0x10a0] sm:$0xff] }
  0xd7   : > { %2894 = vmatprep.mubr.f32.mxu0 %v7038_v44  ;;  %5543 = vmatprep.subr.bf16.mxu1 %v5542_v34  ;;  %v5560_v34 = vpack.c.bf16 %v769_v25, %v759_v24  ;;  %v7047_v44 = vld [vmem:[%s7684_s17 + $0x150] sm:$0xff]  ;;  %v841_v20 = vld [vmem:[%s11699_s1 + $0x1060] sm:$0xff]  ;;  %v860_v24 = vld [vmem:[%s11699_s1 + $0x10f8] sm:$0xff] }
  0xd8   : > { %2251 = vmatmul.mubr.f32.gmra.mrb[36].mxu1 %v7039_v51  ;;  %5763 = vmatprep.subr.bf16.mxu0 %v5762_v38  ;;  %v5780_v38 = vpack.c.bf16 %v771_v28, %v761_v27  ;;  %v851_v21 = vld [vmem:[%s11699_s1 + $0x10b0] sm:$0xff]  ;;  %v870_v25 = vld [vmem:[%s11699_s1 + $0x1148] sm:$0xff]  ;;  %v872_v28 = vld [vmem:[%s11699_s1 + $0x1158] sm:$0xff] }
  0xd9   : > { %2895 = vmatmul.mubr.f32.gmra.mrb[36].mxu0 %v7039_v51  ;;  %5545 = vmatpush1.bf16.msra.mxu1 %v5544_v41  ;;  %v5562_v41 = vpack.c.bf16 %v790_v33, %v780_v32  ;;  %v7048_v51 = vld [vmem:[%s7684_s17 + $0x190] sm:$0xff]  ;;  %v862_v27 = vld [vmem:[%s11699_s1 + $0x1108] sm:$0xff]  ;;  %v869_v33 = vld [vmem:[%s11699_s1 + $0x1140] sm:$0xff] }
  0xda   : > { %5765 = vmatpush1.bf16.msra.mxu0 %v5764_v45  ;;  %2256 = vmatprep.mubr.f32.mxu1 %v7040_v58  ;;  %v5782_v45 = vpack.c.bf16 %v792_v36, %v782_v35  ;;  %v859_v32 = vld [vmem:[%s11699_s1 + $0x10f0] sm:$0xff]  ;;  %v861_v35 = vld [vmem:[%s11699_s1 + $0x1100] sm:$0xff] }
  0xdb   : > { %2900 = vmatprep.mubr.f32.mxu0 %v7040_v58  ;;  %5547 = vmatprep.subr.bf16.mxu1 %v5546_v48  ;;  %v5564_v48 = vpack.c.bf16 %v789_v40, %v779_v39  ;;  %v7049_v58 = vld [vmem:[%s7684_s17 + $0x188] sm:$0xff]  ;;  %v871_v36 = vld [vmem:[%s11699_s1 + $0x1150] sm:$0xff]  ;;  %v880_v39 = vld [vmem:[%s11699_s1 + $0x1198] sm:$0xff] }
  0xdc   : > { %2257 = vmatmul.mubr.f32.gmra.mrb[38].mxu1 %v7041_v1  ;;  %5767 = vmatprep.subr.bf16.mxu0 %v5766_v52  ;;  %v5784_v52 = vpack.c.bf16 %v791_v43, %v781_v42  ;;  %v890_v40 = vld [vmem:[%s11699_s1 + $0x11e8] sm:$0xff]  ;;  %v892_v43 = vld [vmem:[%s11699_s1 + $0x11f8] sm:$0xff] }
  0xdd   : > { %2901 = vmatmul.mubr.f32.gmra.mrb[38].mxu0 %v7041_v1  ;;  %5549 = vmatpush1.bf16.msra.mxu1 %v5548_v55  ;;  %v5566_v55 = vpack.c.bf16 %v810_v47, %v800_v46  ;;  %v7050_v1 = vld [vmem:[%s7684_s17 + $0x1c8] sm:$0xff]  ;;  %v879_v46 = vld [vmem:[%s11699_s1 + $0x1190] sm:$0xff]  ;;  %v889_v47 = vld [vmem:[%s11699_s1 + $0x11e0] sm:$0xff] }
  0xde   : > { %5769 = vmatpush1.bf16.msra.mxu0 %v5768_v59  ;;  %2262 = vmatprep.mubr.f32.mxu1 %v7042_v8  ;;  %v5786_v59 = vpack.c.bf16 %v812_v50, %v802_v49  ;;  %v882_v42 = vld [vmem:[%s11699_s1 + $0x11a8] sm:$0xff]  ;;  %v881_v49 = vld [vmem:[%s11699_s1 + $0x11a0] sm:$0xff]  ;;  %v891_v50 = vld [vmem:[%s11699_s1 + $0x11f0] sm:$0xff] }
  0xdf   : > { %2906 = vmatprep.mubr.f32.mxu0 %v7042_v8  ;;  %5551 = vmatprep.subr.bf16.mxu1 %v5550_v62  ;;  %v5568_v62 = vpack.c.bf16 %v809_v54, %v799_v53  ;;  %v7051_v8 = vld [vmem:[%s7684_s17 + $0x1c0] sm:$0xff]  ;;  %v900_v53 = vld [vmem:[%s11699_s1 + $0x1238] sm:$0xff]  ;;  %v910_v54 = vld [vmem:[%s11699_s1 + $0x1288] sm:$0xff] }
  0xe0   : > { %2263 = vmatmul.mubr.f32.gmra.mrb[40].mxu1 %v7043_v15  ;;  %5771 = vmatprep.subr.bf16.mxu0 %v5770_v2  ;;  %v5788_v2 = vpack.c.bf16 %v811_v57, %v801_v56  ;;  %v902_v56 = vld [vmem:[%s11699_s1 + $0x1248] sm:$0xff]  ;;  %v912_v57 = vld [vmem:[%s11699_s1 + $0x1298] sm:$0xff] }
  0xe1   : > { %2907 = vmatmul.mubr.f32.gmra.mrb[40].mxu0 %v7043_v15  ;;  %5553 = vmatpush1.bf16.msra.mxu1 %v5552_v5  ;;  %v5570_v5 = vpack.c.bf16 %v830_v61, %v820_v60  ;;  %v7052_v15 = vld [vmem:[%s7684_s17 + $0x200] sm:$0xff]  ;;  %v899_v60 = vld [vmem:[%s11699_s1 + $0x1230] sm:$0xff] }
  0xe2   : > { %5773 = vmatpush1.bf16.msra.mxu0 %v5772_v9  ;;  %2268 = vmatprep.mubr.f32.mxu1 %v7044_v22  ;;  %v5790_v9 = vpack.c.bf16 %v832_v0, %v822_v63  ;;  %v909_v61 = vld [vmem:[%s11699_s1 + $0x1280] sm:$0xff]  ;;  %v911_v0 = vld [vmem:[%s11699_s1 + $0x1290] sm:$0xff] }
  0xe3   : > { %2912 = vmatprep.mubr.f32.mxu0 %v7044_v22  ;;  %5555 = vmatprep.subr.bf16.mxu1 %v5554_v12  ;;  %v5572_v12 = vpack.c.bf16 %v829_v4, %v819_v3  ;;  %v7053_v22 = vld [vmem:[%s7684_s17 + $0x1f8] sm:$0xff]  ;;  %v901_v63 = vld [vmem:[%s11699_s1 + $0x1240] sm:$0xff]  ;;  %v930_v4 = vld [vmem:[%s11699_s1 + $0x1328] sm:$0xff] }
  0xe4   : > { %2269 = vmatmul.mubr.f32.gmra.mrb[42].mxu1 %v7045_v30  ;;  %5775 = vmatprep.subr.bf16.mxu0 %v5774_v16  ;;  %v5792_v16 = vpack.c.bf16 %v831_v7, %v821_v6  ;;  %v920_v3 = vld [vmem:[%s11699_s1 + $0x12d8] sm:$0xff]  ;;  %v922_v6 = vld [vmem:[%s11699_s1 + $0x12e8] sm:$0xff] }
  0xe5   : > { %2913 = vmatmul.mubr.f32.gmra.mrb[42].mxu0 %v7045_v30  ;;  %5557 = vmatpush1.bf16.msra.mxu1 %v5556_v19  ;;  %v5574_v19 = vpack.c.bf16 %v850_v11, %v840_v10  ;;  %v7054_v30 = vld [vmem:[%s7684_s17 + $0x238] sm:$0xff]  ;;  %v919_v10 = vld [vmem:[%s11699_s1 + $0x12d0] sm:$0xff]  ;;  %v929_v11 = vld [vmem:[%s11699_s1 + $0x1320] sm:$0xff] }
  0xe6   : > { %5777 = vmatpush1.bf16.msra.mxu0 %v5776_v23  ;;  %2274 = vmatprep.mubr.f32.mxu1 %v7046_v37  ;;  %v5794_v23 = vpack.c.bf16 %v852_v14, %v842_v13  ;;  %v932_v7 = vld [vmem:[%s11699_s1 + $0x1338] sm:$0xff]  ;;  %v921_v13 = vld [vmem:[%s11699_s1 + $0x12e0] sm:$0xff]  ;;  %v931_v14 = vld [vmem:[%s11699_s1 + $0x1330] sm:$0xff] }
  0xe7   : > { %2918 = vmatprep.mubr.f32.mxu0 %v7046_v37  ;;  %5559 = vmatprep.subr.bf16.mxu1 %v5558_v26  ;;  %v5576_v26 = vpack.c.bf16 %v849_v18, %v839_v17  ;;  %v7055_v37 = vld [vmem:[%s7684_s17 + $0x230] sm:$0xff]  ;;  %v940_v17 = vld [vmem:[%s11699_s1 + $0x1378] sm:$0xff]  ;;  %v950_v18 = vld [vmem:[%s11699_s1 + $0x13c8] sm:$0xff] }
  0xe8   : > { %2275 = vmatmul.mubr.f32.gmra.mrb[44].mxu1 %v7047_v44  ;;  %5779 = vmatprep.subr.bf16.mxu0 %v5778_v31  ;;  %v5796_v31 = vpack.c.bf16 %v851_v21, %v841_v20  ;;  %v942_v20 = vld [vmem:[%s11699_s1 + $0x1388] sm:$0xff]  ;;  %v952_v21 = vld [vmem:[%s11699_s1 + $0x13d8] sm:$0xff] }
  0xe9   : > { %2919 = vmatmul.mubr.f32.gmra.mrb[44].mxu0 %v7047_v44  ;;  %5561 = vmatpush1.bf16.msra.mxu1 %v5560_v34  ;;  %v5578_v34 = vpack.c.bf16 %v870_v25, %v860_v24  ;;  %v7056_v44 = vld [vmem:[%s7684_s17 + $0x270] sm:$0xff]  ;;  %v949_v25 = vld [vmem:[%s11699_s1 + $0x13c0] sm:$0xff] }
  0xea   : > { %5781 = vmatpush1.bf16.msra.mxu0 %v5780_v38  ;;  %2280 = vmatprep.mubr.f32.mxu1 %v7048_v51  ;;  %v5798_v38 = vpack.c.bf16 %v872_v28, %v862_v27  ;;  %v939_v24 = vld [vmem:[%s11699_s1 + $0x1370] sm:$0xff]  ;;  %v941_v27 = vld [vmem:[%s11699_s1 + $0x1380] sm:$0xff] }
  0xeb   : > { %2924 = vmatprep.mubr.f32.mxu0 %v7048_v51  ;;  %5563 = vmatprep.subr.bf16.mxu1 %v5562_v41  ;;  %v5580_v41 = vpack.c.bf16 %v869_v33, %v859_v32  ;;  %v7057_v51 = vld [vmem:[%s7684_s17 + $0x268] sm:$0xff]  ;;  %v951_v28 = vld [vmem:[%s11699_s1 + $0x13d0] sm:$0xff]  ;;  %v960_v32 = vld [vmem:[%s11699_s1 + $0x1418] sm:$0xff] }
  0xec   : > { %2281 = vmatmul.mubr.f32.gmra.mrb[46].mxu1 %v7049_v58  ;;  %5783 = vmatprep.subr.bf16.mxu0 %v5782_v45  ;;  %v5800_v45 = vpack.c.bf16 %v871_v36, %v861_v35  ;;  %v970_v33 = vld [vmem:[%s11699_s1 + $0x1468] sm:$0xff]  ;;  %v972_v36 = vld [vmem:[%s11699_s1 + $0x1478] sm:$0xff] }
  0xed   : > { %2925 = vmatmul.mubr.f32.gmra.mrb[46].mxu0 %v7049_v58  ;;  %5565 = vmatpush1.bf16.msra.mxu1 %v5564_v48  ;;  %v5582_v48 = vpack.c.bf16 %v890_v40, %v880_v39  ;;  %v7058_v58 = vld [vmem:[%s7684_s17 + $0x2a8] sm:$0xff]  ;;  %v959_v39 = vld [vmem:[%s11699_s1 + $0x1410] sm:$0xff]  ;;  %v969_v40 = vld [vmem:[%s11699_s1 + $0x1460] sm:$0xff] }
  0xee   : > { %5785 = vmatpush1.bf16.msra.mxu0 %v5784_v52  ;;  %2286 = vmatprep.mubr.f32.mxu1 %v7050_v1  ;;  %v5802_v52 = vpack.c.bf16 %v892_v43, %v882_v42  ;;  %v962_v35 = vld [vmem:[%s11699_s1 + $0x1428] sm:$0xff]  ;;  %v961_v42 = vld [vmem:[%s11699_s1 + $0x1420] sm:$0xff]  ;;  %v971_v43 = vld [vmem:[%s11699_s1 + $0x1470] sm:$0xff] }
  0xef   : > { %2930 = vmatprep.mubr.f32.mxu0 %v7050_v1  ;;  %5567 = vmatprep.subr.bf16.mxu1 %v5566_v55  ;;  %v5584_v55 = vpack.c.bf16 %v889_v47, %v879_v46  ;;  %v7059_v1 = vld [vmem:[%s7684_s17 + $0x2a0] sm:$0xff]  ;;  %v980_v46 = vld [vmem:[%s11699_s1 + $0x14b8] sm:$0xff]  ;;  %v990_v47 = vld [vmem:[%s11699_s1 + $0x1508] sm:$0xff] }
  0xf0   : > { %2287 = vmatmul.mubr.f32.gmra.mrb[48].mxu1 %v7051_v8  ;;  %5787 = vmatprep.subr.bf16.mxu0 %v5786_v59  ;;  %v5804_v59 = vpack.c.bf16 %v891_v50, %v881_v49  ;;  %v982_v49 = vld [vmem:[%s11699_s1 + $0x14c8] sm:$0xff]  ;;  %v992_v50 = vld [vmem:[%s11699_s1 + $0x1518] sm:$0xff] }
  0xf1   : > { %2931 = vmatmul.mubr.f32.gmra.mrb[48].mxu0 %v7051_v8  ;;  %5569 = vmatpush1.bf16.msra.mxu1 %v5568_v62  ;;  %v5586_v62 = vpack.c.bf16 %v910_v54, %v900_v53  ;;  %v7060_v8 = vld [vmem:[%s7684_s17 + $0x2e0] sm:$0xff]  ;;  %v979_v53 = vld [vmem:[%s11699_s1 + $0x14b0] sm:$0xff] }
  0xf2   : > { %5789 = vmatpush1.bf16.msra.mxu0 %v5788_v2  ;;  %2292 = vmatprep.mubr.f32.mxu1 %v7052_v15  ;;  %v5806_v2 = vpack.c.bf16 %v912_v57, %v902_v56  ;;  %v989_v54 = vld [vmem:[%s11699_s1 + $0x1500] sm:$0xff]  ;;  %v991_v57 = vld [vmem:[%s11699_s1 + $0x1510] sm:$0xff] }
  0xf3   : > { %2936 = vmatprep.mubr.f32.mxu0 %v7052_v15  ;;  %5571 = vmatprep.subr.bf16.mxu1 %v5570_v5  ;;  %v5588_v5 = vpack.c.bf16 %v909_v61, %v899_v60  ;;  %v7061_v15 = vld [vmem:[%s7684_s17 + $0x2d8] sm:$0xff]  ;;  %v981_v56 = vld [vmem:[%s11699_s1 + $0x14c0] sm:$0xff]  ;;  %v1010_v61 = vld [vmem:[%s11699_s1 + $0x15a8] sm:$0xff] }
  0xf4   : > { %2293 = vmatmul.mubr.f32.gmra.mrb[50].mxu1 %v7053_v22  ;;  %5791 = vmatprep.subr.bf16.mxu0 %v5790_v9  ;;  %v5808_v9 = vpack.c.bf16 %v911_v0, %v901_v63  ;;  %v1000_v60 = vld [vmem:[%s11699_s1 + $0x1558] sm:$0xff]  ;;  %v1002_v63 = vld [vmem:[%s11699_s1 + $0x1568] sm:$0xff] }
  0xf5   : > { %2937 = vmatmul.mubr.f32.gmra.mrb[50].mxu0 %v7053_v22  ;;  %5573 = vmatpush1.bf16.msra.mxu1 %v5572_v12  ;;  %v5590_v12 = vpack.c.bf16 %v930_v4, %v920_v3  ;;  %v7062_v22 = vld [vmem:[%s7684_s17 + $0x318] sm:$0xff]  ;;  %v999_v3 = vld [vmem:[%s11699_s1 + $0x1550] sm:$0xff]  ;;  %v1009_v4 = vld [vmem:[%s11699_s1 + $0x15a0] sm:$0xff] }
  0xf6   : > { %5793 = vmatpush1.bf16.msra.mxu0 %v5792_v16  ;;  %2298 = vmatprep.mubr.f32.mxu1 %v7054_v30  ;;  %v5810_v16 = vpack.c.bf16 %v932_v7, %v922_v6  ;;  %v1012_v0 = vld [vmem:[%s11699_s1 + $0x15b8] sm:$0xff]  ;;  %v1001_v6 = vld [vmem:[%s11699_s1 + $0x1560] sm:$0xff]  ;;  %v1011_v7 = vld [vmem:[%s11699_s1 + $0x15b0] sm:$0xff] }
  0xf7   : > { %2942 = vmatprep.mubr.f32.mxu0 %v7054_v30  ;;  %5575 = vmatprep.subr.bf16.mxu1 %v5574_v19  ;;  %v5592_v19 = vpack.c.bf16 %v929_v11, %v919_v10  ;;  %v7063_v30 = vld [vmem:[%s7684_s17 + $0x310] sm:$0xff]  ;;  %v1020_v10 = vld [vmem:[%s11699_s1 + $0x15f8] sm:$0xff]  ;;  %v1030_v11 = vld [vmem:[%s11699_s1 + $0x1648] sm:$0xff] }
  0xf8   : > { %2299 = vmatmul.mubr.f32.gmra.mrb[52].mxu1 %v7055_v37  ;;  %5795 = vmatprep.subr.bf16.mxu0 %v5794_v23  ;;  %v5812_v23 = vpack.c.bf16 %v931_v14, %v921_v13  ;;  %v1022_v13 = vld [vmem:[%s11699_s1 + $0x1608] sm:$0xff]  ;;  %v1032_v14 = vld [vmem:[%s11699_s1 + $0x1658] sm:$0xff] }
  0xf9   : > { %2943 = vmatmul.mubr.f32.gmra.mrb[52].mxu0 %v7055_v37  ;;  %5577 = vmatpush1.bf16.msra.mxu1 %v5576_v26  ;;  %v5594_v26 = vpack.c.bf16 %v950_v18, %v940_v17  ;;  %v7064_v37 = vld [vmem:[%s7684_s17 + $0x350] sm:$0xff]  ;;  %v1029_v18 = vld [vmem:[%s11699_s1 + $0x1640] sm:$0xff] }
  0xfa   : > { %5797 = vmatpush1.bf16.msra.mxu0 %v5796_v31  ;;  %2304 = vmatprep.mubr.f32.mxu1 %v7056_v44  ;;  %v5814_v31 = vpack.c.bf16 %v952_v21, %v942_v20  ;;  %v1019_v17 = vld [vmem:[%s11699_s1 + $0x15f0] sm:$0xff]  ;;  %v1021_v20 = vld [vmem:[%s11699_s1 + $0x1600] sm:$0xff] }
  0xfb   : > { %2948 = vmatprep.mubr.f32.mxu0 %v7056_v44  ;;  %5579 = vmatprep.subr.bf16.mxu1 %v5578_v34  ;;  %v5596_v34 = vpack.c.bf16 %v949_v25, %v939_v24  ;;  %v7065_v44 = vld [vmem:[%s7684_s17 + $0x348] sm:$0xff]  ;;  %v1031_v21 = vld [vmem:[%s11699_s1 + $0x1650] sm:$0xff]  ;;  %v1040_v24 = vld [vmem:[%s11699_s1 + $0x1698] sm:$0xff] }
  0xfc   : > { %2305 = vmatmul.mubr.f32.gmra.mrb[54].mxu1 %v7057_v51  ;;  %5799 = vmatprep.subr.bf16.mxu0 %v5798_v38  ;;  %v5816_v38 = vpack.c.bf16 %v951_v28, %v941_v27  ;;  %v1050_v25 = vld [vmem:[%s11699_s1 + $0x16e8] sm:$0xff]  ;;  %v1052_v28 = vld [vmem:[%s11699_s1 + $0x16f8] sm:$0xff] }
  0xfd   : > { %2949 = vmatmul.mubr.f32.gmra.mrb[54].mxu0 %v7057_v51  ;;  %5581 = vmatpush1.bf16.msra.mxu1 %v5580_v41  ;;  %v5598_v41 = vpack.c.bf16 %v970_v33, %v960_v32  ;;  %v7066_v51 = vld [vmem:[%s7684_s17 + $0x18] sm:$0xff]  ;;  %v1042_v27 = vld [vmem:[%s11699_s1 + $0x16a8] sm:$0xff]  ;;  %v1039_v32 = vld [vmem:[%s11699_s1 + $0x1690] sm:$0xff] }
  0xfe   : > { %5801 = vmatpush1.bf16.msra.mxu0 %v5800_v45  ;;  %2310 = vmatprep.mubr.f32.mxu1 %v7058_v58  ;;  %v5818_v45 = vpack.c.bf16 %v972_v36, %v962_v35  ;;  %v1049_v33 = vld [vmem:[%s11699_s1 + $0x16e0] sm:$0xff]  ;;  %v1051_v36 = vld [vmem:[%s11699_s1 + $0x16f0] sm:$0xff] }
  0xff   : > { %2954 = vmatprep.mubr.f32.mxu0 %v7058_v58  ;;  %5583 = vmatprep.subr.bf16.mxu1 %v5582_v48  ;;  %v5600_v48 = vpack.c.bf16 %v969_v40, %v959_v39  ;;  %v7067_v58 = vld [vmem:[%s7684_s17 + $0x10] sm:$0xff]  ;;  %v1041_v35 = vld [vmem:[%s11699_s1 + $0x16a0] sm:$0xff]  ;;  %v1060_v39 = vld [vmem:[%s11699_s1 + $0x1738] sm:$0xff] }
 0x100   : > { %2311 = vmatmul.mubr.f32.gmra.mrb[56].mxu1 %v7059_v1  ;;  %5803 = vmatprep.subr.bf16.mxu0 %v5802_v52  ;;  %v5820_v52 = vpack.c.bf16 %v971_v43, %v961_v42  ;;  %v1070_v40 = vld [vmem:[%s11699_s1 + $0x1788] sm:$0xff]  ;;  %v1072_v43 = vld [vmem:[%s11699_s1 + $0x1798] sm:$0xff] }
 0x101   : > { %2955 = vmatmul.mubr.f32.gmra.mrb[56].mxu0 %v7059_v1  ;;  %5585 = vmatpush1.bf16.msra.mxu1 %v5584_v55  ;;  %v5602_v55 = vpack.c.bf16 %v990_v47, %v980_v46  ;;  %v7068_v1 = vld [vmem:[%s7684_s17 + $0x50] sm:$0xff]  ;;  %v1062_v42 = vld [vmem:[%s11699_s1 + $0x1748] sm:$0xff]  ;;  %v1069_v47 = vld [vmem:[%s11699_s1 + $0x1780] sm:$0xff] }
 0x102   : > { %5805 = vmatpush1.bf16.msra.mxu0 %v5804_v59  ;;  %2316 = vmatprep.mubr.f32.mxu1 %v7060_v8  ;;  %v5822_v59 = vpack.c.bf16 %v992_v50, %v982_v49  ;;  %v1059_v46 = vld [vmem:[%s11699_s1 + $0x1730] sm:$0xff]  ;;  %v1061_v49 = vld [vmem:[%s11699_s1 + $0x1740] sm:$0xff] }
 0x103   : > { %2960 = vmatprep.mubr.f32.mxu0 %v7060_v8  ;;  %5587 = vmatprep.subr.bf16.mxu1 %v5586_v62  ;;  %v5604_v62 = vpack.c.bf16 %v989_v54, %v979_v53  ;;  %v7069_v8 = vld [vmem:[%s7684_s17 + $0x48] sm:$0xff]  ;;  %v1071_v50 = vld [vmem:[%s11699_s1 + $0x1790] sm:$0xff]  ;;  %v1080_v53 = vld [vmem:[%s11699_s1 + $0x17d8] sm:$0xff] }
 0x104   : > { %2317 = vmatmul.mubr.f32.gmra.mrb[58].mxu1 %v7061_v15  ;;  %5807 = vmatprep.subr.bf16.mxu0 %v5806_v2  ;;  %v5824_v2 = vpack.c.bf16 %v991_v57, %v981_v56  ;;  %v1090_v54 = vld [vmem:[%s11699_s1 + $0x1828] sm:$0xff]  ;;  %v1092_v57 = vld [vmem:[%s11699_s1 + $0x1838] sm:$0xff] }
 0x105   : > { %2961 = vmatmul.mubr.f32.gmra.mrb[58].mxu0 %v7061_v15  ;;  %5589 = vmatpush1.bf16.msra.mxu1 %v5588_v5  ;;  %v5606_v5 = vpack.c.bf16 %v1010_v61, %v1000_v60  ;;  %v7070_v15 = vld [vmem:[%s7684_s17 + $0x88] sm:$0xff]  ;;  %v1079_v60 = vld [vmem:[%s11699_s1 + $0x17d0] sm:$0xff]  ;;  %v1089_v61 = vld [vmem:[%s11699_s1 + $0x1820] sm:$0xff] }
 0x106   : > { %5809 = vmatpush1.bf16.msra.mxu0 %v5808_v9  ;;  %2322 = vmatprep.mubr.f32.mxu1 %v7062_v22  ;;  %v5826_v9 = vpack.c.bf16 %v1012_v0, %v1002_v63  ;;  %v1082_v56 = vld [vmem:[%s11699_s1 + $0x17e8] sm:$0xff]  ;;  %v1081_v63 = vld [vmem:[%s11699_s1 + $0x17e0] sm:$0xff]  ;;  %v1091_v0 = vld [vmem:[%s11699_s1 + $0x1830] sm:$0xff] }
 0x107   : > { %2966 = vmatprep.mubr.f32.mxu0 %v7062_v22  ;;  %5591 = vmatprep.subr.bf16.mxu1 %v5590_v12  ;;  %v5608_v12 = vpack.c.bf16 %v1009_v4, %v999_v3  ;;  %v7071_v22 = vld [vmem:[%s7684_s17 + $0x80] sm:$0xff]  ;;  %v1100_v3 = vld [vmem:[%s11699_s1 + $0x1878] sm:$0xff]  ;;  %v1110_v4 = vld [vmem:[%s11699_s1 + $0x18c8] sm:$0xff] }
 0x108   : > { %2323 = vmatmul.mubr.f32.gmra.mrb[60].mxu1 %v7063_v30  ;;  %5811 = vmatprep.subr.bf16.mxu0 %v5810_v16  ;;  %v5828_v16 = vpack.c.bf16 %v1011_v7, %v1001_v6  ;;  %v1102_v6 = vld [vmem:[%s11699_s1 + $0x1888] sm:$0xff]  ;;  %v1112_v7 = vld [vmem:[%s11699_s1 + $0x18d8] sm:$0xff] }
 0x109   : > { %2967 = vmatmul.mubr.f32.gmra.mrb[60].mxu0 %v7063_v30  ;;  %5593 = vmatpush1.bf16.msra.mxu1 %v5592_v19  ;;  %v5610_v19 = vpack.c.bf16 %v1030_v11, %v1020_v10  ;;  %v7072_v30 = vld [vmem:[%s7684_s17 + $0xc0] sm:$0xff]  ;;  %v1099_v10 = vld [vmem:[%s11699_s1 + $0x1870] sm:$0xff] }
 0x10a   : > { %5813 = vmatpush1.bf16.msra.mxu0 %v5812_v23  ;;  %2328 = vmatprep.mubr.f32.mxu1 %v7064_v37  ;;  %v5830_v23 = vpack.c.bf16 %v1032_v14, %v1022_v13  ;;  %v1109_v11 = vld [vmem:[%s11699_s1 + $0x18c0] sm:$0xff]  ;;  %v1111_v14 = vld [vmem:[%s11699_s1 + $0x18d0] sm:$0xff] }
 0x10b   : > { %2972 = vmatprep.mubr.f32.mxu0 %v7064_v37  ;;  %5595 = vmatprep.subr.bf16.mxu1 %v5594_v26  ;;  %v5612_v26 = vpack.c.bf16 %v1029_v18, %v1019_v17  ;;  %v7073_v37 = vld [vmem:[%s7684_s17 + $0xb8] sm:$0xff]  ;;  %v1101_v13 = vld [vmem:[%s11699_s1 + $0x1880] sm:$0xff]  ;;  %v1130_v18 = vld [vmem:[%s11699_s1 + $0x1968] sm:$0xff] }
 0x10c   : > { %2329 = vmatmul.mubr.f32.gmra.mrb[62].mxu1 %v7065_v44  ;;  %5815 = vmatprep.subr.bf16.mxu0 %v5814_v31  ;;  %v5832_v31 = vpack.c.bf16 %v1031_v21, %v1021_v20  ;;  %v1120_v17 = vld [vmem:[%s11699_s1 + $0x1918] sm:$0xff]  ;;  %v1122_v20 = vld [vmem:[%s11699_s1 + $0x1928] sm:$0xff] }
 0x10d   : > { %2973 = vmatmul.mubr.f32.gmra.mrb[62].mxu0 %v7065_v44  ;;  %5597 = vmatpush1.bf16.msra.mxu1 %v5596_v34  ;;  %v5614_v34 = vpack.c.bf16 %v1050_v25, %v1040_v24  ;;  %v7074_v44 = vld [vmem:[%s7684_s17 + $0xf8] sm:$0xff]  ;;  %v1119_v24 = vld [vmem:[%s11699_s1 + $0x1910] sm:$0xff]  ;;  %v1129_v25 = vld [vmem:[%s11699_s1 + $0x1960] sm:$0xff] }
 0x10e   : > { %5817 = vmatpush1.bf16.msra.mxu0 %v5816_v38  ;;  %2399 = vmatprep.mubr.f32.mxu1 %v7066_v51  ;;  %v5834_v38 = vpack.c.bf16 %v1052_v28, %v1042_v27  ;;  %v1132_v21 = vld [vmem:[%s11699_s1 + $0x1978] sm:$0xff]  ;;  %v1121_v27 = vld [vmem:[%s11699_s1 + $0x1920] sm:$0xff]  ;;  %v1131_v28 = vld [vmem:[%s11699_s1 + $0x1970] sm:$0xff] }
 0x10f   : > { %3043 = vmatprep.mubr.f32.mxu0 %v7066_v51  ;;  %5599 = vmatprep.subr.bf16.mxu1 %v5598_v41  ;;  %v5616_v41 = vpack.c.bf16 %v1049_v33, %v1039_v32  ;;  %v7075_v51 = vld [vmem:[%s7684_s17 + $0xf0] sm:$0xff]  ;;  %v1140_v32 = vld [vmem:[%s11699_s1 + $0x19b8] sm:$0xff]  ;;  %v1150_v33 = vld [vmem:[%s11699_s1 + $0x1a08] sm:$0xff] }
 0x110   : > { %2400 = vmatmul.mubr.f32.vlgmr.msra.gmra.mrb[32].mxu1 %v7067_v58  ;;  %5819 = vmatprep.subr.bf16.mxu0 %v5818_v45  ;;  %v5836_v45 = vpack.c.bf16 %v1051_v36, %v1041_v35  ;;  %v1142_v35 = vld [vmem:[%s11699_s1 + $0x19c8] sm:$0xff]  ;;  %v1152_v36 = vld [vmem:[%s11699_s1 + $0x1a18] sm:$0xff] }
 0x111   : > { %3044 = vmatmul.mubr.f32.vlgmr.msra.gmra.mrb[32].mxu0 %v7067_v58  ;;  %5601 = vmatpush1.bf16.msra.mxu1 %v5600_v48  ;;  %v5618_v48 = vpack.c.bf16 %v1070_v40, %v1060_v39  ;;  %v7076_v58 = vld [vmem:[%s7684_s17 + $0x130] sm:$0xff]  ;;  %v1149_v40 = vld [vmem:[%s11699_s1 + $0x1a00] sm:$0xff] }
 0x112   : > { %5821 = vmatpush1.bf16.msra.mxu0 %v5820_v52  ;;  %2405 = vmatprep.mubr.f32.mxu1 %v7068_v1  ;;  %v5838_v52 = vpack.c.bf16 %v1072_v43, %v1062_v42  ;;  %v1139_v39 = vld [vmem:[%s11699_s1 + $0x19b0] sm:$0xff]  ;;  %v1141_v42 = vld [vmem:[%s11699_s1 + $0x19c0] sm:$0xff] }
 0x113   : > { %3049 = vmatprep.mubr.f32.mxu0 %v7068_v1  ;;  %5603 = vmatprep.subr.bf16.mxu1 %v5602_v55  ;;  %v5620_v55 = vpack.c.bf16 %v1069_v47, %v1059_v46  ;;  %v7077_v1 = vld [vmem:[%s7684_s17 + $0x128] sm:$0xff]  ;;  %v1151_v43 = vld [vmem:[%s11699_s1 + $0x1a10] sm:$0xff]  ;;  %v1160_v46 = vld [vmem:[%s11699_s1 + $0x1a58] sm:$0xff] }
 0x114   : > { %2406 = vmatmul.mubr.f32.gmra.mrb[34].mxu1 %v7069_v8  ;;  %5823 = vmatprep.subr.bf16.mxu0 %v5822_v59  ;;  %v5840_v59 = vpack.c.bf16 %v1071_v50, %v1061_v49  ;;  %v1170_v47 = vld [vmem:[%s11699_s1 + $0x1aa8] sm:$0xff]  ;;  %v1172_v50 = vld [vmem:[%s11699_s1 + $0x1ab8] sm:$0xff] }
 0x115   : > { %3050 = vmatmul.mubr.f32.gmra.mrb[34].mxu0 %v7069_v8  ;;  %5605 = vmatpush1.bf16.msra.mxu1 %v5604_v62  ;;  %v5622_v62 = vpack.c.bf16 %v1090_v54, %v1080_v53  ;;  %v7078_v8 = vld [vmem:[%s7684_s17 + $0x168] sm:$0xff]  ;;  %v1159_v53 = vld [vmem:[%s11699_s1 + $0x1a50] sm:$0xff]  ;;  %v1169_v54 = vld [vmem:[%s11699_s1 + $0x1aa0] sm:$0xff] }
 0x116   : > { %5825 = vmatpush1.bf16.msra.mxu0 %v5824_v2  ;;  %2411 = vmatprep.mubr.f32.mxu1 %v7070_v15  ;;  %v5842_v2 = vpack.c.bf16 %v1092_v57, %v1082_v56  ;;  %v1162_v49 = vld [vmem:[%s11699_s1 + $0x1a68] sm:$0xff]  ;;  %v1161_v56 = vld [vmem:[%s11699_s1 + $0x1a60] sm:$0xff]  ;;  %v1171_v57 = vld [vmem:[%s11699_s1 + $0x1ab0] sm:$0xff] }
 0x117   : > { %3055 = vmatprep.mubr.f32.mxu0 %v7070_v15  ;;  %5607 = vmatprep.subr.bf16.mxu1 %v5606_v5  ;;  %v5624_v5 = vpack.c.bf16 %v1089_v61, %v1079_v60  ;;  %v7079_v15 = vld [vmem:[%s7684_s17 + $0x160] sm:$0xff]  ;;  %v1180_v60 = vld [vmem:[%s11699_s1 + $0x1af8] sm:$0xff]  ;;  %v1190_v61 = vld [vmem:[%s11699_s1 + $0x1b48] sm:$0xff] }
 0x118   : > { %2412 = vmatmul.mubr.f32.gmra.mrb[36].mxu1 %v7071_v22  ;;  %5827 = vmatprep.subr.bf16.mxu0 %v5826_v9  ;;  %v5844_v9 = vpack.c.bf16 %v1091_v0, %v1081_v63  ;;  %v1182_v63 = vld [vmem:[%s11699_s1 + $0x1b08] sm:$0xff]  ;;  %v1192_v0 = vld [vmem:[%s11699_s1 + $0x1b58] sm:$0xff] }
 0x119   : > { %3056 = vmatmul.mubr.f32.gmra.mrb[36].mxu0 %v7071_v22  ;;  %5609 = vmatpush1.bf16.msra.mxu1 %v5608_v12  ;;  %v5626_v12 = vpack.c.bf16 %v1110_v4, %v1100_v3  ;;  %v7080_v22 = vld [vmem:[%s7684_s17 + $0x1a0] sm:$0xff]  ;;  %v1179_v3 = vld [vmem:[%s11699_s1 + $0x1af0] sm:$0xff] }
 0x11a   : > { %5829 = vmatpush1.bf16.msra.mxu0 %v5828_v16  ;;  %2417 = vmatprep.mubr.f32.mxu1 %v7072_v30  ;;  %v5846_v16 = vpack.c.bf16 %v1112_v7, %v1102_v6  ;;  %v1189_v4 = vld [vmem:[%s11699_s1 + $0x1b40] sm:$0xff]  ;;  %v1191_v7 = vld [vmem:[%s11699_s1 + $0x1b50] sm:$0xff] }
 0x11b   : > { %3061 = vmatprep.mubr.f32.mxu0 %v7072_v30  ;;  %5611 = vmatprep.subr.bf16.mxu1 %v5610_v19  ;;  %v5628_v19 = vpack.c.bf16 %v1109_v11, %v1099_v10  ;;  %v7081_v30 = vld [vmem:[%s7684_s17 + $0x198] sm:$0xff]  ;;  %v1181_v6 = vld [vmem:[%s11699_s1 + $0x1b00] sm:$0xff]  ;;  %v1210_v11 = vld [vmem:[%s11699_s1 + $0x1be8] sm:$0xff] }
 0x11c   : > { %2418 = vmatmul.mubr.f32.gmra.mrb[38].mxu1 %v7073_v37  ;;  %5831 = vmatprep.subr.bf16.mxu0 %v5830_v23  ;;  %v5848_v23 = vpack.c.bf16 %v1111_v14, %v1101_v13  ;;  %v1200_v10 = vld [vmem:[%s11699_s1 + $0x1b98] sm:$0xff]  ;;  %v1202_v13 = vld [vmem:[%s11699_s1 + $0x1ba8] sm:$0xff] }
 0x11d   : > { %3062 = vmatmul.mubr.f32.gmra.mrb[38].mxu0 %v7073_v37  ;;  %5613 = vmatpush1.bf16.msra.mxu1 %v5612_v26  ;;  %v5630_v26 = vpack.c.bf16 %v1130_v18, %v1120_v17  ;;  %v7082_v37 = vld [vmem:[%s7684_s17 + $0x1d8] sm:$0xff]  ;;  %v1199_v17 = vld [vmem:[%s11699_s1 + $0x1b90] sm:$0xff]  ;;  %v1209_v18 = vld [vmem:[%s11699_s1 + $0x1be0] sm:$0xff] }
 0x11e   : > { %5833 = vmatpush1.bf16.msra.mxu0 %v5832_v31  ;;  %2423 = vmatprep.mubr.f32.mxu1 %v7074_v44  ;;  %v5850_v31 = vpack.c.bf16 %v1132_v21, %v1122_v20  ;;  %v1212_v14 = vld [vmem:[%s11699_s1 + $0x1bf8] sm:$0xff]  ;;  %v1201_v20 = vld [vmem:[%s11699_s1 + $0x1ba0] sm:$0xff]  ;;  %v1211_v21 = vld [vmem:[%s11699_s1 + $0x1bf0] sm:$0xff] }
 0x11f   : > { %3067 = vmatprep.mubr.f32.mxu0 %v7074_v44  ;;  %5615 = vmatprep.subr.bf16.mxu1 %v5614_v34  ;;  %v5632_v34 = vpack.c.bf16 %v1129_v25, %v1119_v24  ;;  %v7083_v44 = vld [vmem:[%s7684_s17 + $0x1d0] sm:$0xff]  ;;  %v1220_v24 = vld [vmem:[%s11699_s1 + $0x1c38] sm:$0xff]  ;;  %v1230_v25 = vld [vmem:[%s11699_s1 + $0x1c88] sm:$0xff] }
 0x120   : > { %2424 = vmatmul.mubr.f32.gmra.mrb[40].mxu1 %v7075_v51  ;;  %5835 = vmatprep.subr.bf16.mxu0 %v5834_v38  ;;  %v5852_v38 = vpack.c.bf16 %v1131_v28, %v1121_v27  ;;  %v1222_v27 = vld [vmem:[%s11699_s1 + $0x1c48] sm:$0xff]  ;;  %v1232_v28 = vld [vmem:[%s11699_s1 + $0x1c98] sm:$0xff] }
 0x121   : > { %3068 = vmatmul.mubr.f32.gmra.mrb[40].mxu0 %v7075_v51  ;;  %5617 = vmatpush1.bf16.msra.mxu1 %v5616_v41  ;;  %v5634_v41 = vpack.c.bf16 %v1150_v33, %v1140_v32  ;;  %v7084_v51 = vld [vmem:[%s7684_s17 + $0x210] sm:$0xff]  ;;  %v1229_v33 = vld [vmem:[%s11699_s1 + $0x1c80] sm:$0xff] }
 0x122   : > { %5837 = vmatpush1.bf16.msra.mxu0 %v5836_v45  ;;  %2429 = vmatprep.mubr.f32.mxu1 %v7076_v58  ;;  %v5854_v45 = vpack.c.bf16 %v1152_v36, %v1142_v35  ;;  %v1219_v32 = vld [vmem:[%s11699_s1 + $0x1c30] sm:$0xff]  ;;  %v1221_v35 = vld [vmem:[%s11699_s1 + $0x1c40] sm:$0xff] }
 0x123   : > { %3073 = vmatprep.mubr.f32.mxu0 %v7076_v58  ;;  %5619 = vmatprep.subr.bf16.mxu1 %v5618_v48  ;;  %v5636_v48 = vpack.c.bf16 %v1149_v40, %v1139_v39  ;;  %v7085_v58 = vld [vmem:[%s7684_s17 + $0x208] sm:$0xff]  ;;  %v1231_v36 = vld [vmem:[%s11699_s1 + $0x1c90] sm:$0xff]  ;;  %v1240_v39 = vld [vmem:[%s11699_s1 + $0x1cd8] sm:$0xff] }
 0x124   : > { %2430 = vmatmul.mubr.f32.gmra.mrb[42].mxu1 %v7077_v1  ;;  %5839 = vmatprep.subr.bf16.mxu0 %v5838_v52  ;;  %v5856_v52 = vpack.c.bf16 %v1151_v43, %v1141_v42  ;;  %v1250_v40 = vld [vmem:[%s11699_s1 + $0x1d28] sm:$0xff]  ;;  %v1252_v43 = vld [vmem:[%s11699_s1 + $0x1d38] sm:$0xff] }
 0x125   : > { %3074 = vmatmul.mubr.f32.gmra.mrb[42].mxu0 %v7077_v1  ;;  %5621 = vmatpush1.bf16.msra.mxu1 %v5620_v55  ;;  %v5638_v55 = vpack.c.bf16 %v1170_v47, %v1160_v46  ;;  %v7086_v1 = vld [vmem:[%s7684_s17 + $0x248] sm:$0xff]  ;;  %v1239_v46 = vld [vmem:[%s11699_s1 + $0x1cd0] sm:$0xff]  ;;  %v1249_v47 = vld [vmem:[%s11699_s1 + $0x1d20] sm:$0xff] }
 0x126   : > { %5841 = vmatpush1.bf16.msra.mxu0 %v5840_v59  ;;  %2435 = vmatprep.mubr.f32.mxu1 %v7078_v8  ;;  %v5858_v59 = vpack.c.bf16 %v1172_v50, %v1162_v49  ;;  %v1242_v42 = vld [vmem:[%s11699_s1 + $0x1ce8] sm:$0xff]  ;;  %v1241_v49 = vld [vmem:[%s11699_s1 + $0x1ce0] sm:$0xff]  ;;  %v1251_v50 = vld [vmem:[%s11699_s1 + $0x1d30] sm:$0xff] }
 0x127   : > { %3079 = vmatprep.mubr.f32.mxu0 %v7078_v8  ;;  %5623 = vmatprep.subr.bf16.mxu1 %v5622_v62  ;;  %v5640_v62 = vpack.c.bf16 %v1169_v54, %v1159_v53  ;;  %v7087_v8 = vld [vmem:[%s7684_s17 + $0x240] sm:$0xff]  ;;  %v1260_v53 = vld [vmem:[%s11699_s1 + $0x1d78] sm:$0xff]  ;;  %v1270_v54 = vld [vmem:[%s11699_s1 + $0x1dc8] sm:$0xff] }
 0x128   : > { %2436 = vmatmul.mubr.f32.gmra.mrb[44].mxu1 %v7079_v15  ;;  %5843 = vmatprep.subr.bf16.mxu0 %v5842_v2  ;;  %v5860_v2 = vpack.c.bf16 %v1171_v57, %v1161_v56  ;;  %v1262_v56 = vld [vmem:[%s11699_s1 + $0x1d88] sm:$0xff]  ;;  %v1272_v57 = vld [vmem:[%s11699_s1 + $0x1dd8] sm:$0xff] }
 0x129   : > { %3080 = vmatmul.mubr.f32.gmra.mrb[44].mxu0 %v7079_v15  ;;  %5625 = vmatpush1.bf16.msra.mxu1 %v5624_v5  ;;  %v5642_v5 = vpack.c.bf16 %v1190_v61, %v1180_v60  ;;  %v7088_v15 = vld [vmem:[%s7684_s17 + $0x280] sm:$0xff]  ;;  %v1259_v60 = vld [vmem:[%s11699_s1 + $0x1d70] sm:$0xff] }
 0x12a   : > { %5845 = vmatpush1.bf16.msra.mxu0 %v5844_v9  ;;  %2441 = vmatprep.mubr.f32.mxu1 %v7080_v22  ;;  %v5862_v9 = vpack.c.bf16 %v1192_v0, %v1182_v63  ;;  %v1269_v61 = vld [vmem:[%s11699_s1 + $0x1dc0] sm:$0xff]  ;;  %v1271_v0 = vld [vmem:[%s11699_s1 + $0x1dd0] sm:$0xff] }
 0x12b   : > { %3085 = vmatprep.mubr.f32.mxu0 %v7080_v22  ;;  %5627 = vmatprep.subr.bf16.mxu1 %v5626_v12  ;;  %v5644_v12 = vpack.c.bf16 %v1189_v4, %v1179_v3  ;;  %v7089_v22 = vld [vmem:[%s7684_s17 + $0x278] sm:$0xff]  ;;  %v1261_v63 = vld [vmem:[%s11699_s1 + $0x1d80] sm:$0xff]  ;;  %v1290_v4 = vld [vmem:[%s11699_s1 + $0x1e68] sm:$0xff] }
 0x12c   : > { %2442 = vmatmul.mubr.f32.gmra.mrb[46].mxu1 %v7081_v30  ;;  %5847 = vmatprep.subr.bf16.mxu0 %v5846_v16  ;;  %v5864_v16 = vpack.c.bf16 %v1191_v7, %v1181_v6  ;;  %v1280_v3 = vld [vmem:[%s11699_s1 + $0x1e18] sm:$0xff]  ;;  %v1282_v6 = vld [vmem:[%s11699_s1 + $0x1e28] sm:$0xff] }
 0x12d   : > { %3086 = vmatmul.mubr.f32.gmra.mrb[46].mxu0 %v7081_v30  ;;  %5629 = vmatpush1.bf16.msra.mxu1 %v5628_v19  ;;  %v5646_v19 = vpack.c.bf16 %v1210_v11, %v1200_v10  ;;  %v7090_v30 = vld [vmem:[%s7684_s17 + $0x2b8] sm:$0xff]  ;;  %v1279_v10 = vld [vmem:[%s11699_s1 + $0x1e10] sm:$0xff]  ;;  %v1289_v11 = vld [vmem:[%s11699_s1 + $0x1e60] sm:$0xff] }
 0x12e   : > { %5849 = vmatpush1.bf16.msra.mxu0 %v5848_v23  ;;  %2447 = vmatprep.mubr.f32.mxu1 %v7082_v37  ;;  %v5866_v23 = vpack.c.bf16 %v1212_v14, %v1202_v13  ;;  %v1292_v7 = vld [vmem:[%s11699_s1 + $0x1e78] sm:$0xff]  ;;  %v1281_v13 = vld [vmem:[%s11699_s1 + $0x1e20] sm:$0xff]  ;;  %v1291_v14 = vld [vmem:[%s11699_s1 + $0x1e70] sm:$0xff] }
 0x12f   : > { %3091 = vmatprep.mubr.f32.mxu0 %v7082_v37  ;;  %5631 = vmatprep.subr.bf16.mxu1 %v5630_v26  ;;  %v5648_v26 = vpack.c.bf16 %v1209_v18, %v1199_v17  ;;  %v7091_v37 = vld [vmem:[%s7684_s17 + $0x2b0] sm:$0xff]  ;;  %v1300_v17 = vld [vmem:[%s11699_s1 + $0x1eb8] sm:$0xff]  ;;  %v1310_v18 = vld [vmem:[%s11699_s1 + $0x1f08] sm:$0xff] }
 0x130   : > { %2448 = vmatmul.mubr.f32.gmra.mrb[48].mxu1 %v7083_v44  ;;  %5851 = vmatprep.subr.bf16.mxu0 %v5850_v31  ;;  %v5868_v31 = vpack.c.bf16 %v1211_v21, %v1201_v20  ;;  %v1302_v20 = vld [vmem:[%s11699_s1 + $0x1ec8] sm:$0xff]  ;;  %v1312_v21 = vld [vmem:[%s11699_s1 + $0x1f18] sm:$0xff] }
 0x131   : > { %3092 = vmatmul.mubr.f32.gmra.mrb[48].mxu0 %v7083_v44  ;;  %5633 = vmatpush1.bf16.msra.mxu1 %v5632_v34  ;;  %v5650_v34 = vpack.c.bf16 %v1230_v25, %v1220_v24  ;;  %v7092_v44 = vld [vmem:[%s7684_s17 + $0x2f0] sm:$0xff]  ;;  %v5666_v24 = vpack.c.bf16 %v1310_v18, %v1300_v17  ;;  %v1382_v18 = vld [vmem:[%s11699_s1 + $0x2148] sm:$0xff] }
 0x132   : > { %5853 = vmatpush1.bf16.msra.mxu0 %v5852_v38  ;;  %2453 = vmatprep.mubr.f32.mxu1 %v7084_v51  ;;  %v5870_v38 = vpack.c.bf16 %v1232_v28, %v1222_v27  ;;  %v1299_v25 = vld [vmem:[%s11699_s1 + $0x1eb0] sm:$0xff]  ;;  %v1301_v27 = vld [vmem:[%s11699_s1 + $0x1ec0] sm:$0xff] }
 0x133   : > { %3097 = vmatprep.mubr.f32.mxu0 %v7084_v51  ;;  %5635 = vmatprep.subr.bf16.mxu1 %v5634_v41  ;;  %v5652_v41 = vpack.c.bf16 %v1229_v33, %v1219_v32  ;;  %v7093_v51 = vld [vmem:[%s7684_s17 + $0x2e8] sm:$0xff]  ;;  %v7099_v28 = vld [vmem:[%s7684_s17 + $0x20] sm:$0xff]  ;;  %v1320_v32 = vld [vmem:[%s11699_s1 + $0x1f58] sm:$0xff] }
 0x134   : > { %2454 = vmatmul.mubr.f32.gmra.mrb[50].mxu1 %v7085_v58  ;;  %5855 = vmatprep.subr.bf16.mxu0 %v5854_v45  ;;  %v5872_v45 = vpack.c.bf16 %v1231_v36, %v1221_v35  ;;  %v1330_v33 = vld [vmem:[%s11699_s1 + $0x1fa8] sm:$0xff]  ;;  %v1332_v35 = vld [vmem:[%s11699_s1 + $0x1fb8] sm:$0xff]  ;;  %v7100_v36 = vld [vmem:[%s7684_s17 + $0x60] sm:$0xff] }
 0x135   : > { %3098 = vmatmul.mubr.f32.gmra.mrb[50].mxu0 %v7085_v58  ;;  %5637 = vmatpush1.bf16.msra.mxu1 %v5636_v48  ;;  %v5654_v48 = vpack.c.bf16 %v1250_v40, %v1240_v39  ;;  %v7094_v58 = vld [vmem:[%s7684_s17 + $0x328] sm:$0xff]  ;;  %v5670_v39 = vpack.c.bf16 %v1330_v33, %v1320_v32  ;;  %v1319_v40 = vld [vmem:[%s11699_s1 + $0x1f50] sm:$0xff]  ;;  %v7108_v33 = vld [vmem:[%s7684_s17 + $0x140] sm:$0xff] }
 0x136   : > { %5857 = vmatpush1.bf16.msra.mxu0 %v5856_v52  ;;  %2459 = vmatprep.mubr.f32.mxu1 %v7086_v1  ;;  %v5874_v52 = vpack.c.bf16 %v1252_v43, %v1242_v42  ;;  %v1321_v42 = vld [vmem:[%s11699_s1 + $0x1f60] sm:$0xff]  ;;  %v7101_v43 = vld [vmem:[%s7684_s17 + $0x58] sm:$0xff]  ;;  %v1410_v32 = vld [vmem:[%s11699_s1 + $0x2228] sm:$0xff] }
 0x137   : > { %3103 = vmatprep.mubr.f32.mxu0 %v7086_v1  ;;  %5639 = vmatprep.subr.bf16.mxu1 %v5638_v55  ;;  %v5656_v55 = vpack.c.bf16 %v1249_v47, %v1239_v46  ;;  %v7095_v1 = vld [vmem:[%s7684_s17 + $0x320] sm:$0xff]  ;;  %v1431_v46 = vlaneseq  ;;  %v1340_v47 = vld [vmem:[%s11699_s1 + $0x1ff8] sm:$0xff] }
 0x138   : > { %2460 = vmatmul.mubr.f32.gmra.mrb[52].mxu1 %v7087_v8  ;;  %5859 = vmatprep.subr.bf16.mxu0 %v5858_v59  ;;  %v5876_v59 = vpack.c.bf16 %v1251_v50, %v1241_v49  ;;  %v7102_v49 = vld [vmem:[%s7684_s17 + $0x98] sm:$0xff]  ;;  %v1342_v50 = vld [vmem:[%s11699_s1 + $0x2008] sm:$0xff] }
 0x139   : > { %3104 = vmatmul.mubr.f32.gmra.mrb[52].mxu0 %v7087_v8  ;;  %5641 = vmatpush1.bf16.msra.mxu1 %v5640_v62  ;;  %v5658_v62 = vpack.c.bf16 %v1270_v54, %v1260_v53  ;;  %v7096_v8 = vld [vmem:[%s7684_s17 + $0x360] sm:$0xff] }
 0x13a   : > { %5861 = vmatpush1.bf16.msra.mxu0 %v5860_v2  ;;  %2465 = vmatprep.mubr.f32.mxu1 %v7088_v15  ;;  %v5878_v2 = vpack.c.bf16 %v1272_v57, %v1262_v56  ;;  %v1349_v56 = vld [vmem:[%s11699_s1 + $0x2040] sm:$0xff] }
 0x13b   : > { %3109 = vmatprep.mubr.f32.mxu0 %v7088_v15  ;;  %5643 = vmatprep.subr.bf16.mxu1 %v5642_v5  ;;  %v5660_v5 = vpack.c.bf16 %v1269_v61, %v1259_v60  ;;  %v7097_v15 = vld [vmem:[%s7684_s17 + $0x358] sm:$0xff]  ;;  %v1341_v57 = vld [vmem:[%s11699_s1 + $0x2000] sm:$0xff]  ;;  %v1351_v61 = vld [vmem:[%s11699_s1 + $0x2050] sm:$0xff] }
 0x13c   : > { %2466 = vmatmul.mubr.f32.gmra.mrb[54].mxu1 %v7089_v22  ;;  %5863 = vmatprep.subr.bf16.mxu0 %v5862_v9  ;;  %v5880_v9 = vpack.c.bf16 %v1271_v0, %v1261_v63  ;;  %v1370_v63 = vld [vmem:[%s11699_s1 + $0x20e8] sm:$0xff]  ;;  %v7104_v0 = vld [vmem:[%s7684_s17 + $0xd0] sm:$0xff] }
 0x13d   : > { %3110 = vmatmul.mubr.f32.gmra.mrb[54].mxu0 %v7089_v22  ;;  %5645 = vmatpush1.bf16.msra.mxu1 %v5644_v12  ;;  %v5662_v12 = vpack.c.bf16 %v1290_v4, %v1280_v3  ;;  %v7098_v22 = vld [vmem:[%s7684_s17 + $0x28] sm:$0xff]  ;;  %v5896_v4 = vpack.c.bf16 %v1351_v61, %v1341_v57 }
 0x13e   : > { %5865 = vmatpush1.bf16.msra.mxu0 %v5864_v16  ;;  %2471 = vmatprep.mubr.f32.mxu1 %v7090_v30  ;;  %v5882_v16 = vpack.c.bf16 %v1292_v7, %v1282_v6  ;;  %v1359_v6 = vld [vmem:[%s11699_s1 + $0x2090] sm:$0xff]  ;;  %v1369_v7 = vld [vmem:[%s11699_s1 + $0x20e0] sm:$0xff] }
 0x13f   : > { %3115 = vmatprep.mubr.f32.mxu0 %v7090_v30  ;;  %5647 = vmatprep.subr.bf16.mxu1 %v5646_v19  ;;  %v5664_v19 = vpack.c.bf16 %v1289_v11, %v1279_v10  ;;  %v5886_v30 = vpack.c.bf16 %v1312_v21, %v1302_v20  ;;  %v5680_v20 = vpack.c.bf16 %v1369_v7, %v1359_v6  ;;  %v7112_v6 = vld [vmem:[%s7684_s17 + $0x1b0] sm:$0xff]  ;;  %v1422_v7 = vld [vmem:[%s11699_s1 + $0x2288] sm:$0xff] }
 0x140   : > { %2472 = vmatmul.mubr.f32.gmra.mrb[56].mxu1 %v7091_v37  ;;  %5867 = vmatprep.subr.bf16.mxu0 %v5866_v23  ;;  %v5884_v23 = vpack.c.bf16 %v1291_v14, %v1281_v13  ;;  %v1380_v13 = vld [vmem:[%s11699_s1 + $0x2138] sm:$0xff]  ;;  %v1390_v14 = vld [vmem:[%s11699_s1 + $0x2188] sm:$0xff] }
 0x141   : > { %3116 = vmatmul.mubr.f32.gmra.mrb[56].mxu0 %v7091_v37  ;;  %5649 = vmatpush1.bf16.msra.mxu1 %v5648_v26  ;;  %v1309_v26 = vld [vmem:[%s11699_s1 + $0x1f00] sm:$0xff] }
 0x142   : > { %5869 = vmatpush1.bf16.msra.mxu0 %v5868_v31  ;;  %2477 = vmatprep.mubr.f32.mxu1 %v7092_v44  ;;  %v1311_v31 = vld [vmem:[%s11699_s1 + $0x1f10] sm:$0xff]  ;;  %v5668_v37 = vpack.c.bf16 %v1309_v26, %v1299_v25  ;;  %v1381_v25 = vld [vmem:[%s11699_s1 + $0x2140] sm:$0xff] }
 0x143   : > { %3121 = vmatprep.mubr.f32.mxu0 %v7092_v44  ;;  %5651 = vmatprep.subr.bf16.mxu1 %v5650_v34  ;;  %v1322_v34 = vld [vmem:[%s11699_s1 + $0x1f68] sm:$0xff]  ;;  %v7107_v26 = vld [vmem:[%s7684_s17 + $0x100] sm:$0xff] }
 0x144   : > { %2478 = vmatmul.mubr.f32.gmra.mrb[58].mxu1 %v7093_v51  ;;  %5871 = vmatprep.subr.bf16.mxu0 %v5870_v38  ;;  %v5888_v38 = vpack.c.bf16 %v1311_v31, %v1301_v27  ;;  %v5890_v44 = vpack.c.bf16 %v1332_v35, %v1322_v34  ;;  %v1400_v31 = vld [vmem:[%s11699_s1 + $0x21d8] sm:$0xff]  ;;  %v1402_v35 = vld [vmem:[%s11699_s1 + $0x21e8] sm:$0xff] }
 0x145   : > { %3122 = vmatmul.mubr.f32.gmra.mrb[58].mxu0 %v7093_v51  ;;  %5653 = vmatpush1.bf16.msra.mxu1 %v5652_v41  ;;  %v1329_v41 = vld [vmem:[%s11699_s1 + $0x1fa0] sm:$0xff]  ;;  %v1352_v51 = vld [vmem:[%s11699_s1 + $0x2058] sm:$0xff] }
 0x146   : > { %5873 = vmatpush1.bf16.msra.mxu0 %v5872_v45  ;;  %2483 = vmatprep.mubr.f32.mxu1 %v7094_v58  ;;  %v1331_v45 = vld [vmem:[%s11699_s1 + $0x1fb0] sm:$0xff]  ;;  %v5894_v60 = vpack.c.bf16 %v1352_v51, %v1342_v50 }
 0x147   : > { %3127 = vmatprep.mubr.f32.mxu0 %v7094_v58  ;;  %5655 = vmatprep.subr.bf16.mxu1 %v5654_v48  ;;  %v1350_v48 = vld [vmem:[%s11699_s1 + $0x2048] sm:$0xff]  ;;  %v5892_v53 = vpack.c.bf16 %v1331_v45, %v1321_v42  ;;  %v7103_v58 = vld [vmem:[%s7684_s17 + $0x90] sm:$0xff]  ;;  %v1409_v42 = vld [vmem:[%s11699_s1 + $0x2220] sm:$0xff] }
 0x148   : > { %2484 = vmatmul.mubr.f32.gmra.mrb[60].mxu1 %v7095_v1  ;;  %5875 = vmatprep.subr.bf16.mxu0 %v5874_v52  ;;  %v5672_v52 = vpack.c.bf16 %v1329_v41, %v1319_v40  ;;  %v5674_v54 = vpack.c.bf16 %v1350_v48, %v1340_v47  ;;  %v5686_v40 = vpack.c.bf16 %v1410_v32, %v1400_v31  ;;  %v1399_v41 = vld [vmem:[%s11699_s1 + $0x21d0] sm:$0xff]  ;;  %v1401_v48 = vld [vmem:[%s11699_s1 + $0x21e0] sm:$0xff] }
 0x149   : > { %3128 = vmatmul.mubr.f32.gmra.mrb[60].mxu0 %v7095_v1  ;;  %5657 = vmatpush1.bf16.msra.mxu1 %v5656_v55  ;;  %v1339_v55 = vld [vmem:[%s11699_s1 + $0x1ff0] sm:$0xff]  ;;  %v1362_v1 = vld [vmem:[%s11699_s1 + $0x20a8] sm:$0xff] }
 0x14a   : > { %5877 = vmatpush1.bf16.msra.mxu0 %v5876_v59  ;;  %2489 = vmatprep.mubr.f32.mxu1 %v7096_v8  ;;  %v9536_v59 = vshrl.u32 %v1431_v46, 7  ;;  %v5676_v3 = vpack.c.bf16 %v1349_v56, %v1339_v55  ;;  %v7109_v46 = vld [vmem:[%s7684_s17 + $0x138] sm:$0xff] }
 0x14b   : > { %3133 = vmatprep.mubr.f32.mxu0 %v7096_v8  ;;  %5659 = vmatprep.subr.bf16.mxu1 %v5658_v62  ;;  %v1360_v62 = vld [vmem:[%s11699_s1 + $0x2098] sm:$0xff]  ;;  %v1361_v8 = vld [vmem:[%s11699_s1 + $0x20a0] sm:$0xff] }
 0x14c   : > { %2490 = vmatmul.mubr.f32.gmra.mrb[62].mxu1 %v7097_v15  ;;  %5879 = vmatprep.subr.bf16.mxu0 %v5878_v2  ;;  %v1372_v2 = vld [vmem:[%s11699_s1 + $0x20f8] sm:$0xff]  ;;  %v1433_v10 = vsub.s32 0, %v9536_v59  ;;  %v1437_v17 = vsub.s32 1, %v9536_v59 }
 0x14d   : > { %3134 = vmatmul.mubr.f32.gmra.mrb[62].mxu0 %v7097_v15  ;;  %5661 = vmatpush1.bf16.msra.mxu1 %v5660_v5  ;;  %v5678_v5 = vpack.c.bf16 %v1370_v63, %v1360_v62  ;;  %v5898_v11 = vpack.c.bf16 %v1372_v2, %v1362_v1  ;;  %v7106_v15 = vld [vmem:[%s7684_s17 + $0x108] sm:$0xff]  ;;  %v7111_v63 = vld [vmem:[%s7684_s17 + $0x170] sm:$0xff]  ;;  %v324_v1 = vld [vmem:[%s11699_s1 + $0x38] sm:$0xff] }
 0x14e   : > { %5881 = vmatpush1.bf16.msra.mxu0 %v5880_v9  ;;  %2560 = vmatprep.mubr.f32.mxu1 %v7098_v22  ;;  %v7105_v9 = vld [vmem:[%s7684_s17 + $0xc8] sm:$0xff] }
 0x14f   : > { %3204 = vmatprep.mubr.f32.mxu0 %v7098_v22  ;;  %5663 = vmatprep.subr.bf16.mxu1 %v5662_v12  ;;  %v1371_v12 = vld [vmem:[%s11699_s1 + $0x20f0] sm:$0xff]  ;;  %v5682_v22 = vpack.c.bf16 %v1390_v14, %v1380_v13  ;;  %v334_v2 = vld [vmem:[%s11699_s1 + $0x88] sm:$0xff] }
 0x150   : > { %2561 = vmatmul.mubr.f32.vlgmr.msra.gmra.mrb[32].mxu1 %v7099_v28  ;;  %5883 = vmatprep.subr.bf16.mxu0 %v5882_v16  ;;  %v1427_v16 = vld [vmem:[%s11700_s2] sm:$0xff]  ;;  %v5900_v21 = vpack.c.bf16 %v1371_v12, %v1361_v8  ;;  %v326_v8 = vld [vmem:[%s11699_s1 + $0x48] sm:$0xff]  ;;  %v1419_v14 = vld [vmem:[%s11699_s1 + $0x2270] sm:$0xff] }
 0x151   : > { %3205 = vmatmul.mubr.f32.vlgmr.msra.gmra.mrb[32].mxu0 %v7099_v28  ;;  %5665 = vmatpush1.bf16.msra.mxu1 %v5664_v19  ;;  %v1392_v19 = vld [vmem:[%s11699_s1 + $0x2198] sm:$0xff]  ;;  %v9597_v27 = vrot.slane %v1427_v16, %v1433_v10  ;;  %v9611_v34 = vrot.slane %v1427_v16, %v1437_v17 }
 0x152   : > { %5885 = vmatpush1.bf16.msra.mxu0 %v5884_v23  ;;  %2566 = vmatprep.mubr.f32.mxu1 %v7100_v36  ;;  %v1379_v23 = vld [vmem:[%s11699_s1 + $0x2130] sm:$0xff]  ;;  %v5902_v28 = vpack.c.bf16 %v1392_v19, %v1382_v18 }
 0x153   : > { %3210 = vmatprep.mubr.f32.mxu0 %v7100_v36  ;;  %5667 = vmatprep.subr.bf16.mxu1 %v5666_v24  ;;  %v1389_v24 = vld [vmem:[%s11699_s1 + $0x2180] sm:$0xff]  ;;  %v1412_v36 = vld [vmem:[%s11699_s1 + $0x2238] sm:$0xff] }
 0x154   : > { %2567 = vmatmul.mubr.f32.gmra.mrb[34].mxu1 %v7101_v43  ;;  %5887 = vmatprep.subr.bf16.mxu0 %v5886_v30  ;;  %v1391_v30 = vld [vmem:[%s11699_s1 + $0x2190] sm:$0xff]  ;;  %v5906_v47 = vpack.c.bf16 %v1412_v36, %v1402_v35 }
 0x155   : > { %3211 = vmatmul.mubr.f32.gmra.mrb[34].mxu0 %v7101_v43  ;;  %2572 = vmatprep.mubr.f32.mxu1 %v7102_v49 }
 0x156   : > { %3216 = vmatprep.mubr.f32.mxu0 %v7102_v49  ;;  %5669 = vmatpush1.bf16.msra.mxu1 %v5668_v37  ;;  %v5684_v37 = vpack.c.bf16 %v1389_v24, %v1379_v23  ;;  %v1411_v49 = vld [vmem:[%s11699_s1 + $0x2230] sm:$0xff] }
 0x157   : > { %5889 = vmatpush1.bf16.msra.mxu0 %v5888_v38  ;;  %5671 = vmatprep.subr.bf16.mxu1 %v5670_v39  ;;  %v5904_v39 = vpack.c.bf16 %v1391_v30, %v1381_v25  ;;  %v5908_v57 = vpack.c.bf16 %v1411_v49, %v1401_v48 }
 0x158   : > { %2573 = vmatmul.mubr.f32.gmra.mrb[36].mxu1 %v7103_v58  ;;  %5891 = vmatprep.subr.bf16.mxu0 %v5890_v44 }
 0x159   : > { %3217 = vmatmul.mubr.f32.gmra.mrb[36].mxu0 %v7103_v58  ;;  %2578 = vmatprep.mubr.f32.mxu1 %v7104_v0 }
 0x15a   : > { %3222 = vmatprep.mubr.f32.mxu0 %v7104_v0  ;;  %5673 = vmatpush1.bf16.msra.mxu1 %v5672_v52  ;;  %v7110_v52 = vld [vmem:[%s7684_s17 + $0x178] sm:$0xff] }
 0x15b   : > { %5893 = vmatpush1.bf16.msra.mxu0 %v5892_v53  ;;  %5675 = vmatprep.subr.bf16.mxu1 %v5674_v54  ;;  %v5688_v54 = vpack.c.bf16 %v1409_v42, %v1399_v41  ;;  %v1420_v0 = vld [vmem:[%s11699_s1 + $0x2278] sm:$0xff]  ;;  %v7116_v42 = vld [vmem:[%s7684_s17 + $0x220] sm:$0xff] }
 0x15c   : > { %2579 = vmatmul.mubr.f32.gmra.mrb[38].mxu1 %v7105_v9  ;;  %5895 = vmatprep.subr.bf16.mxu0 %v5894_v60 }
 0x15d   : > { %3223 = vmatmul.mubr.f32.gmra.mrb[38].mxu0 %v7105_v9  ;;  %2584 = vmatprep.mubr.f32.mxu1 %v7106_v15  ;;  %v336_v9 = vld [vmem:[%s11699_s1 + $0x98] sm:$0xff] }
 0x15e   : > { %3228 = vmatprep.mubr.f32.mxu0 %v7106_v15  ;;  %5677 = vmatpush1.bf16.msra.mxu1 %v5676_v3  ;;  %v5910_v15 = vpack.c.bf16 %v334_v2, %v324_v1  ;;  %v6130_v23 = vpack.c.bf16 %v336_v9, %v326_v8 }
 0x15f   : > { %5897 = vmatpush1.bf16.msra.mxu0 %v5896_v4  ;;  %5679 = vmatprep.subr.bf16.mxu1 %v5678_v5 }
 0x160   : > { %2585 = vmatmul.mubr.f32.gmra.mrb[40].mxu1 %v7107_v26  ;;  %5899 = vmatprep.subr.bf16.mxu0 %v5898_v11 }
 0x161   : > { %3229 = vmatmul.mubr.f32.gmra.mrb[40].mxu0 %v7107_v26  ;;  %2590 = vmatprep.mubr.f32.mxu1 %v7108_v33 }
 0x162   : > { %3234 = vmatprep.mubr.f32.mxu0 %v7108_v33  ;;  %5681 = vmatpush1.bf16.msra.mxu1 %v5680_v20 }
 0x163   : > { %v1757_v38 = vpop.f32.mrb[0].mxu1  ;;  %5901 = vmatpush1.bf16.msra.mxu0 %v5900_v21  ;;  %5683 = vmatprep.subr.bf16.mxu1 %v5682_v22  ;;  %v7113_v21 = vld [vmem:[%s7684_s17 + $0x1a8] sm:$0xff]  ;;  %v1421_v22 = vld [vmem:[%s11699_s1 + $0x2280] sm:$0xff] }
 0x164   : > { %v6350_v43 = vadd.f32 %v1757_v38, %v9597_v27  ;;  %v2079_v44 = vpop.f32.mrb[0].mxu0  ;;  %v1759_v45 = vpop.f32.mrb[1].mxu1  ;;  %2591 = vmatmul.mubr.f32.gmra.mrb[42].mxu1 %v7109_v46  ;;  %5903 = vmatprep.subr.bf16.mxu0 %v5902_v28  ;;  %v7114_v28 = vld [vmem:[%s7684_s17 + $0x1e8] sm:$0xff]  ;;  %v7115_v38 = vld [vmem:[%s7684_s17 + $0x1e0] sm:$0xff] }
 0x165   : > { %v6352_v50 = vadd.f32 %v1759_v45, %v9611_v34  ;;  %v2081_v51 = vpop.f32.mrb[1].mxu0  ;;  %3235 = vmatmul.mubr.f32.gmra.mrb[42].mxu0 %v7109_v46  ;;  %2596 = vmatprep.mubr.f32.mxu1 %v7110_v52 }
 0x166   : > { %v6351_v53 = vadd.f32 %v6350_v43, %v2079_v44  ;;  %3240 = vmatprep.mubr.f32.mxu0 %v7110_v52  ;;  %5685 = vmatpush1.bf16.msra.mxu1 %v5684_v37 }
 0x167   : > { %v6353_v55 = vadd.f32 %v6352_v50, %v2081_v51  ;;  %v1763_v56 = vpop.f32.mrb[2].mxu1  ;;  %5905 = vmatpush1.bf16.msra.mxu0 %v5904_v39  ;;  %5687 = vmatprep.subr.bf16.mxu1 %v5686_v40  ;;  %v7117_v50 = vld [vmem:[%s7684_s17 + $0x218] sm:$0xff] }
 0x168   : > { %v4750_v58 = vmax.f32 %v6351_v53, 0.0  ;;  %v6354_v60 = vadd.f32 %v1763_v56, %v9597_v27  ;;  %v2085_v61 = vpop.f32.mrb[2].mxu0  ;;  %v1765_v62 = vpop.f32.mrb[3].mxu1  ;;  %2597 = vmatmul.mubr.f32.gmra.mrb[44].mxu1 %v7111_v63  ;;  %5907 = vmatprep.subr.bf16.mxu0 %v5906_v47 }
 0x169   : > { %v4751_v3 = vmax.f32 %v6353_v55, 0.0  ;;  %v6356_v4 = vadd.f32 %v1765_v62, %v9611_v34  ;;  %v2087_v5 = vpop.f32.mrb[3].mxu0  ;;  %3241 = vmatmul.mubr.f32.gmra.mrb[44].mxu0 %v7111_v63  ;;  %2602 = vmatprep.mubr.f32.mxu1 %v7112_v6  ;;  %v7119_v63 = vld [vmem:[%s7684_s17 + $0x250] sm:$0xff] }
 0x16a   : > { %4910 = vst [vmem:[%s9662_s28] sm:$0xff] %v4750_v58  ;;  %v6355_v11 = vadd.f32 %v6354_v60, %v2085_v61  ;;  %3246 = vmatprep.mubr.f32.mxu0 %v7112_v6  ;;  %5689 = vmatpush1.bf16.msra.mxu1 %v5688_v54  ;;  %v7118_v54 = vld [vmem:[%s7684_s17 + $0x258] sm:$0xff] }
 0x16b   : > { %4911 = vst [vmem:[%s9662_s28 + $0x8] sm:$0xff] %v4751_v3  ;;  %v6357_v12 = vadd.f32 %v6356_v4, %v2087_v5  ;;  %v1769_v13 = vpop.f32.mrb[4].mxu1  ;;  %5909 = vmatpush1.bf16.msra.mxu0 %v5908_v57  ;;  %2685 = vmatprep.subr.mxu1 %v1420_v0  ;;  %v7120_v3 = vld [vmem:[%s7684_s17 + $0x290] sm:$0xff] }
 0x16c   : > { %v4760_v16 = vmax.f32 %v6355_v11, 0.0  ;;  %v6358_v18 = vadd.f32 %v1769_v13, %v9597_v27  ;;  %v2091_v19 = vpop.f32.mrb[4].mxu0  ;;  %v1771_v20 = vpop.f32.mrb[5].mxu1  ;;  %2603 = vmatmul.mubr.f32.gmra.mrb[46].mxu1 %v7113_v21  ;;  %3329 = vmatprep.subr.mxu0 %v1422_v7 }
 0x16d   : > { %v4761_v24 = vmax.f32 %v6357_v12, 0.0  ;;  %v6360_v25 = vadd.f32 %v1771_v20, %v9611_v34  ;;  %v2093_v26 = vpop.f32.mrb[5].mxu0  ;;  %3247 = vmatmul.mubr.f32.gmra.mrb[46].mxu0 %v7113_v21  ;;  %2608 = vmatprep.mubr.f32.mxu1 %v7114_v28  ;;  %v7121_v12 = vld [vmem:[%s7684_s17 + $0x288] sm:$0xff] }
 0x16e   : > { %4921 = vst [vmem:[%s9662_s28 + $0x50] sm:$0xff] %v4760_v16  ;;  %v6359_v30 = vadd.f32 %v6358_v18, %v2091_v19  ;;  %3252 = vmatprep.mubr.f32.mxu0 %v7114_v28  ;;  %2686 = vmatpush1.msra.mxu1 %v1419_v14  ;;  %v7122_v16 = vld [vmem:[%s7684_s17 + $0x2c8] sm:$0xff] }
 0x16f   : > { %4922 = vst [vmem:[%s9662_s28 + $0x58] sm:$0xff] %v4761_v24  ;;  %v6361_v31 = vadd.f32 %v6360_v25, %v2093_v26  ;;  %v1775_v32 = vpop.f32.mrb[6].mxu1  ;;  %3330 = vmatpush1.msra.mxu0 %v1421_v22  ;;  %5911 = vmatprep.subr.bf16.mxu1 %v5910_v15  ;;  %v7123_v25 = vld [vmem:[%s7684_s17 + $0x2c0] sm:$0xff] }
 0x170   : > { %v4770_v33 = vmax.f32 %v6359_v30, 0.0  ;;  %v6362_v35 = vadd.f32 %v1775_v32, %v9597_v27  ;;  %v2097_v36 = vpop.f32.mrb[6].mxu0  ;;  %v1777_v37 = vpop.f32.mrb[7].mxu1  ;;  %2609 = vmatmul.mubr.f32.gmra.mrb[48].mxu1 %v7115_v38  ;;  %6131 = vmatprep.subr.bf16.mxu0 %v6130_v23 }
 0x171   : > { %v4771_v39 = vmax.f32 %v6361_v31, 0.0  ;;  %v6364_v40 = vadd.f32 %v1777_v37, %v9611_v34  ;;  %v2099_v41 = vpop.f32.mrb[7].mxu0  ;;  %3253 = vmatmul.mubr.f32.gmra.mrb[48].mxu0 %v7115_v38  ;;  %2614 = vmatprep.mubr.f32.mxu1 %v7116_v42  ;;  %v7124_v31 = vld [vmem:[%s7684_s17 + $0x300] sm:$0xff] }
 0x172   : > { %4931 = vst [vmem:[%s9662_s28 + $0xa0] sm:$0xff] %v4770_v33  ;;  %v6363_v43 = vadd.f32 %v6362_v35, %v2097_v36  ;;  %3258 = vmatprep.mubr.f32.mxu0 %v7116_v42 }
 0x173   : > { %4932 = vst [vmem:[%s9662_s28 + $0xa8] sm:$0xff] %v4771_v39  ;;  %v6365_v44 = vadd.f32 %v6364_v40, %v2099_v41  ;;  %v1781_v45 = vpop.f32.mrb[8].mxu1  ;;  %v7125_v40 = vld [vmem:[%s7684_s17 + $0x2f8] sm:$0xff] }
 0x174   : > { %v4780_v46 = vmax.f32 %v6363_v43, 0.0  ;;  %v6366_v47 = vadd.f32 %v1781_v45, %v9597_v27  ;;  %v2103_v48 = vpop.f32.mrb[8].mxu0  ;;  %v1783_v49 = vpop.f32.mrb[9].mxu1  ;;  %2615 = vmatmul.mubr.f32.gmra.mrb[50].mxu1 %v7117_v50 }
 0x175   : > { %v4781_v51 = vmax.f32 %v6365_v44, 0.0  ;;  %v6368_v52 = vadd.f32 %v1783_v49, %v9611_v34  ;;  %v2105_v53 = vpop.f32.mrb[9].mxu0  ;;  %3259 = vmatmul.mubr.f32.gmra.mrb[50].mxu0 %v7117_v50  ;;  %2620 = vmatprep.mubr.f32.mxu1 %v7118_v54  ;;  %v7126_v44 = vld [vmem:[%s7684_s17 + $0x338] sm:$0xff] }
 0x176   : > { %4941 = vst [vmem:[%s9662_s28 + $0xf0] sm:$0xff] %v4780_v46  ;;  %v6367_v55 = vadd.f32 %v6366_v47, %v2103_v48  ;;  %3264 = vmatprep.mubr.f32.mxu0 %v7118_v54 }
 0x177   : > { %4942 = vst [vmem:[%s9662_s28 + $0xf8] sm:$0xff] %v4781_v51  ;;  %v6369_v56 = vadd.f32 %v6368_v52, %v2105_v53  ;;  %v1787_v57 = vpop.f32.mrb[10].mxu1  ;;  %v7127_v52 = vld [vmem:[%s7684_s17 + $0x330] sm:$0xff] }
 0x178   : > { %v4790_v58 = vmax.f32 %v6367_v55, 0.0  ;;  %v6370_v60 = vadd.f32 %v1787_v57, %v9597_v27  ;;  %v2109_v61 = vpop.f32.mrb[10].mxu0  ;;  %v1789_v62 = vpop.f32.mrb[11].mxu1  ;;  %2621 = vmatmul.mubr.f32.gmra.mrb[52].mxu1 %v7119_v63 }
 0x179   : > { %v4791_v0 = vmax.f32 %v6369_v56, 0.0  ;;  %v6372_v1 = vadd.f32 %v1789_v62, %v9611_v34  ;;  %v2111_v2 = vpop.f32.mrb[11].mxu0  ;;  %3265 = vmatmul.mubr.f32.gmra.mrb[52].mxu0 %v7119_v63  ;;  %2626 = vmatprep.mubr.f32.mxu1 %v7120_v3  ;;  %v7128_v56 = vld [vmem:[%s7684_s17 + $0x370] sm:$0xff]  ;;  %v325_v63 = vld [vmem:[%s11699_s1 + $0x40] sm:$0xff] }
 0x17a   : > { %4951 = vst [vmem:[%s9662_s28 + $0x140] sm:$0xff] %v4790_v58  ;;  %v6371_v4 = vadd.f32 %v6370_v60, %v2109_v61  ;;  %3270 = vmatprep.mubr.f32.mxu0 %v7120_v3  ;;  %v323_v58 = vld [vmem:[%s11699_s1 + $0x30] sm:$0xff]  ;;  %v333_v60 = vld [vmem:[%s11699_s1 + $0x80] sm:$0xff] }
 0x17b   : > { %4952 = vst [vmem:[%s9662_s28 + $0x148] sm:$0xff] %v4791_v0  ;;  %v6373_v5 = vadd.f32 %v6372_v1, %v2111_v2  ;;  %v1793_v6 = vpop.f32.mrb[12].mxu1  ;;  %v335_v0 = vld [vmem:[%s11699_s1 + $0x90] sm:$0xff] }
 0x17c   : > { %v4800_v7 = vmax.f32 %v6371_v4, 0.0  ;;  %v6374_v8 = vadd.f32 %v1793_v6, %v9597_v27  ;;  %v2115_v9 = vpop.f32.mrb[12].mxu0  ;;  %v1795_v11 = vpop.f32.mrb[13].mxu1  ;;  %2627 = vmatmul.mubr.f32.gmra.mrb[54].mxu1 %v7121_v12  ;;  %v344_v6 = vld [vmem:[%s11699_s1 + $0xd8] sm:$0xff] }
 0x17d   : > { %v4801_v13 = vmax.f32 %v6373_v5, 0.0  ;;  %v6376_v14 = vadd.f32 %v1795_v11, %v9611_v34  ;;  %v2117_v15 = vpop.f32.mrb[13].mxu0  ;;  %3271 = vmatmul.mubr.f32.gmra.mrb[54].mxu0 %v7121_v12  ;;  %2632 = vmatprep.mubr.f32.mxu1 %v7122_v16  ;;  %v7129_v5 = vld [vmem:[%s7684_s17 + $0x368] sm:$0xff]  ;;  %v5912_v12 = vpack.c.bf16 %v333_v60, %v323_v58 }
 0x17e   : > { %4961 = vst [vmem:[%s9662_s28 + $0x190] sm:$0xff] %v4800_v7  ;;  %v6375_v18 = vadd.f32 %v6374_v8, %v2115_v9  ;;  %3276 = vmatprep.mubr.f32.mxu0 %v7122_v16  ;;  %v354_v7 = vld [vmem:[%s11699_s1 + $0x128] sm:$0xff]  ;;  %v6132_v16 = vpack.c.bf16 %v335_v0, %v325_v63 }
 0x17f   : > { %4962 = vst [vmem:[%s9662_s28 + $0x198] sm:$0xff] %v4801_v13  ;;  %v6377_v19 = vadd.f32 %v6376_v14, %v2117_v15  ;;  %v1799_v20 = vpop.f32.mrb[14].mxu1  ;;  %v346_v13 = vld [vmem:[%s11699_s1 + $0xe8] sm:$0xff]  ;;  %v356_v14 = vld [vmem:[%s11699_s1 + $0x138] sm:$0xff] }
 0x180   : > { %v4810_v21 = vmax.f32 %v6375_v18, 0.0  ;;  %v6378_v22 = vadd.f32 %v1799_v20, %v9597_v27  ;;  %v2121_v23 = vpop.f32.mrb[14].mxu0  ;;  %v1801_v24 = vpop.f32.mrb[15].mxu1  ;;  %2633 = vmatmul.mubr.f32.gmra.mrb[56].mxu1 %v7123_v25  ;;  %v343_v18 = vld [vmem:[%s11699_s1 + $0xd0] sm:$0xff]  ;;  %v394_v58 = vld [vmem:[%s11699_s1 + $0x268] sm:$0xff] }
 0x181   : > { %v4811_v26 = vmax.f32 %v6377_v19, 0.0  ;;  %v6380_v28 = vadd.f32 %v1801_v24, %v9611_v34  ;;  %v2123_v30 = vpop.f32.mrb[15].mxu0  ;;  %3277 = vmatmul.mubr.f32.gmra.mrb[56].mxu0 %v7123_v25  ;;  %2638 = vmatprep.mubr.f32.mxu1 %v7124_v31  ;;  %v353_v19 = vld [vmem:[%s11699_s1 + $0x120] sm:$0xff]  ;;  %v355_v24 = vld [vmem:[%s11699_s1 + $0x130] sm:$0xff]  ;;  %v386_v0 = vld [vmem:[%s11699_s1 + $0x228] sm:$0xff] }
 0x182   : > { %4971 = vst [vmem:[%s9662_s28 + $0x1e0] sm:$0xff] %v4810_v21  ;;  %v6379_v32 = vadd.f32 %v6378_v22, %v2121_v23  ;;  %3282 = vmatprep.mubr.f32.mxu0 %v7124_v31  ;;  %v5914_v22 = vpack.c.bf16 %v354_v7, %v344_v6  ;;  %v345_v23 = vld [vmem:[%s11699_s1 + $0xe0] sm:$0xff]  ;;  %v7130_v31 = vld [vmem:[%s7684_s17 + $0x30] sm:$0xff] }
 0x183   : > { %4972 = vst [vmem:[%s9662_s28 + $0x1e8] sm:$0xff] %v4811_v26  ;;  %v6381_v33 = vadd.f32 %v6380_v28, %v2123_v30  ;;  %v1805_v35 = vpop.f32.mrb[16].mxu1 }
 0x184   : > { %v4820_v36 = vmax.f32 %v6379_v32, 0.0  ;;  %v6382_v37 = vadd.f32 %v1805_v35, %v9597_v27  ;;  %v2127_v38 = vpop.f32.mrb[16].mxu0  ;;  %v1807_v39 = vpop.f32.mrb[17].mxu1  ;;  %2639 = vmatmul.mubr.f32.gmra.mrb[58].mxu1 %v7125_v40  ;;  %v6134_v32 = vpack.c.bf16 %v356_v14, %v346_v13  ;;  %v374_v35 = vld [vmem:[%s11699_s1 + $0x1c8] sm:$0xff] }
 0x185   : > { %v4821_v41 = vmax.f32 %v6381_v33, 0.0  ;;  %v6384_v42 = vadd.f32 %v1807_v39, %v9611_v34  ;;  %v2129_v43 = vpop.f32.mrb[17].mxu0  ;;  %3283 = vmatmul.mubr.f32.gmra.mrb[58].mxu0 %v7125_v40  ;;  %2644 = vmatprep.mubr.f32.mxu1 %v7126_v44  ;;  %v364_v33 = vld [vmem:[%s11699_s1 + $0x178] sm:$0xff]  ;;  %v5916_v39 = vpack.c.bf16 %v353_v19, %v343_v18  ;;  %v366_v40 = vld [vmem:[%s11699_s1 + $0x188] sm:$0xff] }
 0x186   : > { %4981 = vst [vmem:[%s9662_s28 + $0x230] sm:$0xff] %v4820_v36  ;;  %v6383_v45 = vadd.f32 %v6382_v37, %v2127_v38  ;;  %3288 = vmatprep.mubr.f32.mxu0 %v7126_v44  ;;  %v363_v44 = vld [vmem:[%s11699_s1 + $0x170] sm:$0xff]  ;;  %v404_v19 = vld [vmem:[%s11699_s1 + $0x2b8] sm:$0xff] }
 0x187   : > { %4982 = vst [vmem:[%s9662_s28 + $0x238] sm:$0xff] %v4821_v41  ;;  %v6385_v46 = vadd.f32 %v6384_v42, %v2129_v43  ;;  %v1811_v47 = vpop.f32.mrb[18].mxu1  ;;  %v376_v41 = vld [vmem:[%s11699_s1 + $0x1d8] sm:$0xff]  ;;  %v6136_v43 = vpack.c.bf16 %v355_v24, %v345_v23 }
 0x188   : > { %v4830_v48 = vmax.f32 %v6383_v45, 0.0  ;;  %v6386_v49 = vadd.f32 %v1811_v47, %v9597_v27  ;;  %v2133_v50 = vpop.f32.mrb[18].mxu0  ;;  %v1813_v51 = vpop.f32.mrb[19].mxu1  ;;  %2645 = vmatmul.mubr.f32.gmra.mrb[60].mxu1 %v7127_v52  ;;  %v373_v45 = vld [vmem:[%s11699_s1 + $0x1c0] sm:$0xff] }
 0x189   : > { %v4831_v53 = vmax.f32 %v6385_v46, 0.0  ;;  %v6388_v54 = vadd.f32 %v1813_v51, %v9611_v34  ;;  %v2135_v55 = vpop.f32.mrb[19].mxu0  ;;  %3289 = vmatmul.mubr.f32.gmra.mrb[60].mxu0 %v7127_v52  ;;  %2650 = vmatprep.mubr.f32.mxu1 %v7128_v56  ;;  %v5920_v63 = vpack.c.bf16 %v373_v45, %v363_v44  ;;  %v424_v45 = vld [vmem:[%s11699_s1 + $0x358] sm:$0xff] }
 0x18a   : > { %4991 = vst [vmem:[%s9662_s28 + $0x280] sm:$0xff] %v4830_v48  ;;  %v6387_v57 = vadd.f32 %v6386_v49, %v2133_v50  ;;  %3294 = vmatprep.mubr.f32.mxu0 %v7128_v56  ;;  %v5918_v48 = vpack.c.bf16 %v374_v35, %v364_v33  ;;  %v365_v49 = vld [vmem:[%s11699_s1 + $0x180] sm:$0xff]  ;;  %v375_v50 = vld [vmem:[%s11699_s1 + $0x1d0] sm:$0xff]  ;;  %v6138_v56 = vpack.c.bf16 %v376_v41, %v366_v40 }
 0x18b   : > { %4992 = vst [vmem:[%s9662_s28 + $0x288] sm:$0xff] %v4831_v53  ;;  %v6389_v61 = vadd.f32 %v6388_v54, %v2135_v55  ;;  %v1817_v62 = vpop.f32.mrb[20].mxu1  ;;  %v7131_v55 = vld [vmem:[%s7684_s17 + $0x68] sm:$0xff] }
 0x18c   : > { %v4840_v1 = vmax.f32 %v6387_v57, 0.0  ;;  %v6390_v2 = vadd.f32 %v1817_v62, %v9597_v27  ;;  %v2139_v3 = vpop.f32.mrb[20].mxu0  ;;  %v1819_v4 = vpop.f32.mrb[21].mxu1  ;;  %2651 = vmatmul.mubr.f32.gmra.mrb[62].mxu1 %v7129_v5  ;;  %v384_v57 = vld [vmem:[%s11699_s1 + $0x218] sm:$0xff] }
 0x18d   : > { %v4841_v8 = vmax.f32 %v6389_v61, 0.0  ;;  %v6392_v9 = vadd.f32 %v1819_v4, %v9611_v34  ;;  %v2141_v11 = vpop.f32.mrb[21].mxu0  ;;  %3295 = vmatmul.mubr.f32.gmra.mrb[62].mxu0 %v7129_v5  ;;  %2721 = vmatprep.mubr.f32.mxu1 %v7323_v29  ;;  %v383_v4 = vld [vmem:[%s11699_s1 + $0x210] sm:$0xff]  ;;  %v393_v5 = vld [vmem:[%s11699_s1 + $0x260] sm:$0xff] }
 0x18e   : > { %5001 = vst [vmem:[%s9662_s28 + $0x2d0] sm:$0xff] %v4840_v1  ;;  %v6391_v15 = vadd.f32 %v6390_v2, %v2139_v3  ;;  %3365 = vmatprep.mubr.f32.mxu0 %v7323_v29  ;;  %v396_v1 = vld [vmem:[%s11699_s1 + $0x278] sm:$0xff]  ;;  %v6140_v3 = vpack.c.bf16 %v375_v50, %v365_v49  ;;  %v5924_v24 = vpack.c.bf16 %v393_v5, %v383_v4 }
 0x18f   : > { %5002 = vst [vmem:[%s9662_s28 + $0x2d8] sm:$0xff] %v4841_v8  ;;  %v6393_v20 = vadd.f32 %v6392_v9, %v2141_v11  ;;  %v1823_v21 = vpop.f32.mrb[22].mxu1  ;;  %v5922_v8 = vpack.c.bf16 %v394_v58, %v384_v57  ;;  %v385_v9 = vld [vmem:[%s11699_s1 + $0x220] sm:$0xff]  ;;  %v395_v11 = vld [vmem:[%s11699_s1 + $0x270] sm:$0xff]  ;;  %v6142_v18 = vpack.c.bf16 %v396_v1, %v386_v0  ;;  %v444_v5 = vld [vmem:[%s11699_s1 + $0x3f8] sm:$0xff] }
 0x190   : > { %v4850_v25 = vmax.f32 %v6391_v15, 0.0  ;;  %v6394_v26 = vadd.f32 %v1823_v21, %v9597_v27  ;;  %v2145_v28 = vpop.f32.mrb[22].mxu0  ;;  %v1825_v30 = vpop.f32.mrb[23].mxu1  ;;  %5177 = vmatmul.mubr.msk.f32.vlgmr.msra.gmra.mrb[32].mxu1 %vm1481_vm0, %v7130_v31 }
 0x191   : > { %v4851_v36 = vmax.f32 %v6393_v20, 0.0  ;;  %v6396_v37 = vadd.f32 %v1825_v30, %v9611_v34  ;;  %v2147_v38 = vpop.f32.mrb[23].mxu0  ;;  %5193 = vmatmul.mubr.msk.f32.vlgmr.msra.gmra.mrb[32].mxu0 %vm1481_vm0, %v7130_v31  ;;  %5913 = vmatpush1.bf16.msra.mxu1 %v5912_v12  ;;  %v414_v20 = vld [vmem:[%s11699_s1 + $0x308] sm:$0xff]  ;;  %v6144_v30 = vpack.c.bf16 %v395_v11, %v385_v9  ;;  %v403_v31 = vld [vmem:[%s11699_s1 + $0x2b0] sm:$0xff] }
 0x192   : > { %5011 = vst [vmem:[%s9662_s28 + $0x320] sm:$0xff] %v4850_v25  ;;  %v6395_v42 = vadd.f32 %v6394_v26, %v2145_v28  ;;  %6133 = vmatpush1.bf16.msra.mxu0 %v6132_v16  ;;  %2727 = vmatprep.mubr.f32.mxu1 %v7323_v29  ;;  %v7132_v16 = vld [vmem:[%s7684_s17 + $0xa0] sm:$0xff]  ;;  %v406_v25 = vld [vmem:[%s11699_s1 + $0x2c8] sm:$0xff]  ;;  %v416_v26 = vld [vmem:[%s11699_s1 + $0x318] sm:$0xff] }
 0x193   : > { %5012 = vst [vmem:[%s9662_s28 + $0x328] sm:$0xff] %v4851_v36  ;;  %v6397_v46 = vadd.f32 %v6396_v37, %v2147_v38  ;;  %v1829_v47 = vpop.f32.mrb[24].mxu1  ;;  %3371 = vmatprep.mubr.f32.mxu0 %v7323_v29  ;;  %5915 = vmatprep.subr.bf16.mxu1 %v5914_v22  ;;  %v5926_v36 = vpack.c.bf16 %v414_v20, %v404_v19  ;;  %v405_v37 = vld [vmem:[%s11699_s1 + $0x2c0] sm:$0xff]  ;;  %v415_v38 = vld [vmem:[%s11699_s1 + $0x310] sm:$0xff]  ;;  %v446_v11 = vld [vmem:[%s11699_s1 + $0x408] sm:$0xff] }
 0x194   : > { %v4860_v51 = vmax.f32 %v6395_v42, 0.0  ;;  %v6398_v52 = vadd.f32 %v1829_v47, %v9597_v27  ;;  %v2151_v53 = vpop.f32.mrb[24].mxu0  ;;  %v1831_v54 = vpop.f32.mrb[25].mxu1  ;;  %5178 = vmatmul.mubr.msk.f32.gmra.mrb[34].mxu1 %vm1481_vm0, %v7131_v55  ;;  %6135 = vmatprep.subr.bf16.mxu0 %v6134_v32  ;;  %v413_v32 = vld [vmem:[%s11699_s1 + $0x300] sm:$0xff]  ;;  %v6146_v44 = vpack.c.bf16 %v416_v26, %v406_v25  ;;  %v455_v20 = vld [vmem:[%s11699_s1 + $0x450] sm:$0xff]  ;;  %v474_v25 = vld [vmem:[%s11699_s1 + $0x4e8] sm:$0xff] }
 0x195   : > { %v4861_v60 = vmax.f32 %v6397_v46, 0.0  ;;  %v6400_v61 = vadd.f32 %v1831_v54, %v9611_v34  ;;  %v2153_v62 = vpop.f32.mrb[25].mxu0  ;;  %5194 = vmatmul.mubr.msk.f32.gmra.mrb[34].mxu0 %vm1481_vm0, %v7131_v55  ;;  %5917 = vmatpush1.bf16.msra.mxu1 %v5916_v39  ;;  %v434_v46 = vld [vmem:[%s11699_s1 + $0x3a8] sm:$0xff]  ;;  %v5928_v50 = vpack.c.bf16 %v413_v32, %v403_v31  ;;  %v6148_v54 = vpack.c.bf16 %v415_v38, %v405_v37  ;;  %v423_v55 = vld [vmem:[%s11699_s1 + $0x350] sm:$0xff]  ;;  %v445_v19 = vld [vmem:[%s11699_s1 + $0x400] sm:$0xff] }
 0x196   : > { %5021 = vst [vmem:[%s9662_s28 + $0x370] sm:$0xff] %v4860_v51  ;;  %v6399_v2 = vadd.f32 %v6398_v52, %v2151_v53  ;;  %6137 = vmatpush1.bf16.msra.mxu0 %v6136_v43  ;;  %2733 = vmatprep.mubr.f32.mxu1 %v7323_v29  ;;  %v7133_v43 = vld [vmem:[%s7684_s17 + $0xd8] sm:$0xff]  ;;  %v426_v51 = vld [vmem:[%s11699_s1 + $0x368] sm:$0xff]  ;;  %v6156_v32 = vpack.c.bf16 %v455_v20, %v445_v19  ;;  %v465_v37 = vld [vmem:[%s11699_s1 + $0x4a0] sm:$0xff] }
 0x197   : > { %5022 = vst [vmem:[%s9662_s28 + $0x378] sm:$0xff] %v4861_v60  ;;  %v6401_v6 = vadd.f32 %v6400_v61, %v2153_v62  ;;  %v1835_v7 = vpop.f32.mrb[26].mxu1  ;;  %3377 = vmatprep.mubr.f32.mxu0 %v7323_v29  ;;  %5919 = vmatprep.subr.bf16.mxu1 %v5918_v48  ;;  %v436_v52 = vld [vmem:[%s11699_s1 + $0x3b8] sm:$0xff]  ;;  %v5930_v60 = vpack.c.bf16 %v434_v46, %v424_v45  ;;  %v425_v61 = vld [vmem:[%s11699_s1 + $0x360] sm:$0xff]  ;;  %v435_v62 = vld [vmem:[%s11699_s1 + $0x3b0] sm:$0xff] }
 0x198   : > { %v4870_v12 = vmax.f32 %v6399_v2, 0.0  ;;  %v6402_v13 = vadd.f32 %v1835_v7, %v9597_v27  ;;  %v2157_v14 = vpop.f32.mrb[26].mxu0  ;;  %v1837_v15 = vpop.f32.mrb[27].mxu1  ;;  %5179 = vmatmul.mubr.msk.f32.gmra.mrb[36].mxu1 %vm1481_vm0, %v7132_v16  ;;  %6139 = vmatprep.subr.bf16.mxu0 %v6138_v56  ;;  %v433_v56 = vld [vmem:[%s11699_s1 + $0x3a0] sm:$0xff]  ;;  %v6150_v4 = vpack.c.bf16 %v436_v52, %v426_v51  ;;  %v476_v31 = vld [vmem:[%s11699_s1 + $0x4f8] sm:$0xff]  ;;  %v475_v38 = vld [vmem:[%s11699_s1 + $0x4f0] sm:$0xff] }
 0x199   : > { %v4871_v21 = vmax.f32 %v6401_v6, 0.0  ;;  %v6404_v22 = vadd.f32 %v1837_v15, %v9611_v34  ;;  %v2159_v23 = vpop.f32.mrb[27].mxu0  ;;  %5195 = vmatmul.mubr.msk.f32.gmra.mrb[36].mxu0 %vm1481_vm0, %v7132_v16  ;;  %5921 = vmatpush1.bf16.msra.mxu1 %v5920_v63  ;;  %v454_v6 = vld [vmem:[%s11699_s1 + $0x448] sm:$0xff]  ;;  %v5932_v9 = vpack.c.bf16 %v433_v56, %v423_v55  ;;  %v453_v15 = vld [vmem:[%s11699_s1 + $0x440] sm:$0xff]  ;;  %v496_v45 = vld [vmem:[%s11699_s1 + $0x598] sm:$0xff]  ;;  %v6160_v46 = vpack.c.bf16 %v475_v38, %v465_v37 }
 0x19a   : > { %5031 = vst [vmem:[%s9662_s28 + $0x3c0] sm:$0xff] %v4870_v12  ;;  %v6403_v28 = vadd.f32 %v6402_v13, %v2157_v14  ;;  %6141 = vmatpush1.bf16.msra.mxu0 %v6140_v3  ;;  %2739 = vmatprep.mubr.f32.mxu1 %v7323_v29  ;;  %v7134_v3 = vld [vmem:[%s7684_s17 + $0x110] sm:$0xff]  ;;  %v456_v12 = vld [vmem:[%s11699_s1 + $0x458] sm:$0xff]  ;;  %v514_v55 = vld [vmem:[%s11699_s1 + $0x628] sm:$0xff] }
 0x19b   : > { %5032 = vst [vmem:[%s9662_s28 + $0x3c8] sm:$0xff] %v4871_v21  ;;  %v6405_v33 = vadd.f32 %v6404_v22, %v2159_v23  ;;  %v1841_v35 = vpop.f32.mrb[28].mxu1  ;;  %3383 = vmatprep.mubr.f32.mxu0 %v7323_v29  ;;  %5923 = vmatprep.subr.bf16.mxu1 %v5922_v8  ;;  %v443_v14 = vld [vmem:[%s11699_s1 + $0x3f0] sm:$0xff]  ;;  %v7135_v22 = vld [vmem:[%s7684_s17 + $0x148] sm:$0xff]  ;;  %v6154_v23 = vpack.c.bf16 %v456_v12, %v446_v11  ;;  %v7137_v52 = vld [vmem:[%s7684_s17 + $0x1b8] sm:$0xff] }
 0x19c   : > { %v4880_v39 = vmax.f32 %v6403_v28, 0.0  ;;  %v6406_v40 = vadd.f32 %v1841_v35, %v9597_v27  ;;  %v2163_v41 = vpop.f32.mrb[28].mxu0  ;;  %v1843_v42 = vpop.f32.mrb[29].mxu1  ;;  %5180 = vmatmul.mubr.msk.f32.gmra.mrb[38].mxu1 %vm1481_vm0, %v7133_v43  ;;  %6143 = vmatprep.subr.bf16.mxu0 %v6142_v18  ;;  %v5934_v18 = vpack.c.bf16 %v454_v6, %v444_v5  ;;  %v5936_v28 = vpack.c.bf16 %v453_v15, %v443_v14  ;;  %v473_v35 = vld [vmem:[%s11699_s1 + $0x4e0] sm:$0xff]  ;;  %v495_v51 = vld [vmem:[%s11699_s1 + $0x590] sm:$0xff]  ;;  %v534_v5 = vld [vmem:[%s11699_s1 + $0x6c8] sm:$0xff] }
 0x19d   : > { %v4881_v47 = vmax.f32 %v6405_v33, 0.0  ;;  %v6408_v48 = vadd.f32 %v1843_v42, %v9611_v34  ;;  %v2165_v49 = vpop.f32.mrb[29].mxu0  ;;  %5196 = vmatmul.mubr.msk.f32.gmra.mrb[38].mxu0 %vm1481_vm0, %v7133_v43  ;;  %5925 = vmatpush1.bf16.msra.mxu1 %v5924_v24  ;;  %v464_v24 = vld [vmem:[%s11699_s1 + $0x498] sm:$0xff]  ;;  %v463_v33 = vld [vmem:[%s11699_s1 + $0x490] sm:$0xff]  ;;  %v494_v42 = vld [vmem:[%s11699_s1 + $0x588] sm:$0xff] }
 0x19e   : > { %5041 = vst [vmem:[%s9662_s28 + $0x410] sm:$0xff] %v4880_v39  ;;  %v6407_v53 = vadd.f32 %v6406_v40, %v2163_v41  ;;  %6145 = vmatpush1.bf16.msra.mxu0 %v6144_v30  ;;  %2745 = vmatprep.mubr.f32.mxu1 %v7323_v29  ;;  %v466_v30 = vld [vmem:[%s11699_s1 + $0x4a8] sm:$0xff]  ;;  %v7136_v39 = vld [vmem:[%s7684_s17 + $0x180] sm:$0xff]  ;;  %v484_v41 = vld [vmem:[%s11699_s1 + $0x538] sm:$0xff]  ;;  %v5940_v43 = vpack.c.bf16 %v473_v35, %v463_v33 }
 0x19f   : > { %5042 = vst [vmem:[%s9662_s28 + $0x418] sm:$0xff] %v4881_v47  ;;  %v6409_v57 = vadd.f32 %v6408_v48, %v2165_v49  ;;  %v1847_v58 = vpop.f32.mrb[30].mxu1  ;;  %3389 = vmatprep.mubr.f32.mxu0 %v7323_v29  ;;  %5927 = vmatprep.subr.bf16.mxu1 %v5926_v36  ;;  %v5938_v36 = vpack.c.bf16 %v474_v25, %v464_v24  ;;  %v483_v47 = vld [vmem:[%s11699_s1 + $0x530] sm:$0xff]  ;;  %v493_v48 = vld [vmem:[%s11699_s1 + $0x580] sm:$0xff]  ;;  %v7139_v14 = vld [vmem:[%s7684_s17 + $0x228] sm:$0xff] }
 0x1a0   : > { %v4890_v63 = vmax.f32 %v6407_v53, 0.0  ;;  %v6410_v0 = vadd.f32 %v1847_v58, %v9597_v27  ;;  %v2169_v1 = vpop.f32.mrb[30].mxu0  ;;  %v1849_v2 = vpop.f32.mrb[31].mxu1  ;;  %5181 = vmatmul.mubr.msk.f32.gmra.mrb[40].mxu1 %vm1481_vm0, %v7134_v3  ;;  %6147 = vmatprep.subr.bf16.mxu0 %v6146_v44  ;;  %v6158_v40 = vpack.c.bf16 %v476_v31, %v466_v30  ;;  %v486_v44 = vld [vmem:[%s11699_s1 + $0x548] sm:$0xff]  ;;  %v5942_v49 = vpack.c.bf16 %v494_v42, %v484_v41  ;;  %v516_v58 = vld [vmem:[%s11699_s1 + $0x638] sm:$0xff]  ;;  %v533_v11 = vld [vmem:[%s11699_s1 + $0x6c0] sm:$0xff] }
 0x1a1   : > { %v4891_v7 = vmax.f32 %v6409_v57, 0.0  ;;  %v6412_v27 = vadd.f32 %v1849_v2, %v9611_v34  ;;  %v2171_v8 = vpop.f32.mrb[31].mxu0  ;;  %5197 = vmatmul.mubr.msk.f32.gmra.mrb[40].mxu0 %vm1481_vm0, %v7134_v3  ;;  %5929 = vmatpush1.bf16.msra.mxu1 %v5928_v50  ;;  %v6152_v34 = vpack.c.bf16 %v435_v62, %v425_v61  ;;  %v485_v50 = vld [vmem:[%s11699_s1 + $0x540] sm:$0xff]  ;;  %v6162_v53 = vpack.c.bf16 %v496_v45, %v486_v44  ;;  %v506_v57 = vld [vmem:[%s11699_s1 + $0x5e8] sm:$0xff]  ;;  %v503_v61 = vld [vmem:[%s11699_s1 + $0x5d0] sm:$0xff] }
 0x1a2   : > { %5051 = vst [vmem:[%s9662_s28 + $0x460] sm:$0xff] %v4890_v63  ;;  %v6411_v13 = vadd.f32 %v6410_v0, %v2169_v1  ;;  %6149 = vmatpush1.bf16.msra.mxu0 %v6148_v54  ;;  %2751 = vmatprep.mubr.f32.mxu1 %v7323_v29  ;;  %v504_v54 = vld [vmem:[%s11699_s1 + $0x5d8] sm:$0xff]  ;;  %v5944_v56 = vpack.c.bf16 %v493_v48, %v483_v47  ;;  %v513_v62 = vld [vmem:[%s11699_s1 + $0x620] sm:$0xff]  ;;  %v515_v1 = vld [vmem:[%s11699_s1 + $0x630] sm:$0xff] }
 0x1a3   : > { %5052 = vst [vmem:[%s9662_s28 + $0x468] sm:$0xff] %v4891_v7  ;;  %v6413_v16 = vadd.f32 %v6412_v27, %v2171_v8  ;;  %3395 = vmatprep.mubr.f32.mxu0 %v7323_v29  ;;  %5931 = vmatprep.subr.bf16.mxu1 %v5930_v60  ;;  %v6164_v60 = vpack.c.bf16 %v495_v51, %v485_v50  ;;  %v505_v0 = vld [vmem:[%s11699_s1 + $0x5e0] sm:$0xff]  ;;  %v7138_v2 = vld [vmem:[%s7684_s17 + $0x1f0] sm:$0xff]  ;;  %v526_v7 = vld [vmem:[%s11699_s1 + $0x688] sm:$0xff] }
 0x1a4   : > { %v4900_v21 = vmax.f32 %v6411_v13, 0.0  ;;  %5182 = vmatmul.mubr.msk.f32.gmra.mrb[42].mxu1 %vm1481_vm0, %v7135_v22  ;;  %6151 = vmatprep.subr.bf16.mxu0 %v6150_v4  ;;  %v5946_v63 = vpack.c.bf16 %v514_v55, %v504_v54  ;;  %v6166_v3 = vpack.c.bf16 %v516_v58, %v506_v57  ;;  %v524_v4 = vld [vmem:[%s11699_s1 + $0x678] sm:$0xff]  ;;  %v5948_v6 = vpack.c.bf16 %v513_v62, %v503_v61  ;;  %v525_v13 = vld [vmem:[%s11699_s1 + $0x680] sm:$0xff]  ;;  %v546_v20 = vld [vmem:[%s11699_s1 + $0x728] sm:$0xff] }
 0x1a5   : > { %v4901_v26 = vmax.f32 %v6413_v16, 0.0  ;;  %5198 = vmatmul.mubr.msk.f32.gmra.mrb[42].mxu0 %vm1481_vm0, %v7135_v22  ;;  %5933 = vmatpush1.bf16.msra.mxu1 %v5932_v9  ;;  %v536_v27 = vld [vmem:[%s11699_s1 + $0x6d8] sm:$0xff]  ;;  %v6168_v8 = vpack.c.bf16 %v515_v1, %v505_v0  ;;  %v523_v9 = vld [vmem:[%s11699_s1 + $0x670] sm:$0xff]  ;;  %v5950_v12 = vpack.c.bf16 %v534_v5, %v524_v4  ;;  %v553_v24 = vld [vmem:[%s11699_s1 + $0x760] sm:$0xff] }
 0x1a6   : > { %5061 = vst [vmem:[%s9662_s28 + $0x4b0] sm:$0xff] %v4900_v21  ;;  %6153 = vmatpush1.bf16.msra.mxu0 %v6152_v34  ;;  %2757 = vmatprep.mubr.f32.mxu1 %v7323_v29  ;;  %v535_v34 = vld [vmem:[%s11699_s1 + $0x6d0] sm:$0xff]  ;;  %v6170_v15 = vpack.c.bf16 %v536_v27, %v526_v7  ;;  %v544_v16 = vld [vmem:[%s11699_s1 + $0x718] sm:$0xff]  ;;  %v5952_v19 = vpack.c.bf16 %v533_v11, %v523_v9  ;;  %v7140_v30 = vld [vmem:[%s7684_s17 + $0x260] sm:$0xff] }
 0x1a7   : > { %5062 = vst [vmem:[%s9662_s28 + $0x4b8] sm:$0xff] %v4901_v26  ;;  %3401 = vmatprep.mubr.f32.mxu0 %v7323_v29  ;;  %5935 = vmatprep.subr.bf16.mxu1 %v5934_v18  ;;  %v554_v18 = vld [vmem:[%s11699_s1 + $0x768] sm:$0xff]  ;;  %v556_v21 = vld [vmem:[%s11699_s1 + $0x778] sm:$0xff]  ;;  %v6172_v22 = vpack.c.bf16 %v535_v34, %v525_v13  ;;  %v545_v26 = vld [vmem:[%s11699_s1 + $0x720] sm:$0xff] }
 0x1a8   : > { %5183 = vmatmul.mubr.msk.f32.gmra.mrb[44].mxu1 %vm1481_vm0, %v7136_v39  ;;  %6155 = vmatprep.subr.bf16.mxu0 %v6154_v23  ;;  %v543_v23 = vld [vmem:[%s11699_s1 + $0x710] sm:$0xff]  ;;  %v5954_v25 = vpack.c.bf16 %v554_v18, %v544_v16  ;;  %v6174_v31 = vpack.c.bf16 %v556_v21, %v546_v20  ;;  %v574_v33 = vld [vmem:[%s11699_s1 + $0x808] sm:$0xff]  ;;  %v576_v37 = vld [vmem:[%s11699_s1 + $0x818] sm:$0xff] }
 0x1a9   : > { %5199 = vmatmul.mubr.msk.f32.gmra.mrb[44].mxu0 %vm1481_vm0, %v7136_v39  ;;  %5937 = vmatpush1.bf16.msra.mxu1 %v5936_v28  ;;  %v555_v28 = vld [vmem:[%s11699_s1 + $0x770] sm:$0xff]  ;;  %v5956_v35 = vpack.c.bf16 %v553_v24, %v543_v23  ;;  %v565_v42 = vld [vmem:[%s11699_s1 + $0x7c0] sm:$0xff]  ;;  %v7141_v44 = vld [vmem:[%s7684_s17 + $0x298] sm:$0xff] }
 0x1aa   : > { %6157 = vmatpush1.bf16.msra.mxu0 %v6156_v32  ;;  %2763 = vmatprep.mubr.f32.mxu1 %v7323_v29  ;;  %v564_v32 = vld [vmem:[%s11699_s1 + $0x7b8] sm:$0xff]  ;;  %v6176_v38 = vpack.c.bf16 %v555_v28, %v545_v26  ;;  %v563_v39 = vld [vmem:[%s11699_s1 + $0x7b0] sm:$0xff]  ;;  %v594_v47 = vld [vmem:[%s11699_s1 + $0x8a8] sm:$0xff] }
 0x1ab   : > { %3407 = vmatprep.mubr.f32.mxu0 %v7323_v29  ;;  %5939 = vmatprep.subr.bf16.mxu1 %v5938_v36  ;;  %v566_v36 = vld [vmem:[%s11699_s1 + $0x7c8] sm:$0xff]  ;;  %v5958_v41 = vpack.c.bf16 %v574_v33, %v564_v32  ;;  %v596_v50 = vld [vmem:[%s11699_s1 + $0x8b8] sm:$0xff]  ;;  %v585_v55 = vld [vmem:[%s11699_s1 + $0x860] sm:$0xff] }
 0x1ac   : > { %5184 = vmatmul.mubr.msk.f32.gmra.mrb[46].mxu1 %vm1481_vm0, %v7137_v52  ;;  %6159 = vmatprep.subr.bf16.mxu0 %v6158_v40  ;;  %v573_v40 = vld [vmem:[%s11699_s1 + $0x800] sm:$0xff]  ;;  %v6178_v45 = vpack.c.bf16 %v576_v37, %v566_v36  ;;  %v7142_v57 = vld [vmem:[%s7684_s17 + $0x2d0] sm:$0xff]  ;;  %v614_v61 = vld [vmem:[%s11699_s1 + $0x948] sm:$0xff] }
 0x1ad   : > { %5200 = vmatmul.mubr.msk.f32.gmra.mrb[46].mxu0 %vm1481_vm0, %v7137_v52  ;;  %5941 = vmatpush1.bf16.msra.mxu1 %v5940_v43  ;;  %v575_v43 = vld [vmem:[%s11699_s1 + $0x810] sm:$0xff]  ;;  %v5960_v48 = vpack.c.bf16 %v573_v40, %v563_v39  ;;  %v616_v0 = vld [vmem:[%s11699_s1 + $0x958] sm:$0xff]  ;;  %v605_v5 = vld [vmem:[%s11699_s1 + $0x900] sm:$0xff] }
 0x1ae   : > { %6161 = vmatpush1.bf16.msra.mxu0 %v6160_v46  ;;  %2769 = vmatprep.mubr.f32.mxu1 %v7323_v29  ;;  %v584_v46 = vld [vmem:[%s11699_s1 + $0x858] sm:$0xff]  ;;  %v6180_v51 = vpack.c.bf16 %v575_v43, %v565_v42  ;;  %v583_v52 = vld [vmem:[%s11699_s1 + $0x850] sm:$0xff]  ;;  %v7143_v7 = vld [vmem:[%s7684_s17 + $0x308] sm:$0xff] }
 0x1af   : > { %3413 = vmatprep.mubr.f32.mxu0 %v7323_v29  ;;  %5943 = vmatprep.subr.bf16.mxu1 %v5942_v49  ;;  %v586_v49 = vld [vmem:[%s11699_s1 + $0x868] sm:$0xff]  ;;  %v5962_v54 = vpack.c.bf16 %v594_v47, %v584_v46  ;;  %v636_v13 = vld [vmem:[%s11699_s1 + $0x9f8] sm:$0xff]  ;;  %v625_v18 = vld [vmem:[%s11699_s1 + $0x9a0] sm:$0xff] }
 0x1b0   : > { %5185 = vmatmul.mubr.msk.f32.gmra.mrb[48].mxu1 %vm1481_vm0, %v7138_v2  ;;  %6163 = vmatprep.subr.bf16.mxu0 %v6162_v53  ;;  %v593_v53 = vld [vmem:[%s11699_s1 + $0x8a0] sm:$0xff]  ;;  %v6182_v58 = vpack.c.bf16 %v596_v50, %v586_v49  ;;  %v634_v9 = vld [vmem:[%s11699_s1 + $0x9e8] sm:$0xff]  ;;  %v656_v26 = vld [vmem:[%s11699_s1 + $0xa98] sm:$0xff] }
 0x1b1   : > { %5201 = vmatmul.mubr.msk.f32.gmra.mrb[48].mxu0 %vm1481_vm0, %v7138_v2  ;;  %5945 = vmatpush1.bf16.msra.mxu1 %v5944_v56  ;;  %v595_v56 = vld [vmem:[%s11699_s1 + $0x8b0] sm:$0xff]  ;;  %v5964_v62 = vpack.c.bf16 %v593_v53, %v583_v52  ;;  %v7144_v20 = vld [vmem:[%s7684_s17 + $0x340] sm:$0xff]  ;;  %v654_v23 = vld [vmem:[%s11699_s1 + $0xa88] sm:$0xff] }
 0x1b2   : > { %6165 = vmatpush1.bf16.msra.mxu0 %v6164_v60  ;;  %2775 = vmatprep.mubr.f32.mxu1 %v7323_v29  ;;  %v604_v60 = vld [vmem:[%s11699_s1 + $0x8f8] sm:$0xff]  ;;  %v6184_v1 = vpack.c.bf16 %v595_v56, %v585_v55  ;;  %v603_v2 = vld [vmem:[%s11699_s1 + $0x8f0] sm:$0xff]  ;;  %v645_v33 = vld [vmem:[%s11699_s1 + $0xa40] sm:$0xff] }
 0x1b3   : > { %3419 = vmatprep.mubr.f32.mxu0 %v7323_v29  ;;  %5947 = vmatprep.subr.bf16.mxu1 %v5946_v63  ;;  %v606_v63 = vld [vmem:[%s11699_s1 + $0x908] sm:$0xff]  ;;  %v5966_v4 = vpack.c.bf16 %v614_v61, %v604_v60  ;;  %v7145_v36 = vld [vmem:[%s7684_s17 + $0x378] sm:$0xff]  ;;  %v673_v46 = vld [vmem:[%s11699_s1 + $0xb20] sm:$0xff] }
 0x1b4   : > { %5186 = vmatmul.mubr.msk.f32.gmra.mrb[50].mxu1 %vm1481_vm0, %v7139_v14  ;;  %6167 = vmatprep.subr.bf16.mxu0 %v6166_v3  ;;  %v613_v3 = vld [vmem:[%s11699_s1 + $0x940] sm:$0xff]  ;;  %v6186_v27 = vpack.c.bf16 %v616_v0, %v606_v63  ;;  %v674_v39 = vld [vmem:[%s11699_s1 + $0xb28] sm:$0xff]  ;;  %v676_v42 = vld [vmem:[%s11699_s1 + $0xb38] sm:$0xff] }
 0x1b5   : > { %5202 = vmatmul.mubr.msk.f32.gmra.mrb[50].mxu0 %vm1481_vm0, %v7139_v14  ;;  %5949 = vmatpush1.bf16.msra.mxu1 %v5948_v6  ;;  %v615_v6 = vld [vmem:[%s11699_s1 + $0x950] sm:$0xff]  ;;  %v5968_v11 = vpack.c.bf16 %v613_v3, %v603_v2  ;;  %v7146_v43 = vld [vmem:[%s7684_s17 + $0x8] sm:$0xff]  ;;  %v7147_v50 = vld [vmem:[%s7684_s17] sm:$0xff] }
 0x1b6   : > { %6169 = vmatpush1.bf16.msra.mxu0 %v6168_v8  ;;  %2781 = vmatprep.mubr.f32.mxu1 %v7323_v29  ;;  %v624_v8 = vld [vmem:[%s11699_s1 + $0x998] sm:$0xff]  ;;  %v6188_v34 = vpack.c.bf16 %v615_v6, %v605_v5  ;;  %v623_v14 = vld [vmem:[%s11699_s1 + $0x990] sm:$0xff]  ;;  %v694_v53 = vld [vmem:[%s11699_s1 + $0xbc8] sm:$0xff] }
 0x1b7   : > { %3425 = vmatprep.mubr.f32.mxu0 %v7323_v29  ;;  %5951 = vmatprep.subr.bf16.mxu1 %v5950_v12  ;;  %v626_v12 = vld [vmem:[%s11699_s1 + $0x9a8] sm:$0xff]  ;;  %v5970_v16 = vpack.c.bf16 %v634_v9, %v624_v8  ;;  %v675_v49 = vld [vmem:[%s11699_s1 + $0xb30] sm:$0xff]  ;;  %v684_v52 = vld [vmem:[%s11699_s1 + $0xb78] sm:$0xff] }
 0x1b8   : > { %5187 = vmatmul.mubr.msk.f32.gmra.mrb[52].mxu1 %vm1481_vm0, %v7140_v30  ;;  %6171 = vmatprep.subr.bf16.mxu0 %v6170_v15  ;;  %v633_v15 = vld [vmem:[%s11699_s1 + $0x9e0] sm:$0xff]  ;;  %v6190_v21 = vpack.c.bf16 %v636_v13, %v626_v12  ;;  %v686_v55 = vld [vmem:[%s11699_s1 + $0xb88] sm:$0xff]  ;;  %v696_v56 = vld [vmem:[%s11699_s1 + $0xbd8] sm:$0xff] }
 0x1b9   : > { %5203 = vmatmul.mubr.msk.f32.gmra.mrb[52].mxu0 %vm1481_vm0, %v7140_v30  ;;  %5953 = vmatpush1.bf16.msra.mxu1 %v5952_v19  ;;  %v635_v19 = vld [vmem:[%s11699_s1 + $0x9f0] sm:$0xff]  ;;  %v5972_v24 = vpack.c.bf16 %v633_v15, %v623_v14  ;;  %v693_v61 = vld [vmem:[%s11699_s1 + $0xbc0] sm:$0xff]  ;;  %v6202_v2 = vpack.c.bf16 %v696_v56, %v686_v55  ;;  %v704_v3 = vld [vmem:[%s11699_s1 + $0xc18] sm:$0xff] }
 0x1ba   : > { %6173 = vmatpush1.bf16.msra.mxu0 %v6172_v22  ;;  %2787 = vmatprep.mubr.f32.mxu1 %v7323_v29  ;;  %v644_v22 = vld [vmem:[%s11699_s1 + $0xa38] sm:$0xff]  ;;  %v6192_v28 = vpack.c.bf16 %v635_v19, %v625_v18  ;;  %v643_v30 = vld [vmem:[%s11699_s1 + $0xa30] sm:$0xff]  ;;  %v685_v63 = vld [vmem:[%s11699_s1 + $0xb80] sm:$0xff] }
 0x1bb   : > { %3431 = vmatprep.mubr.f32.mxu0 %v7323_v29  ;;  %5955 = vmatprep.subr.bf16.mxu1 %v5954_v25  ;;  %v646_v25 = vld [vmem:[%s11699_s1 + $0xa48] sm:$0xff]  ;;  %v5974_v32 = vpack.c.bf16 %v654_v23, %v644_v22  ;;  %v683_v60 = vld [vmem:[%s11699_s1 + $0xb70] sm:$0xff]  ;;  %v705_v13 = vld [vmem:[%s11699_s1 + $0xc20] sm:$0xff] }
 0x1bc   : > { %5188 = vmatmul.mubr.msk.f32.gmra.mrb[54].mxu1 %vm1481_vm0, %v7141_v44  ;;  %6175 = vmatprep.subr.bf16.mxu0 %v6174_v31  ;;  %v653_v31 = vld [vmem:[%s11699_s1 + $0xa80] sm:$0xff]  ;;  %v6194_v37 = vpack.c.bf16 %v656_v26, %v646_v25  ;;  %v695_v0 = vld [vmem:[%s11699_s1 + $0xbd0] sm:$0xff]  ;;  %v5984_v5 = vpack.c.bf16 %v693_v61, %v683_v60  ;;  %v706_v6 = vld [vmem:[%s11699_s1 + $0xc28] sm:$0xff] }
 0x1bd   : > { %5204 = vmatmul.mubr.msk.f32.gmra.mrb[54].mxu0 %vm1481_vm0, %v7141_v44  ;;  %5957 = vmatpush1.bf16.msra.mxu1 %v5956_v35  ;;  %v655_v35 = vld [vmem:[%s11699_s1 + $0xa90] sm:$0xff]  ;;  %v5976_v40 = vpack.c.bf16 %v653_v31, %v643_v30  ;;  %v6204_v8 = vpack.c.bf16 %v695_v0, %v685_v63  ;;  %v734_v18 = vld [vmem:[%s11699_s1 + $0xd08] sm:$0xff]  ;;  %v733_v25 = vld [vmem:[%s11699_s1 + $0xd00] sm:$0xff] }
 0x1be   : > { %6177 = vmatpush1.bf16.msra.mxu0 %v6176_v38  ;;  %2793 = vmatprep.mubr.f32.mxu1 %v7323_v29  ;;  %v664_v38 = vld [vmem:[%s11699_s1 + $0xad8] sm:$0xff]  ;;  %v6196_v44 = vpack.c.bf16 %v655_v35, %v645_v33  ;;  %v703_v9 = vld [vmem:[%s11699_s1 + $0xc10] sm:$0xff]  ;;  %v7153_v31 = vld [vmem:[%s7684_s17 + $0xa8] sm:$0xff] }
 0x1bf   : > { %3437 = vmatprep.mubr.f32.mxu0 %v7323_v29  ;;  %5959 = vmatprep.subr.bf16.mxu1 %v5958_v41  ;;  %v666_v41 = vld [vmem:[%s11699_s1 + $0xae8] sm:$0xff]  ;;  %v5978_v47 = vpack.c.bf16 %v674_v39, %v664_v38  ;;  %v7151_v14 = vld [vmem:[%s7684_s17 + $0x70] sm:$0xff]  ;;  %v744_v33 = vld [vmem:[%s11699_s1 + $0xd58] sm:$0xff] }
 0x1c0   : > { %5189 = vmatmul.mubr.msk.f32.gmra.mrb[56].mxu1 %vm1481_vm0, %v7142_v57  ;;  %6179 = vmatprep.subr.bf16.mxu0 %v6178_v45  ;;  %v663_v45 = vld [vmem:[%s11699_s1 + $0xad0] sm:$0xff]  ;;  %v754_v35 = vld [vmem:[%s11699_s1 + $0xda8] sm:$0xff]  ;;  %v756_v38 = vld [vmem:[%s11699_s1 + $0xdb8] sm:$0xff] }
 0x1c1   : > { %5205 = vmatmul.mubr.msk.f32.gmra.mrb[56].mxu0 %vm1481_vm0, %v7142_v57  ;;  %5961 = vmatpush1.bf16.msra.mxu1 %v5960_v48  ;;  %v665_v48 = vld [vmem:[%s11699_s1 + $0xae0] sm:$0xff]  ;;  %v7152_v22 = vld [vmem:[%s7684_s17 + $0xb0] sm:$0xff]  ;;  %v7154_v39 = vld [vmem:[%s7684_s17 + $0xe8] sm:$0xff] }
 0x1c2   : > { %6181 = vmatpush1.bf16.msra.mxu0 %v6180_v51  ;;  %2799 = vmatprep.mubr.f32.mxu1 %v7323_v29  ;;  %v6198_v51 = vpack.c.bf16 %v676_v42, %v666_v41  ;;  %v7148_v57 = vld [vmem:[%s7684_s17 + $0x40] sm:$0xff]  ;;  %v735_v30 = vld [vmem:[%s11699_s1 + $0xd10] sm:$0xff]  ;;  %v7157_v61 = vld [vmem:[%s7684_s17 + $0x118] sm:$0xff] }
 0x1c3   : > { %3443 = vmatprep.mubr.f32.mxu0 %v7323_v29  ;;  %5963 = vmatprep.subr.bf16.mxu1 %v5962_v54  ;;  %v5980_v54 = vpack.c.bf16 %v673_v46, %v663_v45  ;;  %v743_v41 = vld [vmem:[%s11699_s1 + $0xd50] sm:$0xff]  ;;  %v753_v42 = vld [vmem:[%s11699_s1 + $0xda0] sm:$0xff]  ;;  %v784_v63 = vld [vmem:[%s11699_s1 + $0xe98] sm:$0xff] }
 0x1c4   : > { %5190 = vmatmul.mubr.msk.f32.gmra.mrb[58].mxu1 %vm1481_vm0, %v7143_v7  ;;  %6183 = vmatprep.subr.bf16.mxu0 %v6182_v58  ;;  %v6200_v58 = vpack.c.bf16 %v675_v49, %v665_v48  ;;  %v755_v45 = vld [vmem:[%s11699_s1 + $0xdb0] sm:$0xff]  ;;  %v7155_v46 = vld [vmem:[%s7684_s17 + $0xe0] sm:$0xff]  ;;  %v764_v48 = vld [vmem:[%s11699_s1 + $0xdf8] sm:$0xff] }
 0x1c5   : > { %5206 = vmatmul.mubr.msk.f32.gmra.mrb[58].mxu0 %vm1481_vm0, %v7143_v7  ;;  %5965 = vmatpush1.bf16.msra.mxu1 %v5964_v62  ;;  %v5982_v62 = vpack.c.bf16 %v694_v53, %v684_v52  ;;  %v716_v7 = vld [vmem:[%s11699_s1 + $0xc78] sm:$0xff]  ;;  %v774_v49 = vld [vmem:[%s11699_s1 + $0xe48] sm:$0xff]  ;;  %v7156_v53 = vld [vmem:[%s7684_s17 + $0x120] sm:$0xff] }
 0x1c6   : > { %6185 = vmatpush1.bf16.msra.mxu0 %v6184_v1  ;;  %2805 = vmatprep.mubr.f32.mxu1 %v7323_v29  ;;  %v7149_v1 = vld [vmem:[%s7684_s17 + $0x38] sm:$0xff]  ;;  %v6206_v15 = vpack.c.bf16 %v716_v7, %v706_v6  ;;  %v763_v55 = vld [vmem:[%s11699_s1 + $0xdf0] sm:$0xff]  ;;  %v773_v56 = vld [vmem:[%s11699_s1 + $0xe40] sm:$0xff] }
 0x1c7   : > { %3449 = vmatprep.mubr.f32.mxu0 %v7323_v29  ;;  %5967 = vmatprep.subr.bf16.mxu1 %v5966_v4  ;;  %v714_v4 = vld [vmem:[%s11699_s1 + $0xc68] sm:$0xff]  ;;  %v776_v52 = vld [vmem:[%s11699_s1 + $0xe58] sm:$0xff]  ;;  %v775_v60 = vld [vmem:[%s11699_s1 + $0xe50] sm:$0xff] }
 0x1c8   : > { %5191 = vmatmul.mubr.msk.f32.gmra.mrb[60].mxu1 %vm1481_vm0, %v7144_v20  ;;  %6187 = vmatprep.subr.bf16.mxu0 %v6186_v27  ;;  %v7150_v27 = vld [vmem:[%s7684_s17 + $0x78] sm:$0xff]  ;;  %v5986_v12 = vpack.c.bf16 %v714_v4, %v704_v3  ;;  %v794_v0 = vld [vmem:[%s11699_s1 + $0xee8] sm:$0xff]  ;;  %v783_v6 = vld [vmem:[%s11699_s1 + $0xe90] sm:$0xff] }
 0x1c9   : > { %5207 = vmatmul.mubr.msk.f32.gmra.mrb[60].mxu0 %vm1481_vm0, %v7144_v20  ;;  %5969 = vmatpush1.bf16.msra.mxu1 %v5968_v11  ;;  %v713_v11 = vld [vmem:[%s11699_s1 + $0xc60] sm:$0xff]  ;;  %v726_v20 = vld [vmem:[%s11699_s1 + $0xcc8] sm:$0xff]  ;;  %v796_v3 = vld [vmem:[%s11699_s1 + $0xef8] sm:$0xff] }
 0x1ca   : > { %6189 = vmatpush1.bf16.msra.mxu0 %v6188_v34  ;;  %2811 = vmatprep.mubr.f32.mxu1 %v7323_v29  ;;  %v715_v34 = vld [vmem:[%s11699_s1 + $0xc70] sm:$0xff]  ;;  %v5988_v19 = vpack.c.bf16 %v713_v11, %v703_v9  ;;  %v7158_v4 = vld [vmem:[%s7684_s17 + $0x158] sm:$0xff]  ;;  %v793_v7 = vld [vmem:[%s11699_s1 + $0xee0] sm:$0xff] }
 0x1cb   : > { %3455 = vmatprep.mubr.f32.mxu0 %v7323_v29  ;;  %5971 = vmatprep.subr.bf16.mxu1 %v5970_v16  ;;  %v724_v16 = vld [vmem:[%s11699_s1 + $0xcb8] sm:$0xff]  ;;  %v6208_v23 = vpack.c.bf16 %v715_v34, %v705_v13  ;;  %v795_v9 = vld [vmem:[%s11699_s1 + $0xef0] sm:$0xff]  ;;  %v814_v34 = vld [vmem:[%s11699_s1 + $0xf88] sm:$0xff] }
 0x1cc   : > { %5192 = vmatmul.mubr.msk.f32.gmra.mrb[62].mxu1 %vm1481_vm0, %v7145_v36  ;;  %6191 = vmatprep.subr.bf16.mxu0 %v6190_v21  ;;  %v736_v21 = vld [vmem:[%s11699_s1 + $0xd18] sm:$0xff]  ;;  %v5990_v26 = vpack.c.bf16 %v734_v18, %v724_v16  ;;  %v7159_v11 = vld [vmem:[%s7684_s17 + $0x150] sm:$0xff] }
 0x1cd   : > { %5208 = vmatmul.mubr.msk.f32.gmra.mrb[62].mxu0 %vm1481_vm0, %v7145_v36  ;;  %5973 = vmatpush1.bf16.msra.mxu1 %v5972_v24  ;;  %v723_v24 = vld [vmem:[%s11699_s1 + $0xcb0] sm:$0xff]  ;;  %v804_v13 = vld [vmem:[%s11699_s1 + $0xf38] sm:$0xff] }
 0x1ce   : > { %6193 = vmatpush1.bf16.msra.mxu0 %v6192_v28  ;;  %3526 = vmatprep.mubr.f32.mxu1 %v7146_v43  ;;  %v725_v28 = vld [vmem:[%s11699_s1 + $0xcc0] sm:$0xff]  ;;  %v5992_v36 = vpack.c.bf16 %v733_v25, %v723_v24  ;;  %v816_v16 = vld [vmem:[%s11699_s1 + $0xf98] sm:$0xff]  ;;  %v7160_v18 = vld [vmem:[%s7684_s17 + $0x190] sm:$0xff] }
 0x1cf   : > { %4170 = vmatprep.mubr.f32.mxu0 %v7146_v43  ;;  %5975 = vmatprep.subr.bf16.mxu1 %v5974_v32  ;;  %v6210_v32 = vpack.c.bf16 %v736_v21, %v726_v20  ;;  %v5994_v43 = vpack.c.bf16 %v754_v35, %v744_v33  ;;  %v803_v20 = vld [vmem:[%s11699_s1 + $0xf30] sm:$0xff]  ;;  %v813_v21 = vld [vmem:[%s11699_s1 + $0xf80] sm:$0xff]  ;;  %v7161_v25 = vld [vmem:[%s7684_s17 + $0x188] sm:$0xff] }
 0x1d0   : > { %3527 = vmatmul.mubr.f32.vlgmr.msra.gmra.mrb[64].mxu1 %v7147_v50  ;;  %6195 = vmatprep.subr.bf16.mxu0 %v6194_v37  ;;  %v746_v37 = vld [vmem:[%s11699_s1 + $0xd68] sm:$0xff]  ;;  %v815_v24 = vld [vmem:[%s11699_s1 + $0xf90] sm:$0xff]  ;;  %v836_v33 = vld [vmem:[%s11699_s1 + $0x1038] sm:$0xff] }
 0x1d1   : > { %4171 = vmatmul.mubr.f32.vlgmr.msra.gmra.mrb[64].mxu0 %v7147_v50  ;;  %5977 = vmatpush1.bf16.msra.mxu1 %v5976_v40  ;;  %v6212_v40 = vpack.c.bf16 %v735_v30, %v725_v28  ;;  %v5996_v50 = vpack.c.bf16 %v753_v42, %v743_v41  ;;  %v824_v28 = vld [vmem:[%s11699_s1 + $0xfd8] sm:$0xff]  ;;  %v834_v30 = vld [vmem:[%s11699_s1 + $0x1028] sm:$0xff]  ;;  %v835_v41 = vld [vmem:[%s11699_s1 + $0x1030] sm:$0xff] }
 0x1d2   : > { %6197 = vmatpush1.bf16.msra.mxu0 %v6196_v44  ;;  %3532 = vmatprep.mubr.f32.mxu1 %v7148_v57  ;;  %v745_v44 = vld [vmem:[%s11699_s1 + $0xd60] sm:$0xff]  ;;  %v7162_v35 = vld [vmem:[%s7684_s17 + $0x1c8] sm:$0xff] }
 0x1d3   : > { %4176 = vmatprep.mubr.f32.mxu0 %v7148_v57  ;;  %5979 = vmatprep.subr.bf16.mxu1 %v5978_v47  ;;  %v6214_v47 = vpack.c.bf16 %v756_v38, %v746_v37  ;;  %v5998_v57 = vpack.c.bf16 %v774_v49, %v764_v48  ;;  %v823_v37 = vld [vmem:[%s11699_s1 + $0xfd0] sm:$0xff]  ;;  %v833_v38 = vld [vmem:[%s11699_s1 + $0x1020] sm:$0xff]  ;;  %v856_v48 = vld [vmem:[%s11699_s1 + $0x10d8] sm:$0xff] }
 0x1d4   : > { %3533 = vmatmul.mubr.f32.gmra.mrb[66].mxu1 %v7149_v1  ;;  %6199 = vmatprep.subr.bf16.mxu0 %v6198_v51  ;;  %v766_v51 = vld [vmem:[%s11699_s1 + $0xe08] sm:$0xff]  ;;  %v7163_v42 = vld [vmem:[%s7684_s17 + $0x1c0] sm:$0xff] }
 0x1d5   : > { %4177 = vmatmul.mubr.f32.gmra.mrb[66].mxu0 %v7149_v1  ;;  %5981 = vmatpush1.bf16.msra.mxu1 %v5980_v54  ;;  %v6216_v54 = vpack.c.bf16 %v755_v45, %v745_v44  ;;  %v6000_v1 = vpack.c.bf16 %v773_v56, %v763_v55  ;;  %v844_v44 = vld [vmem:[%s11699_s1 + $0x1078] sm:$0xff]  ;;  %v854_v45 = vld [vmem:[%s11699_s1 + $0x10c8] sm:$0xff]  ;;  %v7164_v49 = vld [vmem:[%s7684_s17 + $0x200] sm:$0xff] }
 0x1d6   : > { %6201 = vmatpush1.bf16.msra.mxu0 %v6200_v58  ;;  %3538 = vmatprep.mubr.f32.mxu1 %v7150_v27  ;;  %v765_v58 = vld [vmem:[%s11699_s1 + $0xe00] sm:$0xff]  ;;  %v855_v55 = vld [vmem:[%s11699_s1 + $0x10d0] sm:$0xff]  ;;  %v7165_v56 = vld [vmem:[%s7684_s17 + $0x1f8] sm:$0xff] }
 0x1d7   : > { %4182 = vmatprep.mubr.f32.mxu0 %v7150_v27  ;;  %5983 = vmatprep.subr.bf16.mxu1 %v5982_v62  ;;  %v6218_v62 = vpack.c.bf16 %v776_v52, %v766_v51  ;;  %v6002_v27 = vpack.c.bf16 %v794_v0, %v784_v63  ;;  %v843_v51 = vld [vmem:[%s11699_s1 + $0x1070] sm:$0xff]  ;;  %v853_v52 = vld [vmem:[%s11699_s1 + $0x10c0] sm:$0xff]  ;;  %v876_v63 = vld [vmem:[%s11699_s1 + $0x1178] sm:$0xff] }
 0x1d8   : > { %3539 = vmatmul.mubr.f32.gmra.mrb[68].mxu1 %v7151_v14  ;;  %6203 = vmatprep.subr.bf16.mxu0 %v6202_v2  ;;  %v786_v2 = vld [vmem:[%s11699_s1 + $0xea8] sm:$0xff]  ;;  %v7166_v0 = vld [vmem:[%s7684_s17 + $0x238] sm:$0xff] }
 0x1d9   : > { %4183 = vmatmul.mubr.f32.gmra.mrb[68].mxu0 %v7151_v14  ;;  %5985 = vmatpush1.bf16.msra.mxu1 %v5984_v5  ;;  %v6220_v5 = vpack.c.bf16 %v775_v60, %v765_v58  ;;  %v6004_v14 = vpack.c.bf16 %v793_v7, %v783_v6  ;;  %v864_v58 = vld [vmem:[%s11699_s1 + $0x1118] sm:$0xff]  ;;  %v874_v60 = vld [vmem:[%s11699_s1 + $0x1168] sm:$0xff]  ;;  %v875_v6 = vld [vmem:[%s11699_s1 + $0x1170] sm:$0xff] }
 0x1da   : > { %6205 = vmatpush1.bf16.msra.mxu0 %v6204_v8  ;;  %3544 = vmatprep.mubr.f32.mxu1 %v7152_v22  ;;  %v785_v8 = vld [vmem:[%s11699_s1 + $0xea0] sm:$0xff]  ;;  %v7167_v7 = vld [vmem:[%s7684_s17 + $0x230] sm:$0xff] }
 0x1db   : > { %4188 = vmatprep.mubr.f32.mxu0 %v7152_v22  ;;  %5987 = vmatprep.subr.bf16.mxu1 %v5986_v12  ;;  %v6222_v12 = vpack.c.bf16 %v796_v3, %v786_v2  ;;  %v6006_v22 = vpack.c.bf16 %v814_v34, %v804_v13  ;;  %v863_v2 = vld [vmem:[%s11699_s1 + $0x1110] sm:$0xff]  ;;  %v873_v3 = vld [vmem:[%s11699_s1 + $0x1160] sm:$0xff]  ;;  %v896_v13 = vld [vmem:[%s11699_s1 + $0x1218] sm:$0xff] }
 0x1dc   : > { %3545 = vmatmul.mubr.f32.gmra.mrb[70].mxu1 %v7153_v31  ;;  %6207 = vmatprep.subr.bf16.mxu0 %v6206_v15  ;;  %v806_v15 = vld [vmem:[%s11699_s1 + $0xf48] sm:$0xff]  ;;  %v7168_v34 = vld [vmem:[%s7684_s17 + $0x270] sm:$0xff] }
 0x1dd   : > { %4189 = vmatmul.mubr.f32.gmra.mrb[70].mxu0 %v7153_v31  ;;  %5989 = vmatpush1.bf16.msra.mxu1 %v5988_v19  ;;  %v6224_v19 = vpack.c.bf16 %v795_v9, %v785_v8  ;;  %v6008_v31 = vpack.c.bf16 %v813_v21, %v803_v20  ;;  %v884_v8 = vld [vmem:[%s11699_s1 + $0x11b8] sm:$0xff]  ;;  %v894_v9 = vld [vmem:[%s11699_s1 + $0x1208] sm:$0xff]  ;;  %v895_v20 = vld [vmem:[%s11699_s1 + $0x1210] sm:$0xff] }
 0x1de   : > { %6209 = vmatpush1.bf16.msra.mxu0 %v6208_v23  ;;  %3550 = vmatprep.mubr.f32.mxu1 %v7154_v39  ;;  %v805_v23 = vld [vmem:[%s11699_s1 + $0xf40] sm:$0xff]  ;;  %v7169_v21 = vld [vmem:[%s7684_s17 + $0x268] sm:$0xff] }
 0x1df   : > { %4194 = vmatprep.mubr.f32.mxu0 %v7154_v39  ;;  %5991 = vmatprep.subr.bf16.mxu1 %v5990_v26  ;;  %v6226_v26 = vpack.c.bf16 %v816_v16, %v806_v15  ;;  %v6010_v39 = vpack.c.bf16 %v834_v30, %v824_v28  ;;  %v883_v15 = vld [vmem:[%s11699_s1 + $0x11b0] sm:$0xff]  ;;  %v893_v16 = vld [vmem:[%s11699_s1 + $0x1200] sm:$0xff]  ;;  %v916_v28 = vld [vmem:[%s11699_s1 + $0x12b8] sm:$0xff] }
 0x1e0   : > { %3551 = vmatmul.mubr.f32.gmra.mrb[72].mxu1 %v7155_v46  ;;  %6211 = vmatprep.subr.bf16.mxu0 %v6210_v32  ;;  %v826_v32 = vld [vmem:[%s11699_s1 + $0xfe8] sm:$0xff] }
 0x1e1   : > { %4195 = vmatmul.mubr.f32.gmra.mrb[72].mxu0 %v7155_v46  ;;  %5993 = vmatpush1.bf16.msra.mxu1 %v5992_v36  ;;  %v6228_v36 = vpack.c.bf16 %v815_v24, %v805_v23  ;;  %v6012_v46 = vpack.c.bf16 %v833_v38, %v823_v37  ;;  %v904_v23 = vld [vmem:[%s11699_s1 + $0x1258] sm:$0xff]  ;;  %v914_v24 = vld [vmem:[%s11699_s1 + $0x12a8] sm:$0xff]  ;;  %v915_v37 = vld [vmem:[%s11699_s1 + $0x12b0] sm:$0xff] }
 0x1e2   : > { %6213 = vmatpush1.bf16.msra.mxu0 %v6212_v40  ;;  %3556 = vmatprep.mubr.f32.mxu1 %v7156_v53  ;;  %v825_v40 = vld [vmem:[%s11699_s1 + $0xfe0] sm:$0xff]  ;;  %v7170_v30 = vld [vmem:[%s7684_s17 + $0x2a8] sm:$0xff] }
 0x1e3   : > { %4200 = vmatprep.mubr.f32.mxu0 %v7156_v53  ;;  %5995 = vmatprep.subr.bf16.mxu1 %v5994_v43  ;;  %v6230_v43 = vpack.c.bf16 %v836_v33, %v826_v32  ;;  %v6014_v53 = vpack.c.bf16 %v854_v45, %v844_v44  ;;  %v903_v32 = vld [vmem:[%s11699_s1 + $0x1250] sm:$0xff]  ;;  %v913_v33 = vld [vmem:[%s11699_s1 + $0x12a0] sm:$0xff]  ;;  %v936_v44 = vld [vmem:[%s11699_s1 + $0x1358] sm:$0xff] }
 0x1e4   : > { %3557 = vmatmul.mubr.f32.gmra.mrb[74].mxu1 %v7157_v61  ;;  %6215 = vmatprep.subr.bf16.mxu0 %v6214_v47  ;;  %v846_v47 = vld [vmem:[%s11699_s1 + $0x1088] sm:$0xff]  ;;  %v7171_v38 = vld [vmem:[%s7684_s17 + $0x2a0] sm:$0xff] }
 0x1e5   : > { %4201 = vmatmul.mubr.f32.gmra.mrb[74].mxu0 %v7157_v61  ;;  %5997 = vmatpush1.bf16.msra.mxu1 %v5996_v50  ;;  %v6232_v50 = vpack.c.bf16 %v835_v41, %v825_v40  ;;  %v6016_v61 = vpack.c.bf16 %v853_v52, %v843_v51  ;;  %v924_v40 = vld [vmem:[%s11699_s1 + $0x12f8] sm:$0xff]  ;;  %v934_v41 = vld [vmem:[%s11699_s1 + $0x1348] sm:$0xff]  ;;  %v7172_v45 = vld [vmem:[%s7684_s17 + $0x2e0] sm:$0xff] }
 0x1e6   : > { %6217 = vmatpush1.bf16.msra.mxu0 %v6216_v54  ;;  %3562 = vmatprep.mubr.f32.mxu1 %v7158_v4  ;;  %v845_v54 = vld [vmem:[%s11699_s1 + $0x1080] sm:$0xff]  ;;  %v935_v51 = vld [vmem:[%s11699_s1 + $0x1350] sm:$0xff]  ;;  %v7173_v52 = vld [vmem:[%s7684_s17 + $0x2d8] sm:$0xff] }
 0x1e7   : > { %4206 = vmatprep.mubr.f32.mxu0 %v7158_v4  ;;  %5999 = vmatprep.subr.bf16.mxu1 %v5998_v57  ;;  %v6234_v57 = vpack.c.bf16 %v856_v48, %v846_v47  ;;  %v6018_v4 = vpack.c.bf16 %v874_v60, %v864_v58  ;;  %v923_v47 = vld [vmem:[%s11699_s1 + $0x12f0] sm:$0xff]  ;;  %v933_v48 = vld [vmem:[%s11699_s1 + $0x1340] sm:$0xff]  ;;  %v956_v58 = vld [vmem:[%s11699_s1 + $0x13f8] sm:$0xff] }
 0x1e8   : > { %3563 = vmatmul.mubr.f32.gmra.mrb[76].mxu1 %v7159_v11  ;;  %6219 = vmatprep.subr.bf16.mxu0 %v6218_v62  ;;  %v866_v62 = vld [vmem:[%s11699_s1 + $0x1128] sm:$0xff]  ;;  %v7174_v60 = vld [vmem:[%s7684_s17 + $0x318] sm:$0xff] }
 0x1e9   : > { %4207 = vmatmul.mubr.f32.gmra.mrb[76].mxu0 %v7159_v11  ;;  %6001 = vmatpush1.bf16.msra.mxu1 %v6000_v1  ;;  %v6236_v1 = vpack.c.bf16 %v855_v55, %v845_v54  ;;  %v6020_v11 = vpack.c.bf16 %v873_v3, %v863_v2  ;;  %v944_v54 = vld [vmem:[%s11699_s1 + $0x1398] sm:$0xff]  ;;  %v954_v55 = vld [vmem:[%s11699_s1 + $0x13e8] sm:$0xff]  ;;  %v955_v2 = vld [vmem:[%s11699_s1 + $0x13f0] sm:$0xff] }
 0x1ea   : > { %6221 = vmatpush1.bf16.msra.mxu0 %v6220_v5  ;;  %3568 = vmatprep.mubr.f32.mxu1 %v7160_v18  ;;  %v865_v5 = vld [vmem:[%s11699_s1 + $0x1120] sm:$0xff]  ;;  %v7175_v3 = vld [vmem:[%s7684_s17 + $0x310] sm:$0xff] }
 0x1eb   : > { %4212 = vmatprep.mubr.f32.mxu0 %v7160_v18  ;;  %6003 = vmatprep.subr.bf16.mxu1 %v6002_v27  ;;  %v6238_v27 = vpack.c.bf16 %v876_v63, %v866_v62  ;;  %v6022_v18 = vpack.c.bf16 %v894_v9, %v884_v8  ;;  %v943_v62 = vld [vmem:[%s11699_s1 + $0x1390] sm:$0xff]  ;;  %v953_v63 = vld [vmem:[%s11699_s1 + $0x13e0] sm:$0xff]  ;;  %v976_v8 = vld [vmem:[%s11699_s1 + $0x1498] sm:$0xff] }
 0x1ec   : > { %3569 = vmatmul.mubr.f32.gmra.mrb[78].mxu1 %v7161_v25  ;;  %6223 = vmatprep.subr.bf16.mxu0 %v6222_v12  ;;  %v886_v12 = vld [vmem:[%s11699_s1 + $0x11c8] sm:$0xff]  ;;  %v7176_v9 = vld [vmem:[%s7684_s17 + $0x350] sm:$0xff] }
 0x1ed   : > { %4213 = vmatmul.mubr.f32.gmra.mrb[78].mxu0 %v7161_v25  ;;  %6005 = vmatpush1.bf16.msra.mxu1 %v6004_v14  ;;  %v6240_v14 = vpack.c.bf16 %v875_v6, %v865_v5  ;;  %v6024_v25 = vpack.c.bf16 %v893_v16, %v883_v15  ;;  %v964_v5 = vld [vmem:[%s11699_s1 + $0x1438] sm:$0xff]  ;;  %v974_v6 = vld [vmem:[%s11699_s1 + $0x1488] sm:$0xff]  ;;  %v975_v15 = vld [vmem:[%s11699_s1 + $0x1490] sm:$0xff] }
 0x1ee   : > { %6225 = vmatpush1.bf16.msra.mxu0 %v6224_v19  ;;  %3574 = vmatprep.mubr.f32.mxu1 %v7162_v35  ;;  %v885_v19 = vld [vmem:[%s11699_s1 + $0x11c0] sm:$0xff]  ;;  %v7177_v16 = vld [vmem:[%s7684_s17 + $0x348] sm:$0xff] }
 0x1ef   : > { %4218 = vmatprep.mubr.f32.mxu0 %v7162_v35  ;;  %6007 = vmatprep.subr.bf16.mxu1 %v6006_v22  ;;  %v6242_v22 = vpack.c.bf16 %v896_v13, %v886_v12  ;;  %v6026_v35 = vpack.c.bf16 %v914_v24, %v904_v23  ;;  %v963_v12 = vld [vmem:[%s11699_s1 + $0x1430] sm:$0xff]  ;;  %v973_v13 = vld [vmem:[%s11699_s1 + $0x1480] sm:$0xff]  ;;  %v996_v23 = vld [vmem:[%s11699_s1 + $0x1538] sm:$0xff] }
 0x1f0   : > { %3575 = vmatmul.mubr.f32.gmra.mrb[80].mxu1 %v7163_v42  ;;  %6227 = vmatprep.subr.bf16.mxu0 %v6226_v26  ;;  %v906_v26 = vld [vmem:[%s11699_s1 + $0x1268] sm:$0xff]  ;;  %v7178_v24 = vld [vmem:[%s7684_s17 + $0x18] sm:$0xff] }
 0x1f1   : > { %4219 = vmatmul.mubr.f32.gmra.mrb[80].mxu0 %v7163_v42  ;;  %6009 = vmatpush1.bf16.msra.mxu1 %v6008_v31  ;;  %v6244_v31 = vpack.c.bf16 %v895_v20, %v885_v19  ;;  %v6028_v42 = vpack.c.bf16 %v913_v33, %v903_v32  ;;  %v984_v19 = vld [vmem:[%s11699_s1 + $0x14d8] sm:$0xff]  ;;  %v994_v20 = vld [vmem:[%s11699_s1 + $0x1528] sm:$0xff]  ;;  %v995_v32 = vld [vmem:[%s11699_s1 + $0x1530] sm:$0xff] }
 0x1f2   : > { %6229 = vmatpush1.bf16.msra.mxu0 %v6228_v36  ;;  %3580 = vmatprep.mubr.f32.mxu1 %v7164_v49  ;;  %v905_v36 = vld [vmem:[%s11699_s1 + $0x1260] sm:$0xff]  ;;  %v7179_v33 = vld [vmem:[%s7684_s17 + $0x10] sm:$0xff] }
 0x1f3   : > { %4224 = vmatprep.mubr.f32.mxu0 %v7164_v49  ;;  %6011 = vmatprep.subr.bf16.mxu1 %v6010_v39  ;;  %v6246_v39 = vpack.c.bf16 %v916_v28, %v906_v26  ;;  %v6030_v49 = vpack.c.bf16 %v934_v41, %v924_v40  ;;  %v983_v26 = vld [vmem:[%s11699_s1 + $0x14d0] sm:$0xff]  ;;  %v993_v28 = vld [vmem:[%s11699_s1 + $0x1520] sm:$0xff]  ;;  %v1016_v40 = vld [vmem:[%s11699_s1 + $0x15d8] sm:$0xff] }
 0x1f4   : > { %3581 = vmatmul.mubr.f32.gmra.mrb[82].mxu1 %v7165_v56  ;;  %6231 = vmatprep.subr.bf16.mxu0 %v6230_v43  ;;  %v926_v43 = vld [vmem:[%s11699_s1 + $0x1308] sm:$0xff]  ;;  %v7180_v41 = vld [vmem:[%s7684_s17 + $0x50] sm:$0xff] }
 0x1f5   : > { %4225 = vmatmul.mubr.f32.gmra.mrb[82].mxu0 %v7165_v56  ;;  %6013 = vmatpush1.bf16.msra.mxu1 %v6012_v46  ;;  %v6248_v46 = vpack.c.bf16 %v915_v37, %v905_v36  ;;  %v6032_v56 = vpack.c.bf16 %v933_v48, %v923_v47  ;;  %v1004_v36 = vld [vmem:[%s11699_s1 + $0x1578] sm:$0xff]  ;;  %v1014_v37 = vld [vmem:[%s11699_s1 + $0x15c8] sm:$0xff]  ;;  %v1015_v47 = vld [vmem:[%s11699_s1 + $0x15d0] sm:$0xff] }
 0x1f6   : > { %6233 = vmatpush1.bf16.msra.mxu0 %v6232_v50  ;;  %3586 = vmatprep.mubr.f32.mxu1 %v7166_v0  ;;  %v925_v50 = vld [vmem:[%s11699_s1 + $0x1300] sm:$0xff]  ;;  %v7181_v48 = vld [vmem:[%s7684_s17 + $0x48] sm:$0xff] }
 0x1f7   : > { %4230 = vmatprep.mubr.f32.mxu0 %v7166_v0  ;;  %6015 = vmatprep.subr.bf16.mxu1 %v6014_v53  ;;  %v6250_v53 = vpack.c.bf16 %v936_v44, %v926_v43  ;;  %v6034_v0 = vpack.c.bf16 %v954_v55, %v944_v54  ;;  %v1003_v43 = vld [vmem:[%s11699_s1 + $0x1570] sm:$0xff]  ;;  %v1013_v44 = vld [vmem:[%s11699_s1 + $0x15c0] sm:$0xff]  ;;  %v1036_v54 = vld [vmem:[%s11699_s1 + $0x1678] sm:$0xff] }
 0x1f8   : > { %3587 = vmatmul.mubr.f32.gmra.mrb[84].mxu1 %v7167_v7  ;;  %6235 = vmatprep.subr.bf16.mxu0 %v6234_v57  ;;  %v946_v57 = vld [vmem:[%s11699_s1 + $0x13a8] sm:$0xff] }
 0x1f9   : > { %4231 = vmatmul.mubr.f32.gmra.mrb[84].mxu0 %v7167_v7  ;;  %6017 = vmatpush1.bf16.msra.mxu1 %v6016_v61  ;;  %v6252_v61 = vpack.c.bf16 %v935_v51, %v925_v50  ;;  %v6036_v7 = vpack.c.bf16 %v953_v63, %v943_v62  ;;  %v1024_v50 = vld [vmem:[%s11699_s1 + $0x1618] sm:$0xff]  ;;  %v1034_v51 = vld [vmem:[%s11699_s1 + $0x1668] sm:$0xff]  ;;  %v1035_v62 = vld [vmem:[%s11699_s1 + $0x1670] sm:$0xff] }
 0x1fa   : > { %6237 = vmatpush1.bf16.msra.mxu0 %v6236_v1  ;;  %3592 = vmatprep.mubr.f32.mxu1 %v7168_v34  ;;  %v945_v1 = vld [vmem:[%s11699_s1 + $0x13a0] sm:$0xff]  ;;  %v7182_v55 = vld [vmem:[%s7684_s17 + $0x88] sm:$0xff] }
 0x1fb   : > { %4236 = vmatprep.mubr.f32.mxu0 %v7168_v34  ;;  %6019 = vmatprep.subr.bf16.mxu1 %v6018_v4  ;;  %v6254_v4 = vpack.c.bf16 %v956_v58, %v946_v57  ;;  %v6038_v34 = vpack.c.bf16 %v974_v6, %v964_v5  ;;  %v1023_v57 = vld [vmem:[%s11699_s1 + $0x1610] sm:$0xff]  ;;  %v1033_v58 = vld [vmem:[%s11699_s1 + $0x1660] sm:$0xff]  ;;  %v1056_v5 = vld [vmem:[%s11699_s1 + $0x1718] sm:$0xff] }
 0x1fc   : > { %3593 = vmatmul.mubr.f32.gmra.mrb[86].mxu1 %v7169_v21  ;;  %6239 = vmatprep.subr.bf16.mxu0 %v6238_v27  ;;  %v966_v27 = vld [vmem:[%s11699_s1 + $0x1448] sm:$0xff]  ;;  %v7183_v63 = vld [vmem:[%s7684_s17 + $0x80] sm:$0xff] }
 0x1fd   : > { %4237 = vmatmul.mubr.f32.gmra.mrb[86].mxu0 %v7169_v21  ;;  %6021 = vmatpush1.bf16.msra.mxu1 %v6020_v11  ;;  %v6256_v11 = vpack.c.bf16 %v955_v2, %v945_v1  ;;  %v6040_v21 = vpack.c.bf16 %v973_v13, %v963_v12  ;;  %v1044_v1 = vld [vmem:[%s11699_s1 + $0x16b8] sm:$0xff]  ;;  %v1054_v2 = vld [vmem:[%s11699_s1 + $0x1708] sm:$0xff]  ;;  %v7184_v6 = vld [vmem:[%s7684_s17 + $0xc0] sm:$0xff] }
 0x1fe   : > { %6241 = vmatpush1.bf16.msra.mxu0 %v6240_v14  ;;  %3598 = vmatprep.mubr.f32.mxu1 %v7170_v30  ;;  %v965_v14 = vld [vmem:[%s11699_s1 + $0x1440] sm:$0xff]  ;;  %v1055_v12 = vld [vmem:[%s11699_s1 + $0x1710] sm:$0xff]  ;;  %v7185_v13 = vld [vmem:[%s7684_s17 + $0xb8] sm:$0xff] }
 0x1ff   : > { %4242 = vmatprep.mubr.f32.mxu0 %v7170_v30  ;;  %6023 = vmatprep.subr.bf16.mxu1 %v6022_v18  ;;  %v6258_v18 = vpack.c.bf16 %v976_v8, %v966_v27  ;;  %v6042_v30 = vpack.c.bf16 %v994_v20, %v984_v19  ;;  %v1043_v27 = vld [vmem:[%s11699_s1 + $0x16b0] sm:$0xff]  ;;  %v1053_v8 = vld [vmem:[%s11699_s1 + $0x1700] sm:$0xff]  ;;  %v1076_v19 = vld [vmem:[%s11699_s1 + $0x17b8] sm:$0xff] }
 0x200   : > { %3599 = vmatmul.mubr.f32.gmra.mrb[88].mxu1 %v7171_v38  ;;  %6243 = vmatprep.subr.bf16.mxu0 %v6242_v22  ;;  %v986_v22 = vld [vmem:[%s11699_s1 + $0x14e8] sm:$0xff]  ;;  %v7186_v20 = vld [vmem:[%s7684_s17 + $0xf8] sm:$0xff] }
 0x201   : > { %4243 = vmatmul.mubr.f32.gmra.mrb[88].mxu0 %v7171_v38  ;;  %6025 = vmatpush1.bf16.msra.mxu1 %v6024_v25  ;;  %v6260_v25 = vpack.c.bf16 %v975_v15, %v965_v14  ;;  %v6044_v38 = vpack.c.bf16 %v993_v28, %v983_v26  ;;  %v1064_v14 = vld [vmem:[%s11699_s1 + $0x1758] sm:$0xff]  ;;  %v1074_v15 = vld [vmem:[%s11699_s1 + $0x17a8] sm:$0xff]  ;;  %v1075_v26 = vld [vmem:[%s11699_s1 + $0x17b0] sm:$0xff] }
 0x202   : > { %6245 = vmatpush1.bf16.msra.mxu0 %v6244_v31  ;;  %3604 = vmatprep.mubr.f32.mxu1 %v7172_v45  ;;  %v985_v31 = vld [vmem:[%s11699_s1 + $0x14e0] sm:$0xff]  ;;  %v7187_v28 = vld [vmem:[%s7684_s17 + $0xf0] sm:$0xff] }
 0x203   : > { %4248 = vmatprep.mubr.f32.mxu0 %v7172_v45  ;;  %6027 = vmatprep.subr.bf16.mxu1 %v6026_v35  ;;  %v6262_v35 = vpack.c.bf16 %v996_v23, %v986_v22  ;;  %v6046_v45 = vpack.c.bf16 %v1014_v37, %v1004_v36  ;;  %v1063_v22 = vld [vmem:[%s11699_s1 + $0x1750] sm:$0xff]  ;;  %v1073_v23 = vld [vmem:[%s11699_s1 + $0x17a0] sm:$0xff]  ;;  %v1096_v36 = vld [vmem:[%s11699_s1 + $0x1858] sm:$0xff] }
 0x204   : > { %3605 = vmatmul.mubr.f32.gmra.mrb[90].mxu1 %v7173_v52  ;;  %6247 = vmatprep.subr.bf16.mxu0 %v6246_v39  ;;  %v1006_v39 = vld [vmem:[%s11699_s1 + $0x1588] sm:$0xff]  ;;  %v7188_v37 = vld [vmem:[%s7684_s17 + $0x130] sm:$0xff] }
 0x205   : > { %4249 = vmatmul.mubr.f32.gmra.mrb[90].mxu0 %v7173_v52  ;;  %6029 = vmatpush1.bf16.msra.mxu1 %v6028_v42  ;;  %v6264_v42 = vpack.c.bf16 %v995_v32, %v985_v31  ;;  %v6048_v52 = vpack.c.bf16 %v1013_v44, %v1003_v43  ;;  %v1084_v31 = vld [vmem:[%s11699_s1 + $0x17f8] sm:$0xff]  ;;  %v1094_v32 = vld [vmem:[%s11699_s1 + $0x1848] sm:$0xff]  ;;  %v1095_v43 = vld [vmem:[%s11699_s1 + $0x1850] sm:$0xff] }
 0x206   : > { %6249 = vmatpush1.bf16.msra.mxu0 %v6248_v46  ;;  %3610 = vmatprep.mubr.f32.mxu1 %v7174_v60  ;;  %v1005_v46 = vld [vmem:[%s11699_s1 + $0x1580] sm:$0xff]  ;;  %v7189_v44 = vld [vmem:[%s7684_s17 + $0x128] sm:$0xff] }
 0x207   : > { %4254 = vmatprep.mubr.f32.mxu0 %v7174_v60  ;;  %6031 = vmatprep.subr.bf16.mxu1 %v6030_v49  ;;  %v6266_v49 = vpack.c.bf16 %v1016_v40, %v1006_v39  ;;  %v6050_v60 = vpack.c.bf16 %v1034_v51, %v1024_v50  ;;  %v1083_v39 = vld [vmem:[%s11699_s1 + $0x17f0] sm:$0xff]  ;;  %v1093_v40 = vld [vmem:[%s11699_s1 + $0x1840] sm:$0xff]  ;;  %v1116_v50 = vld [vmem:[%s11699_s1 + $0x18f8] sm:$0xff] }
 0x208   : > { %3611 = vmatmul.mubr.f32.gmra.mrb[92].mxu1 %v7175_v3  ;;  %6251 = vmatprep.subr.bf16.mxu0 %v6250_v53  ;;  %v1026_v53 = vld [vmem:[%s11699_s1 + $0x1628] sm:$0xff] }
 0x209   : > { %4255 = vmatmul.mubr.f32.gmra.mrb[92].mxu0 %v7175_v3  ;;  %6033 = vmatpush1.bf16.msra.mxu1 %v6032_v56  ;;  %v6268_v56 = vpack.c.bf16 %v1015_v47, %v1005_v46  ;;  %v6052_v3 = vpack.c.bf16 %v1033_v58, %v1023_v57  ;;  %v1104_v46 = vld [vmem:[%s11699_s1 + $0x1898] sm:$0xff]  ;;  %v1114_v47 = vld [vmem:[%s11699_s1 + $0x18e8] sm:$0xff]  ;;  %v1115_v57 = vld [vmem:[%s11699_s1 + $0x18f0] sm:$0xff] }
 0x20a   : > { %6253 = vmatpush1.bf16.msra.mxu0 %v6252_v61  ;;  %3616 = vmatprep.mubr.f32.mxu1 %v7176_v9  ;;  %v1025_v61 = vld [vmem:[%s11699_s1 + $0x1620] sm:$0xff]  ;;  %v7190_v51 = vld [vmem:[%s7684_s17 + $0x168] sm:$0xff] }
 0x20b   : > { %4260 = vmatprep.mubr.f32.mxu0 %v7176_v9  ;;  %6035 = vmatprep.subr.bf16.mxu1 %v6034_v0  ;;  %v6270_v0 = vpack.c.bf16 %v1036_v54, %v1026_v53  ;;  %v6054_v9 = vpack.c.bf16 %v1054_v2, %v1044_v1  ;;  %v1103_v53 = vld [vmem:[%s11699_s1 + $0x1890] sm:$0xff]  ;;  %v1113_v54 = vld [vmem:[%s11699_s1 + $0x18e0] sm:$0xff]  ;;  %v1136_v1 = vld [vmem:[%s11699_s1 + $0x1998] sm:$0xff] }
 0x20c   : > { %3617 = vmatmul.mubr.f32.gmra.mrb[94].mxu1 %v7177_v16  ;;  %6255 = vmatprep.subr.bf16.mxu0 %v6254_v4  ;;  %v1046_v4 = vld [vmem:[%s11699_s1 + $0x16c8] sm:$0xff]  ;;  %v7191_v58 = vld [vmem:[%s7684_s17 + $0x160] sm:$0xff] }
 0x20d   : > { %4261 = vmatmul.mubr.f32.gmra.mrb[94].mxu0 %v7177_v16  ;;  %6037 = vmatpush1.bf16.msra.mxu1 %v6036_v7  ;;  %v6272_v7 = vpack.c.bf16 %v1035_v62, %v1025_v61  ;;  %v6056_v16 = vpack.c.bf16 %v1053_v8, %v1043_v27  ;;  %v1124_v61 = vld [vmem:[%s11699_s1 + $0x1938] sm:$0xff]  ;;  %v1134_v62 = vld [vmem:[%s11699_s1 + $0x1988] sm:$0xff]  ;;  %v7192_v2 = vld [vmem:[%s7684_s17 + $0x1a0] sm:$0xff] }
 0x20e   : > { %6257 = vmatpush1.bf16.msra.mxu0 %v6256_v11  ;;  %3687 = vmatprep.mubr.f32.mxu1 %v7178_v24  ;;  %v1045_v11 = vld [vmem:[%s11699_s1 + $0x16c0] sm:$0xff]  ;;  %v1135_v27 = vld [vmem:[%s11699_s1 + $0x1990] sm:$0xff]  ;;  %v7193_v8 = vld [vmem:[%s7684_s17 + $0x198] sm:$0xff] }
 0x20f   : > { %4331 = vmatprep.mubr.f32.mxu0 %v7178_v24  ;;  %6039 = vmatprep.subr.bf16.mxu1 %v6038_v34  ;;  %v6274_v34 = vpack.c.bf16 %v1056_v5, %v1046_v4  ;;  %v6058_v24 = vpack.c.bf16 %v1074_v15, %v1064_v14  ;;  %v1123_v4 = vld [vmem:[%s11699_s1 + $0x1930] sm:$0xff]  ;;  %v1133_v5 = vld [vmem:[%s11699_s1 + $0x1980] sm:$0xff]  ;;  %v1156_v14 = vld [vmem:[%s11699_s1 + $0x1a38] sm:$0xff] }
 0x210   : > { %3688 = vmatmul.mubr.f32.vlgmr.msra.gmra.mrb[64].mxu1 %v7179_v33  ;;  %6259 = vmatprep.subr.bf16.mxu0 %v6258_v18  ;;  %v1066_v18 = vld [vmem:[%s11699_s1 + $0x1768] sm:$0xff]  ;;  %v7194_v15 = vld [vmem:[%s7684_s17 + $0x1d8] sm:$0xff] }
 0x211   : > { %4332 = vmatmul.mubr.f32.vlgmr.msra.gmra.mrb[64].mxu0 %v7179_v33  ;;  %6041 = vmatpush1.bf16.msra.mxu1 %v6040_v21  ;;  %v6276_v21 = vpack.c.bf16 %v1055_v12, %v1045_v11  ;;  %v6060_v33 = vpack.c.bf16 %v1073_v23, %v1063_v22  ;;  %v1144_v11 = vld [vmem:[%s11699_s1 + $0x19d8] sm:$0xff]  ;;  %v1154_v12 = vld [vmem:[%s11699_s1 + $0x1a28] sm:$0xff]  ;;  %v1155_v22 = vld [vmem:[%s11699_s1 + $0x1a30] sm:$0xff] }
 0x212   : > { %6261 = vmatpush1.bf16.msra.mxu0 %v6260_v25  ;;  %3693 = vmatprep.mubr.f32.mxu1 %v7180_v41  ;;  %v1065_v25 = vld [vmem:[%s11699_s1 + $0x1760] sm:$0xff]  ;;  %v7195_v23 = vld [vmem:[%s7684_s17 + $0x1d0] sm:$0xff] }
 0x213   : > { %4337 = vmatprep.mubr.f32.mxu0 %v7180_v41  ;;  %6043 = vmatprep.subr.bf16.mxu1 %v6042_v30  ;;  %v6278_v30 = vpack.c.bf16 %v1076_v19, %v1066_v18  ;;  %v6062_v41 = vpack.c.bf16 %v1094_v32, %v1084_v31  ;;  %v1143_v18 = vld [vmem:[%s11699_s1 + $0x19d0] sm:$0xff]  ;;  %v1153_v19 = vld [vmem:[%s11699_s1 + $0x1a20] sm:$0xff]  ;;  %v1176_v31 = vld [vmem:[%s11699_s1 + $0x1ad8] sm:$0xff] }
 0x214   : > { %3694 = vmatmul.mubr.f32.gmra.mrb[66].mxu1 %v7181_v48  ;;  %6263 = vmatprep.subr.bf16.mxu0 %v6262_v35  ;;  %v1086_v35 = vld [vmem:[%s11699_s1 + $0x1808] sm:$0xff]  ;;  %v7196_v32 = vld [vmem:[%s7684_s17 + $0x210] sm:$0xff] }
 0x215   : > { %4338 = vmatmul.mubr.f32.gmra.mrb[66].mxu0 %v7181_v48  ;;  %6045 = vmatpush1.bf16.msra.mxu1 %v6044_v38  ;;  %v6280_v38 = vpack.c.bf16 %v1075_v26, %v1065_v25  ;;  %v6064_v48 = vpack.c.bf16 %v1093_v40, %v1083_v39  ;;  %v1164_v25 = vld [vmem:[%s11699_s1 + $0x1a78] sm:$0xff]  ;;  %v1174_v26 = vld [vmem:[%s11699_s1 + $0x1ac8] sm:$0xff]  ;;  %v1175_v39 = vld [vmem:[%s11699_s1 + $0x1ad0] sm:$0xff] }
 0x216   : > { %6265 = vmatpush1.bf16.msra.mxu0 %v6264_v42  ;;  %3699 = vmatprep.mubr.f32.mxu1 %v7182_v55  ;;  %v1085_v42 = vld [vmem:[%s11699_s1 + $0x1800] sm:$0xff]  ;;  %v7197_v40 = vld [vmem:[%s7684_s17 + $0x208] sm:$0xff] }
 0x217   : > { %4343 = vmatprep.mubr.f32.mxu0 %v7182_v55  ;;  %6047 = vmatprep.subr.bf16.mxu1 %v6046_v45  ;;  %v6282_v45 = vpack.c.bf16 %v1096_v36, %v1086_v35  ;;  %v6066_v55 = vpack.c.bf16 %v1114_v47, %v1104_v46  ;;  %v1163_v35 = vld [vmem:[%s11699_s1 + $0x1a70] sm:$0xff]  ;;  %v1173_v36 = vld [vmem:[%s11699_s1 + $0x1ac0] sm:$0xff]  ;;  %v1196_v46 = vld [vmem:[%s11699_s1 + $0x1b78] sm:$0xff] }
 0x218   : > { %3700 = vmatmul.mubr.f32.gmra.mrb[68].mxu1 %v7183_v63  ;;  %6267 = vmatprep.subr.bf16.mxu0 %v6266_v49  ;;  %v1106_v49 = vld [vmem:[%s11699_s1 + $0x18a8] sm:$0xff] }
 0x219   : > { %4344 = vmatmul.mubr.f32.gmra.mrb[68].mxu0 %v7183_v63  ;;  %6049 = vmatpush1.bf16.msra.mxu1 %v6048_v52  ;;  %v6284_v52 = vpack.c.bf16 %v1095_v43, %v1085_v42  ;;  %v6068_v63 = vpack.c.bf16 %v1113_v54, %v1103_v53  ;;  %v1184_v42 = vld [vmem:[%s11699_s1 + $0x1b18] sm:$0xff]  ;;  %v1194_v43 = vld [vmem:[%s11699_s1 + $0x1b68] sm:$0xff]  ;;  %v1195_v53 = vld [vmem:[%s11699_s1 + $0x1b70] sm:$0xff] }
 0x21a   : > { %6269 = vmatpush1.bf16.msra.mxu0 %v6268_v56  ;;  %3705 = vmatprep.mubr.f32.mxu1 %v7184_v6  ;;  %v1105_v56 = vld [vmem:[%s11699_s1 + $0x18a0] sm:$0xff]  ;;  %v7198_v47 = vld [vmem:[%s7684_s17 + $0x248] sm:$0xff] }
 0x21b   : > { %4349 = vmatprep.mubr.f32.mxu0 %v7184_v6  ;;  %6051 = vmatprep.subr.bf16.mxu1 %v6050_v60  ;;  %v6286_v60 = vpack.c.bf16 %v1116_v50, %v1106_v49  ;;  %v6070_v6 = vpack.c.bf16 %v1134_v62, %v1124_v61  ;;  %v1183_v49 = vld [vmem:[%s11699_s1 + $0x1b10] sm:$0xff]  ;;  %v1193_v50 = vld [vmem:[%s11699_s1 + $0x1b60] sm:$0xff]  ;;  %v1216_v61 = vld [vmem:[%s11699_s1 + $0x1c18] sm:$0xff] }
 0x21c   : > { %3706 = vmatmul.mubr.f32.gmra.mrb[70].mxu1 %v7185_v13  ;;  %6271 = vmatprep.subr.bf16.mxu0 %v6270_v0  ;;  %v1126_v0 = vld [vmem:[%s11699_s1 + $0x1948] sm:$0xff]  ;;  %v7199_v54 = vld [vmem:[%s7684_s17 + $0x240] sm:$0xff] }
 0x21d   : > { %4350 = vmatmul.mubr.f32.gmra.mrb[70].mxu0 %v7185_v13  ;;  %6053 = vmatpush1.bf16.msra.mxu1 %v6052_v3  ;;  %v6288_v3 = vpack.c.bf16 %v1115_v57, %v1105_v56  ;;  %v6072_v13 = vpack.c.bf16 %v1133_v5, %v1123_v4  ;;  %v1204_v56 = vld [vmem:[%s11699_s1 + $0x1bb8] sm:$0xff]  ;;  %v1214_v57 = vld [vmem:[%s11699_s1 + $0x1c08] sm:$0xff]  ;;  %v7200_v62 = vld [vmem:[%s7684_s17 + $0x280] sm:$0xff] }
 0x21e   : > { %6273 = vmatpush1.bf16.msra.mxu0 %v6272_v7  ;;  %3711 = vmatprep.mubr.f32.mxu1 %v7186_v20  ;;  %v1125_v7 = vld [vmem:[%s11699_s1 + $0x1940] sm:$0xff]  ;;  %v1215_v4 = vld [vmem:[%s11699_s1 + $0x1c10] sm:$0xff]  ;;  %v7201_v5 = vld [vmem:[%s7684_s17 + $0x278] sm:$0xff] }
 0x21f   : > { %4355 = vmatprep.mubr.f32.mxu0 %v7186_v20  ;;  %6055 = vmatprep.subr.bf16.mxu1 %v6054_v9  ;;  %v6290_v9 = vpack.c.bf16 %v1136_v1, %v1126_v0  ;;  %v6074_v20 = vpack.c.bf16 %v1154_v12, %v1144_v11  ;;  %v1203_v0 = vld [vmem:[%s11699_s1 + $0x1bb0] sm:$0xff]  ;;  %v1213_v1 = vld [vmem:[%s11699_s1 + $0x1c00] sm:$0xff]  ;;  %v1236_v11 = vld [vmem:[%s11699_s1 + $0x1cb8] sm:$0xff] }
 0x220   : > { %3712 = vmatmul.mubr.f32.gmra.mrb[72].mxu1 %v7187_v28  ;;  %6275 = vmatprep.subr.bf16.mxu0 %v6274_v34  ;;  %v1146_v34 = vld [vmem:[%s11699_s1 + $0x19e8] sm:$0xff]  ;;  %v7202_v12 = vld [vmem:[%s7684_s17 + $0x2b8] sm:$0xff] }
 0x221   : > { %4356 = vmatmul.mubr.f32.gmra.mrb[72].mxu0 %v7187_v28  ;;  %6057 = vmatpush1.bf16.msra.mxu1 %v6056_v16  ;;  %v6292_v16 = vpack.c.bf16 %v1135_v27, %v1125_v7  ;;  %v6076_v28 = vpack.c.bf16 %v1153_v19, %v1143_v18  ;;  %v1224_v7 = vld [vmem:[%s11699_s1 + $0x1c58] sm:$0xff]  ;;  %v1234_v27 = vld [vmem:[%s11699_s1 + $0x1ca8] sm:$0xff]  ;;  %v1235_v18 = vld [vmem:[%s11699_s1 + $0x1cb0] sm:$0xff] }
 0x222   : > { %6277 = vmatpush1.bf16.msra.mxu0 %v6276_v21  ;;  %3717 = vmatprep.mubr.f32.mxu1 %v7188_v37  ;;  %v1145_v21 = vld [vmem:[%s11699_s1 + $0x19e0] sm:$0xff]  ;;  %v7203_v19 = vld [vmem:[%s7684_s17 + $0x2b0] sm:$0xff] }
 0x223   : > { %4361 = vmatprep.mubr.f32.mxu0 %v7188_v37  ;;  %6059 = vmatprep.subr.bf16.mxu1 %v6058_v24  ;;  %v6294_v24 = vpack.c.bf16 %v1156_v14, %v1146_v34  ;;  %v6078_v37 = vpack.c.bf16 %v1174_v26, %v1164_v25  ;;  %v1223_v34 = vld [vmem:[%s11699_s1 + $0x1c50] sm:$0xff]  ;;  %v1233_v14 = vld [vmem:[%s11699_s1 + $0x1ca0] sm:$0xff]  ;;  %v1256_v25 = vld [vmem:[%s11699_s1 + $0x1d58] sm:$0xff] }
 0x224   : > { %3718 = vmatmul.mubr.f32.gmra.mrb[74].mxu1 %v7189_v44  ;;  %6279 = vmatprep.subr.bf16.mxu0 %v6278_v30  ;;  %v1166_v30 = vld [vmem:[%s11699_s1 + $0x1a88] sm:$0xff]  ;;  %v7204_v26 = vld [vmem:[%s7684_s17 + $0x2f0] sm:$0xff] }
 0x225   : > { %4362 = vmatmul.mubr.f32.gmra.mrb[74].mxu0 %v7189_v44  ;;  %6061 = vmatpush1.bf16.msra.mxu1 %v6060_v33  ;;  %v6296_v33 = vpack.c.bf16 %v1155_v22, %v1145_v21  ;;  %v6080_v44 = vpack.c.bf16 %v1173_v36, %v1163_v35  ;;  %v1244_v21 = vld [vmem:[%s11699_s1 + $0x1cf8] sm:$0xff]  ;;  %v1254_v22 = vld [vmem:[%s11699_s1 + $0x1d48] sm:$0xff]  ;;  %v1255_v35 = vld [vmem:[%s11699_s1 + $0x1d50] sm:$0xff] }
 0x226   : > { %6281 = vmatpush1.bf16.msra.mxu0 %v6280_v38  ;;  %3723 = vmatprep.mubr.f32.mxu1 %v7190_v51  ;;  %v1165_v38 = vld [vmem:[%s11699_s1 + $0x1a80] sm:$0xff]  ;;  %v7205_v36 = vld [vmem:[%s7684_s17 + $0x2e8] sm:$0xff] }
 0x227   : > { %4367 = vmatprep.mubr.f32.mxu0 %v7190_v51  ;;  %6063 = vmatprep.subr.bf16.mxu1 %v6062_v41  ;;  %v6298_v41 = vpack.c.bf16 %v1176_v31, %v1166_v30  ;;  %v6082_v51 = vpack.c.bf16 %v1194_v43, %v1184_v42  ;;  %v1243_v30 = vld [vmem:[%s11699_s1 + $0x1cf0] sm:$0xff]  ;;  %v1253_v31 = vld [vmem:[%s11699_s1 + $0x1d40] sm:$0xff]  ;;  %v1276_v42 = vld [vmem:[%s11699_s1 + $0x1df8] sm:$0xff] }
 0x228   : > { %3724 = vmatmul.mubr.f32.gmra.mrb[76].mxu1 %v7191_v58  ;;  %6283 = vmatprep.subr.bf16.mxu0 %v6282_v45  ;;  %v1186_v45 = vld [vmem:[%s11699_s1 + $0x1b28] sm:$0xff] }
 0x229   : > { %4368 = vmatmul.mubr.f32.gmra.mrb[76].mxu0 %v7191_v58  ;;  %6065 = vmatpush1.bf16.msra.mxu1 %v6064_v48  ;;  %v6300_v48 = vpack.c.bf16 %v1175_v39, %v1165_v38  ;;  %v6084_v58 = vpack.c.bf16 %v1193_v50, %v1183_v49  ;;  %v1264_v38 = vld [vmem:[%s11699_s1 + $0x1d98] sm:$0xff]  ;;  %v1274_v39 = vld [vmem:[%s11699_s1 + $0x1de8] sm:$0xff]  ;;  %v1275_v49 = vld [vmem:[%s11699_s1 + $0x1df0] sm:$0xff] }
 0x22a   : > { %6285 = vmatpush1.bf16.msra.mxu0 %v6284_v52  ;;  %3729 = vmatprep.mubr.f32.mxu1 %v7192_v2  ;;  %v1185_v52 = vld [vmem:[%s11699_s1 + $0x1b20] sm:$0xff]  ;;  %v7206_v43 = vld [vmem:[%s7684_s17 + $0x328] sm:$0xff] }
 0x22b   : > { %4373 = vmatprep.mubr.f32.mxu0 %v7192_v2  ;;  %6067 = vmatprep.subr.bf16.mxu1 %v6066_v55  ;;  %v6302_v55 = vpack.c.bf16 %v1196_v46, %v1186_v45  ;;  %v6086_v2 = vpack.c.bf16 %v1214_v57, %v1204_v56  ;;  %v1263_v45 = vld [vmem:[%s11699_s1 + $0x1d90] sm:$0xff]  ;;  %v1273_v46 = vld [vmem:[%s11699_s1 + $0x1de0] sm:$0xff]  ;;  %v1296_v56 = vld [vmem:[%s11699_s1 + $0x1e98] sm:$0xff] }
 0x22c   : > { %3730 = vmatmul.mubr.f32.gmra.mrb[78].mxu1 %v7193_v8  ;;  %6287 = vmatprep.subr.bf16.mxu0 %v6286_v60  ;;  %v1206_v60 = vld [vmem:[%s11699_s1 + $0x1bc8] sm:$0xff]  ;;  %v7207_v50 = vld [vmem:[%s7684_s17 + $0x320] sm:$0xff] }
 0x22d   : > { %4374 = vmatmul.mubr.f32.gmra.mrb[78].mxu0 %v7193_v8  ;;  %6069 = vmatpush1.bf16.msra.mxu1 %v6068_v63  ;;  %v6304_v63 = vpack.c.bf16 %v1195_v53, %v1185_v52  ;;  %v6088_v8 = vpack.c.bf16 %v1213_v1, %v1203_v0  ;;  %v1284_v52 = vld [vmem:[%s11699_s1 + $0x1e38] sm:$0xff]  ;;  %v1294_v53 = vld [vmem:[%s11699_s1 + $0x1e88] sm:$0xff]  ;;  %v7208_v57 = vld [vmem:[%s7684_s17 + $0x360] sm:$0xff] }
 0x22e   : > { %6289 = vmatpush1.bf16.msra.mxu0 %v6288_v3  ;;  %3735 = vmatprep.mubr.f32.mxu1 %v7194_v15  ;;  %v1205_v3 = vld [vmem:[%s11699_s1 + $0x1bc0] sm:$0xff]  ;;  %v1295_v0 = vld [vmem:[%s11699_s1 + $0x1e90] sm:$0xff]  ;;  %v7209_v1 = vld [vmem:[%s7684_s17 + $0x358] sm:$0xff] }
 0x22f   : > { %4379 = vmatprep.mubr.f32.mxu0 %v7194_v15  ;;  %6071 = vmatprep.subr.bf16.mxu1 %v6070_v6  ;;  %v6306_v6 = vpack.c.bf16 %v1216_v61, %v1206_v60  ;;  %v6090_v15 = vpack.c.bf16 %v1234_v27, %v1224_v7  ;;  %v1283_v60 = vld [vmem:[%s11699_s1 + $0x1e30] sm:$0xff]  ;;  %v1293_v61 = vld [vmem:[%s11699_s1 + $0x1e80] sm:$0xff]  ;;  %v1316_v7 = vld [vmem:[%s11699_s1 + $0x1f38] sm:$0xff] }
 0x230   : > { %3736 = vmatmul.mubr.f32.gmra.mrb[80].mxu1 %v7195_v23  ;;  %6291 = vmatprep.subr.bf16.mxu0 %v6290_v9  ;;  %v1226_v9 = vld [vmem:[%s11699_s1 + $0x1c68] sm:$0xff] }
 0x231   : > { %4380 = vmatmul.mubr.f32.gmra.mrb[80].mxu0 %v7195_v23  ;;  %6073 = vmatpush1.bf16.msra.mxu1 %v6072_v13  ;;  %v6308_v13 = vpack.c.bf16 %v1215_v4, %v1205_v3  ;;  %v6092_v23 = vpack.c.bf16 %v1233_v14, %v1223_v34  ;;  %v1304_v3 = vld [vmem:[%s11699_s1 + $0x1ed8] sm:$0xff]  ;;  %v1314_v4 = vld [vmem:[%s11699_s1 + $0x1f28] sm:$0xff]  ;;  %v7211_v34 = vld [vmem:[%s7684_s17 + $0x20] sm:$0xff] }
 0x232   : > { %6293 = vmatpush1.bf16.msra.mxu0 %v6292_v16  ;;  %3741 = vmatprep.mubr.f32.mxu1 %v7196_v32  ;;  %v1225_v16 = vld [vmem:[%s11699_s1 + $0x1c60] sm:$0xff]  ;;  %v7210_v27 = vld [vmem:[%s7684_s17 + $0x28] sm:$0xff] }
 0x233   : > { %4385 = vmatprep.mubr.f32.mxu0 %v7196_v32  ;;  %6075 = vmatprep.subr.bf16.mxu1 %v6074_v20  ;;  %v6310_v20 = vpack.c.bf16 %v1236_v11, %v1226_v9  ;;  %v6094_v32 = vpack.c.bf16 %v1254_v22, %v1244_v21  ;;  %v6106_v9 = vpack.c.bf16 %v1314_v4, %v1304_v3  ;;  %v1303_v11 = vld [vmem:[%s11699_s1 + $0x1ed0] sm:$0xff]  ;;  %v7212_v21 = vld [vmem:[%s7684_s17 + $0x60] sm:$0xff]  ;;  %v1449_v3 = vsub.s32 4, %v9536_v59 }
 0x234   : > { %3742 = vmatmul.mubr.f32.gmra.mrb[82].mxu1 %v7197_v40  ;;  %6295 = vmatprep.subr.bf16.mxu0 %v6294_v24  ;;  %v1246_v24 = vld [vmem:[%s11699_s1 + $0x1d08] sm:$0xff]  ;;  %v1445_v4 = vsub.s32 3, %v9536_v59 }
 0x235   : > { %4386 = vmatmul.mubr.f32.gmra.mrb[82].mxu0 %v7197_v40  ;;  %6077 = vmatpush1.bf16.msra.mxu1 %v6076_v28  ;;  %v6312_v28 = vpack.c.bf16 %v1235_v18, %v1225_v16  ;;  %v6096_v40 = vpack.c.bf16 %v1253_v31, %v1243_v30  ;;  %v1324_v16 = vld [vmem:[%s11699_s1 + $0x1f78] sm:$0xff]  ;;  %v1334_v18 = vld [vmem:[%s11699_s1 + $0x1fc8] sm:$0xff] }
 0x236   : > { %6297 = vmatpush1.bf16.msra.mxu0 %v6296_v33  ;;  %3747 = vmatprep.mubr.f32.mxu1 %v7198_v47  ;;  %v1245_v33 = vld [vmem:[%s11699_s1 + $0x1d00] sm:$0xff]  ;;  %v7213_v30 = vld [vmem:[%s7684_s17 + $0x58] sm:$0xff] }
 0x237   : > { %4391 = vmatprep.mubr.f32.mxu0 %v7198_v47  ;;  %6079 = vmatprep.subr.bf16.mxu1 %v6078_v37  ;;  %v6314_v37 = vpack.c.bf16 %v1256_v25, %v1246_v24  ;;  %v6098_v47 = vpack.c.bf16 %v1274_v39, %v1264_v38  ;;  %v6110_v24 = vpack.c.bf16 %v1334_v18, %v1324_v16  ;;  %v1323_v25 = vld [vmem:[%s11699_s1 + $0x1f70] sm:$0xff]  ;;  %v1356_v38 = vld [vmem:[%s11699_s1 + $0x2078] sm:$0xff] }
 0x238   : > { %3748 = vmatmul.mubr.f32.gmra.mrb[84].mxu1 %v7199_v54  ;;  %6299 = vmatprep.subr.bf16.mxu0 %v6298_v41  ;;  %v1266_v41 = vld [vmem:[%s11699_s1 + $0x1da8] sm:$0xff]  ;;  %v1395_v18 = vld [vmem:[%s11699_s1 + $0x21b0] sm:$0xff] }
 0x239   : > { %4392 = vmatmul.mubr.f32.gmra.mrb[84].mxu0 %v7199_v54  ;;  %6081 = vmatpush1.bf16.msra.mxu1 %v6080_v44  ;;  %v6316_v44 = vpack.c.bf16 %v1255_v35, %v1245_v33  ;;  %v6100_v54 = vpack.c.bf16 %v1273_v46, %v1263_v45  ;;  %v1344_v33 = vld [vmem:[%s11699_s1 + $0x2018] sm:$0xff]  ;;  %v1354_v35 = vld [vmem:[%s11699_s1 + $0x2068] sm:$0xff]  ;;  %v7215_v45 = vld [vmem:[%s7684_s17 + $0x90] sm:$0xff] }
 0x23a   : > { %6301 = vmatpush1.bf16.msra.mxu0 %v6300_v48  ;;  %3753 = vmatprep.mubr.f32.mxu1 %v7200_v62  ;;  %v1265_v48 = vld [vmem:[%s11699_s1 + $0x1da0] sm:$0xff] }
 0x23b   : > { %4397 = vmatprep.mubr.f32.mxu0 %v7200_v62  ;;  %6083 = vmatprep.subr.bf16.mxu1 %v6082_v51  ;;  %v6318_v51 = vpack.c.bf16 %v1276_v42, %v1266_v41  ;;  %v6102_v62 = vpack.c.bf16 %v1294_v53, %v1284_v52  ;;  %v6114_v41 = vpack.c.bf16 %v1354_v35, %v1344_v33  ;;  %v1343_v42 = vld [vmem:[%s11699_s1 + $0x2010] sm:$0xff]  ;;  %v1376_v52 = vld [vmem:[%s11699_s1 + $0x2118] sm:$0xff]  ;;  %v1413_v35 = vld [vmem:[%s11699_s1 + $0x2240] sm:$0xff] }
 0x23c   : > { %3754 = vmatmul.mubr.f32.gmra.mrb[86].mxu1 %v7201_v5  ;;  %6303 = vmatprep.subr.bf16.mxu0 %v6302_v55  ;;  %v1286_v55 = vld [vmem:[%s11699_s1 + $0x1e48] sm:$0xff]  ;;  %v1403_v33 = vld [vmem:[%s11699_s1 + $0x21f0] sm:$0xff] }
 0x23d   : > { %4398 = vmatmul.mubr.f32.gmra.mrb[86].mxu0 %v7201_v5  ;;  %6085 = vmatpush1.bf16.msra.mxu1 %v6084_v58  ;;  %v6320_v58 = vpack.c.bf16 %v1275_v49, %v1265_v48  ;;  %v6104_v5 = vpack.c.bf16 %v1293_v61, %v1283_v60  ;;  %v1364_v48 = vld [vmem:[%s11699_s1 + $0x20b8] sm:$0xff]  ;;  %v1374_v49 = vld [vmem:[%s11699_s1 + $0x2108] sm:$0xff]  ;;  %v1441_v61 = vsub.s32 2, %v9536_v59 }
 0x23e   : > { %6305 = vmatpush1.bf16.msra.mxu0 %v6304_v63  ;;  %3759 = vmatprep.mubr.f32.mxu1 %v7202_v12  ;;  %v1285_v63 = vld [vmem:[%s11699_s1 + $0x1e40] sm:$0xff]  ;;  %v7217_v60 = vld [vmem:[%s7684_s17 + $0xc8] sm:$0xff] }
 0x23f   : > { %4403 = vmatprep.mubr.f32.mxu0 %v7202_v12  ;;  %6087 = vmatprep.subr.bf16.mxu1 %v6086_v2  ;;  %v6322_v2 = vpack.c.bf16 %v1296_v56, %v1286_v55  ;;  %v1313_v12 = vld [vmem:[%s11699_s1 + $0x1f20] sm:$0xff]  ;;  %v6118_v55 = vpack.c.bf16 %v1374_v49, %v1364_v48  ;;  %v1363_v56 = vld [vmem:[%s11699_s1 + $0x20b0] sm:$0xff]  ;;  %v6128_v49 = vpack.c.bf16 %v1413_v35, %v1403_v33 }
 0x240   : > { %3760 = vmatmul.mubr.f32.gmra.mrb[88].mxu1 %v7203_v19  ;;  %6307 = vmatprep.subr.bf16.mxu0 %v6306_v6  ;;  %v1306_v6 = vld [vmem:[%s11699_s1 + $0x1ee8] sm:$0xff]  ;;  %v6108_v22 = vpack.c.bf16 %v1313_v12, %v1303_v11  ;;  %v1383_v11 = vld [vmem:[%s11699_s1 + $0x2150] sm:$0xff]  ;;  %v1393_v12 = vld [vmem:[%s11699_s1 + $0x21a0] sm:$0xff] }
 0x241   : > { %4404 = vmatmul.mubr.f32.gmra.mrb[88].mxu0 %v7203_v19  ;;  %6089 = vmatpush1.bf16.msra.mxu1 %v6088_v8  ;;  %v6324_v8 = vpack.c.bf16 %v1295_v0, %v1285_v63  ;;  %v6326_v14 = vpack.c.bf16 %v1316_v7, %v1306_v6  ;;  %v1326_v19 = vld [vmem:[%s11699_s1 + $0x1f88] sm:$0xff]  ;;  %v1375_v63 = vld [vmem:[%s11699_s1 + $0x2110] sm:$0xff]  ;;  %v1384_v0 = vld [vmem:[%s11699_s1 + $0x2158] sm:$0xff]  ;;  %v1453_v7 = vsub.s32 5, %v9536_v59 }
 0x242   : > { %6309 = vmatpush1.bf16.msra.mxu0 %v6308_v13  ;;  %3765 = vmatprep.mubr.f32.mxu1 %v7204_v26  ;;  %v1305_v13 = vld [vmem:[%s11699_s1 + $0x1ee0] sm:$0xff]  ;;  %v1396_v6 = vld [vmem:[%s11699_s1 + $0x21b8] sm:$0xff] }
 0x243   : > { %4409 = vmatprep.mubr.f32.mxu0 %v7204_v26  ;;  %6091 = vmatprep.subr.bf16.mxu1 %v6090_v15  ;;  %v1315_v15 = vld [vmem:[%s11699_s1 + $0x1f30] sm:$0xff]  ;;  %v1333_v26 = vld [vmem:[%s11699_s1 + $0x1fc0] sm:$0xff] }
 0x244   : > { %3766 = vmatmul.mubr.f32.gmra.mrb[90].mxu1 %v7205_v36  ;;  %6311 = vmatprep.subr.bf16.mxu0 %v6310_v20  ;;  %v1336_v20 = vld [vmem:[%s11699_s1 + $0x1fd8] sm:$0xff]  ;;  %v6112_v39 = vpack.c.bf16 %v1333_v26, %v1323_v25  ;;  %v7228_v35 = vld [vmem:[%s7684_s17 + $0x1e0] sm:$0xff] }
 0x245   : > { %4410 = vmatmul.mubr.f32.gmra.mrb[90].mxu0 %v7205_v36  ;;  %6093 = vmatpush1.bf16.msra.mxu1 %v6092_v23  ;;  %v6328_v23 = vpack.c.bf16 %v1315_v15, %v1305_v13  ;;  %v6330_v31 = vpack.c.bf16 %v1336_v20, %v1326_v19  ;;  %v7214_v36 = vld [vmem:[%s7684_s17 + $0x98] sm:$0xff]  ;;  %v1385_v13 = vld [vmem:[%s11699_s1 + $0x2160] sm:$0xff]  ;;  %v1414_v20 = vld [vmem:[%s11699_s1 + $0x2248] sm:$0xff] }
 0x246   : > { %6313 = vmatpush1.bf16.msra.mxu0 %v6312_v28  ;;  %3771 = vmatprep.mubr.f32.mxu1 %v7206_v43  ;;  %v1325_v28 = vld [vmem:[%s11699_s1 + $0x1f80] sm:$0xff]  ;;  %v1404_v19 = vld [vmem:[%s11699_s1 + $0x21f8] sm:$0xff] }
 0x247   : > { %4415 = vmatprep.mubr.f32.mxu0 %v7206_v43  ;;  %6095 = vmatprep.subr.bf16.mxu1 %v6094_v32  ;;  %v1335_v32 = vld [vmem:[%s11699_s1 + $0x1fd0] sm:$0xff]  ;;  %v1353_v43 = vld [vmem:[%s11699_s1 + $0x2060] sm:$0xff]  ;;  %v1416_v25 = vld [vmem:[%s11699_s1 + $0x2258] sm:$0xff] }
 0x248   : > { %3772 = vmatmul.mubr.f32.gmra.mrb[92].mxu1 %v7207_v50  ;;  %6315 = vmatprep.subr.bf16.mxu0 %v6314_v37  ;;  %v1346_v37 = vld [vmem:[%s11699_s1 + $0x2028] sm:$0xff]  ;;  %v6116_v53 = vpack.c.bf16 %v1353_v43, %v1343_v42  ;;  %v1415_v42 = vld [vmem:[%s11699_s1 + $0x2250] sm:$0xff] }
 0x249   : > { %4416 = vmatmul.mubr.f32.gmra.mrb[92].mxu0 %v7207_v50  ;;  %6097 = vmatpush1.bf16.msra.mxu1 %v6096_v40  ;;  %v6332_v40 = vpack.c.bf16 %v1335_v32, %v1325_v28  ;;  %v6334_v46 = vpack.c.bf16 %v1356_v38, %v1346_v37  ;;  %v7216_v50 = vld [vmem:[%s7684_s17 + $0xd0] sm:$0xff]  ;;  %v6124_v28 = vpack.c.bf16 %v1393_v12, %v1383_v11  ;;  %v7226_v12 = vld [vmem:[%s7684_s17 + $0x1a8] sm:$0xff] }
 0x24a   : > { %6317 = vmatpush1.bf16.msra.mxu0 %v6316_v44  ;;  %3777 = vmatprep.mubr.f32.mxu1 %v7208_v57  ;;  %v1345_v44 = vld [vmem:[%s11699_s1 + $0x2020] sm:$0xff]  ;;  %v6126_v32 = vpack.c.bf16 %v1414_v20, %v1404_v19  ;;  %v7227_v19 = vld [vmem:[%s7684_s17 + $0x1e8] sm:$0xff] }
 0x24b   : > { %4421 = vmatprep.mubr.f32.mxu0 %v7208_v57  ;;  %6099 = vmatprep.subr.bf16.mxu1 %v6098_v47  ;;  %v1355_v47 = vld [vmem:[%s11699_s1 + $0x2070] sm:$0xff]  ;;  %v1373_v57 = vld [vmem:[%s11699_s1 + $0x2100] sm:$0xff] }
 0x24c   : > { %3778 = vmatmul.mubr.f32.gmra.mrb[94].mxu1 %v7209_v1  ;;  %6319 = vmatprep.subr.bf16.mxu0 %v6318_v51  ;;  %v1366_v51 = vld [vmem:[%s11699_s1 + $0x20c8] sm:$0xff] }
 0x24d   : > { %4422 = vmatmul.mubr.f32.gmra.mrb[94].mxu0 %v7209_v1  ;;  %6101 = vmatpush1.bf16.msra.mxu1 %v6100_v54  ;;  %v6336_v54 = vpack.c.bf16 %v1355_v47, %v1345_v44  ;;  %v1394_v1 = vld [vmem:[%s11699_s1 + $0x21a8] sm:$0xff] }
 0x24e   : > { %6321 = vmatpush1.bf16.msra.mxu0 %v6320_v58  ;;  %3848 = vmatprep.mubr.f32.mxu1 %v7210_v27  ;;  %v1365_v58 = vld [vmem:[%s11699_s1 + $0x20c0] sm:$0xff] }
 0x24f   : > { %4492 = vmatprep.mubr.f32.mxu0 %v7210_v27  ;;  %6103 = vmatprep.subr.bf16.mxu1 %v6102_v62  ;;  %v6338_v62 = vpack.c.bf16 %v1376_v52, %v1366_v51  ;;  %v6120_v27 = vpack.c.bf16 %v1373_v57, %v1363_v56 }
 0x250   : > { %3849 = vmatmul.mubr.f32.vlgmr.msra.gmra.mrb[64].mxu1 %v7211_v34  ;;  %6323 = vmatprep.subr.bf16.mxu0 %v6322_v2  ;;  %v7218_v2 = vld [vmem:[%s7684_s17 + $0x108] sm:$0xff] }
 0x251   : > { %4493 = vmatmul.mubr.f32.vlgmr.msra.gmra.mrb[64].mxu0 %v7211_v34  ;;  %6105 = vmatpush1.bf16.msra.mxu1 %v6104_v5  ;;  %v1386_v5 = vld [vmem:[%s11699_s1 + $0x2168] sm:$0xff]  ;;  %v7219_v34 = vld [vmem:[%s7684_s17 + $0x100] sm:$0xff] }
 0x252   : > { %6325 = vmatpush1.bf16.msra.mxu0 %v6324_v8  ;;  %3854 = vmatprep.mubr.f32.mxu1 %v7212_v21  ;;  %v6340_v8 = vpack.c.bf16 %v1375_v63, %v1365_v58  ;;  %v6342_v16 = vpack.c.bf16 %v1396_v6, %v1386_v5  ;;  %v7224_v58 = vld [vmem:[%s7684_s17 + $0x170] sm:$0xff] }
 0x253   : > { %4498 = vmatprep.mubr.f32.mxu0 %v7212_v21  ;;  %6107 = vmatprep.subr.bf16.mxu1 %v6106_v9  ;;  %v6122_v9 = vpack.c.bf16 %v1394_v1, %v1384_v0  ;;  %v7225_v0 = vld [vmem:[%s7684_s17 + $0x1b0] sm:$0xff]  ;;  %v1426_v1 = vld [vmem:[%s11699_s1 + $0x22a8] sm:$0xff] }
 0x254   : > { %3855 = vmatmul.mubr.f32.gmra.mrb[66].mxu1 %v7213_v30  ;;  %6327 = vmatprep.subr.bf16.mxu0 %v6326_v14  ;;  %v11189_v14 = vld [vmem:[%s11700_s2] sm:$0xff] }
 0x255   : > { %4499 = vmatmul.mubr.f32.gmra.mrb[66].mxu0 %v7213_v30  ;;  %3860 = vmatprep.mubr.f32.mxu1 %v7214_v36  ;;  %v11192_v15 = vrot.slane %v11189_v14, %v1441_v61  ;;  %v11204_v21 = vrot.slane %v11189_v14, %v1449_v3  ;;  %v11217_v26 = vrot.slane %v11189_v14, %v1453_v7  ;;  %v1423_v7 = vld [vmem:[%s11699_s1 + $0x2290] sm:$0xff] }
 0x256   : > { %4504 = vmatprep.mubr.f32.mxu0 %v7214_v36  ;;  %6109 = vmatpush1.bf16.msra.mxu1 %v6108_v22  ;;  %v7221_v22 = vld [vmem:[%s7684_s17 + $0x140] sm:$0xff] }
 0x257   : > { %6329 = vmatpush1.bf16.msra.mxu0 %v6328_v23  ;;  %6111 = vmatprep.subr.bf16.mxu1 %v6110_v24  ;;  %v11208_v23 = vrot.slane %v11189_v14, %v1445_v4  ;;  %v1406_v24 = vld [vmem:[%s11699_s1 + $0x2208] sm:$0xff] }
 0x258   : > { %3861 = vmatmul.mubr.f32.gmra.mrb[68].mxu1 %v7215_v45  ;;  %6331 = vmatprep.subr.bf16.mxu0 %v6330_v31  ;;  %v6344_v31 = vpack.c.bf16 %v1395_v18, %v1385_v13  ;;  %v1425_v13 = vld [vmem:[%s11699_s1 + $0x22a0] sm:$0xff] }
 0x259   : > { %4505 = vmatmul.mubr.f32.gmra.mrb[68].mxu0 %v7215_v45  ;;  %3866 = vmatprep.mubr.f32.mxu1 %v7216_v50 }
 0x25a   : > { %4510 = vmatprep.mubr.f32.mxu0 %v7216_v50  ;;  %6113 = vmatpush1.bf16.msra.mxu1 %v6112_v39  ;;  %v7222_v39 = vld [vmem:[%s7684_s17 + $0x138] sm:$0xff] }
 0x25b   : > { %6333 = vmatpush1.bf16.msra.mxu0 %v6332_v40  ;;  %6115 = vmatprep.subr.bf16.mxu1 %v6114_v41  ;;  %v6346_v40 = vpack.c.bf16 %v1416_v25, %v1406_v24  ;;  %v1405_v41 = vld [vmem:[%s11699_s1 + $0x2200] sm:$0xff] }
 0x25c   : > { %3867 = vmatmul.mubr.f32.gmra.mrb[70].mxu1 %v7217_v60  ;;  %6335 = vmatprep.subr.bf16.mxu0 %v6334_v46  ;;  %v7223_v46 = vld [vmem:[%s7684_s17 + $0x178] sm:$0xff] }
 0x25d   : > { %4511 = vmatmul.mubr.f32.gmra.mrb[70].mxu0 %v7217_v60  ;;  %3872 = vmatprep.mubr.f32.mxu1 %v7218_v2  ;;  %v1424_v60 = vld [vmem:[%s11699_s1 + $0x2298] sm:$0xff] }
 0x25e   : > { %4516 = vmatprep.mubr.f32.mxu0 %v7218_v2  ;;  %6117 = vmatpush1.bf16.msra.mxu1 %v6116_v53  ;;  %v6348_v53 = vpack.c.bf16 %v1415_v42, %v1405_v41 }
 0x25f   : > { %6337 = vmatpush1.bf16.msra.mxu0 %v6336_v54  ;;  %6119 = vmatprep.subr.bf16.mxu1 %v6118_v55 }
 0x260   : > { %3873 = vmatmul.mubr.f32.gmra.mrb[72].mxu1 %v7219_v34  ;;  %6339 = vmatprep.subr.bf16.mxu0 %v6338_v62 }
 0x261   : > { %4517 = vmatmul.mubr.f32.gmra.mrb[72].mxu0 %v7219_v34  ;;  %3878 = vmatprep.mubr.f32.mxu1 %v7221_v22 }
 0x262   : > { %4522 = vmatprep.mubr.f32.mxu0 %v7221_v22  ;;  %6121 = vmatpush1.bf16.msra.mxu1 %v6120_v27 }
 0x263   : > { %v2723_v30 = vpop.f32.mrb[32].mxu1  ;;  %6341 = vmatpush1.bf16.msra.mxu0 %v6340_v8  ;;  %6123 = vmatprep.subr.bf16.mxu1 %v6122_v9 }
 0x264   : > { %v6414_v36 = vadd.f32 %v2723_v30, %v11192_v15  ;;  %v3367_v37 = vpop.f32.mrb[32].mxu0  ;;  %v2725_v38 = vpop.f32.mrb[33].mxu1  ;;  %3879 = vmatmul.mubr.f32.gmra.mrb[74].mxu1 %v7222_v39  ;;  %6343 = vmatprep.subr.bf16.mxu0 %v6342_v16 }
 0x265   : > { %v6446_v43 = vadd.f32 %v3367_v37, %v11204_v21  ;;  %v6415_v44 = vadd.f32 %v2725_v38, %v11208_v23  ;;  %v3369_v45 = vpop.f32.mrb[33].mxu0  ;;  %4523 = vmatmul.mubr.f32.gmra.mrb[74].mxu0 %v7222_v39  ;;  %3884 = vmatprep.mubr.f32.mxu1 %v7223_v46  ;;  %v7229_v39 = vld [vmem:[%s7684_s17 + $0x220] sm:$0xff] }
 0x266   : > { %v4752_v47 = vmax.f32 %v6414_v36, 0.0  ;;  %v6447_v48 = vadd.f32 %v3369_v45, %v11217_v26  ;;  %4528 = vmatprep.mubr.f32.mxu0 %v7223_v46  ;;  %6125 = vmatpush1.bf16.msra.mxu1 %v6124_v28 }
 0x267   : > { %v4754_v50 = vmax.f32 %v6446_v43, 0.0  ;;  %v4753_v51 = vmax.f32 %v6415_v44, 0.0  ;;  %v2729_v52 = vpop.f32.mrb[34].mxu1  ;;  %6345 = vmatpush1.bf16.msra.mxu0 %v6344_v31  ;;  %6127 = vmatprep.subr.bf16.mxu1 %v6126_v32 }
 0x268   : > { %4912 = vst [vmem:[%s9662_s28 + $0x10] sm:$0xff] %v4752_v47  ;;  %v4755_v54 = vmax.f32 %v6447_v48, 0.0  ;;  %v6416_v55 = vadd.f32 %v2729_v52, %v11192_v15  ;;  %v3373_v56 = vpop.f32.mrb[34].mxu0  ;;  %v2731_v57 = vpop.f32.mrb[35].mxu1  ;;  %3885 = vmatmul.mubr.f32.gmra.mrb[76].mxu1 %v7224_v58  ;;  %6347 = vmatprep.subr.bf16.mxu0 %v6346_v40 }
 0x269   : > { %4914 = vst [vmem:[%s9662_s28 + $0x20] sm:$0xff] %v4754_v50  ;;  %4913 = vst [vmem:[%s9662_s28 + $0x18] sm:$0xff] %v4753_v51  ;;  %v6448_v61 = vadd.f32 %v3373_v56, %v11204_v21  ;;  %v6417_v62 = vadd.f32 %v2731_v57, %v11208_v23  ;;  %v3375_v63 = vpop.f32.mrb[35].mxu0  ;;  %4529 = vmatmul.mubr.f32.gmra.mrb[76].mxu0 %v7224_v58  ;;  %3890 = vmatprep.mubr.f32.mxu1 %v7225_v0 }
 0x26a   : > { %4915 = vst [vmem:[%s9662_s28 + $0x28] sm:$0xff] %v4755_v54  ;;  %v4762_v2 = vmax.f32 %v6416_v55, 0.0  ;;  %v6449_v3 = vadd.f32 %v3375_v63, %v11217_v26  ;;  %4534 = vmatprep.mubr.f32.mxu0 %v7225_v0  ;;  %6129 = vmatpush1.bf16.msra.mxu1 %v6128_v49  ;;  %v7230_v49 = vld [vmem:[%s7684_s17 + $0x218] sm:$0xff]  ;;  %v7232_v0 = vld [vmem:[%s7684_s17 + $0x250] sm:$0xff] }
 0x26b   : > { %v4764_v4 = vmax.f32 %v6448_v61, 0.0  ;;  %v4763_v5 = vmax.f32 %v6417_v62, 0.0  ;;  %v2735_v6 = vpop.f32.mrb[36].mxu1  ;;  %6349 = vmatpush1.bf16.msra.mxu0 %v6348_v53  ;;  %3973 = vmatprep.subr.mxu1 %v1424_v60  ;;  %v7231_v53 = vld [vmem:[%s7684_s17 + $0x258] sm:$0xff] }
 0x26c   : > { %4923 = vst [vmem:[%s9662_s28 + $0x60] sm:$0xff] %v4762_v2  ;;  %v4765_v27 = vmax.f32 %v6449_v3, 0.0  ;;  %v6418_v8 = vadd.f32 %v2735_v6, %v11192_v15  ;;  %v3379_v9 = vpop.f32.mrb[36].mxu0  ;;  %v2737_v11 = vpop.f32.mrb[37].mxu1  ;;  %3891 = vmatmul.mubr.f32.gmra.mrb[78].mxu1 %v7226_v12  ;;  %4617 = vmatprep.subr.mxu0 %v1426_v1 }
 0x26d   : > { %4925 = vst [vmem:[%s9662_s28 + $0x70] sm:$0xff] %v4764_v4  ;;  %4924 = vst [vmem:[%s9662_s28 + $0x68] sm:$0xff] %v4763_v5  ;;  %v6450_v34 = vadd.f32 %v3379_v9, %v11204_v21  ;;  %v6419_v16 = vadd.f32 %v2737_v11, %v11208_v23  ;;  %v3381_v18 = vpop.f32.mrb[37].mxu0  ;;  %4535 = vmatmul.mubr.f32.gmra.mrb[78].mxu0 %v7226_v12  ;;  %3896 = vmatprep.mubr.f32.mxu1 %v7227_v19  ;;  %v7233_v4 = vld [vmem:[%s7684_s17 + $0x290] sm:$0xff] }
 0x26e   : > { %4926 = vst [vmem:[%s9662_s28 + $0x78] sm:$0xff] %v4765_v27  ;;  %v4772_v20 = vmax.f32 %v6418_v8, 0.0  ;;  %v6451_v22 = vadd.f32 %v3381_v18, %v11217_v26  ;;  %4540 = vmatprep.mubr.f32.mxu0 %v7227_v19  ;;  %3974 = vmatpush1.msra.mxu1 %v1423_v7 }
 0x26f   : > { %v4774_v24 = vmax.f32 %v6450_v34, 0.0  ;;  %v4773_v25 = vmax.f32 %v6419_v16, 0.0  ;;  %v2741_v28 = vpop.f32.mrb[38].mxu1  ;;  %4618 = vmatpush1.msra.mxu0 %v1425_v13  ;;  %v7234_v34 = vld [vmem:[%s7684_s17 + $0x288] sm:$0xff] }
 0x270   : > { %4933 = vst [vmem:[%s9662_s28 + $0xb0] sm:$0xff] %v4772_v20  ;;  %v4775_v30 = vmax.f32 %v6451_v22, 0.0  ;;  %v6420_v31 = vadd.f32 %v2741_v28, %v11192_v15  ;;  %v3385_v32 = vpop.f32.mrb[38].mxu0  ;;  %v2743_v33 = vpop.f32.mrb[39].mxu1  ;;  %3897 = vmatmul.mubr.f32.gmra.mrb[80].mxu1 %v7228_v35  ;;  %v7235_v20 = vld [vmem:[%s7684_s17 + $0x2c8] sm:$0xff] }
 0x271   : > { %4935 = vst [vmem:[%s9662_s28 + $0xc0] sm:$0xff] %v4774_v24  ;;  %4934 = vst [vmem:[%s9662_s28 + $0xb8] sm:$0xff] %v4773_v25  ;;  %v6452_v36 = vadd.f32 %v3385_v32, %v11204_v21  ;;  %v6421_v37 = vadd.f32 %v2743_v33, %v11208_v23  ;;  %v3387_v38 = vpop.f32.mrb[39].mxu0  ;;  %4541 = vmatmul.mubr.f32.gmra.mrb[80].mxu0 %v7228_v35  ;;  %3902 = vmatprep.mubr.f32.mxu1 %v7229_v39 }
 0x272   : > { %4936 = vst [vmem:[%s9662_s28 + $0xc8] sm:$0xff] %v4775_v30  ;;  %v4782_v40 = vmax.f32 %v6420_v31, 0.0  ;;  %v6453_v41 = vadd.f32 %v3387_v38, %v11217_v26  ;;  %4546 = vmatprep.mubr.f32.mxu0 %v7229_v39 }
 0x273   : > { %v4784_v42 = vmax.f32 %v6452_v36, 0.0  ;;  %v4783_v43 = vmax.f32 %v6421_v37, 0.0  ;;  %v2747_v44 = vpop.f32.mrb[40].mxu1  ;;  %v7236_v36 = vld [vmem:[%s7684_s17 + $0x2c0] sm:$0xff] }
 0x274   : > { %4943 = vst [vmem:[%s9662_s28 + $0x100] sm:$0xff] %v4782_v40  ;;  %v4785_v45 = vmax.f32 %v6453_v41, 0.0  ;;  %v6422_v46 = vadd.f32 %v2747_v44, %v11192_v15  ;;  %v3391_v47 = vpop.f32.mrb[40].mxu0  ;;  %v2749_v48 = vpop.f32.mrb[41].mxu1  ;;  %3903 = vmatmul.mubr.f32.gmra.mrb[82].mxu1 %v7230_v49  ;;  %v7237_v40 = vld [vmem:[%s7684_s17 + $0x300] sm:$0xff] }
 0x275   : > { %4945 = vst [vmem:[%s9662_s28 + $0x110] sm:$0xff] %v4784_v42  ;;  %4944 = vst [vmem:[%s9662_s28 + $0x108] sm:$0xff] %v4783_v43  ;;  %v6454_v50 = vadd.f32 %v3391_v47, %v11204_v21  ;;  %v6423_v51 = vadd.f32 %v2749_v48, %v11208_v23  ;;  %v3393_v52 = vpop.f32.mrb[41].mxu0  ;;  %4547 = vmatmul.mubr.f32.gmra.mrb[82].mxu0 %v7230_v49  ;;  %3908 = vmatprep.mubr.f32.mxu1 %v7231_v53 }
 0x276   : > { %4946 = vst [vmem:[%s9662_s28 + $0x118] sm:$0xff] %v4785_v45  ;;  %v4792_v54 = vmax.f32 %v6422_v46, 0.0  ;;  %v6455_v55 = vadd.f32 %v3393_v52, %v11217_v26  ;;  %4552 = vmatprep.mubr.f32.mxu0 %v7231_v53 }
 0x277   : > { %v4794_v56 = vmax.f32 %v6454_v50, 0.0  ;;  %v4793_v57 = vmax.f32 %v6423_v51, 0.0  ;;  %v2753_v58 = vpop.f32.mrb[42].mxu1  ;;  %v7238_v50 = vld [vmem:[%s7684_s17 + $0x2f8] sm:$0xff] }
 0x278   : > { %4953 = vst [vmem:[%s9662_s28 + $0x150] sm:$0xff] %v4792_v54  ;;  %v4795_v60 = vmax.f32 %v6455_v55, 0.0  ;;  %v6424_v61 = vadd.f32 %v2753_v58, %v11192_v15  ;;  %v3397_v62 = vpop.f32.mrb[42].mxu0  ;;  %v2755_v63 = vpop.f32.mrb[43].mxu1  ;;  %3909 = vmatmul.mubr.f32.gmra.mrb[84].mxu1 %v7232_v0  ;;  %v7239_v54 = vld [vmem:[%s7684_s17 + $0x338] sm:$0xff] }
 0x279   : > { %4955 = vst [vmem:[%s9662_s28 + $0x160] sm:$0xff] %v4794_v56  ;;  %4954 = vst [vmem:[%s9662_s28 + $0x158] sm:$0xff] %v4793_v57  ;;  %v6456_v1 = vadd.f32 %v3397_v62, %v11204_v21  ;;  %v6425_v2 = vadd.f32 %v2755_v63, %v11208_v23  ;;  %v3399_v3 = vpop.f32.mrb[43].mxu0  ;;  %4553 = vmatmul.mubr.f32.gmra.mrb[84].mxu0 %v7232_v0  ;;  %3914 = vmatprep.mubr.f32.mxu1 %v7233_v4 }
 0x27a   : > { %4956 = vst [vmem:[%s9662_s28 + $0x168] sm:$0xff] %v4795_v60  ;;  %v4802_v5 = vmax.f32 %v6424_v61, 0.0  ;;  %v6457_v6 = vadd.f32 %v3399_v3, %v11217_v26  ;;  %4558 = vmatprep.mubr.f32.mxu0 %v7233_v4 }
 0x27b   : > { %v4804_v7 = vmax.f32 %v6456_v1, 0.0  ;;  %v4803_v27 = vmax.f32 %v6425_v2, 0.0  ;;  %v2759_v8 = vpop.f32.mrb[44].mxu1  ;;  %v7240_v1 = vld [vmem:[%s7684_s17 + $0x330] sm:$0xff] }
 0x27c   : > { %4963 = vst [vmem:[%s9662_s28 + $0x1a0] sm:$0xff] %v4802_v5  ;;  %v4805_v9 = vmax.f32 %v6457_v6, 0.0  ;;  %v6426_v11 = vadd.f32 %v2759_v8, %v11192_v15  ;;  %v3403_v12 = vpop.f32.mrb[44].mxu0  ;;  %v2761_v13 = vpop.f32.mrb[45].mxu1  ;;  %3915 = vmatmul.mubr.f32.gmra.mrb[86].mxu1 %v7234_v34  ;;  %v7241_v5 = vld [vmem:[%s7684_s17 + $0x370] sm:$0xff] }
 0x27d   : > { %4965 = vst [vmem:[%s9662_s28 + $0x1b0] sm:$0xff] %v4804_v7  ;;  %4964 = vst [vmem:[%s9662_s28 + $0x1a8] sm:$0xff] %v4803_v27  ;;  %v6458_v16 = vadd.f32 %v3403_v12, %v11204_v21  ;;  %v6427_v18 = vadd.f32 %v2761_v13, %v11208_v23  ;;  %v3405_v19 = vpop.f32.mrb[45].mxu0  ;;  %4559 = vmatmul.mubr.f32.gmra.mrb[86].mxu0 %v7234_v34  ;;  %3920 = vmatprep.mubr.f32.mxu1 %v7235_v20 }
 0x27e   : > { %4966 = vst [vmem:[%s9662_s28 + $0x1b8] sm:$0xff] %v4805_v9  ;;  %v4812_v22 = vmax.f32 %v6426_v11, 0.0  ;;  %v6459_v24 = vadd.f32 %v3405_v19, %v11217_v26  ;;  %4564 = vmatprep.mubr.f32.mxu0 %v7235_v20 }
 0x27f   : > { %v4814_v25 = vmax.f32 %v6458_v16, 0.0  ;;  %v4813_v28 = vmax.f32 %v6427_v18, 0.0  ;;  %v2765_v30 = vpop.f32.mrb[46].mxu1  ;;  %v7242_v16 = vld [vmem:[%s7684_s17 + $0x368] sm:$0xff] }
 0x280   : > { %4973 = vst [vmem:[%s9662_s28 + $0x1f0] sm:$0xff] %v4812_v22  ;;  %v4815_v31 = vmax.f32 %v6459_v24, 0.0  ;;  %v6428_v32 = vadd.f32 %v2765_v30, %v11192_v15  ;;  %v3409_v33 = vpop.f32.mrb[46].mxu0  ;;  %v2767_v35 = vpop.f32.mrb[47].mxu1  ;;  %3921 = vmatmul.mubr.f32.gmra.mrb[88].mxu1 %v7236_v36 }
 0x281   : > { %4975 = vst [vmem:[%s9662_s28 + $0x200] sm:$0xff] %v4814_v25  ;;  %4974 = vst [vmem:[%s9662_s28 + $0x1f8] sm:$0xff] %v4813_v28  ;;  %v6460_v37 = vadd.f32 %v3409_v33, %v11204_v21  ;;  %v6429_v38 = vadd.f32 %v2767_v35, %v11208_v23  ;;  %v3411_v39 = vpop.f32.mrb[47].mxu0  ;;  %4565 = vmatmul.mubr.f32.gmra.mrb[88].mxu0 %v7236_v36  ;;  %3926 = vmatprep.mubr.f32.mxu1 %v7237_v40  ;;  %v7243_v36 = vld [vmem:[%s7684_s17 + $0x30] sm:$0xff] }
 0x282   : > { %4976 = vst [vmem:[%s9662_s28 + $0x208] sm:$0xff] %v4815_v31  ;;  %v4822_v41 = vmax.f32 %v6428_v32, 0.0  ;;  %v6461_v42 = vadd.f32 %v3411_v39, %v11217_v26  ;;  %4570 = vmatprep.mubr.f32.mxu0 %v7237_v40 }
 0x283   : > { %v4824_v43 = vmax.f32 %v6460_v37, 0.0  ;;  %v4823_v44 = vmax.f32 %v6429_v38, 0.0  ;;  %v2771_v45 = vpop.f32.mrb[48].mxu1 }
 0x284   : > { %4983 = vst [vmem:[%s9662_s28 + $0x240] sm:$0xff] %v4822_v41  ;;  %v4825_v46 = vmax.f32 %v6461_v42, 0.0  ;;  %v6430_v47 = vadd.f32 %v2771_v45, %v11192_v15  ;;  %v3415_v48 = vpop.f32.mrb[48].mxu0  ;;  %v2773_v49 = vpop.f32.mrb[49].mxu1  ;;  %3927 = vmatmul.mubr.f32.gmra.mrb[90].mxu1 %v7238_v50 }
 0x285   : > { %4985 = vst [vmem:[%s9662_s28 + $0x250] sm:$0xff] %v4824_v43  ;;  %4984 = vst [vmem:[%s9662_s28 + $0x248] sm:$0xff] %v4823_v44  ;;  %v6462_v51 = vadd.f32 %v3415_v48, %v11204_v21  ;;  %v6431_v52 = vadd.f32 %v2773_v49, %v11208_v23  ;;  %v3417_v53 = vpop.f32.mrb[49].mxu0  ;;  %4571 = vmatmul.mubr.f32.gmra.mrb[90].mxu0 %v7238_v50  ;;  %3932 = vmatprep.mubr.f32.mxu1 %v7239_v54  ;;  %v7244_v49 = vld [vmem:[%s7684_s17 + $0x68] sm:$0xff] }
 0x286   : > { %4986 = vst [vmem:[%s9662_s28 + $0x258] sm:$0xff] %v4825_v46  ;;  %v4832_v55 = vmax.f32 %v6430_v47, 0.0  ;;  %v6463_v56 = vadd.f32 %v3417_v53, %v11217_v26  ;;  %4576 = vmatprep.mubr.f32.mxu0 %v7239_v54 }
 0x287   : > { %v4834_v57 = vmax.f32 %v6462_v51, 0.0  ;;  %v4833_v58 = vmax.f32 %v6431_v52, 0.0  ;;  %v2777_v60 = vpop.f32.mrb[50].mxu1 }
 0x288   : > { %4993 = vst [vmem:[%s9662_s28 + $0x290] sm:$0xff] %v4832_v55  ;;  %v4835_v61 = vmax.f32 %v6463_v56, 0.0  ;;  %v6432_v62 = vadd.f32 %v2777_v60, %v11192_v15  ;;  %v3421_v63 = vpop.f32.mrb[50].mxu0  ;;  %v2779_v0 = vpop.f32.mrb[51].mxu1  ;;  %3933 = vmatmul.mubr.f32.gmra.mrb[92].mxu1 %v7240_v1 }
 0x289   : > { %4995 = vst [vmem:[%s9662_s28 + $0x2a0] sm:$0xff] %v4834_v57  ;;  %4994 = vst [vmem:[%s9662_s28 + $0x298] sm:$0xff] %v4833_v58  ;;  %v6464_v2 = vadd.f32 %v3421_v63, %v11204_v21  ;;  %v6433_v3 = vadd.f32 %v2779_v0, %v11208_v23  ;;  %v3423_v4 = vpop.f32.mrb[51].mxu0  ;;  %4577 = vmatmul.mubr.f32.gmra.mrb[92].mxu0 %v7240_v1  ;;  %3938 = vmatprep.mubr.f32.mxu1 %v7241_v5  ;;  %v7245_v63 = vld [vmem:[%s7684_s17 + $0xa0] sm:$0xff] }
 0x28a   : > { %4996 = vst [vmem:[%s9662_s28 + $0x2a8] sm:$0xff] %v4835_v61  ;;  %v4842_v6 = vmax.f32 %v6432_v62, 0.0  ;;  %v6465_v7 = vadd.f32 %v3423_v4, %v11217_v26  ;;  %4582 = vmatprep.mubr.f32.mxu0 %v7241_v5 }
 0x28b   : > { %v4844_v27 = vmax.f32 %v6464_v2, 0.0  ;;  %v4843_v8 = vmax.f32 %v6433_v3, 0.0  ;;  %v2783_v9 = vpop.f32.mrb[52].mxu1 }
 0x28c   : > { %5003 = vst [vmem:[%s9662_s28 + $0x2e0] sm:$0xff] %v4842_v6  ;;  %v4845_v11 = vmax.f32 %v6465_v7, 0.0  ;;  %v6434_v12 = vadd.f32 %v2783_v9, %v11192_v15  ;;  %v3427_v13 = vpop.f32.mrb[52].mxu0  ;;  %v2785_v34 = vpop.f32.mrb[53].mxu1  ;;  %3939 = vmatmul.mubr.f32.gmra.mrb[94].mxu1 %v7242_v16 }
 0x28d   : > { %5005 = vst [vmem:[%s9662_s28 + $0x2f0] sm:$0xff] %v4844_v27  ;;  %5004 = vst [vmem:[%s9662_s28 + $0x2e8] sm:$0xff] %v4843_v8  ;;  %v6466_v18 = vadd.f32 %v3427_v13, %v11204_v21  ;;  %v6435_v19 = vadd.f32 %v2785_v34, %v11208_v23  ;;  %v3429_v20 = vpop.f32.mrb[53].mxu0  ;;  %4583 = vmatmul.mubr.f32.gmra.mrb[94].mxu0 %v7242_v16  ;;  %4009 = vmatprep.mubr.f32.mxu1 %v7323_v29 }
 0x28e   : > { %5006 = vst [vmem:[%s9662_s28 + $0x2f8] sm:$0xff] %v4845_v11  ;;  %v4852_v22 = vmax.f32 %v6434_v12, 0.0  ;;  %v6467_v24 = vadd.f32 %v3429_v20, %v11217_v26  ;;  %4653 = vmatprep.mubr.f32.mxu0 %v7323_v29  ;;  %v7246_v12 = vld [vmem:[%s7684_s17 + $0xd8] sm:$0xff] }
 0x28f   : > { %v4854_v25 = vmax.f32 %v6466_v18, 0.0  ;;  %v4853_v28 = vmax.f32 %v6435_v19, 0.0  ;;  %v2789_v30 = vpop.f32.mrb[54].mxu1 }
 0x290   : > { %5013 = vst [vmem:[%s9662_s28 + $0x330] sm:$0xff] %v4852_v22  ;;  %v4855_v31 = vmax.f32 %v6467_v24, 0.0  ;;  %v6436_v32 = vadd.f32 %v2789_v30, %v11192_v15  ;;  %v3433_v33 = vpop.f32.mrb[54].mxu0  ;;  %v2791_v35 = vpop.f32.mrb[55].mxu1  ;;  %5209 = vmatmul.mubr.msk.f32.vlgmr.msra.gmra.mrb[64].mxu1 %vm1481_vm0, %v7243_v36 }
 0x291   : > { %5015 = vst [vmem:[%s9662_s28 + $0x340] sm:$0xff] %v4854_v25  ;;  %5014 = vst [vmem:[%s9662_s28 + $0x338] sm:$0xff] %v4853_v28  ;;  %v6468_v37 = vadd.f32 %v3433_v33, %v11204_v21  ;;  %v6437_v38 = vadd.f32 %v2791_v35, %v11208_v23  ;;  %v3435_v39 = vpop.f32.mrb[55].mxu0  ;;  %5225 = vmatmul.mubr.msk.f32.vlgmr.msra.gmra.mrb[64].mxu0 %vm1481_vm0, %v7243_v36  ;;  %4015 = vmatprep.mubr.f32.mxu1 %v7323_v29 }
 0x292   : > { %5016 = vst [vmem:[%s9662_s28 + $0x348] sm:$0xff] %v4855_v31  ;;  %v4862_v40 = vmax.f32 %v6436_v32, 0.0  ;;  %v6469_v41 = vadd.f32 %v3435_v39, %v11217_v26  ;;  %4659 = vmatprep.mubr.f32.mxu0 %v7323_v29  ;;  %v7247_v32 = vld [vmem:[%s7684_s17 + $0x110] sm:$0xff] }
 0x293   : > { %v4864_v42 = vmax.f32 %v6468_v37, 0.0  ;;  %v4863_v43 = vmax.f32 %v6437_v38, 0.0  ;;  %v2795_v44 = vpop.f32.mrb[56].mxu1 }
 0x294   : > { %5023 = vst [vmem:[%s9662_s28 + $0x380] sm:$0xff] %v4862_v40  ;;  %v4865_v45 = vmax.f32 %v6469_v41, 0.0  ;;  %v6438_v46 = vadd.f32 %v2795_v44, %v11192_v15  ;;  %v3439_v47 = vpop.f32.mrb[56].mxu0  ;;  %v2797_v48 = vpop.f32.mrb[57].mxu1  ;;  %5210 = vmatmul.mubr.msk.f32.gmra.mrb[66].mxu1 %vm1481_vm0, %v7244_v49  ;;  %v7248_v40 = vld [vmem:[%s7684_s17 + $0x148] sm:$0xff]  ;;  %v7251_v41 = vld [vmem:[%s7684_s17 + $0x1f0] sm:$0xff] }
 0x295   : > { %5025 = vst [vmem:[%s9662_s28 + $0x390] sm:$0xff] %v4864_v42  ;;  %5024 = vst [vmem:[%s9662_s28 + $0x388] sm:$0xff] %v4863_v43  ;;  %v6470_v50 = vadd.f32 %v3439_v47, %v11204_v21  ;;  %v6439_v51 = vadd.f32 %v2797_v48, %v11208_v23  ;;  %v3441_v52 = vpop.f32.mrb[57].mxu0  ;;  %5226 = vmatmul.mubr.msk.f32.gmra.mrb[66].mxu0 %vm1481_vm0, %v7244_v49  ;;  %4021 = vmatprep.mubr.f32.mxu1 %v7323_v29  ;;  %v7252_v42 = vld [vmem:[%s7684_s17 + $0x228] sm:$0xff]  ;;  %v7253_v43 = vld [vmem:[%s7684_s17 + $0x260] sm:$0xff]  ;;  %v1457_v49 = vsub.s32 6, %v9536_v59 }
 0x296   : > { %5026 = vst [vmem:[%s9662_s28 + $0x398] sm:$0xff] %v4865_v45  ;;  %v4872_v53 = vmax.f32 %v6438_v46, 0.0  ;;  %v6471_v54 = vadd.f32 %v3441_v52, %v11217_v26  ;;  %4665 = vmatprep.mubr.f32.mxu0 %v7323_v29  ;;  %v7254_v44 = vld [vmem:[%s7684_s17 + $0x298] sm:$0xff]  ;;  %v7255_v45 = vld [vmem:[%s7684_s17 + $0x2d0] sm:$0xff]  ;;  %v7256_v46 = vld [vmem:[%s7684_s17 + $0x308] sm:$0xff] }
 0x297   : > { %v4874_v55 = vmax.f32 %v6470_v50, 0.0  ;;  %v4873_v56 = vmax.f32 %v6439_v51, 0.0  ;;  %v2801_v57 = vpop.f32.mrb[58].mxu1  ;;  %v7257_v47 = vld [vmem:[%s7684_s17 + $0x340] sm:$0xff]  ;;  %v7258_v48 = vld [vmem:[%s7684_s17 + $0x378] sm:$0xff]  ;;  %v1461_v50 = vsub.s32 7, %v9536_v59  ;;  %v11478_v52 = vrot.slane %v11189_v14, %v1457_v49 }
 0x298   : > { %5033 = vst [vmem:[%s9662_s28 + $0x3d0] sm:$0xff] %v4872_v53  ;;  %v4875_v58 = vmax.f32 %v6471_v54, 0.0  ;;  %v6440_v60 = vadd.f32 %v2801_v57, %v11192_v15  ;;  %v3445_v61 = vpop.f32.mrb[58].mxu0  ;;  %v2803_v62 = vpop.f32.mrb[59].mxu1  ;;  %5211 = vmatmul.mubr.msk.f32.gmra.mrb[68].mxu1 %vm1481_vm0, %v7245_v63  ;;  %v1428_v51 = vld [vmem:[%s11700_s2 + $0x8] sm:$0x3] }
 0x299   : > { %5035 = vst [vmem:[%s9662_s28 + $0x3e0] sm:$0xff] %v4874_v55  ;;  %5034 = vst [vmem:[%s9662_s28 + $0x3d8] sm:$0xff] %v4873_v56  ;;  %v6472_v0 = vadd.f32 %v3445_v61, %v11204_v21  ;;  %v6441_v1 = vadd.f32 %v2803_v62, %v11208_v23  ;;  %v3447_v2 = vpop.f32.mrb[59].mxu0  ;;  %5227 = vmatmul.mubr.msk.f32.gmra.mrb[68].mxu0 %vm1481_vm0, %v7245_v63  ;;  %4027 = vmatprep.mubr.f32.mxu1 %v7323_v29 }
 0x29a   : > { %5036 = vst [vmem:[%s9662_s28 + $0x3e8] sm:$0xff] %v4875_v58  ;;  %v4882_v3 = vmax.f32 %v6440_v60, 0.0  ;;  %v6473_v4 = vadd.f32 %v3447_v2, %v11217_v26  ;;  %4671 = vmatprep.mubr.f32.mxu0 %v7323_v29  ;;  %v11482_v53 = vrot.slane %v1428_v51, %v1433_v10  ;;  %v11489_v54 = vrot.slane %v1428_v51, %v1437_v17 }
 0x29b   : > { %v4884_v5 = vmax.f32 %v6472_v0, 0.0  ;;  %v4883_v6 = vmax.f32 %v6441_v1, 0.0  ;;  %v2807_v7 = vpop.f32.mrb[60].mxu1 }
 0x29c   : > { %5043 = vst [vmem:[%s9662_s28 + $0x420] sm:$0xff] %v4882_v3  ;;  %v4885_v27 = vmax.f32 %v6473_v4, 0.0  ;;  %v6442_v8 = vadd.f32 %v2807_v7, %v11192_v15  ;;  %v3451_v9 = vpop.f32.mrb[60].mxu0  ;;  %v2809_v11 = vpop.f32.mrb[61].mxu1  ;;  %5212 = vmatmul.mubr.msk.f32.gmra.mrb[70].mxu1 %vm1481_vm0, %v7246_v12 }
 0x29d   : > { %5045 = vst [vmem:[%s9662_s28 + $0x430] sm:$0xff] %v4884_v5  ;;  %5044 = vst [vmem:[%s9662_s28 + $0x428] sm:$0xff] %v4883_v6  ;;  %v6474_v13 = vadd.f32 %v3451_v9, %v11204_v21  ;;  %v6443_v34 = vadd.f32 %v2809_v11, %v11208_v23  ;;  %v3453_v16 = vpop.f32.mrb[61].mxu0  ;;  %5228 = vmatmul.mubr.msk.f32.gmra.mrb[70].mxu0 %vm1481_vm0, %v7246_v12  ;;  %4033 = vmatprep.mubr.f32.mxu1 %v7323_v29 }
 0x29e   : > { %5046 = vst [vmem:[%s9662_s28 + $0x438] sm:$0xff] %v4885_v27  ;;  %v4892_v18 = vmax.f32 %v6442_v8, 0.0  ;;  %v6475_v19 = vadd.f32 %v3453_v16, %v11217_v26  ;;  %4677 = vmatprep.mubr.f32.mxu0 %v7323_v29 }
 0x29f   : > { %v4894_v20 = vmax.f32 %v6474_v13, 0.0  ;;  %v4893_v22 = vmax.f32 %v6443_v34, 0.0  ;;  %v2813_v24 = vpop.f32.mrb[62].mxu1 }
 0x2a0   : > { %5053 = vst [vmem:[%s9662_s28 + $0x470] sm:$0xff] %v4892_v18  ;;  %v4895_v25 = vmax.f32 %v6475_v19, 0.0  ;;  %v6444_v28 = vadd.f32 %v2813_v24, %v11192_v15  ;;  %v3457_v30 = vpop.f32.mrb[62].mxu0  ;;  %v2815_v31 = vpop.f32.mrb[63].mxu1  ;;  %5213 = vmatmul.mubr.msk.f32.gmra.mrb[72].mxu1 %vm1481_vm0, %v7247_v32 }
 0x2a1   : > { %5055 = vst [vmem:[%s9662_s28 + $0x480] sm:$0xff] %v4894_v20  ;;  %5054 = vst [vmem:[%s9662_s28 + $0x478] sm:$0xff] %v4893_v22  ;;  %v6476_v33 = vadd.f32 %v3457_v30, %v11204_v21  ;;  %v6445_v35 = vadd.f32 %v2815_v31, %v11208_v23  ;;  %v3459_v36 = vpop.f32.mrb[63].mxu0  ;;  %5229 = vmatmul.mubr.msk.f32.gmra.mrb[72].mxu0 %vm1481_vm0, %v7247_v32  ;;  %4039 = vmatprep.mubr.f32.mxu1 %v7323_v29  ;;  %v7249_v23 = vld [vmem:[%s7684_s17 + $0x180] sm:$0xff] }
 0x2a2   : > { %5056 = vst [vmem:[%s9662_s28 + $0x488] sm:$0xff] %v4895_v25  ;;  %v4902_v15 = vmax.f32 %v6444_v28, 0.0  ;;  %v6477_v37 = vadd.f32 %v3459_v36, %v11217_v26  ;;  %4683 = vmatprep.mubr.f32.mxu0 %v7323_v29  ;;  %v7250_v26 = vld [vmem:[%s7684_s17 + $0x1b8] sm:$0xff]  ;;  %s11637_s17 = scalar_lea.sflag [#allocation3], %s179_s5 }
 0x2a3   : > { %v4904_v38 = vmax.f32 %v6476_v33, 0.0  ;;  %v4903_v39 = vmax.f32 %v6445_v35, 0.0 }
 0x2a4   : > { %5063 = vst [vmem:[%s9662_s28 + $0x4c0] sm:$0xff] %v4902_v15  ;;  %v4905_v21 = vmax.f32 %v6477_v37, 0.0  ;;  %5214 = vmatmul.mubr.msk.f32.gmra.mrb[74].mxu1 %vm1481_vm0, %v7248_v40 }
 0x2a5   : > { %5065 = vst [vmem:[%s9662_s28 + $0x4d0] sm:$0xff] %v4904_v38  ;;  %5064 = vst [vmem:[%s9662_s28 + $0x4c8] sm:$0xff] %v4903_v39  ;;  %5230 = vmatmul.mubr.msk.f32.gmra.mrb[74].mxu0 %vm1481_vm0, %v7248_v40  ;;  %4045 = vmatprep.mubr.f32.mxu1 %v7323_v29 }
 0x2a6   : > { %5066 = vst [vmem:[%s9662_s28 + $0x4d8] sm:$0xff] %v4905_v21  ;;  %4689 = vmatprep.mubr.f32.mxu0 %v7323_v29 }
 0x2a8   : > { %5215 = vmatmul.mubr.msk.f32.gmra.mrb[76].mxu1 %vm1481_vm0, %v7249_v23 }
 0x2a9   : > { %5231 = vmatmul.mubr.msk.f32.gmra.mrb[76].mxu0 %vm1481_vm0, %v7249_v23  ;;  %4051 = vmatprep.mubr.f32.mxu1 %v7323_v29 }
 0x2aa   : > { %4695 = vmatprep.mubr.f32.mxu0 %v7323_v29 }
 0x2ac   : > { %5216 = vmatmul.mubr.msk.f32.gmra.mrb[78].mxu1 %vm1481_vm0, %v7250_v26 }
 0x2ad   : > { %5232 = vmatmul.mubr.msk.f32.gmra.mrb[78].mxu0 %vm1481_vm0, %v7250_v26  ;;  %4057 = vmatprep.mubr.f32.mxu1 %v7323_v29 }
 0x2ae   : > { %4701 = vmatprep.mubr.f32.mxu0 %v7323_v29 }
 0x2b0   : > { %5217 = vmatmul.mubr.msk.f32.gmra.mrb[80].mxu1 %vm1481_vm0, %v7251_v41 }
 0x2b1   : > { %5233 = vmatmul.mubr.msk.f32.gmra.mrb[80].mxu0 %vm1481_vm0, %v7251_v41  ;;  %4063 = vmatprep.mubr.f32.mxu1 %v7323_v29 }
 0x2b2   : > { %4707 = vmatprep.mubr.f32.mxu0 %v7323_v29 }
 0x2b4   : > { %5218 = vmatmul.mubr.msk.f32.gmra.mrb[82].mxu1 %vm1481_vm0, %v7252_v42 }
 0x2b5   : > { %5234 = vmatmul.mubr.msk.f32.gmra.mrb[82].mxu0 %vm1481_vm0, %v7252_v42  ;;  %4069 = vmatprep.mubr.f32.mxu1 %v7323_v29 }
 0x2b6   : > { %4713 = vmatprep.mubr.f32.mxu0 %v7323_v29 }
 0x2b8   : > { %5219 = vmatmul.mubr.msk.f32.gmra.mrb[84].mxu1 %vm1481_vm0, %v7253_v43 }
 0x2b9   : > { %5235 = vmatmul.mubr.msk.f32.gmra.mrb[84].mxu0 %vm1481_vm0, %v7253_v43  ;;  %4075 = vmatprep.mubr.f32.mxu1 %v7323_v29 }
 0x2ba   : > { %4719 = vmatprep.mubr.f32.mxu0 %v7323_v29 }
 0x2bc   : > { %5220 = vmatmul.mubr.msk.f32.gmra.mrb[86].mxu1 %vm1481_vm0, %v7254_v44 }
 0x2bd   : > { %5236 = vmatmul.mubr.msk.f32.gmra.mrb[86].mxu0 %vm1481_vm0, %v7254_v44  ;;  %4081 = vmatprep.mubr.f32.mxu1 %v7323_v29 }
 0x2be   : > { %4725 = vmatprep.mubr.f32.mxu0 %v7323_v29 }
 0x2c0   : > { %5221 = vmatmul.mubr.msk.f32.gmra.mrb[88].mxu1 %vm1481_vm0, %v7255_v45 }
 0x2c1   : > { %5237 = vmatmul.mubr.msk.f32.gmra.mrb[88].mxu0 %vm1481_vm0, %v7255_v45  ;;  %4087 = vmatprep.mubr.f32.mxu1 %v7323_v29 }
 0x2c2   : > { %4731 = vmatprep.mubr.f32.mxu0 %v7323_v29 }
 0x2c4   : > { %5222 = vmatmul.mubr.msk.f32.gmra.mrb[90].mxu1 %vm1481_vm0, %v7256_v46 }
 0x2c5   : > { %5238 = vmatmul.mubr.msk.f32.gmra.mrb[90].mxu0 %vm1481_vm0, %v7256_v46  ;;  %4093 = vmatprep.mubr.f32.mxu1 %v7323_v29 }
 0x2c6   : > { %4737 = vmatprep.mubr.f32.mxu0 %v7323_v29 }
 0x2c8   : > { %5223 = vmatmul.mubr.msk.f32.gmra.mrb[92].mxu1 %vm1481_vm0, %v7257_v47 }
 0x2c9   : > { %5239 = vmatmul.mubr.msk.f32.gmra.mrb[92].mxu0 %vm1481_vm0, %v7257_v47  ;;  %4099 = vmatprep.mubr.f32.mxu1 %v7323_v29 }
 0x2ca   : > { %4743 = vmatprep.mubr.f32.mxu0 %v7323_v29  ;;  %v11485_v29 = vrot.slane %v11189_v14, %v1461_v50 }
 0x2cc   : > { %5224 = vmatmul.mubr.msk.f32.gmra.mrb[94].mxu1 %vm1481_vm0, %v7258_v48 }
 0x2cd   : > { %5240 = vmatmul.mubr.msk.f32.gmra.mrb[94].mxu0 %vm1481_vm0, %v7258_v48 }
 0x363   : > { %v4011_v55 = vpop.f32.mrb[64].mxu1 }
 0x364   : > { %v6478_v56 = vadd.f32 %v4011_v55, %v11478_v52  ;;  %v4655_v57 = vpop.f32.mrb[64].mxu0  ;;  %v4013_v58 = vpop.f32.mrb[65].mxu1 }
 0x365   : > { %v6510_v60 = vadd.f32 %v4655_v57, %v11482_v53  ;;  %v6479_v10 = vadd.f32 %v4013_v58, %v11485_v29  ;;  %v4657_v61 = vpop.f32.mrb[65].mxu0 }
 0x366   : > { %v4756_v62 = vmax.f32 %v6478_v56, 0.0  ;;  %v6511_v14 = vadd.f32 %v4657_v61, %v11489_v54 }
 0x367   : > { %v4758_v63 = vmax.f32 %v6510_v60, 0.0  ;;  %v4757_v59 = vmax.f32 %v6479_v10, 0.0  ;;  %v4017_v17 = vpop.f32.mrb[66].mxu1 }
 0x368   : > { %4916 = vst [vmem:[%s9662_s28 + $0x30] sm:$0xff] %v4756_v62  ;;  %v4759_v0 = vmax.f32 %v6511_v14, 0.0  ;;  %v6480_v1 = vadd.f32 %v4017_v17, %v11478_v52  ;;  %v4661_v2 = vpop.f32.mrb[66].mxu0  ;;  %v4019_v3 = vpop.f32.mrb[67].mxu1 }
 0x369   : > { %4918 = vst [vmem:[%s9662_s28 + $0x40] sm:$0xff] %v4758_v63  ;;  %4917 = vst [vmem:[%s9662_s28 + $0x38] sm:$0xff] %v4757_v59  ;;  %v6512_v4 = vadd.f32 %v4661_v2, %v11482_v53  ;;  %v6481_v5 = vadd.f32 %v4019_v3, %v11485_v29  ;;  %v4663_v6 = vpop.f32.mrb[67].mxu0 }
 0x36a   : > { %4920 = vst.msk [vmem:[%s9662_s28 + $0x48] sm:$0xff] %vm4919_vm1, %v4759_v0  ;;  %v4766_v7 = vmax.f32 %v6480_v1, 0.0  ;;  %v6513_v27 = vadd.f32 %v4663_v6, %v11489_v54 }
 0x36b   : > { %v4768_v8 = vmax.f32 %v6512_v4, 0.0  ;;  %v4767_v9 = vmax.f32 %v6481_v5, 0.0  ;;  %v4023_v11 = vpop.f32.mrb[68].mxu1 }
 0x36c   : > { %4927 = vst [vmem:[%s9662_s28 + $0x80] sm:$0xff] %v4766_v7  ;;  %v4769_v12 = vmax.f32 %v6513_v27, 0.0  ;;  %v6482_v13 = vadd.f32 %v4023_v11, %v11478_v52  ;;  %v4667_v34 = vpop.f32.mrb[68].mxu0  ;;  %v4025_v16 = vpop.f32.mrb[69].mxu1 }
 0x36d   : > { %4929 = vst [vmem:[%s9662_s28 + $0x90] sm:$0xff] %v4768_v8  ;;  %4928 = vst [vmem:[%s9662_s28 + $0x88] sm:$0xff] %v4767_v9  ;;  %v6514_v18 = vadd.f32 %v4667_v34, %v11482_v53  ;;  %v6483_v19 = vadd.f32 %v4025_v16, %v11485_v29  ;;  %v4669_v20 = vpop.f32.mrb[69].mxu0 }
 0x36e   : > { %4930 = vst.msk [vmem:[%s9662_s28 + $0x98] sm:$0xff] %vm4919_vm1, %v4769_v12  ;;  %v4776_v22 = vmax.f32 %v6482_v13, 0.0  ;;  %v6515_v24 = vadd.f32 %v4669_v20, %v11489_v54 }
 0x36f   : > { %v4778_v25 = vmax.f32 %v6514_v18, 0.0  ;;  %v4777_v28 = vmax.f32 %v6483_v19, 0.0  ;;  %v4029_v30 = vpop.f32.mrb[70].mxu1 }
 0x370   : > { %4937 = vst [vmem:[%s9662_s28 + $0xd0] sm:$0xff] %v4776_v22  ;;  %v4779_v31 = vmax.f32 %v6515_v24, 0.0  ;;  %v6484_v32 = vadd.f32 %v4029_v30, %v11478_v52  ;;  %v4673_v33 = vpop.f32.mrb[70].mxu0  ;;  %v4031_v35 = vpop.f32.mrb[71].mxu1 }
 0x371   : > { %4939 = vst [vmem:[%s9662_s28 + $0xe0] sm:$0xff] %v4778_v25  ;;  %4938 = vst [vmem:[%s9662_s28 + $0xd8] sm:$0xff] %v4777_v28  ;;  %v6516_v36 = vadd.f32 %v4673_v33, %v11482_v53  ;;  %v6485_v15 = vadd.f32 %v4031_v35, %v11485_v29  ;;  %v4675_v37 = vpop.f32.mrb[71].mxu0 }
 0x372   : > { %4940 = vst.msk [vmem:[%s9662_s28 + $0xe8] sm:$0xff] %vm4919_vm1, %v4779_v31  ;;  %v4786_v38 = vmax.f32 %v6484_v32, 0.0  ;;  %v6517_v39 = vadd.f32 %v4675_v37, %v11489_v54 }
 0x373   : > { %v4788_v21 = vmax.f32 %v6516_v36, 0.0  ;;  %v4787_v40 = vmax.f32 %v6485_v15, 0.0  ;;  %v4035_v23 = vpop.f32.mrb[72].mxu1 }
 0x374   : > { %4947 = vst [vmem:[%s9662_s28 + $0x120] sm:$0xff] %v4786_v38  ;;  %v4789_v26 = vmax.f32 %v6517_v39, 0.0  ;;  %v6486_v41 = vadd.f32 %v4035_v23, %v11478_v52  ;;  %v4679_v42 = vpop.f32.mrb[72].mxu0  ;;  %v4037_v43 = vpop.f32.mrb[73].mxu1 }
 0x375   : > { %4949 = vst [vmem:[%s9662_s28 + $0x130] sm:$0xff] %v4788_v21  ;;  %4948 = vst [vmem:[%s9662_s28 + $0x128] sm:$0xff] %v4787_v40  ;;  %v6518_v44 = vadd.f32 %v4679_v42, %v11482_v53  ;;  %v6487_v45 = vadd.f32 %v4037_v43, %v11485_v29  ;;  %v4681_v46 = vpop.f32.mrb[73].mxu0 }
 0x376   : > { %4950 = vst.msk [vmem:[%s9662_s28 + $0x138] sm:$0xff] %vm4919_vm1, %v4789_v26  ;;  %v4796_v47 = vmax.f32 %v6486_v41, 0.0  ;;  %v6519_v48 = vadd.f32 %v4681_v46, %v11489_v54 }
 0x377   : > { %v4798_v49 = vmax.f32 %v6518_v44, 0.0  ;;  %v4797_v50 = vmax.f32 %v6487_v45, 0.0  ;;  %v4041_v51 = vpop.f32.mrb[74].mxu1 }
 0x378   : > { %4957 = vst [vmem:[%s9662_s28 + $0x170] sm:$0xff] %v4796_v47  ;;  %v4799_v55 = vmax.f32 %v6519_v48, 0.0  ;;  %v6488_v56 = vadd.f32 %v4041_v51, %v11478_v52  ;;  %v4685_v57 = vpop.f32.mrb[74].mxu0  ;;  %v4043_v58 = vpop.f32.mrb[75].mxu1 }
 0x379   : > { %4959 = vst [vmem:[%s9662_s28 + $0x180] sm:$0xff] %v4798_v49  ;;  %4958 = vst [vmem:[%s9662_s28 + $0x178] sm:$0xff] %v4797_v50  ;;  %v6520_v60 = vadd.f32 %v4685_v57, %v11482_v53  ;;  %v6489_v10 = vadd.f32 %v4043_v58, %v11485_v29  ;;  %v4687_v61 = vpop.f32.mrb[75].mxu0 }
 0x37a   : > { %4960 = vst.msk [vmem:[%s9662_s28 + $0x188] sm:$0xff] %vm4919_vm1, %v4799_v55  ;;  %v4806_v62 = vmax.f32 %v6488_v56, 0.0  ;;  %v6521_v14 = vadd.f32 %v4687_v61, %v11489_v54 }
 0x37b   : > { %v4808_v63 = vmax.f32 %v6520_v60, 0.0  ;;  %v4807_v59 = vmax.f32 %v6489_v10, 0.0  ;;  %v4047_v17 = vpop.f32.mrb[76].mxu1 }
 0x37c   : > { %4967 = vst [vmem:[%s9662_s28 + $0x1c0] sm:$0xff] %v4806_v62  ;;  %v4809_v0 = vmax.f32 %v6521_v14, 0.0  ;;  %v6490_v1 = vadd.f32 %v4047_v17, %v11478_v52  ;;  %v4691_v2 = vpop.f32.mrb[76].mxu0  ;;  %v4049_v3 = vpop.f32.mrb[77].mxu1 }
 0x37d   : > { %4969 = vst [vmem:[%s9662_s28 + $0x1d0] sm:$0xff] %v4808_v63  ;;  %4968 = vst [vmem:[%s9662_s28 + $0x1c8] sm:$0xff] %v4807_v59  ;;  %v6522_v4 = vadd.f32 %v4691_v2, %v11482_v53  ;;  %v6491_v5 = vadd.f32 %v4049_v3, %v11485_v29  ;;  %v4693_v6 = vpop.f32.mrb[77].mxu0 }
 0x37e   : > { %4970 = vst.msk [vmem:[%s9662_s28 + $0x1d8] sm:$0xff] %vm4919_vm1, %v4809_v0  ;;  %v4816_v7 = vmax.f32 %v6490_v1, 0.0  ;;  %v6523_v27 = vadd.f32 %v4693_v6, %v11489_v54 }
 0x37f   : > { %v4818_v8 = vmax.f32 %v6522_v4, 0.0  ;;  %v4817_v9 = vmax.f32 %v6491_v5, 0.0  ;;  %v4053_v11 = vpop.f32.mrb[78].mxu1 }
 0x380   : > { %4977 = vst [vmem:[%s9662_s28 + $0x210] sm:$0xff] %v4816_v7  ;;  %v4819_v12 = vmax.f32 %v6523_v27, 0.0  ;;  %v6492_v13 = vadd.f32 %v4053_v11, %v11478_v52  ;;  %v4697_v34 = vpop.f32.mrb[78].mxu0  ;;  %v4055_v16 = vpop.f32.mrb[79].mxu1 }
 0x381   : > { %4979 = vst [vmem:[%s9662_s28 + $0x220] sm:$0xff] %v4818_v8  ;;  %4978 = vst [vmem:[%s9662_s28 + $0x218] sm:$0xff] %v4817_v9  ;;  %v6524_v18 = vadd.f32 %v4697_v34, %v11482_v53  ;;  %v6493_v19 = vadd.f32 %v4055_v16, %v11485_v29  ;;  %v4699_v20 = vpop.f32.mrb[79].mxu0 }
 0x382   : > { %4980 = vst.msk [vmem:[%s9662_s28 + $0x228] sm:$0xff] %vm4919_vm1, %v4819_v12  ;;  %v4826_v22 = vmax.f32 %v6492_v13, 0.0  ;;  %v6525_v24 = vadd.f32 %v4699_v20, %v11489_v54 }
 0x383   : > { %v4828_v25 = vmax.f32 %v6524_v18, 0.0  ;;  %v4827_v28 = vmax.f32 %v6493_v19, 0.0  ;;  %v4059_v30 = vpop.f32.mrb[80].mxu1 }
 0x384   : > { %4987 = vst [vmem:[%s9662_s28 + $0x260] sm:$0xff] %v4826_v22  ;;  %v4829_v31 = vmax.f32 %v6525_v24, 0.0  ;;  %v6494_v32 = vadd.f32 %v4059_v30, %v11478_v52  ;;  %v4703_v33 = vpop.f32.mrb[80].mxu0  ;;  %v4061_v35 = vpop.f32.mrb[81].mxu1 }
 0x385   : > { %4989 = vst [vmem:[%s9662_s28 + $0x270] sm:$0xff] %v4828_v25  ;;  %4988 = vst [vmem:[%s9662_s28 + $0x268] sm:$0xff] %v4827_v28  ;;  %v6526_v36 = vadd.f32 %v4703_v33, %v11482_v53  ;;  %v6495_v15 = vadd.f32 %v4061_v35, %v11485_v29  ;;  %v4705_v37 = vpop.f32.mrb[81].mxu0 }
 0x386   : > { %4990 = vst.msk [vmem:[%s9662_s28 + $0x278] sm:$0xff] %vm4919_vm1, %v4829_v31  ;;  %v4836_v38 = vmax.f32 %v6494_v32, 0.0  ;;  %v6527_v39 = vadd.f32 %v4705_v37, %v11489_v54 }
 0x387   : > { %v4838_v21 = vmax.f32 %v6526_v36, 0.0  ;;  %v4837_v40 = vmax.f32 %v6495_v15, 0.0  ;;  %v4065_v23 = vpop.f32.mrb[82].mxu1 }
 0x388   : > { %4997 = vst [vmem:[%s9662_s28 + $0x2b0] sm:$0xff] %v4836_v38  ;;  %v4839_v26 = vmax.f32 %v6527_v39, 0.0  ;;  %v6496_v41 = vadd.f32 %v4065_v23, %v11478_v52  ;;  %v4709_v42 = vpop.f32.mrb[82].mxu0  ;;  %v4067_v43 = vpop.f32.mrb[83].mxu1 }
 0x389   : > { %4999 = vst [vmem:[%s9662_s28 + $0x2c0] sm:$0xff] %v4838_v21  ;;  %4998 = vst [vmem:[%s9662_s28 + $0x2b8] sm:$0xff] %v4837_v40  ;;  %v6528_v44 = vadd.f32 %v4709_v42, %v11482_v53  ;;  %v6497_v45 = vadd.f32 %v4067_v43, %v11485_v29  ;;  %v4711_v46 = vpop.f32.mrb[83].mxu0 }
 0x38a   : > { %5000 = vst.msk [vmem:[%s9662_s28 + $0x2c8] sm:$0xff] %vm4919_vm1, %v4839_v26  ;;  %v4846_v47 = vmax.f32 %v6496_v41, 0.0  ;;  %v6529_v48 = vadd.f32 %v4711_v46, %v11489_v54 }
 0x38b   : > { %v4848_v49 = vmax.f32 %v6528_v44, 0.0  ;;  %v4847_v50 = vmax.f32 %v6497_v45, 0.0  ;;  %v4071_v51 = vpop.f32.mrb[84].mxu1 }
 0x38c   : > { %5007 = vst [vmem:[%s9662_s28 + $0x300] sm:$0xff] %v4846_v47  ;;  %v4849_v55 = vmax.f32 %v6529_v48, 0.0  ;;  %v6498_v56 = vadd.f32 %v4071_v51, %v11478_v52  ;;  %v4715_v57 = vpop.f32.mrb[84].mxu0  ;;  %v4073_v58 = vpop.f32.mrb[85].mxu1 }
 0x38d   : > { %5009 = vst [vmem:[%s9662_s28 + $0x310] sm:$0xff] %v4848_v49  ;;  %5008 = vst [vmem:[%s9662_s28 + $0x308] sm:$0xff] %v4847_v50  ;;  %v6530_v60 = vadd.f32 %v4715_v57, %v11482_v53  ;;  %v6499_v10 = vadd.f32 %v4073_v58, %v11485_v29  ;;  %v4717_v61 = vpop.f32.mrb[85].mxu0 }
 0x38e   : > { %5010 = vst.msk [vmem:[%s9662_s28 + $0x318] sm:$0xff] %vm4919_vm1, %v4849_v55  ;;  %v4856_v62 = vmax.f32 %v6498_v56, 0.0  ;;  %v6531_v14 = vadd.f32 %v4717_v61, %v11489_v54 }
 0x38f   : > { %v4858_v63 = vmax.f32 %v6530_v60, 0.0  ;;  %v4857_v59 = vmax.f32 %v6499_v10, 0.0  ;;  %v4077_v17 = vpop.f32.mrb[86].mxu1 }
 0x390   : > { %5017 = vst [vmem:[%s9662_s28 + $0x350] sm:$0xff] %v4856_v62  ;;  %v4859_v0 = vmax.f32 %v6531_v14, 0.0  ;;  %v6500_v1 = vadd.f32 %v4077_v17, %v11478_v52  ;;  %v4721_v2 = vpop.f32.mrb[86].mxu0  ;;  %v4079_v3 = vpop.f32.mrb[87].mxu1 }
 0x391   : > { %5019 = vst [vmem:[%s9662_s28 + $0x360] sm:$0xff] %v4858_v63  ;;  %5018 = vst [vmem:[%s9662_s28 + $0x358] sm:$0xff] %v4857_v59  ;;  %v6532_v4 = vadd.f32 %v4721_v2, %v11482_v53  ;;  %v6501_v5 = vadd.f32 %v4079_v3, %v11485_v29  ;;  %v4723_v6 = vpop.f32.mrb[87].mxu0 }
 0x392   : > { %5020 = vst.msk [vmem:[%s9662_s28 + $0x368] sm:$0xff] %vm4919_vm1, %v4859_v0  ;;  %v4866_v7 = vmax.f32 %v6500_v1, 0.0  ;;  %v6533_v27 = vadd.f32 %v4723_v6, %v11489_v54 }
 0x393   : > { %v4868_v8 = vmax.f32 %v6532_v4, 0.0  ;;  %v4867_v9 = vmax.f32 %v6501_v5, 0.0  ;;  %v4083_v11 = vpop.f32.mrb[88].mxu1 }
 0x394   : > { %5027 = vst [vmem:[%s9662_s28 + $0x3a0] sm:$0xff] %v4866_v7  ;;  %v4869_v12 = vmax.f32 %v6533_v27, 0.0  ;;  %v6502_v13 = vadd.f32 %v4083_v11, %v11478_v52  ;;  %v4727_v34 = vpop.f32.mrb[88].mxu0  ;;  %v4085_v16 = vpop.f32.mrb[89].mxu1 }
 0x395   : > { %5029 = vst [vmem:[%s9662_s28 + $0x3b0] sm:$0xff] %v4868_v8  ;;  %5028 = vst [vmem:[%s9662_s28 + $0x3a8] sm:$0xff] %v4867_v9  ;;  %v6534_v18 = vadd.f32 %v4727_v34, %v11482_v53  ;;  %v6503_v19 = vadd.f32 %v4085_v16, %v11485_v29  ;;  %v4729_v20 = vpop.f32.mrb[89].mxu0 }
 0x396   : > { %5030 = vst.msk [vmem:[%s9662_s28 + $0x3b8] sm:$0xff] %vm4919_vm1, %v4869_v12  ;;  %v4876_v22 = vmax.f32 %v6502_v13, 0.0  ;;  %v6535_v24 = vadd.f32 %v4729_v20, %v11489_v54 }
 0x397   : > { %v4878_v25 = vmax.f32 %v6534_v18, 0.0  ;;  %v4877_v28 = vmax.f32 %v6503_v19, 0.0  ;;  %v4089_v30 = vpop.f32.mrb[90].mxu1 }
 0x398   : > { %5037 = vst [vmem:[%s9662_s28 + $0x3f0] sm:$0xff] %v4876_v22  ;;  %v4879_v31 = vmax.f32 %v6535_v24, 0.0  ;;  %v6504_v32 = vadd.f32 %v4089_v30, %v11478_v52  ;;  %v4733_v33 = vpop.f32.mrb[90].mxu0  ;;  %v4091_v35 = vpop.f32.mrb[91].mxu1 }
 0x399   : > { %5039 = vst [vmem:[%s9662_s28 + $0x400] sm:$0xff] %v4878_v25  ;;  %5038 = vst [vmem:[%s9662_s28 + $0x3f8] sm:$0xff] %v4877_v28  ;;  %v6536_v36 = vadd.f32 %v4733_v33, %v11482_v53  ;;  %v6505_v15 = vadd.f32 %v4091_v35, %v11485_v29  ;;  %v4735_v37 = vpop.f32.mrb[91].mxu0 }
 0x39a   : > { %5040 = vst.msk [vmem:[%s9662_s28 + $0x408] sm:$0xff] %vm4919_vm1, %v4879_v31  ;;  %v4886_v38 = vmax.f32 %v6504_v32, 0.0  ;;  %v6537_v39 = vadd.f32 %v4735_v37, %v11489_v54 }
 0x39b   : > { %v4888_v21 = vmax.f32 %v6536_v36, 0.0  ;;  %v4887_v40 = vmax.f32 %v6505_v15, 0.0  ;;  %v4095_v23 = vpop.f32.mrb[92].mxu1 }
 0x39c   : > { %5047 = vst [vmem:[%s9662_s28 + $0x440] sm:$0xff] %v4886_v38  ;;  %v4889_v26 = vmax.f32 %v6537_v39, 0.0  ;;  %v6506_v41 = vadd.f32 %v4095_v23, %v11478_v52  ;;  %v4739_v42 = vpop.f32.mrb[92].mxu0  ;;  %v4097_v43 = vpop.f32.mrb[93].mxu1 }
 0x39d   : > { %5049 = vst [vmem:[%s9662_s28 + $0x450] sm:$0xff] %v4888_v21  ;;  %5048 = vst [vmem:[%s9662_s28 + $0x448] sm:$0xff] %v4887_v40  ;;  %v6538_v44 = vadd.f32 %v4739_v42, %v11482_v53  ;;  %v6507_v45 = vadd.f32 %v4097_v43, %v11485_v29  ;;  %v4741_v46 = vpop.f32.mrb[93].mxu0 }
 0x39e   : > { %5050 = vst.msk [vmem:[%s9662_s28 + $0x458] sm:$0xff] %vm4919_vm1, %v4889_v26  ;;  %v4896_v47 = vmax.f32 %v6506_v41, 0.0  ;;  %v6539_v48 = vadd.f32 %v4741_v46, %v11489_v54 }
 0x39f   : > { %v4898_v49 = vmax.f32 %v6538_v44, 0.0  ;;  %v4897_v50 = vmax.f32 %v6507_v45, 0.0  ;;  %v4101_v51 = vpop.f32.mrb[94].mxu1 }
 0x3a0   : > { %5057 = vst [vmem:[%s9662_s28 + $0x490] sm:$0xff] %v4896_v47  ;;  %v4899_v55 = vmax.f32 %v6539_v48, 0.0  ;;  %v6508_v56 = vadd.f32 %v4101_v51, %v11478_v52  ;;  %v4745_v57 = vpop.f32.mrb[94].mxu0  ;;  %v4103_v58 = vpop.f32.mrb[95].mxu1  ;;  %5078 = sbr.rel (!%p7385_p5) target bundleno = 964 (0x3c4), region = 36 }
 0x3a1   : > { %5059 = vst [vmem:[%s9662_s28 + $0x4a0] sm:$0xff] %v4898_v49  ;;  %5058 = vst [vmem:[%s9662_s28 + $0x498] sm:$0xff] %v4897_v50  ;;  %v6540_v60 = vadd.f32 %v4745_v57, %v11482_v53  ;;  %v6509_v10 = vadd.f32 %v4103_v58, %v11485_v29  ;;  %v4747_v61 = vpop.f32.mrb[95].mxu0 }
 0x3a2   : > { %5060 = vst.msk [vmem:[%s9662_s28 + $0x4a8] sm:$0xff] %vm4919_vm1, %v4899_v55  ;;  %v4906_v62 = vmax.f32 %v6508_v56, 0.0  ;;  %v6541_v14 = vadd.f32 %v4747_v61, %v11489_v54 }
 0x3a3   : > { %v4908_v63 = vmax.f32 %v6540_v60, 0.0  ;;  %v4907_v59 = vmax.f32 %v6509_v10, 0.0 }
 0x3a4   : > { %5067 = vst [vmem:[%s9662_s28 + $0x4e0] sm:$0xff] %v4906_v62  ;;  %v4909_v52 = vmax.f32 %v6541_v14, 0.0 }
 0x3a5   : > { %5069 = vst [vmem:[%s9662_s28 + $0x4f0] sm:$0xff] %v4908_v63  ;;  %5068 = vst [vmem:[%s9662_s28 + $0x4e8] sm:$0xff] %v4907_v59 }
 0x3a6   : > { %5070 = vst.msk [vmem:[%s9662_s28 + $0x4f8] sm:$0xff] %vm4919_vm1, %v4909_v52 }
 0x3a7   : > { %s11709_s11 = smov (!%p5081_p11, %s5080_s11), 16 }
 0x3a8   : > { %s11642_s19 = smul.u32 1280, %s11709_s11 }
 0x3aa   : > { %s5086_s24 = ssub.s32 20480, %s11642_s19 }
 0x3ab   : > { %5087 = vsyncadd %s11637_s17, %s5086_s24  ;;  %p5244_p12 = scmp.ne.s32.totalorder %s11642_s19, 0  ;;  %s6992_s5 = smul.u32 20480, %s7368_s16 }
 0x3ac   : > { %s5093_s7 = sshll.u32 %s9662_s28, 4  ;;  %s7324_s8 = smov [#allocation2]   ;;  %s11654_s7 = int_to_ptr.vmem [resolvable:$true] %s5093_s7 }
 0x3ad   : > { %s11652_s26 = scalar_lea.hbm %s11701_s3, %s6992_s5  ;;  %s7259_s9 = scalar_lea.vmem %s11654_s7, %s11642_s19 }
 0x3ae   : > { %p7260_p13 = scmp.ne.s32.totalorder %s11654_s7, %s7259_s9  ;;  %s7263_s27 = sshll.u32 %s7324_s8, 4  ;;  %s7264_s27 = int_to_ptr.vmem [resolvable:$false] %s7263_s27 }
 0x3af   : > { %s7265_s16 = scalar_lea.vmem %s7264_s27, 40960  ;;  %p7266_p2 = scmp.lt.s32.totalorder %s11654_s7, %s7264_s27 }
 0x3b0   : > { %p7261_p0 = pnand %p7260_p13, %p5244_p12  ;;  %p7267_p3 = scmp.lt.s32.totalorder %s7265_s16, %s7259_s9 }
 0x3b2   : > { %p7262_p1 = pneg %p7261_p0  ;;  %p7268_p4 = por %p7267_p3, %p7266_p2 }
 0x3b4   : > { %p7269_p5 = pnand %p7268_p4, %p7262_p1 }
 0x3b6   : > { %7272 = shalt.err (!%p7269_p5)
}
 0x3b7   : > { %s7273_s28 = scalar_lea.hbm %s11652_s26, %s11642_s19  ;;  %s7277_s20 = scalar_lea.hbm %s11701_s3, 198400 }
 0x3b8   : > { %p7274_p7 = scmp.ne.s32.totalorder %s11652_s26, %s7273_s28  ;;  %p7278_p10 = scmp.lt.u32.totalorder %s11652_s26, %s11701_s3 }
 0x3b9   : > { %p7279_p11 = scmp.lt.u32.totalorder %s7277_s20, %s7273_s28  ;;  %p7281_p0 = scmp.lt.u32.totalorder %s7273_s28, %s11652_s26 }
 0x3ba   : > { %p7275_p8 = pnand %p7274_p7, %p5244_p12 }
 0x3bb   : > { %p7280_p13 = por %p7279_p11, %p7278_p10 }
 0x3bc   : > { %p7276_p9 = pneg %p7275_p8 }
 0x3bd   : > { %p7282_p1 = por %p7281_p0, %p7280_p13 }
 0x3bf   : > { %p7283_p2 = pnand %p7282_p1, %p7276_p9 }
 0x3c1   : > { %7286 = shalt.err (!%p7283_p2)
}
 0x3c2   : > { %s7325_s10 = smov 1280   ;;  %s7326_s11 = smov 80  }
 0x3c3   : > { %5099 = dma.vmem_to_hbm [thread:$0]  (%p5244_p12), %s11654_s7, %s11642_s19, %s11652_s26, %s11637_s17, %s7325_s10, %s7325_s10, %s7326_s11  }
 0x3c4 PF: > { %p6998_p3 = scmp.ge.s32.totalorder %s7321_s15, 2  ;;  %s5108_s24 = sand.u32 1, %s7309_s12  }
 0x3c5   : > { %s5109_s5 = scalar_lea.sflag [#allocation3], %s5108_s24 }
 0x3c6   : > { %p6995_p4 = pnand %p6998_p3, %p7389_p6 }
 0x3c8   : > { %7304 = dma.done.wait (!%p6995_p4), %s5109_s5, 20480  }
 0x3c9   : > { %7306 = vsyncadd (!%p6995_p4), %s5109_s5, 4294946816  ;;  %p13_p5 = scmp.ge.s32.totalorder %s7372_s18, 12   ;;  %s11704_s12 = smov %s7313_s13 }
 0x3ca   : > { %s11705_s13 = smov %s7317_s14  ;;  %s11706_s14 = smov %s7383_s21 }
 0x3cb   : > { %s11707_s15 = smov %s7372_s18  ;;  %15 = sbr.rel (!%p13_p5) target bundleno = 3 (0x3), region = 67 }
 0x3d2   :  { %5114 = vsyncpa [#allocation3], 1 }
 0x3d3   :  { %5116 = vsyncpa [#allocation3 + $0x1], 1 }

</bundles_post_ra>
